<compile_context>
chip_gen: v7x
topology: tpu7x:2x2x1
jax: 0.10.0
libtpu: 0.0.40
codegen_flags: <defaults>
</compile_context>

<pallas_src>
import functools

import jax
import jax.numpy as jnp
from jax.experimental import pallas as pl
from jax.experimental.pallas import tpu as pltpu

LEAKY_SLOPE = 0.01   # torch.nn.LeakyReLU default
BN_EPS = 1e-5        # torch.nn.BatchNorm3d default


# ----------------------------------------------------------------------------
# Hardware-aware knobs
# ----------------------------------------------------------------------------
@functools.lru_cache(maxsize=None)
def _device_info():
    """(num_tensorcores, vmem_limit_bytes, native_bf16_dot)."""
    try:
        d = jax.devices()[0]
        kind = d.device_kind.lower()
        platform = d.platform.lower()
    except Exception:        # pragma: no cover - backend init failure
        kind, platform = "", ""
    is_v7 = "v7" in kind
    num_tc = 2 if is_v7 else 1                       # v7x has 2 TCs/chip
    vmem_limit = (48 if is_v7 else 80) * 1024 * 1024  # v7x VMEM is 64 MiB
    native_bf16 = platform == "tpu"
    return num_tc, vmem_limit, native_bf16


def _mxu_in(v):
    # bf16 operands go to the MXU natively on TPU; widen to f32 elsewhere
    # (interpret/CPU execution does not support BF16 x BF16 = F32 dots).
    return v if _device_info()[2] else v.astype(jnp.float32)


def _round_up(x, m):
    return -(-x // m) * m


def _lane_tiles(m, bytes_per_col, num_tc, max_block_bytes=4 << 20):
    """Pick (tile, padded_m) for a lane-tiled operand of m columns."""
    nblk = max(num_tc, pl.cdiv(m * bytes_per_col, max_block_bytes))
    if nblk <= 1:
        return m, m                                   # single full-array block
    tm = _round_up(pl.cdiv(m, nblk), 128)
    return tm, _round_up(m, tm)


def _row_tiles(n, bytes_per_row, num_tc, max_block_bytes=4 << 20):
    """Pick (tile, padded_n) for a sublane(batch)-tiled operand of n rows."""
    nblk = max(num_tc, pl.cdiv(n * bytes_per_row, max_block_bytes))
    if nblk <= 1:
        return n, n
    nb = _round_up(pl.cdiv(n, nblk), 8)
    return nb, _round_up(n, nb)


# ----------------------------------------------------------------------------
# Pallas kernels
# ----------------------------------------------------------------------------
def _gemm_shift_act_kernel(a_ref, b_ref, shift_ref, o_ref, *, act):
    """out = act(A @ B + shift); f32 accumulation, store in o_ref.dtype."""
    acc = jnp.dot(_mxu_in(a_ref[...]), _mxu_in(b_ref[...]),
                  preferred_element_type=jnp.float32)
    y = acc + shift_ref[...]
    if act == "leaky_relu":
        y = jnp.where(y >= 0, y, LEAKY_SLOPE * y)
    o_ref[...] = y.astype(o_ref.dtype)


def _head_kernel(cols_ref, w2_ref, sh2_ref, w1_ref, b1_ref, w3_ref, b3_ref,
                 o_ref):
    """conv2+BN+LeakyReLU -> MaxPool3d(2) -> flatten -> fc1+ReLU -> fc2 -> LogSoftmax."""
    # conv2 as GEMM: rows = (n, od, oh, ow), 8 spatial positions per sample.
    y = jnp.dot(_mxu_in(cols_ref[...]), _mxu_in(w2_ref[...]),
                preferred_element_type=jnp.float32)
    y = y + sh2_ref[...]
    y = jnp.where(y >= 0, y, LEAKY_SLOPE * y)
    # MaxPool3d(2) over the 2x2x2 block + flatten -> (nb, 32) features.
    nb = y.shape[0] // 8
    feats = jnp.max(y.reshape(nb, 8, y.shape[1]), axis=1)
    # Linear(32,128) + ReLU            (Dropout = identity at inference)
    h = jnp.dot(feats, w1_ref[...], preferred_element_type=jnp.float32)
    h = jnp.maximum(h + b1_ref[...], 0.0)
    # Linear(128, num_classes) + LogSoftmax over the class (lane) axis.
    logits = jnp.dot(h, w3_ref[...], preferred_element_type=jnp.float32)
    logits = logits + b3_ref[...]
    mx = jnp.max(logits, axis=-1, keepdims=True)
    s = logits - mx
    o_ref[...] = s - jnp.log(jnp.sum(jnp.exp(s), axis=-1, keepdims=True))


# ----------------------------------------------------------------------------
# pallas_call wrappers
# ----------------------------------------------------------------------------
def conv0_gemm(w0, cols, shift_col):
    """out[16, M] = (W0[16,27] @ cols[27,M]) + shift ; M = N*10^3 on lanes."""
    cout, k = w0.shape
    _, m = cols.shape
    num_tc, vmem_limit, _ = _device_info()
    # Single full block on 1-TC chips; exactly num_tc "parallel" blocks on v7x;
    # byte-capped lane tiles once M grows with batch.
    tm, m_pad = _lane_tiles(m, k * cols.dtype.itemsize, num_tc)
    if m_pad != m:
        cols = jnp.pad(cols, ((0, 0), (0, m_pad - m)))
    out = pl.pallas_call(
        functools.partial(_gemm_shift_act_kernel, act=None),
        out_shape=jax.ShapeDtypeStruct((cout, m_pad), jnp.bfloat16),
        grid=(m_pad // tm,),
        in_specs=[
            pl.BlockSpec((cout, k), lambda i: (0, 0)),    # scaled weights
            pl.BlockSpec((k, tm), lambda i: (0, i)),      # bf16 cols, lane-tiled
            pl.BlockSpec((cout, 1), lambda i: (0, 0)),    # folded BN shift
        ],
        out_specs=pl.BlockSpec((cout, tm), lambda i: (0, i)),
        compiler_params=pltpu.CompilerParams(
            dimension_semantics=("parallel",),
            vmem_limit_bytes=vmem_limit),
    )(w0, cols, shift_col)
    return out[:, :m] if m_pad != m else out


def conv1_gemm(x, w_t, shift_row):
    """y1[N, 2048] = leaky(x[N,2000] @ W_eff^T[2000,2048] + shift) ; batch-tiled."""
    n, k = x.shape
    _, p = w_t.shape
    num_tc, vmem_limit, _ = _device_info()
    nb, n_pad = _row_tiles(n, k * x.dtype.itemsize, num_tc)
    if n_pad != n:
        x = jnp.pad(x, ((0, n_pad - n), (0, 0)))
    out = pl.pallas_call(
        functools.partial(_gemm_shift_act_kernel, act="leaky_relu"),
        out_shape=jax.ShapeDtypeStruct((n_pad, p), jnp.bfloat16),
        grid=(n_pad // nb,),
        in_specs=[
            pl.BlockSpec((nb, k), lambda i: (i, 0)),      # pooled-interior delta
            pl.BlockSpec((k, p), lambda i: (0, 0)),       # densified weight, resident
            pl.BlockSpec((1, p), lambda i: (0, 0)),       # per-output-column shift
        ],
        out_specs=pl.BlockSpec((nb, p), lambda i: (i, 0)),
        compiler_params=pltpu.CompilerParams(
            dimension_semantics=("parallel",),
            vmem_limit_bytes=vmem_limit),
    )(x, w_t, shift_row)
    return out[:n] if n_pad != n else out


def head_call(cols2, w2t, shift2_row, fc1_wt, fc1_b, fc2_wt, fc2_b):
    """Fused conv2+BN+LeakyReLU + MaxPool3d(2) + flatten + fc head, batch-tiled."""
    m, k = cols2.shape
    n = m // 8
    c2 = w2t.shape[1]
    nh = fc1_wt.shape[1]
    nc = fc2_wt.shape[1]
    num_tc, vmem_limit, _ = _device_info()
    nb, n_pad = _row_tiles(n, 8 * k * cols2.dtype.itemsize, num_tc)
    if n_pad != n:
        cols2 = jnp.pad(cols2, ((0, (n_pad - n) * 8), (0, 0)))
    out = pl.pallas_call(
        _head_kernel,
        out_shape=jax.ShapeDtypeStruct((n_pad, nc), jnp.float32),
        grid=(n_pad // nb,),
        in_specs=[
            pl.BlockSpec((nb * 8, k), lambda i: (i, 0)),  # row-major im2col (no .T)
            pl.BlockSpec((k, c2), lambda i: (0, 0)),      # scaled conv2 weight.T
            pl.BlockSpec((1, c2), lambda i: (0, 0)),
            pl.BlockSpec((c2, nh), lambda i: (0, 0)),     # fc1 weight.T
            pl.BlockSpec((1, nh), lambda i: (0, 0)),
            pl.BlockSpec((nh, nc), lambda i: (0, 0)),     # fc2 weight.T
            pl.BlockSpec((1, nc), lambda i: (0, 0)),
        ],
        out_specs=pl.BlockSpec((nb, nc), lambda i: (i, 0)),
        compiler_params=pltpu.CompilerParams(
            dimension_semantics=("parallel",),
            vmem_limit_bytes=vmem_limit),
    )(cols2, w2t, shift2_row, fc1_wt, fc1_b, fc2_wt, fc2_b)
    return out[:n] if n_pad != n else out


# ----------------------------------------------------------------------------
# Small JAX glue (layout plumbing only; all heavy math is in the kernels)
# ----------------------------------------------------------------------------
def _avg_pool2(x):
    """AvgPool3d(kernel=2, stride=2), floor mode, over the last 3 dims."""
    d, h, w = x.shape[-3:]
    x = x[..., : (d // 2) * 2, : (h // 2) * 2, : (w // 2) * 2]
    x = x[..., 0::2] + x[..., 1::2]
    x = x[..., 0::2, :] + x[..., 1::2, :]
    x = x[..., 0::2, :, :] + x[..., 1::2, :, :]
    return x * 0.125


def _im2col_cf(x, k):
    """(C, N, D, H, W) -> cols (C*k^3, N*Do*Ho*Wo)  (valid, stride 1).

    Row order (cin, kd, kh, kw) matches torch weight.reshape(Cout, Cin*k^3);
    column order is n-major over (n, od, oh, ow).
    """
    c, n, d, h, w = x.shape
    do, ho, wo = d - k + 1, h - k + 1, w - k + 1
    patches = []
    for dz in range(k):
        for dy in range(k):
            for dx in range(k):
                patches.append(x[:, :, dz:dz + do, dy:dy + ho, dx:dx + wo])
    p = jnp.stack(patches, axis=1)                 # (C, k^3, N, Do, Ho, Wo)
    return p.reshape(c * k ** 3, n * do * ho * wo), (do, ho, wo)


def _im2col_rows_nc(x, k):
    """(N, C, D, H, W) -> rows (N*Do*Ho*Wo, C*k^3)  (valid, stride 1, row-major)."""
    n, c, d, h, w = x.shape
    do, ho, wo = d - k + 1, h - k + 1, w - k + 1
    patches = []
    for dz in range(k):
        for dy in range(k):
            for dx in range(k):
                patches.append(x[:, :, dz:dz + do, dy:dy + ho, dx:dx + wo])
    p = jnp.stack(patches, axis=-1)                # (N, C, Do, Ho, Wo, k^3)
    p = jnp.transpose(p, (0, 2, 3, 4, 1, 5))       # (N, Do, Ho, Wo, C, k^3)
    return p.reshape(n * do * ho * wo, c * k ** 3)


# ----------------------------------------------------------------------------
# Parameter folding / preprocessing (host side, done once)
# ----------------------------------------------------------------------------
def _bn_fold(gamma, beta, conv_bias, running_mean=0.0, running_var=1.0):
    # Eval-mode BatchNorm folded to a per-channel affine, conv bias folded in.
    # The generalized formula keeps the conv0 zero-skip exact for arbitrary
    # running stats (the exterior pre-BN value is exactly the conv bias).
    scale = gamma / jnp.sqrt(running_var + BN_EPS)
    shift = beta + scale * (conv_bias - running_mean)
    return scale, shift


def prepare_params(raw):
    """Fold BN into weights/shifts and build the densified conv1 weight map."""
    s0, h0 = _bn_fold(raw["bn0_g"], raw["bn0_b"], raw["conv0_b"])
    s1, h1 = _bn_fold(raw["bn1_g"], raw["bn1_b"], raw["conv1_b"])
    s2, h2 = _bn_fold(raw["bn2_g"], raw["bn2_b"], raw["conv2_b"])

    # conv0: BN scale folded into the (16, 27) weight matrix.
    w0 = (raw["conv0_w"].reshape(16, -1) * s0[:, None]).astype(jnp.bfloat16)

    # conv1 densified map: the 11^3 pooled-preprocess field equals h0[c]
    # everywhere except the 5^3 interior at [3:8]^3, and every stride-2 conv1
    # window lies fully inside the field, so
    #   conv1(pre)[co, od,oh,ow] = base[co] + sum_q W_eff[p, q] * delta[q]
    # with delta = pooled_interior - h0, p = co*64+od*16+oh*4+ow,
    # q = ci*125+a*25+b*5+c, and W_eff[p, q] = W1[co,ci, 3+a-2od, 3+b-2oh, 3+c-2ow]
    # (zero when a tap index falls outside [0,5)).
    w1 = raw["conv1_w"]                                     # (32,16,5,5,5)
    w1p = jnp.pad(w1, ((0, 0), (0, 0), (3, 3), (3, 3), (3, 3)))
    idx = 6 + jnp.arange(5)[None, :] - 2 * jnp.arange(4)[:, None]   # (4,5) in [0,10]
    t = w1p[:, :, idx]                      # (co,ci,od,a,kh',kw')
    t = t[:, :, :, :, idx]                  # (co,ci,od,a,oh,b,kw')
    t = t[:, :, :, :, :, :, idx]            # (co,ci,od,a,oh,b,ow,c)
    t = jnp.transpose(t, (0, 2, 4, 6, 1, 3, 5, 7))          # (co,od,oh,ow,ci,a,b,c)
    w_eff = t.reshape(32 * 64, 16 * 125)                    # (2048, 2000)
    w_eff = w_eff * jnp.repeat(s1, 64)[:, None]             # fold BN1 scale
    base = w1.sum(axis=(2, 3, 4)) @ h0                      # (32,) constant field
    shift1_row = jnp.repeat(s1 * base + h1, 64).reshape(1, 32 * 64)

    # conv2: BN scale folded, transposed for the row-major head GEMM.
    w2t = (raw["conv2_w"].reshape(32, -1) * s2[:, None]).T.astype(jnp.bfloat16)

    nh = raw["fc1_w"].shape[0]
    nc = raw["fc2_w"].shape[0]
    return dict(
        w0=w0,
        shift0_col=h0.reshape(16, 1).astype(jnp.float32),
        shift0=h0.astype(jnp.float32),
        w1t=w_eff.T.astype(jnp.bfloat16),                   # (2000, 2048)
        shift1_row=shift1_row.astype(jnp.float32),
        w2t=w2t,
        shift2_row=h2.reshape(1, 32).astype(jnp.float32),
        fc1_wt=raw["fc1_w"].T.astype(jnp.float32),
        fc1_b=raw["fc1_b"].reshape(1, nh).astype(jnp.float32),
        fc2_wt=raw["fc2_w"].T.astype(jnp.float32),
        fc2_b=raw["fc2_b"].reshape(1, nc).astype(jnp.float32),
    )


# ----------------------------------------------------------------------------
# VoxNet forward  (constructor input_shape=(12,12,12) => first_fc_in_features=32)
# ----------------------------------------------------------------------------
def voxnet_forward(x, prep):
    n = x.shape[0]
    xf = x.astype(jnp.float32)

    # preprocess stage 1: AvgPool3d(2)  (N,1,16,16,16) -> channel-major (1,N,8,8,8)
    x_p = _avg_pool2(jnp.transpose(xf, (1, 0, 2, 3, 4)))

    # Conv3d(1,16,3,padding=8) + BN (eval), zero-skipped: only the 10^3 interior
    # of the 22^3 output sees real data; it is a valid k=3 conv on the 2-padded
    # 8^3 input.  Activations are cast to bf16 BEFORE im2col.
    x_int = jnp.pad(x_p, ((0, 0), (0, 0), (2, 2), (2, 2), (2, 2)))
    cols0, (d0, e0, f0) = _im2col_cf(x_int.astype(jnp.bfloat16), 3)  # (27, N*1000)
    y0 = conv0_gemm(prep["w0"], cols0, prep["shift0_col"])           # (16, N*1000) bf16
    y0 = y0.reshape(16, n, d0, e0, f0)
    # TODO(synk): the AvgPool3d(2) below could be fused into the conv0 epilogue
    # (8x less writeback); kept in XLA to avoid an in-kernel lane-dim reshape.

    # AvgPool3d(2) of the interior (pool windows never straddle the interior
    # boundary).  The exterior of the pooled 11^3 field is exactly shift0 and
    # is handled analytically inside the conv1 GEMM, so neither the 22^3 field
    # nor the 11^3 `pre` tensor nor any conv1 im2col is materialized in HBM.
    pooled = _avg_pool2(y0.astype(jnp.float32))                      # (16, N, 5,5,5)
    delta = pooled - prep["shift0"].reshape(16, 1, 1, 1, 1)
    x1 = jnp.transpose(delta, (1, 0, 2, 3, 4)).reshape(n, 16 * 125)

    # Conv3d(16,32,5,stride=2) + BN + LeakyReLU as one dense GEMM.
    y1 = conv1_gemm(x1.astype(jnp.bfloat16), prep["w1t"], prep["shift1_row"])
    y1 = y1.reshape(n, 32, 4, 4, 4)                                  # bf16

    # Conv3d(32,32,3)+BN+LeakyReLU -> MaxPool3d(2) -> flatten -> fc1+ReLU ->
    # fc2 -> LogSoftmax, fused in one batch-tiled Pallas kernel.
    cols2 = _im2col_rows_nc(y1, 3)                                   # (N*8, 864) bf16
    return head_call(cols2, prep["w2t"], prep["shift2_row"],
                     prep["fc1_wt"], prep["fc1_b"],
                     prep["fc2_wt"], prep["fc2_b"])                  # (N, num_classes)


# ----------------------------------------------------------------------------
# Pure-JAX f32 reference (mirrors the PyTorch module, eval mode) for checking
# ----------------------------------------------------------------------------
def _conv3d_ref(x, w, b, *, stride=1, padding=0):
    if padding:
        p = padding
        x = jnp.pad(x, ((0, 0), (0, 0), (p, p), (p, p), (p, p)))
    k = w.shape[2]
    d, h, ww = x.shape[2:]
    do = (d - k) // stride + 1
    ho = (h - k) // stride + 1
    wo = (ww - k) // stride + 1
    acc = jnp.zeros((x.shape[0], w.shape[0], do, ho, wo), jnp.float32)
    for kd in range(k):
        for kh in range(k):
            for kw in range(k):
                xs = x[:, :,
                       kd: kd + stride * (do - 1) + 1: stride,
                       kh: kh + stride * (ho - 1) + 1: stride,
                       kw: kw + stride * (wo - 1) + 1: stride]
                acc = acc + jnp.einsum("ncdhw,oc->nodhw", xs, w[:, :, kd, kh, kw])
    return acc + b.reshape(1, -1, 1, 1, 1)


def voxnet_reference(x, raw):
    def bn(z, g, b):
        s = g / jnp.sqrt(1.0 + BN_EPS)
        return z * s.reshape(1, -1, 1, 1, 1) + b.reshape(1, -1, 1, 1, 1)

    h = _avg_pool2(x.astype(jnp.float32))
    h = _conv3d_ref(h, raw["conv0_w"], raw["conv0_b"], padding=8)
    h = bn(h, raw["bn0_g"], raw["bn0_b"])
    h = _avg_pool2(h)
    h = _conv3d_ref(h, raw["conv1_w"], raw["conv1_b"], stride=2)
    h = bn(h, raw["bn1_g"], raw["bn1_b"])
    h = jnp.where(h >= 0, h, LEAKY_SLOPE * h)
    h = _conv3d_ref(h, raw["conv2_w"], raw["conv2_b"])
    h = bn(h, raw["bn2_g"], raw["bn2_b"])
    h = jnp.where(h >= 0, h, LEAKY_SLOPE * h)
    feats = jnp.max(h.reshape(h.shape[0], h.shape[1], -1), axis=-1)  # MaxPool3d(2)
    z = jnp.maximum(feats @ raw["fc1_w"].T + raw["fc1_b"], 0.0)
    z = z @ raw["fc2_w"].T + raw["fc2_b"]
    return jax.nn.log_softmax(z, axis=-1)


# ----------------------------------------------------------------------------
# Parameter init
# ----------------------------------------------------------------------------
def init_params(key, num_classes=10):
    ks = jax.random.split(key, 16)

    def nrm(k, shape, s=0.1):
        return jax.random.normal(k, shape, dtype=jnp.float32) * s

    return dict(
        conv0_w=nrm(ks[0], (16, 1, 3, 3, 3)), conv0_b=nrm(ks[1], (16,)),
        bn0_g=1.0 + nrm(ks[2], (16,), 0.05), bn0_b=nrm(ks[3], (16,), 0.05),
        conv1_w=nrm(ks[4], (32, 16, 5, 5, 5), 0.05), conv1_b=nrm(ks[5], (32,)),
        bn1_g=1.0 + nrm(ks[6], (32,), 0.05), bn1_b=nrm(ks[7], (32,), 0.05),
        conv2_w=nrm(ks[8], (32, 32, 3, 3, 3), 0.05), conv2_b=nrm(ks[9], (32,)),
        bn2_g=1.0 + nrm(ks[10], (32,), 0.05), bn2_b=nrm(ks[11], (32,), 0.05),
        fc1_w=nrm(ks[12], (128, 32)), fc1_b=nrm(ks[13], (128,)),
        fc2_w=nrm(ks[14], (num_classes, 128)), fc2_b=nrm(ks[15], (num_classes,)),
    )


if __name__ == "__main__":
    # TODO(synk): training-mode stochastic Dropout / BN batch-stat updates are
    # not reproduced; eval-mode (deterministic inference) semantics are used.
    key = jax.random.PRNGKey(0)
    pkey, xkey = jax.random.split(key)
    raw = init_params(pkey, num_classes=10)
    prep = prepare_params(raw)
    # (N,1,16,16,16) -> preprocess -> (N,16,11,11,11) -> body -> (N,32,1,1,1),
    # matching first_fc_in_features = 32 from constructor input_shape=(12,12,12).
    x = jax.random.normal(xkey, (2, 1, 16, 16, 16), dtype=jnp.float32)

    fwd = jax.jit(voxnet_forward)
    out = jax.block_until_ready(fwd(x, prep))
    assert out.shape == (2, 10), out.shape
    assert bool(jnp.all(jnp.isfinite(out)))

    # Check against the pure-JAX f32 reference of the PyTorch module
    # (tolerance covers the bf16 weight/activation rounding used on-chip).
    ref = jax.block_until_ready(jax.jit(voxnet_reference)(x, raw))
    err = float(jnp.max(jnp.abs(out - ref)))
    assert err < 0.15, f"max |kernel - reference| = {err}"

    print("KERNEL_OK")
</pallas_src>

<mosaic_0001>
module attributes {stable_mosaic.version = 11 : i64} {
  func.func @_gemm_shift_act_kernel(%arg0: i32, %arg1: memref<16x27xbf16, #tpu.memory_space<vmem>>, %arg2: memref<27x2000xbf16, #tpu.memory_space<vmem>>, %arg3: memref<16x1xf32, #tpu.memory_space<vmem>>, %arg4: memref<16x2000xbf16, #tpu.memory_space<vmem>>) attributes {dimension_semantics = [#tpu.dimension_semantics<parallel>], iteration_bounds = array<i64: 1>, scalar_prefetch = 0 : i64, scratch_operands = 0 : i64, tpu.core_type = #tpu.core_type<tc>, window_params = [{pipeline_mode = #tpu.pipeline_mode<synchronous>, transform_indices = @transform_0, window_bounds = array<i64: 16, 27>}, {transform_indices = @transform_1, window_bounds = array<i64: 27, 2000>}, {pipeline_mode = #tpu.pipeline_mode<synchronous>, transform_indices = @transform_2, window_bounds = array<i64: 16, 1>}, {transform_indices = @transform_3, window_bounds = array<i64: 16, 2000>}]} {
    %c0 = arith.constant 0 : index
    %c0_0 = arith.constant 0 : index
    %0 = vector.load %arg1[%c0, %c0_0] : memref<16x27xbf16, #tpu.memory_space<vmem>>, vector<16x27xbf16>
    %1 = arith.extf %0 : vector<16x27xbf16> to vector<16x27xf32>
    %c0_1 = arith.constant 0 : index
    %c0_2 = arith.constant 0 : index
    %2 = vector.load %arg2[%c0_1, %c0_2] : memref<27x2000xbf16, #tpu.memory_space<vmem>>, vector<27x2000xbf16>
    %3 = arith.extf %2 : vector<27x2000xbf16> to vector<27x2000xf32>
    %cst = arith.constant dense<0.000000e+00> : vector<16x2000xf32>
    %4 = tpu.matmul %1, %3, %cst {dimension_numbers = #tpu.dot_dimension_numbers<[1], [0], [0], [1], [0, 0, 1, 1], [], []>} : vector<16x27xf32>, vector<27x2000xf32>, vector<16x2000xf32> -> vector<16x2000xf32>
    %c0_3 = arith.constant 0 : index
    %c0_4 = arith.constant 0 : index
    %5 = vector.load %arg3[%c0_3, %c0_4] : memref<16x1xf32, #tpu.memory_space<vmem>>, vector<16x1xf32>
    %6 = vector.broadcast %5 : vector<16x1xf32> to vector<16x2000xf32>
    %7 = arith.addf %4, %6 : vector<16x2000xf32>
    %8 = arith.truncf %7 : vector<16x2000xf32> to vector<16x2000xbf16>
    %c0_5 = arith.constant 0 : index
    %c0_6 = arith.constant 0 : index
    %9 = vector.load %arg4[%c0_5, %c0_6] : memref<16x2000xbf16, #tpu.memory_space<vmem>>, vector<16x2000xbf16>
    tpu.vector_store %arg4[%c0_5, %c0_6], %8 {strides = array<i32>} : memref<16x2000xbf16, #tpu.memory_space<vmem>>, vector<16x2000xbf16>,
    return
  }
  func.func @transform_0(%arg0: i32) -> (i32, i32) {
    %c0_i32 = arith.constant 0 : i32
    %c0_i32_0 = arith.constant 0 : i32
    %c0_i32_1 = arith.constant 0 : i32
    return %c0_i32, %c0_i32_0 : i32, i32
  }
  func.func @transform_1(%arg0: i32) -> (i32, i32) {
    %c0_i32 = arith.constant 0 : i32
    %c0_i32_0 = arith.constant 0 : i32
    return %c0_i32, %arg0 : i32, i32
  }
  func.func @transform_2(%arg0: i32) -> (i32, i32) {
    %c0_i32 = arith.constant 0 : i32
    %c0_i32_0 = arith.constant 0 : i32
    %c0_i32_1 = arith.constant 0 : i32
    return %c0_i32, %c0_i32_0 : i32, i32
  }
  func.func @transform_3(%arg0: i32) -> (i32, i32) {
    %c0_i32 = arith.constant 0 : i32
    %c0_i32_0 = arith.constant 0 : i32
    return %c0_i32, %arg0 : i32, i32
  }
}

module attributes {stable_mosaic.version = 11 : i64} {
  func.func @_gemm_shift_act_kernel(%arg0: i32, %arg1: memref<2x2000xbf16, #tpu.memory_space<vmem>>, %arg2: memref<2000x2048xbf16, #tpu.memory_space<vmem>>, %arg3: memref<1x2048xf32, #tpu.memory_space<vmem>>, %arg4: memref<2x2048xbf16, #tpu.memory_space<vmem>>) attributes {dimension_semantics = [#tpu.dimension_semantics<parallel>], iteration_bounds = array<i64: 1>, scalar_prefetch = 0 : i64, scratch_operands = 0 : i64, tpu.core_type = #tpu.core_type<tc>, window_params = [{transform_indices = @transform_0, window_bounds = array<i64: 2, 2000>}, {pipeline_mode = #tpu.pipeline_mode<synchronous>, transform_indices = @transform_1, window_bounds = array<i64: 2000, 2048>}, {pipeline_mode = #tpu.pipeline_mode<synchronous>, transform_indices = @transform_2, window_bounds = array<i64: 1, 2048>}, {transform_indices = @transform_3, window_bounds = array<i64: 2, 2048>}]} {
    %c0 = arith.constant 0 : index
    %c0_0 = arith.constant 0 : index
    %0 = vector.load %arg1[%c0, %c0_0] : memref<2x2000xbf16, #tpu.memory_space<vmem>>, vector<2x2000xbf16>
    %1 = arith.extf %0 : vector<2x2000xbf16> to vector<2x2000xf32>
    %c0_1 = arith.constant 0 : index
    %c0_2 = arith.constant 0 : index
    %2 = vector.load %arg2[%c0_1, %c0_2] : memref<2000x2048xbf16, #tpu.memory_space<vmem>>, vector<2000x2048xbf16>
    %3 = arith.extf %2 : vector<2000x2048xbf16> to vector<2000x2048xf32>
    %cst = arith.constant dense<0.000000e+00> : vector<2x2048xf32>
    %4 = tpu.matmul %1, %3, %cst {dimension_numbers = #tpu.dot_dimension_numbers<[1], [0], [0], [1], [0, 0, 1, 1], [], []>} : vector<2x2000xf32>, vector<2000x2048xf32>, vector<2x2048xf32> -> vector<2x2048xf32>
    %c0_3 = arith.constant 0 : index
    %c0_4 = arith.constant 0 : index
    %5 = vector.load %arg3[%c0_3, %c0_4] : memref<1x2048xf32, #tpu.memory_space<vmem>>, vector<1x2048xf32>
    %6 = vector.broadcast %5 : vector<1x2048xf32> to vector<2x2048xf32>
    %7 = arith.addf %4, %6 : vector<2x2048xf32>
    %cst_5 = arith.constant 0.000000e+00 : f32
    %8 = vector.broadcast %cst_5 : f32 to vector<2x2048xf32>
    %9 = arith.cmpf oge, %7, %8 : vector<2x2048xf32>
    %cst_6 = arith.constant 0.00999999977 : f32
    %10 = vector.broadcast %cst_6 : f32 to vector<2x2048xf32>
    %11 = arith.mulf %10, %7 : vector<2x2048xf32>
    %12 = arith.select %9, %7, %11 : vector<2x2048xi1>, vector<2x2048xf32>
    %13 = arith.truncf %12 : vector<2x2048xf32> to vector<2x2048xbf16>
    %c0_7 = arith.constant 0 : index
    %c0_8 = arith.constant 0 : index
    %14 = vector.load %arg4[%c0_7, %c0_8] : memref<2x2048xbf16, #tpu.memory_space<vmem>>, vector<2x2048xbf16>
    tpu.vector_store %arg4[%c0_7, %c0_8], %13 {strides = array<i32>} : memref<2x2048xbf16, #tpu.memory_space<vmem>>, vector<2x2048xbf16>,
    return
  }
  func.func @transform_0(%arg0: i32) -> (i32, i32) {
    %c0_i32 = arith.constant 0 : i32
    %c0_i32_0 = arith.constant 0 : i32
    return %arg0, %c0_i32 : i32, i32
  }
  func.func @transform_1(%arg0: i32) -> (i32, i32) {
    %c0_i32 = arith.constant 0 : i32
    %c0_i32_0 = arith.constant 0 : i32
    %c0_i32_1 = arith.constant 0 : i32
    return %c0_i32, %c0_i32_0 : i32, i32
  }
  func.func @transform_2(%arg0: i32) -> (i32, i32) {
    %c0_i32 = arith.constant 0 : i32
    %c0_i32_0 = arith.constant 0 : i32
    %c0_i32_1 = arith.constant 0 : i32
    return %c0_i32, %c0_i32_0 : i32, i32
  }
  func.func @transform_3(%arg0: i32) -> (i32, i32) {
    %c0_i32 = arith.constant 0 : i32
    %c0_i32_0 = arith.constant 0 : i32
    return %arg0, %c0_i32 : i32, i32
  }
}

module attributes {stable_mosaic.version = 11 : i64} {
  func.func @_head_kernel(%arg0: i32, %arg1: memref<16x864xbf16, #tpu.memory_space<vmem>>, %arg2: memref<864x32xbf16, #tpu.memory_space<vmem>>, %arg3: memref<1x32xf32, #tpu.memory_space<vmem>>, %arg4: memref<32x128xf32, #tpu.memory_space<vmem>>, %arg5: memref<1x128xf32, #tpu.memory_space<vmem>>, %arg6: memref<128x10xf32, #tpu.memory_space<vmem>>, %arg7: memref<1x10xf32, #tpu.memory_space<vmem>>, %arg8: memref<2x10xf32, #tpu.memory_space<vmem>>) attributes {dimension_semantics = [#tpu.dimension_semantics<parallel>], iteration_bounds = array<i64: 1>, scalar_prefetch = 0 : i64, scratch_operands = 0 : i64, tpu.core_type = #tpu.core_type<tc>, window_params = [{transform_indices = @transform_0, window_bounds = array<i64: 16, 864>}, {pipeline_mode = #tpu.pipeline_mode<synchronous>, transform_indices = @transform_1, window_bounds = array<i64: 864, 32>}, {pipeline_mode = #tpu.pipeline_mode<synchronous>, transform_indices = @transform_2, window_bounds = array<i64: 1, 32>}, {pipeline_mode = #tpu.pipeline_mode<synchronous>, transform_indices = @transform_3, window_bounds = array<i64: 32, 128>}, {pipeline_mode = #tpu.pipeline_mode<synchronous>, transform_indices = @transform_4, window_bounds = array<i64: 1, 128>}, {pipeline_mode = #tpu.pipeline_mode<synchronous>, transform_indices = @transform_5, window_bounds = array<i64: 128, 10>}, {pipeline_mode = #tpu.pipeline_mode<synchronous>, transform_indices = @transform_6, window_bounds = array<i64: 1, 10>}, {transform_indices = @transform_7, window_bounds = array<i64: 2, 10>}]} {
    %c0 = arith.constant 0 : index
    %c0_0 = arith.constant 0 : index
    %0 = vector.load %arg1[%c0, %c0_0] : memref<16x864xbf16, #tpu.memory_space<vmem>>, vector<16x864xbf16>
    %1 = arith.extf %0 : vector<16x864xbf16> to vector<16x864xf32>
    %c0_1 = arith.constant 0 : index
    %c0_2 = arith.constant 0 : index
    %2 = vector.load %arg2[%c0_1, %c0_2] : memref<864x32xbf16, #tpu.memory_space<vmem>>, vector<864x32xbf16>
    %3 = arith.extf %2 : vector<864x32xbf16> to vector<864x32xf32>
    %cst = arith.constant dense<0.000000e+00> : vector<16x32xf32>
    %4 = tpu.matmul %1, %3, %cst {dimension_numbers = #tpu.dot_dimension_numbers<[1], [0], [0], [1], [0, 0, 1, 1], [], []>} : vector<16x864xf32>, vector<864x32xf32>, vector<16x32xf32> -> vector<16x32xf32>
    %c0_3 = arith.constant 0 : index
    %c0_4 = arith.constant 0 : index
    %5 = vector.load %arg3[%c0_3, %c0_4] : memref<1x32xf32, #tpu.memory_space<vmem>>, vector<1x32xf32>
    %6 = vector.broadcast %5 : vector<1x32xf32> to vector<16x32xf32>
    %7 = arith.addf %4, %6 : vector<16x32xf32>
    %cst_5 = arith.constant 0.000000e+00 : f32
    %8 = vector.broadcast %cst_5 : f32 to vector<16x32xf32>
    %9 = arith.cmpf oge, %7, %8 : vector<16x32xf32>
    %cst_6 = arith.constant 0.00999999977 : f32
    %10 = vector.broadcast %cst_6 : f32 to vector<16x32xf32>
    %11 = arith.mulf %10, %7 : vector<16x32xf32>
    %12 = arith.select %9, %7, %11 : vector<16x32xi1>, vector<16x32xf32>
    %13 = vector.shape_cast %12 : vector<16x32xf32> to vector<2x8x32xf32>
    %cst_7 = arith.constant dense<0xFF800000> : vector<2x32xf32>
    %14 = vector.multi_reduction <maximumf>, %13, %cst_7 [1] : vector<2x8x32xf32> to vector<2x32xf32>
    %c0_8 = arith.constant 0 : index
    %c0_9 = arith.constant 0 : index
    %15 = vector.load %arg4[%c0_8, %c0_9] : memref<32x128xf32, #tpu.memory_space<vmem>>, vector<32x128xf32>
    %cst_10 = arith.constant dense<0.000000e+00> : vector<2x128xf32>
    %16 = tpu.matmul %14, %15, %cst_10 {dimension_numbers = #tpu.dot_dimension_numbers<[1], [0], [0], [1], [0, 0, 1, 1], [], []>} : vector<2x32xf32>, vector<32x128xf32>, vector<2x128xf32> -> vector<2x128xf32>
    %c0_11 = arith.constant 0 : index
    %c0_12 = arith.constant 0 : index
    %17 = vector.load %arg5[%c0_11, %c0_12] : memref<1x128xf32, #tpu.memory_space<vmem>>, vector<1x128xf32>
    %18 = vector.broadcast %17 : vector<1x128xf32> to vector<2x128xf32>
    %19 = arith.addf %16, %18 : vector<2x128xf32>
    %cst_13 = arith.constant 0.000000e+00 : f32
    %20 = vector.broadcast %cst_13 : f32 to vector<2x128xf32>
    %21 = arith.maximumf %19, %20 : vector<2x128xf32>
    %c0_14 = arith.constant 0 : index
    %c0_15 = arith.constant 0 : index
    %22 = vector.load %arg6[%c0_14, %c0_15] : memref<128x10xf32, #tpu.memory_space<vmem>>, vector<128x10xf32>
    %cst_16 = arith.constant dense<0.000000e+00> : vector<2x10xf32>
    %23 = tpu.matmul %21, %22, %cst_16 {dimension_numbers = #tpu.dot_dimension_numbers<[1], [0], [0], [1], [0, 0, 1, 1], [], []>} : vector<2x128xf32>, vector<128x10xf32>, vector<2x10xf32> -> vector<2x10xf32>
    %c0_17 = arith.constant 0 : index
    %c0_18 = arith.constant 0 : index
    %24 = vector.load %arg7[%c0_17, %c0_18] : memref<1x10xf32, #tpu.memory_space<vmem>>, vector<1x10xf32>
    %25 = vector.broadcast %24 : vector<1x10xf32> to vector<2x10xf32>
    %26 = arith.addf %23, %25 : vector<2x10xf32>
    %cst_19 = arith.constant dense<0xFF800000> : vector<2xf32>
    %27 = vector.multi_reduction <maximumf>, %26, %cst_19 [1] : vector<2x10xf32> to vector<2xf32>
    %28 = vector.shape_cast %27 : vector<2xf32> to vector<2x1xf32>
    %29 = vector.broadcast %28 : vector<2x1xf32> to vector<2x10xf32>
    %30 = arith.subf %26, %29 : vector<2x10xf32>
    %31 = math.exp %30 : vector<2x10xf32>
    %cst_20 = arith.constant dense<0.000000e+00> : vector<2xf32>
    %32 = vector.multi_reduction <add>, %31, %cst_20 [1] : vector<2x10xf32> to vector<2xf32>
    %33 = vector.shape_cast %32 : vector<2xf32> to vector<2x1xf32>
    %34 = math.log %33 : vector<2x1xf32>
    %35 = vector.broadcast %34 : vector<2x1xf32> to vector<2x10xf32>
    %36 = arith.subf %30, %35 : vector<2x10xf32>
    %c0_21 = arith.constant 0 : index
    %c0_22 = arith.constant 0 : index
    %37 = vector.load %arg8[%c0_21, %c0_22] : memref<2x10xf32, #tpu.memory_space<vmem>>, vector<2x10xf32>
    tpu.vector_store %arg8[%c0_21, %c0_22], %36 {strides = array<i32>} : memref<2x10xf32, #tpu.memory_space<vmem>>, vector<2x10xf32>,
    return
  }
  func.func @transform_0(%arg0: i32) -> (i32, i32) {
    %c0_i32 = arith.constant 0 : i32
    %c0_i32_0 = arith.constant 0 : i32
    return %arg0, %c0_i32 : i32, i32
  }
  func.func @transform_1(%arg0: i32) -> (i32, i32) {
    %c0_i32 = arith.constant 0 : i32
    %c0_i32_0 = arith.constant 0 : i32
    %c0_i32_1 = arith.constant 0 : i32
    return %c0_i32, %c0_i32_0 : i32, i32
  }
  func.func @transform_2(%arg0: i32) -> (i32, i32) {
    %c0_i32 = arith.constant 0 : i32
    %c0_i32_0 = arith.constant 0 : i32
    %c0_i32_1 = arith.constant 0 : i32
    return %c0_i32, %c0_i32_0 : i32, i32
  }
  func.func @transform_3(%arg0: i32) -> (i32, i32) {
    %c0_i32 = arith.constant 0 : i32
    %c0_i32_0 = arith.constant 0 : i32
    %c0_i32_1 = arith.constant 0 : i32
    return %c0_i32, %c0_i32_0 : i32, i32
  }
  func.func @transform_4(%arg0: i32) -> (i32, i32) {
    %c0_i32 = arith.constant 0 : i32
    %c0_i32_0 = arith.constant 0 : i32
    %c0_i32_1 = arith.constant 0 : i32
    return %c0_i32, %c0_i32_0 : i32, i32
  }
  func.func @transform_5(%arg0: i32) -> (i32, i32) {
    %c0_i32 = arith.constant 0 : i32
    %c0_i32_0 = arith.constant 0 : i32
    %c0_i32_1 = arith.constant 0 : i32
    return %c0_i32, %c0_i32_0 : i32, i32
  }
  func.func @transform_6(%arg0: i32) -> (i32, i32) {
    %c0_i32 = arith.constant 0 : i32
    %c0_i32_0 = arith.constant 0 : i32
    %c0_i32_1 = arith.constant 0 : i32
    return %c0_i32, %c0_i32_0 : i32, i32
  }
  func.func @transform_7(%arg0: i32) -> (i32, i32) {
    %c0_i32 = arith.constant 0 : i32
    %c0_i32_0 = arith.constant 0 : i32
    return %arg0, %c0_i32 : i32, i32
  }
}

</mosaic_0001>

<bundles_post_ra>
// kernel: voxnet_forward.3
= control target key start
LH: loop header
LB: loop body
LE: loop exit
PB: predicated region body
PF: predicated region fallthrough
CT: control target
= control target key end

     0   :  { %8 = vsyncpa [#allocation3], 0  ;;  %s1480_s0 = inlined_call_operand.hbm [shape: bf16[16,27], index: 0, kind: input, shape index: {}]   ;;  %s1481_s1 = inlined_call_operand.hbm [shape: bf16[27,2000], index: 1, kind: input, shape index: {}]   ;;  %s1482_s2 = inlined_call_operand.hbm [shape: f32[16,1], index: 2, kind: input, shape index: {}]   ;;  %s1483_s3 = inlined_call_operand.hbm [shape: bf16[16,2000], index: 3, kind: output, shape index: {}]  }
   0x1   :  { %9 = vsyncpa [#allocation6], 0 }
   0x2   :  { %10 = vsyncpa [#allocation4], 0  ;;  %s1260_s12 = smov [#allocation5]   ;;  %s1166_s16 = scalar_lea.hbm %s1481_s1, 4096 }
   0x3   :  { %s28_s13 = sshll.u32 %s1260_s12, 4  ;;  %p1167_p0 = scmp.ne.s32.totalorder %s1481_s1, %s1166_s16  ;;  %s29_s13 = int_to_ptr.vmem [resolvable:$true] %s28_s13 }
   0x4   :  { %p1170_p1 = scmp.lt.u32.totalorder %s1166_s16, %s1481_s1 }
   0x6   :  { %p1172_p2 = pnand %p1170_p1, %p1167_p0 }
   0x8   :  { %1175 = shalt.err (!%p1172_p2)
}
   0x9   :  { %s1176_s21 = scalar_lea.vmem %s29_s13, 4096  ;;  %p1181_p4 = scmp.lt.s32.totalorder %s29_s13, %s29_s13 }
   0xa   :  { %p1177_p3 = scmp.ne.s32.totalorder %s29_s13, %s1176_s21  ;;  %p1182_p5 = scmp.lt.s32.totalorder %s1176_s21, %s1176_s21 }
   0xc   :  { %p1183_p6 = por %p1182_p5, %p1181_p4 }
   0xe   :  { %p1184_p7 = pnand %p1183_p6, %p1177_p3 }
  0x10   :  { %1187 = shalt.err (!%p1184_p7)
}
  0x11   :  { %s1261_s22 = smov 1024   ;;  %s1262_s23 = smov 64  }
  0x12   :  { %34 = dma.hbm_to_vmem [thread:$0]  %s1481_s1, 4096, %s29_s13, [#allocation6], %s1261_s22, %s1261_s22, %s1262_s23  }
  0x13   :  { %s1263_s26 = smov [#allocation2]   ;;  %s1188_s30 = scalar_lea.hbm %s1480_s0, 128 }
  0x14   :  { %s16_s27 = sshll.u32 %s1263_s26, 4  ;;  %p1189_p8 = scmp.ne.s32.totalorder %s1480_s0, %s1188_s30  ;;  %s17_s27 = int_to_ptr.vmem [resolvable:$true] %s16_s27 }
  0x15   :  { %p1192_p9 = scmp.lt.u32.totalorder %s1188_s30, %s1480_s0 }
  0x17   :  { %p1194_p10 = pnand %p1192_p9, %p1189_p8 }
  0x19   :  { %1197 = shalt.err (!%p1194_p10)
}
  0x1a   :  { %s1198_s8 = scalar_lea.vmem %s17_s27, 128  ;;  %p1203_p12 = scmp.lt.s32.totalorder %s17_s27, %s17_s27 }
  0x1b   :  { %p1199_p11 = scmp.ne.s32.totalorder %s17_s27, %s1198_s8  ;;  %p1204_p13 = scmp.lt.s32.totalorder %s1198_s8, %s1198_s8 }
  0x1d   :  { %p1205_p0 = por %p1204_p13, %p1203_p12 }
  0x1f   :  { %p1206_p1 = pnand %p1205_p0, %p1199_p11 }
  0x21   :  { %1209 = shalt.err (!%p1206_p1)
}
  0x22   :  { %s1264_s1 = smov 4   ;;  %s1265_s11 = smov [#allocation7]  }
  0x23   :  { %22 = dma.hbm_to_vmem [thread:$0]  %s1480_s0, 128, %s17_s27, [#allocation3], %s1262_s23, %s1262_s23, %s1264_s1  }
  0x24   :  { %s40_s12 = sshll.u32 %s1265_s11, 4  ;;  %s1210_s15 = scalar_lea.hbm %s1482_s2, 256  ;;  %s41_s12 = int_to_ptr.vmem [resolvable:$true] %s40_s12 }
  0x25   :  { %p1211_p2 = scmp.ne.s32.totalorder %s1482_s2, %s1210_s15  ;;  %p1214_p3 = scmp.lt.u32.totalorder %s1210_s15, %s1482_s2 }
  0x27   :  { %p1216_p4 = pnand %p1214_p3, %p1211_p2 }
  0x29   :  { %1219 = shalt.err (!%p1216_p4)
}
  0x2a   :  { %s1220_s20 = scalar_lea.vmem %s41_s12, 256  ;;  %p1225_p6 = scmp.lt.s32.totalorder %s41_s12, %s41_s12 }
  0x2b   :  { %p1221_p5 = scmp.ne.s32.totalorder %s41_s12, %s1220_s20  ;;  %p1226_p7 = scmp.lt.s32.totalorder %s1220_s20, %s1220_s20 }
  0x2d   :  { %p1227_p8 = por %p1226_p7, %p1225_p6 }
  0x2f   :  { %p1228_p9 = pnand %p1227_p8, %p1221_p5 }
  0x31   :  { %1231 = shalt.err (!%p1228_p9)
}
  0x32   :  { %s1266_s0 = smov 128   ;;  %s1267_s21 = smov 8  }
  0x33   :  { %46 = dma.hbm_to_vmem [thread:$0]  %s1482_s2, 256, %s41_s12, [#allocation6], %s1266_s0, %s1266_s0, %s1267_s21  }
  0x34   :  { %1254 = dma.done.wait [#allocation3], 128  }
  0x35   :  { %1255 = vsyncadd [#allocation3], 4294967168 }
  0x36   :  { %1256 = dma.done.wait [#allocation6], 4352  }
  0x37   :  { %1257 = vsyncadd [#allocation6], 4294962944  ;;  %v1268_v0 = vmov 0.0   ;;  %v1269_v1 = vmov 0   ;;  %vm175_vm0 = vcmask 1042432   ;;  %v60_v2 = vld [vmem:[#allocation5] sm:$0xff] }
  0x38   :  { %288 = vmatprep.mubr.f32.mxu0 %v1268_v0  ;;  %365 = vmatprep.mubr.f32.mxu1 %v1268_v0  ;;  %v68_v3 = vld [vmem:[#allocation5 + $0x40] sm:$0xff]  ;;  %v61_v4 = vld [vmem:[#allocation5 + $0x8] sm:$0xff]  ;;  %vm1270_vm1 = vmmov 1   ;;  %v62_v17 = vld [vmem:[#allocation5 + $0x10] sm:$0xff]  ;;  %vm168_vm3 = vcmask 220160   ;;  %vm943_vm4 = vcmask 1043456  }
  0x39   :  { %1165 = vset.pattern.permute.xlu0 %v1269_v1  ;;  %v1121_v5 = vcombine.high %v60_v2, %v68_v3  ;;  %v69_v6 = vld [vmem:[#allocation5 + $0x48] sm:$0xff]  ;;  %v1122_v7 = vcombine.low %v60_v2, %v68_v3  ;;  %v76_v8 = vld [vmem:[#allocation5 + $0x80] sm:$0xff]  ;;  %vm1335_vm2 = vmpackc.low %vm175_vm0, %vm1270_vm1  ;;  %vm944_vm5 = vcmask 654340   ;;  %s1271_s2 = smov [#allocation8]  }
  0x3a   :  { %v84_v9 = vld [vmem:[#allocation5 + $0xc0] sm:$0x33]  ;;  %v1125_v10 = vcombine.high %v61_v4, %v69_v6  ;;  %v1126_v11 = vcombine.low %v61_v4, %v69_v6  ;;  %v77_v14 = vld [vmem:[#allocation5 + $0x88] sm:$0xff]  ;;  %v70_v18 = vld [vmem:[#allocation5 + $0x50] sm:$0xff]  ;;  %s960_s26 = sshll.u32 %s1271_s2, 4  ;;  %s961_s26 = int_to_ptr.vmem [resolvable:$true] %s960_s26 }
  0x3b   :  { %v1123_v12 = vcombine.high %v76_v8, %v84_v9  ;;  %v85_v15 = vld [vmem:[#allocation5 + $0xc8] sm:$0x33]  ;;  %1042 = vmatprep.subr.bf16.mxu0 %v1121_v5  ;;  %v63_v19 = vld [vmem:[#allocation5 + $0x18] sm:$0xff]  ;;  %v1124_v20 = vcombine.low %v76_v8, %v84_v9  ;;  %v1129_v24 = vcombine.high %v62_v17, %v70_v18  ;;  %v78_v27 = vld [vmem:[#allocation5 + $0x90] sm:$0xff]  ;;  %v1130_v29 = vcombine.low %v62_v17, %v70_v18  ;;  %s1232_s27 = scalar_lea.vmem %s961_s26, 2048  ;;  %p1237_p11 = scmp.lt.s32.totalorder %s961_s26, %s961_s26 }
  0x3c   :  { %v1127_v16 = vcombine.high %v77_v14, %v85_v15  ;;  %1052 = vmatprep.subr.bf16.mxu1 %v1125_v10  ;;  %1044 = vmatpush1.bf16.msra.mxu0 %v1122_v7  ;;  %v1038_v21 = vld [vmem:[#allocation2] sm:$0xff]   ;;  %v1128_v23 = vcombine.low %v77_v14, %v85_v15  ;;  %v86_v28 = vld [vmem:[#allocation5 + $0xd0] sm:$0x33]  ;;  %v64_v36 = vld [vmem:[#allocation5 + $0x20] sm:$0xff]  ;;  %p1233_p10 = scmp.ne.s32.totalorder %s961_s26, %s1232_s27  ;;  %p1238_p12 = scmp.lt.s32.totalorder %s1232_s27, %s1232_s27 }
  0x3d   :  { %v71_v22 = vld [vmem:[#allocation5 + $0x58] sm:$0xff]  ;;  %1054 = vmatpush1.bf16.msra.mxu1 %v1126_v11  ;;  %1047 = vmatprep.subr.msk.bf16.mxu0 %vm1335_vm2, %v1123_v12  ;;  %v1343_v26 = vunpack.c.l.bf16 %v1038_v21  ;;  %v1131_v33 = vcombine.high %v78_v27, %v86_v28  ;;  %v1351_v34 = vunpack.c.h.bf16 %v1038_v21  ;;  %v72_v37 = vld [vmem:[#allocation5 + $0x60] sm:$0xff]  ;;  %v1132_v38 = vcombine.low %v78_v27, %v86_v28  ;;  %v65_v39 = vld [vmem:[#allocation5 + $0x28] sm:$0xff] }
  0x3e   :  { %1057 = vmatprep.subr.msk.bf16.mxu1 %vm1335_vm2, %v1127_v16  ;;  %v1133_v25 = vcombine.high %v63_v19, %v71_v22  ;;  %v79_v30 = vld [vmem:[#allocation5 + $0x98] sm:$0xff]  ;;  %v1134_v32 = vcombine.low %v63_v19, %v71_v22  ;;  %v73_v40 = vld [vmem:[#allocation5 + $0x68] sm:$0xff]  ;;  %v1137_v42 = vcombine.high %v64_v36, %v72_v37  ;;  %v80_v44 = vld [vmem:[#allocation5 + $0xa0] sm:$0xff]  ;;  %v1138_v46 = vcombine.low %v64_v36, %v72_v37  ;;  %p1239_p13 = por %p1238_p12, %p1237_p11 }
  0x3f   :  { %v87_v31 = vld [vmem:[#allocation5 + $0xd8] sm:$0x33]  ;;  %v1141_v43 = vcombine.high %v65_v39, %v73_v40  ;;  %v88_v45 = vld [vmem:[#allocation5 + $0xe0] sm:$0x33]  ;;  %v81_v47 = vld [vmem:[#allocation5 + $0xa8] sm:$0xff]  ;;  %v1142_v49 = vcombine.low %v65_v39, %v73_v40 }
  0x40   :  { %1050 = vmatpush1.bf16.msk.msra.mxu0 %vm1335_vm2, %v1124_v20  ;;  %v1135_v35 = vcombine.high %v79_v30, %v87_v31  ;;  %v1136_v41 = vcombine.low %v79_v30, %v87_v31  ;;  %v89_v48 = vld [vmem:[#allocation5 + $0xe8] sm:$0x33]  ;;  %v1139_v50 = vcombine.high %v80_v44, %v88_v45  ;;  %v66_v52 = vld [vmem:[#allocation5 + $0x30] sm:$0xff]  ;;  %v1140_v54 = vcombine.low %v80_v44, %v88_v45  ;;  %v67_v55 = vld [vmem:[#allocation5 + $0x38] sm:$0xff]  ;;  %p1240_p0 = pnand %p1239_p13, %p1233_p10 }
  0x41   :  { %1060 = vmatpush1.bf16.msk.msra.mxu1 %vm1335_vm2, %v1128_v23  ;;  %1062 = vmatprep.subr.bf16.mxu0 %v1129_v24  ;;  %v1143_v51 = vcombine.high %v81_v47, %v89_v48  ;;  %v74_v53 = vld [vmem:[#allocation5 + $0x70] sm:$0xff]  ;;  %v75_v56 = vld [vmem:[#allocation5 + $0x78] sm:$0xff]  ;;  %v1144_v57 = vcombine.low %v81_v47, %v89_v48  ;;  %v156_v7 = vld [vmem:[#allocation7] sm:$0xff] }
  0x42   :  { %1072 = vmatprep.subr.bf16.mxu1 %v1133_v25  ;;  %v1145_v58 = vcombine.high %v66_v52, %v74_v53  ;;  %v1149_v59 = vcombine.high %v67_v55, %v75_v56  ;;  %v82_v60 = vld [vmem:[#allocation5 + $0xb0] sm:$0xff]  ;;  %v1146_v62 = vcombine.low %v66_v52, %v74_v53  ;;  %v83_v63 = vld [vmem:[#allocation5 + $0xb8] sm:$0xff]  ;;  %v1150_v2 = vcombine.low %v67_v55, %v75_v56  ;;  %v157_v8 = vld [vmem:[#allocation7 + $0x8] sm:$0xff] }
  0x43   :  { %975 = vmatmul.mubr.msk.f32.vlgmr.msra.gmra.mrb[0].mxu0 %vm168_vm3, %v1343_v26  ;;  %v90_v61 = vld [vmem:[#allocation5 + $0xf0] sm:$0x33]  ;;  %v91_v1 = vld [vmem:[#allocation5 + $0xf8] sm:$0x33]  ;;  %160 = vperm.xlu0 %1165, %v156_v7   ;;  %vm1453_vm6 = vmor %vm944_vm5, %vm943_vm4 }
  0x44   :  { %979 = vmatmul.mubr.msk.f32.vlgmr.msra.gmra.mrb[0].mxu1 %vm168_vm3, %v1343_v26  ;;  %1064 = vmatpush1.bf16.msra.mxu0 %v1130_v29  ;;  %v1147_v3 = vcombine.high %v82_v60, %v90_v61  ;;  %v1151_v4 = vcombine.high %v83_v63, %v91_v1  ;;  %v1148_v5 = vcombine.low %v82_v60, %v90_v61 }
  0x45   :  { %1074 = vmatpush1.bf16.msra.mxu1 %v1134_v32  ;;  %294 = vmatprep.mubr.f32.mxu0 %v1268_v0  ;;  %v1152_v6 = vcombine.low %v83_v63, %v91_v1 }
  0x46   :  { %371 = vmatprep.mubr.f32.mxu1 %v1268_v0  ;;  %1067 = vmatprep.subr.msk.bf16.mxu0 %vm1335_vm2, %v1131_v33 }
  0x47   :  { %976 = vmatmul.mubr.msk.f32.gmra.mrb[2].mxu0 %vm168_vm3, %v1351_v34  ;;  %1077 = vmatprep.subr.msk.bf16.mxu1 %vm1335_vm2, %v1135_v35 }
  0x48   :  { %980 = vmatmul.mubr.msk.f32.gmra.mrb[2].mxu1 %vm168_vm3, %v1351_v34  ;;  %1070 = vmatpush1.bf16.msk.msra.mxu0 %vm1335_vm2, %v1132_v38 }
  0x49   :  { %1080 = vmatpush1.bf16.msk.msra.mxu1 %vm1335_vm2, %v1136_v41  ;;  %442 = vmatprep.mubr.f32.mxu0 %v1268_v0 }
  0x4a   :  { %519 = vmatprep.mubr.f32.mxu1 %v1268_v0  ;;  %1082 = vmatprep.subr.bf16.mxu0 %v1137_v42 }
  0x4b   :  { %983 = vmatmul.mubr.msk.f32.vlgmr.msra.gmra.mrb[4].mxu0 %vm168_vm3, %v1343_v26  ;;  %1092 = vmatprep.subr.bf16.mxu1 %v1141_v43 }
  0x4c   :  { %987 = vmatmul.mubr.msk.f32.vlgmr.msra.gmra.mrb[4].mxu1 %vm168_vm3, %v1343_v26  ;;  %1084 = vmatpush1.bf16.msra.mxu0 %v1138_v46 }
  0x4d   :  { %1094 = vmatpush1.bf16.msra.mxu1 %v1142_v49  ;;  %448 = vmatprep.mubr.f32.mxu0 %v1268_v0 }
  0x4e   :  { %525 = vmatprep.mubr.f32.mxu1 %v1268_v0  ;;  %1087 = vmatprep.subr.msk.bf16.mxu0 %vm1335_vm2, %v1139_v50 }
  0x4f   :  { %984 = vmatmul.mubr.msk.f32.gmra.mrb[6].mxu0 %vm168_vm3, %v1351_v34  ;;  %1097 = vmatprep.subr.msk.bf16.mxu1 %vm1335_vm2, %v1143_v51 }
  0x50   :  { %988 = vmatmul.mubr.msk.f32.gmra.mrb[6].mxu1 %vm168_vm3, %v1351_v34  ;;  %1090 = vmatpush1.bf16.msk.msra.mxu0 %vm1335_vm2, %v1140_v54 }
  0x51   :  { %1100 = vmatpush1.bf16.msk.msra.mxu1 %vm1335_vm2, %v1144_v57  ;;  %596 = vmatprep.mubr.f32.mxu0 %v1268_v0 }
  0x52   :  { %673 = vmatprep.mubr.f32.mxu1 %v1268_v0  ;;  %1102 = vmatprep.subr.bf16.mxu0 %v1145_v58 }
  0x53   :  { %991 = vmatmul.mubr.msk.f32.vlgmr.msra.gmra.mrb[8].mxu0 %vm168_vm3, %v1343_v26  ;;  %1112 = vmatprep.subr.bf16.mxu1 %v1149_v59 }
  0x54   :  { %995 = vmatmul.mubr.msk.f32.vlgmr.msra.gmra.mrb[8].mxu1 %vm168_vm3, %v1343_v26  ;;  %1104 = vmatpush1.bf16.msra.mxu0 %v1146_v62 }
  0x55   :  { %1114 = vmatpush1.bf16.msra.mxu1 %v1150_v2  ;;  %602 = vmatprep.mubr.f32.mxu0 %v1268_v0 }
  0x56   :  { %679 = vmatprep.mubr.f32.mxu1 %v1268_v0  ;;  %1107 = vmatprep.subr.msk.bf16.mxu0 %vm1335_vm2, %v1147_v3 }
  0x57   :  { %992 = vmatmul.mubr.msk.f32.gmra.mrb[10].mxu0 %vm168_vm3, %v1351_v34  ;;  %1117 = vmatprep.subr.msk.bf16.mxu1 %vm1335_vm2, %v1151_v4 }
  0x58   :  { %996 = vmatmul.mubr.msk.f32.gmra.mrb[10].mxu1 %vm168_vm3, %v1351_v34  ;;  %1110 = vmatpush1.bf16.msk.msra.mxu0 %vm1335_vm2, %v1148_v5 }
  0x59   :  { %1120 = vmatpush1.bf16.msk.msra.mxu1 %vm1335_vm2, %v1152_v6  ;;  %750 = vmatprep.mubr.f32.mxu0 %v1268_v0 }
  0x5a   :  { %827 = vmatprep.mubr.f32.mxu1 %v1268_v0  ;;  %165 = vperm.xlu0 %1165, %v157_v8  }
  0x5b   :  { %999 = vmatmul.mubr.msk.f32.vlgmr.msra.gmra.mrb[12].mxu0 %vm168_vm3, %v1343_v26 }
  0x5c   :  { %1003 = vmatmul.mubr.msk.f32.vlgmr.msra.gmra.mrb[12].mxu1 %vm168_vm3, %v1343_v26  ;;  %756 = vmatprep.mubr.f32.mxu0 %v1268_v0 }
  0x5d   :  { %833 = vmatprep.mubr.f32.mxu1 %v1268_v0 }
  0x5f   :  { %1000 = vmatmul.mubr.msk.f32.gmra.mrb[14].mxu0 %vm168_vm3, %v1351_v34 }
  0x60   :  { %1004 = vmatmul.mubr.msk.f32.gmra.mrb[14].mxu1 %vm168_vm3, %v1351_v34 }
  0xc2   :  { %v1421_v9 = vpop.permute.xlu0 %160 }
  0xd9   :  { %v1426_v0 = vpop.permute.xlu0 %165 }
 0x116   :  { %v290_v10 = vpop.f32.mrb[0].mxu0 }
 0x117   :  { %v367_v11 = vpop.f32.mrb[0].mxu1  ;;  %v291_v12 = vadd.f32 %v290_v10, %v1421_v9  ;;  %v292_v13 = vpop.f32.mrb[1].mxu0 }
 0x118   :  { %v293_v14 = vadd.f32 %v292_v13, %v1421_v9  ;;  %v368_v15 = vadd.f32 %v367_v11, %v1421_v9  ;;  %v369_v16 = vpop.f32.mrb[1].mxu1 }
 0x119   :  { %v370_v17 = vadd.f32 %v369_v16, %v1421_v9 }
 0x11a   :  { %v1021_v18 = vpack.c.bf16 %v293_v14, %v291_v12  ;;  %v296_v19 = vpop.f32.mrb[2].mxu0 }
 0x11b   :  { %v1022_v20 = vpack.c.bf16 %v370_v17, %v368_v15  ;;  %v373_v21 = vpop.f32.mrb[2].mxu1  ;;  %v297_v22 = vadd.f32 %v296_v19, %v1426_v0  ;;  %v298_v23 = vpop.f32.mrb[3].mxu0 }
 0x11c   :  { %936 = vst [vmem:[#allocation8] sm:$0xff] %v1021_v18  ;;  %v299_v24 = vadd.f32 %v298_v23, %v1426_v0  ;;  %v374_v25 = vadd.f32 %v373_v21, %v1426_v0  ;;  %v375_v26 = vpop.f32.mrb[3].mxu1 }
 0x11d   :  { %937 = vst [vmem:[#allocation8 + $0x8] sm:$0xff] %v1022_v20  ;;  %v376_v27 = vadd.f32 %v375_v26, %v1426_v0 }
 0x11e   :  { %v1029_v28 = vpack.c.bf16 %v299_v24, %v297_v22  ;;  %v444_v29 = vpop.f32.mrb[4].mxu0 }
 0x11f   :  { %v1030_v30 = vpack.c.bf16 %v376_v27, %v374_v25  ;;  %v445_v31 = vadd.f32 %v444_v29, %v1421_v9  ;;  %v521_v32 = vpop.f32.mrb[4].mxu1  ;;  %v446_v33 = vpop.f32.mrb[5].mxu0 }
 0x120   :  { %947 = vst [vmem:[#allocation8 + $0x40] sm:$0xff] %v1029_v28  ;;  %v522_v34 = vadd.f32 %v521_v32, %v1421_v9  ;;  %v447_v35 = vadd.f32 %v446_v33, %v1421_v9  ;;  %v523_v36 = vpop.f32.mrb[5].mxu1 }
 0x121   :  { %948 = vst [vmem:[#allocation8 + $0x48] sm:$0xff] %v1030_v30  ;;  %v524_v37 = vadd.f32 %v523_v36, %v1421_v9 }
 0x122   :  { %v1023_v38 = vpack.c.bf16 %v447_v35, %v445_v31  ;;  %v450_v39 = vpop.f32.mrb[6].mxu0 }
 0x123   :  { %v1024_v40 = vpack.c.bf16 %v524_v37, %v522_v34  ;;  %v451_v41 = vadd.f32 %v450_v39, %v1426_v0  ;;  %v527_v42 = vpop.f32.mrb[6].mxu1  ;;  %v452_v43 = vpop.f32.mrb[7].mxu0 }
 0x124   :  { %938 = vst [vmem:[#allocation8 + $0x10] sm:$0xff] %v1023_v38  ;;  %v528_v44 = vadd.f32 %v527_v42, %v1426_v0  ;;  %v453_v45 = vadd.f32 %v452_v43, %v1426_v0  ;;  %v529_v46 = vpop.f32.mrb[7].mxu1 }
 0x125   :  { %939 = vst [vmem:[#allocation8 + $0x18] sm:$0xff] %v1024_v40  ;;  %v530_v47 = vadd.f32 %v529_v46, %v1426_v0 }
 0x126   :  { %v1031_v48 = vpack.c.bf16 %v453_v45, %v451_v41  ;;  %v598_v49 = vpop.f32.mrb[8].mxu0 }
 0x127   :  { %v1032_v50 = vpack.c.bf16 %v530_v47, %v528_v44  ;;  %v599_v51 = vadd.f32 %v598_v49, %v1421_v9  ;;  %v675_v52 = vpop.f32.mrb[8].mxu1  ;;  %v600_v53 = vpop.f32.mrb[9].mxu0 }
 0x128   :  { %949 = vst [vmem:[#allocation8 + $0x50] sm:$0xff] %v1031_v48  ;;  %v676_v54 = vadd.f32 %v675_v52, %v1421_v9  ;;  %v601_v55 = vadd.f32 %v600_v53, %v1421_v9  ;;  %v677_v56 = vpop.f32.mrb[9].mxu1 }
 0x129   :  { %950 = vst [vmem:[#allocation8 + $0x58] sm:$0xff] %v1032_v50  ;;  %v678_v57 = vadd.f32 %v677_v56, %v1421_v9 }
 0x12a   :  { %v1025_v58 = vpack.c.bf16 %v601_v55, %v599_v51  ;;  %v604_v59 = vpop.f32.mrb[10].mxu0 }
 0x12b   :  { %v1026_v60 = vpack.c.bf16 %v678_v57, %v676_v54  ;;  %v605_v61 = vadd.f32 %v604_v59, %v1426_v0  ;;  %v681_v62 = vpop.f32.mrb[10].mxu1  ;;  %v606_v63 = vpop.f32.mrb[11].mxu0 }
 0x12c   :  { %940 = vst [vmem:[#allocation8 + $0x20] sm:$0xff] %v1025_v58  ;;  %v682_v1 = vadd.f32 %v681_v62, %v1426_v0  ;;  %v607_v2 = vadd.f32 %v606_v63, %v1426_v0  ;;  %v683_v3 = vpop.f32.mrb[11].mxu1 }
 0x12d   :  { %941 = vst [vmem:[#allocation8 + $0x28] sm:$0xff] %v1026_v60  ;;  %v684_v4 = vadd.f32 %v683_v3, %v1426_v0 }
 0x12e   :  { %v1033_v5 = vpack.c.bf16 %v607_v2, %v605_v61  ;;  %v752_v6 = vpop.f32.mrb[12].mxu0 }
 0x12f   :  { %v1034_v7 = vpack.c.bf16 %v684_v4, %v682_v1  ;;  %v753_v8 = vadd.f32 %v752_v6, %v1421_v9  ;;  %v829_v10 = vpop.f32.mrb[12].mxu1  ;;  %v754_v11 = vpop.f32.mrb[13].mxu0 }
 0x130   :  { %951 = vst [vmem:[#allocation8 + $0x60] sm:$0xff] %v1033_v5  ;;  %v830_v12 = vadd.f32 %v829_v10, %v1421_v9  ;;  %v755_v13 = vadd.f32 %v754_v11, %v1421_v9  ;;  %v831_v14 = vpop.f32.mrb[13].mxu1 }
 0x131   :  { %952 = vst [vmem:[#allocation8 + $0x68] sm:$0xff] %v1034_v7  ;;  %v832_v15 = vadd.f32 %v831_v14, %v1421_v9 }
 0x132   :  { %v1027_v16 = vpack.c.bf16 %v755_v13, %v753_v8  ;;  %v758_v18 = vpop.f32.mrb[14].mxu0 }
 0x133   :  { %v1028_v19 = vpack.c.bf16 %v832_v15, %v830_v12  ;;  %v759_v20 = vadd.f32 %v758_v18, %v1426_v0  ;;  %v835_v21 = vpop.f32.mrb[14].mxu1  ;;  %v760_v22 = vpop.f32.mrb[15].mxu0 }
 0x134   :  { %942 = vst [vmem:[#allocation8 + $0x30] sm:$0xff] %v1027_v16  ;;  %v836_v23 = vadd.f32 %v835_v21, %v1426_v0  ;;  %v761_v24 = vadd.f32 %v760_v22, %v1426_v0  ;;  %v837_v25 = vpop.f32.mrb[15].mxu1 }
 0x135   :  { %946 = vst.msk [vmem:[#allocation8 + $0x38] sm:$0xff] %vm1453_vm6, %v1028_v19  ;;  %v838_v9 = vadd.f32 %v837_v25, %v1426_v0 }
 0x136   :  { %v1035_v26 = vpack.c.bf16 %v761_v24, %v759_v20 }
 0x137   :  { %v1036_v27 = vpack.c.bf16 %v838_v9, %v836_v23 }
 0x138   :  { %953 = vst [vmem:[#allocation8 + $0x70] sm:$0xff] %v1035_v26 }
 0x139   :  { %954 = vst.msk [vmem:[#allocation8 + $0x78] sm:$0xff] %vm1453_vm6, %v1036_v27 }
 0x13a   :  { %1243 = shalt.err (!%p1240_p0)
}
 0x13b   :  { %s1244_s30 = scalar_lea.hbm %s1483_s3, 2048 }
 0x13c   :  { %p1245_p1 = scmp.ne.s32.totalorder %s1483_s3, %s1244_s30  ;;  %p1248_p2 = scmp.lt.u32.totalorder %s1244_s30, %s1483_s3 }
 0x13e   :  { %p1250_p3 = pnand %p1248_p2, %p1245_p1 }
 0x140   :  { %1253 = shalt.err (!%p1250_p3)
}
 0x141   :  { %966 = dma.vmem_to_hbm [thread:$0]  %s961_s26, 2048, %s1483_s3, [#allocation4], %s1261_s22, %s1261_s22, %s1262_s23  }
 0x142   :  { %1258 = dma.done.wait [#allocation4], 2048  }
 0x143   :  { %1259 = vsyncadd [#allocation4], 4294965248 }
 0x144   :  { %970 = vsyncpa [#allocation3], 1 }
 0x145   :  { %971 = vsyncpa [#allocation6], 1 }
 0x146   :  { %972 = vsyncpa [#allocation4], 1 }

// kernel: voxnet_forward.4
= control target key start
LH: loop header
LB: loop body
LE: loop exit
PB: predicated region body
PF: predicated region fallthrough
CT: control target
= control target key end

     0   :  { %8 = vsyncpa [#allocation3], 0  ;;  %s17596_s0 = inlined_call_operand.hbm [shape: bf16[2,2000], index: 0, kind: input, shape index: {}]   ;;  %s17597_s1 = inlined_call_operand.hbm [shape: bf16[2000,2048], index: 1, kind: input, shape index: {}]   ;;  %s17598_s2 = inlined_call_operand.hbm [shape: f32[1,2048], index: 2, kind: input, shape index: {}]   ;;  %s17599_s3 = inlined_call_operand.hbm [shape: bf16[2,2048], index: 3, kind: output, shape index: {}]  }
   0x1   :  { %9 = vsyncpa [#allocation6], 0 }
   0x2   :  { %10 = vsyncpa [#allocation4], 0  ;;  %s17222_s12 = smov [#allocation5]   ;;  %s17128_s16 = scalar_lea.hbm %s17597_s1, 256000 }
   0x3   :  { %s26_s13 = sshll.u32 %s17222_s12, 4  ;;  %p17129_p0 = scmp.ne.s32.totalorder %s17597_s1, %s17128_s16  ;;  %s27_s13 = int_to_ptr.vmem [resolvable:$true] %s26_s13 }
   0x4   :  { %p17132_p1 = scmp.lt.u32.totalorder %s17128_s16, %s17597_s1 }
   0x6   :  { %p17134_p2 = pnand %p17132_p1, %p17129_p0 }
   0x8   :  { %17137 = shalt.err (!%p17134_p2)
}
   0x9   :  { %s17138_s21 = scalar_lea.vmem %s27_s13, 256000  ;;  %p17143_p4 = scmp.lt.s32.totalorder %s27_s13, %s27_s13 }
   0xa   :  { %p17139_p3 = scmp.ne.s32.totalorder %s27_s13, %s17138_s21  ;;  %p17144_p5 = scmp.lt.s32.totalorder %s17138_s21, %s17138_s21 }
   0xc   :  { %p17145_p6 = por %p17144_p5, %p17143_p4 }
   0xe   :  { %p17146_p7 = pnand %p17145_p6, %p17139_p3 }
  0x10   :  { %17149 = shalt.err (!%p17146_p7)
}
  0x11   :  { %s17223_s22 = smov 1024   ;;  %s17224_s23 = smov 64  }
  0x12   :  { %32 = dma.hbm_to_vmem [thread:$0]  %s17597_s1, 256000, %s27_s13, [#allocation6], %s17223_s22, %s17223_s22, %s17224_s23  }
  0x13   :  { %s17225_s26 = smov [#allocation2]   ;;  %s17226_s28 = smov [#allocation7]  }
  0x14   :  { %s17_s27 = sshll.u32 %s17225_s26, 4  ;;  %s39_s29 = sshll.u32 %s17226_s28, 4  ;;  %s18_s27 = int_to_ptr.vmem [resolvable:$true] %s17_s27  ;;  %s40_s29 = int_to_ptr.vmem [resolvable:$true] %s39_s29 }
  0x15   :  { %s17150_s5 = scalar_lea.hbm %s17596_s0, 256 }
  0x16   :  { %p17151_p8 = scmp.ne.s32.totalorder %s17596_s0, %s17150_s5  ;;  %p17154_p9 = scmp.lt.u32.totalorder %s17150_s5, %s17596_s0 }
  0x18   :  { %p17156_p10 = pnand %p17154_p9, %p17151_p8 }
  0x1a   :  { %17159 = shalt.err (!%p17156_p10)
}
  0x1b   :  { %s17160_s1 = scalar_lea.vmem %s18_s27, 256  ;;  %p17165_p12 = scmp.lt.s32.totalorder %s18_s27, %s18_s27 }
  0x1c   :  { %p17161_p11 = scmp.ne.s32.totalorder %s18_s27, %s17160_s1  ;;  %p17166_p13 = scmp.lt.s32.totalorder %s17160_s1, %s17160_s1 }
  0x1e   :  { %p17167_p0 = por %p17166_p13, %p17165_p12 }
  0x20   :  { %p17168_p1 = pnand %p17167_p0, %p17161_p11 }
  0x22   :  { %17171 = shalt.err (!%p17168_p1)
}
  0x23   :  { %20 = dma.hbm_to_vmem [thread:$0]  %s17596_s0, 256, %s18_s27, [#allocation3]  }
  0x24   :  { %s17172_s14 = scalar_lea.hbm %s17598_s2, 256 }
  0x25   :  { %p17173_p2 = scmp.ne.s32.totalorder %s17598_s2, %s17172_s14  ;;  %p17176_p3 = scmp.lt.u32.totalorder %s17172_s14, %s17598_s2 }
  0x27   :  { %p17178_p4 = pnand %p17176_p3, %p17173_p2 }
  0x29   :  { %17181 = shalt.err (!%p17178_p4)
}
  0x2a   :  { %s17182_s19 = scalar_lea.vmem %s40_s29, 256  ;;  %p17187_p6 = scmp.lt.s32.totalorder %s40_s29, %s40_s29 }
  0x2b   :  { %p17183_p5 = scmp.ne.s32.totalorder %s40_s29, %s17182_s19  ;;  %p17188_p7 = scmp.lt.s32.totalorder %s17182_s19, %s17182_s19 }
  0x2d   :  { %p17189_p8 = por %p17188_p7, %p17187_p6 }
  0x2f   :  { %p17190_p9 = pnand %p17189_p8, %p17183_p5 }
  0x31   :  { %17193 = shalt.err (!%p17190_p9)
}
  0x32   :  { %42 = dma.hbm_to_vmem [thread:$0]  %s17598_s2, 256, %s40_s29, [#allocation6]  }
  0x33   :  { %17216 = dma.done.wait [#allocation3], 256  }
  0x34   :  { %17217 = vsyncadd [#allocation3], 4294967040 }
  0x35   :  { %17218 = dma.done.wait [#allocation6], 256256  }
  0x36   :  { %17219 = vsyncadd [#allocation6], 4294711040  ;;  %v58_v0 = vld [vmem:[#allocation5] sm:$0xff]  ;;  %v59_v2 = vld [vmem:[#allocation5 + $0x8] sm:$0xff]  ;;  %v6062_v35 = vlaneseq  ;;  %v17227_v36 = vmov 1983009808  }
  0x37   :  { %v66_v1 = vld [vmem:[#allocation5 + $0x40] sm:$0xff]  ;;  %v67_v4 = vld [vmem:[#allocation5 + $0x48] sm:$0xff]  ;;  %v6148_v37 = vunpack.c.l.s4 %v17227_v36  ;;  %v17291_v59 = vld [vmem:[#allocation2] sm:$0xff]  ;;  %vm6229_vm0 = vcmask 654336   ;;  %s17229_s2 = smov [#allocation8]  }
  0x38   :  { %v15118_v3 = vcombine.high %v58_v0, %v66_v1  ;;  %v15119_v5 = vcombine.low %v58_v0, %v66_v1  ;;  %v74_v6 = vld [vmem:[#allocation5 + $0x80] sm:$0xff]  ;;  %v15368_v8 = vcombine.high %v59_v2, %v67_v4  ;;  %v15369_v9 = vcombine.low %v59_v2, %v67_v4  ;;  %v75_v11 = vld [vmem:[#allocation5 + $0x88] sm:$0xff]  ;;  %s10964_s21 = sshll.u32 %s17229_s2, 4  ;;  %s10965_s21 = int_to_ptr.vmem [resolvable:$true] %s10964_s21 }
  0x39   :  { %v82_v7 = vld [vmem:[#allocation5 + $0xc0] sm:$0xff]  ;;  %v83_v12 = vld [vmem:[#allocation5 + $0xc8] sm:$0xff]  ;;  %v17286_v46 = vshrl.u32 %v6062_v35, 7  ;;  %v6149_v47 = vunpack.c.0.s8 %v6148_v37  ;;  %v17294_v63 = vunpack.c.l.bf16 %v17291_v59  ;;  %s17194_s22 = scalar_lea.vmem %s10965_s21, 256  ;;  %p17199_p11 = scmp.lt.s32.totalorder %s10965_s21, %s10965_s21 }
  0x3a   :  { %v15120_v10 = vcombine.high %v74_v6, %v82_v7  ;;  %v90_v13 = vld [vmem:[#allocation5 + $0x100] sm:$0xff]  ;;  %10991 = vmatprep.subr.bf16.mxu0 %v15118_v3  ;;  %v15370_v14 = vcombine.high %v75_v11, %v83_v12  ;;  %v91_v16 = vld [vmem:[#allocation5 + $0x108] sm:$0xff]  ;;  %11491 = vmatprep.subr.bf16.mxu1 %v15368_v8  ;;  %v15121_v18 = vcombine.low %v74_v6, %v82_v7  ;;  %p17195_p10 = scmp.ne.s32.totalorder %s10965_s21, %s17194_s22  ;;  %p17200_p12 = scmp.lt.s32.totalorder %s17194_s22, %s17194_s22 }
  0x3b   :  { %v98_v15 = vld [vmem:[#allocation5 + $0x140] sm:$0xff]  ;;  %v99_v17 = vld [vmem:[#allocation5 + $0x148] sm:$0xff]  ;;  %10993 = vmatpush1.bf16.msra.mxu0 %v15119_v5  ;;  %11493 = vmatpush1.bf16.msra.mxu1 %v15369_v9  ;;  %v15371_v19 = vcombine.low %v75_v11, %v83_v12  ;;  %v17289_v56 = vsub.s32 %v6149_v47, %v17286_v46 }
  0x3c   :  { %10995 = vmatprep.subr.bf16.mxu0 %v15120_v10  ;;  %v15122_v20 = vcombine.high %v90_v13, %v98_v15  ;;  %11495 = vmatprep.subr.bf16.mxu1 %v15370_v14  ;;  %v15372_v21 = vcombine.high %v91_v16, %v99_v17  ;;  %v106_v22 = vld [vmem:[#allocation5 + $0x180] sm:$0xff]  ;;  %v107_v24 = vld [vmem:[#allocation5 + $0x188] sm:$0xff]  ;;  %v15123_v26 = vcombine.low %v90_v13, %v98_v15  ;;  %p17201_p13 = por %p17200_p12, %p17199_p11 }
  0x3d   :  { %v114_v23 = vld [vmem:[#allocation5 + $0x1c0] sm:$0xff]  ;;  %v115_v25 = vld [vmem:[#allocation5 + $0x1c8] sm:$0xff]  ;;  %v15373_v27 = vcombine.low %v91_v16, %v99_v17  ;;  %v17298_v3 = vrot.slane %v17294_v63, %v17289_v56 }
  0x3e   :  { %v15124_v28 = vcombine.high %v106_v22, %v114_v23  ;;  %v15374_v29 = vcombine.high %v107_v24, %v115_v25  ;;  %v122_v30 = vld [vmem:[#allocation5 + $0x200] sm:$0xff]  ;;  %v123_v32 = vld [vmem:[#allocation5 + $0x208] sm:$0xff]  ;;  %v15125_v34 = vcombine.low %v106_v22, %v114_v23  ;;  %v15375_v38 = vcombine.low %v107_v24, %v115_v25  ;;  %p17202_p0 = pnand %p17201_p13, %p17195_p10 }
  0x3f   :  { %10997 = vmatpush1.bf16.msra.mxu0 %v15121_v18  ;;  %11497 = vmatpush1.bf16.msra.mxu1 %v15371_v19  ;;  %v130_v31 = vld [vmem:[#allocation5 + $0x240] sm:$0xff]  ;;  %v131_v33 = vld [vmem:[#allocation5 + $0x248] sm:$0xff]  ;;  %v17302_v9 = vcombine.high %v17298_v3, %v17298_v3 }
  0x40   :  { %10999 = vmatprep.subr.bf16.mxu0 %v15122_v20  ;;  %11499 = vmatprep.subr.bf16.mxu1 %v15372_v21  ;;  %v15126_v39 = vcombine.high %v122_v30, %v130_v31  ;;  %v15376_v40 = vcombine.high %v123_v32, %v131_v33  ;;  %v138_v41 = vld [vmem:[#allocation5 + $0x280] sm:$0xff]  ;;  %v139_v43 = vld [vmem:[#allocation5 + $0x288] sm:$0xff]  ;;  %v15127_v45 = vcombine.low %v122_v30, %v130_v31 }
  0x41   :  { %v146_v42 = vld [vmem:[#allocation5 + $0x2c0] sm:$0xff]  ;;  %v147_v44 = vld [vmem:[#allocation5 + $0x2c8] sm:$0xff]  ;;  %v15377_v48 = vcombine.low %v123_v32, %v131_v33  ;;  %6296 = vmatprep.mubr.f32.mxu0 %v17302_v9  ;;  %6864 = vmatprep.mubr.f32.mxu1 %v17302_v9 }
  0x42   :  { %v15128_v49 = vcombine.high %v138_v41, %v146_v42  ;;  %v15378_v50 = vcombine.high %v139_v43, %v147_v44  ;;  %v154_v51 = vld [vmem:[#allocation5 + $0x300] sm:$0xff]  ;;  %v155_v53 = vld [vmem:[#allocation5 + $0x308] sm:$0xff]  ;;  %v15129_v55 = vcombine.low %v138_v41, %v146_v42  ;;  %v15379_v57 = vcombine.low %v139_v43, %v147_v44 }
  0x43   :  { %11001 = vmatpush1.bf16.msra.mxu0 %v15123_v26  ;;  %11501 = vmatpush1.bf16.msra.mxu1 %v15373_v27  ;;  %v162_v52 = vld [vmem:[#allocation5 + $0x340] sm:$0xff]  ;;  %v163_v54 = vld [vmem:[#allocation5 + $0x348] sm:$0xff] }
  0x44   :  { %11003 = vmatprep.subr.bf16.mxu0 %v15124_v28  ;;  %11503 = vmatprep.subr.bf16.mxu1 %v15374_v29  ;;  %v15130_v58 = vcombine.high %v154_v51, %v162_v52  ;;  %v15380_v60 = vcombine.high %v155_v53, %v163_v54  ;;  %v170_v61 = vld [vmem:[#allocation5 + $0x380] sm:$0xff]  ;;  %v171_v0 = vld [vmem:[#allocation5 + $0x388] sm:$0xff]  ;;  %v15131_v2 = vcombine.low %v154_v51, %v162_v52 }
  0x45   :  { %v178_v62 = vld [vmem:[#allocation5 + $0x3c0] sm:$0xff]  ;;  %v179_v1 = vld [vmem:[#allocation5 + $0x3c8] sm:$0xff]  ;;  %v15381_v4 = vcombine.low %v155_v53, %v163_v54 }
  0x46   :  { %v15132_v5 = vcombine.high %v170_v61, %v178_v62  ;;  %v15382_v6 = vcombine.high %v171_v0, %v179_v1  ;;  %v186_v7 = vld [vmem:[#allocation5 + $0x400] sm:$0xff]  ;;  %v187_v10 = vld [vmem:[#allocation5 + $0x408] sm:$0xff]  ;;  %v15133_v12 = vcombine.low %v170_v61, %v178_v62  ;;  %v15383_v13 = vcombine.low %v171_v0, %v179_v1 }
  0x47   :  { %11005 = vmatpush1.bf16.msra.mxu0 %v15125_v34  ;;  %11505 = vmatpush1.bf16.msra.mxu1 %v15375_v38  ;;  %v194_v8 = vld [vmem:[#allocation5 + $0x440] sm:$0xff]  ;;  %v195_v11 = vld [vmem:[#allocation5 + $0x448] sm:$0xff] }
  0x48   :  { %11007 = vmatprep.subr.bf16.mxu0 %v15126_v39  ;;  %11507 = vmatprep.subr.bf16.mxu1 %v15376_v40  ;;  %v15134_v14 = vcombine.high %v186_v7, %v194_v8  ;;  %v15384_v15 = vcombine.high %v187_v10, %v195_v11  ;;  %v202_v16 = vld [vmem:[#allocation5 + $0x480] sm:$0xff]  ;;  %v203_v18 = vld [vmem:[#allocation5 + $0x488] sm:$0xff]  ;;  %v15135_v20 = vcombine.low %v186_v7, %v194_v8 }
  0x49   :  { %v210_v17 = vld [vmem:[#allocation5 + $0x4c0] sm:$0xff]  ;;  %v211_v19 = vld [vmem:[#allocation5 + $0x4c8] sm:$0xff]  ;;  %v15385_v21 = vcombine.low %v187_v10, %v195_v11 }
  0x4a   :  { %v15136_v22 = vcombine.high %v202_v16, %v210_v17  ;;  %v15386_v23 = vcombine.high %v203_v18, %v211_v19  ;;  %v218_v24 = vld [vmem:[#allocation5 + $0x500] sm:$0xff]  ;;  %v219_v26 = vld [vmem:[#allocation5 + $0x508] sm:$0xff]  ;;  %v15137_v28 = vcombine.low %v202_v16, %v210_v17  ;;  %v15387_v29 = vcombine.low %v203_v18, %v211_v19 }
  0x4b   :  { %11009 = vmatpush1.bf16.msra.mxu0 %v15127_v45  ;;  %11509 = vmatpush1.bf16.msra.mxu1 %v15377_v48  ;;  %v226_v25 = vld [vmem:[#allocation5 + $0x540] sm:$0xff]  ;;  %v227_v27 = vld [vmem:[#allocation5 + $0x548] sm:$0xff]  ;;  %v6146_v16 = vcombine.high %v17294_v63, %v17294_v63 }
  0x4c   :  { %11011 = vmatprep.subr.bf16.mxu0 %v15128_v49  ;;  %11511 = vmatprep.subr.bf16.mxu1 %v15378_v50  ;;  %v15138_v30 = vcombine.high %v218_v24, %v226_v25  ;;  %v15388_v31 = vcombine.high %v219_v26, %v227_v27  ;;  %v234_v32 = vld [vmem:[#allocation5 + $0x580] sm:$0xff]  ;;  %v235_v34 = vld [vmem:[#allocation5 + $0x588] sm:$0xff]  ;;  %v15139_v36 = vcombine.low %v218_v24, %v226_v25 }
  0x4d   :  { %v242_v33 = vld [vmem:[#allocation5 + $0x5c0] sm:$0xff]  ;;  %v243_v35 = vld [vmem:[#allocation5 + $0x5c8] sm:$0xff]  ;;  %v15389_v37 = vcombine.low %v219_v26, %v227_v27  ;;  %v17309_v25 = vrot.slane %v6146_v16, %v17289_v56 }
  0x4e   :  { %v15140_v38 = vcombine.high %v234_v32, %v242_v33  ;;  %v15390_v39 = vcombine.high %v235_v34, %v243_v35  ;;  %v250_v40 = vld [vmem:[#allocation5 + $0x600] sm:$0xff]  ;;  %v251_v42 = vld [vmem:[#allocation5 + $0x608] sm:$0xff]  ;;  %v15141_v44 = vcombine.low %v234_v32, %v242_v33  ;;  %v15391_v45 = vcombine.low %v235_v34, %v243_v35 }
  0x4f   :  { %11013 = vmatpush1.bf16.msra.mxu0 %v15129_v55  ;;  %11513 = vmatpush1.bf16.msra.mxu1 %v15379_v57  ;;  %v258_v41 = vld [vmem:[#allocation5 + $0x640] sm:$0xff]  ;;  %v259_v43 = vld [vmem:[#allocation5 + $0x648] sm:$0xff]  ;;  %v17313_v33 = vcombine.high %v17309_v25, %v17309_v25 }
  0x50   :  { %11015 = vmatprep.subr.bf16.mxu0 %v15130_v58  ;;  %11515 = vmatprep.subr.bf16.mxu1 %v15380_v60  ;;  %v15142_v47 = vcombine.high %v250_v40, %v258_v41  ;;  %v15392_v48 = vcombine.high %v251_v42, %v259_v43  ;;  %v266_v49 = vld [vmem:[#allocation5 + $0x680] sm:$0xff]  ;;  %v267_v51 = vld [vmem:[#allocation5 + $0x688] sm:$0xff]  ;;  %v15143_v53 = vcombine.low %v250_v40, %v258_v41 }
  0x51   :  { %v274_v50 = vld [vmem:[#allocation5 + $0x6c0] sm:$0xff]  ;;  %v275_v52 = vld [vmem:[#allocation5 + $0x6c8] sm:$0xff]  ;;  %v15393_v54 = vcombine.low %v251_v42, %v259_v43 }
  0x52   :  { %v15144_v55 = vcombine.high %v266_v49, %v274_v50  ;;  %v15394_v57 = vcombine.high %v267_v51, %v275_v52  ;;  %v282_v58 = vld [vmem:[#allocation5 + $0x700] sm:$0xff]  ;;  %v283_v61 = vld [vmem:[#allocation5 + $0x708] sm:$0xff]  ;;  %v15145_v0 = vcombine.low %v266_v49, %v274_v50  ;;  %v15395_v1 = vcombine.low %v267_v51, %v275_v52 }
  0x53   :  { %11017 = vmatpush1.bf16.msra.mxu0 %v15131_v2  ;;  %11517 = vmatpush1.bf16.msra.mxu1 %v15381_v4  ;;  %v290_v60 = vld [vmem:[#allocation5 + $0x740] sm:$0xff]  ;;  %v291_v62 = vld [vmem:[#allocation5 + $0x748] sm:$0xff] }
  0x54   :  { %11019 = vmatprep.subr.bf16.mxu0 %v15132_v5  ;;  %11519 = vmatprep.subr.bf16.mxu1 %v15382_v6  ;;  %v15146_v2 = vcombine.high %v282_v58, %v290_v60  ;;  %v15396_v4 = vcombine.high %v283_v61, %v291_v62  ;;  %v298_v5 = vld [vmem:[#allocation5 + $0x780] sm:$0xff]  ;;  %v299_v7 = vld [vmem:[#allocation5 + $0x788] sm:$0xff]  ;;  %v15147_v10 = vcombine.low %v282_v58, %v290_v60 }
  0x55   :  { %v306_v6 = vld [vmem:[#allocation5 + $0x7c0] sm:$0xff]  ;;  %v307_v8 = vld [vmem:[#allocation5 + $0x7c8] sm:$0xff]  ;;  %v15397_v11 = vcombine.low %v283_v61, %v291_v62 }
  0x56   :  { %v315_v17 = vld [vmem:[#allocation5 + $0x808] sm:$0xff]  ;;  %v15149_v19 = vcombine.low %v298_v5, %v306_v6  ;;  %v338_v24 = vld [vmem:[#allocation5 + $0x8c0] sm:$0xff] }
  0x57   :  { %11021 = vmatpush1.bf16.msra.mxu0 %v15133_v12  ;;  %11521 = vmatpush1.bf16.msra.mxu1 %v15383_v13  ;;  %v15148_v12 = vcombine.high %v298_v5, %v306_v6  ;;  %v15398_v13 = vcombine.high %v299_v7, %v307_v8  ;;  %v323_v18 = vld [vmem:[#allocation5 + $0x848] sm:$0xff]  ;;  %v354_v32 = vld [vmem:[#allocation5 + $0x940] sm:$0xff] }
  0x58   :  { %11023 = vmatprep.subr.bf16.mxu0 %v15134_v14  ;;  %11523 = vmatprep.subr.bf16.mxu1 %v15384_v15  ;;  %v314_v14 = vld [vmem:[#allocation5 + $0x800] sm:$0xff]  ;;  %v331_v26 = vld [vmem:[#allocation5 + $0x888] sm:$0xff]  ;;  %v15401_v63 = vcombine.low %v315_v17, %v323_v18 }
  0x59   :  { %v322_v15 = vld [vmem:[#allocation5 + $0x840] sm:$0xff]  ;;  %v339_v27 = vld [vmem:[#allocation5 + $0x8c8] sm:$0xff] }
  0x5a   :  { %v347_v34 = vld [vmem:[#allocation5 + $0x908] sm:$0xff]  ;;  %v362_v40 = vld [vmem:[#allocation5 + $0x980] sm:$0xff] }
  0x5b   :  { %11025 = vmatpush1.bf16.msra.mxu0 %v15135_v20  ;;  %11525 = vmatpush1.bf16.msra.mxu1 %v15385_v21  ;;  %v15399_v20 = vcombine.low %v299_v7, %v307_v8  ;;  %v15150_v21 = vcombine.high %v314_v14, %v322_v15  ;;  %v355_v35 = vld [vmem:[#allocation5 + $0x948] sm:$0xff]  ;;  %v370_v41 = vld [vmem:[#allocation5 + $0x9c0] sm:$0xff] }
  0x5c   :  { %11027 = vmatprep.subr.bf16.mxu0 %v15136_v22  ;;  %11527 = vmatprep.subr.bf16.mxu1 %v15386_v23  ;;  %v15400_v22 = vcombine.high %v315_v17, %v323_v18  ;;  %v330_v23 = vld [vmem:[#allocation5 + $0x880] sm:$0xff]  ;;  %v363_v42 = vld [vmem:[#allocation5 + $0x988] sm:$0xff] }
  0x5d   :  { %v371_v43 = vld [vmem:[#allocation5 + $0x9c8] sm:$0xff]  ;;  %v378_v49 = vld [vmem:[#allocation5 + $0xa00] sm:$0xff] }
  0x5e   :  { %v386_v50 = vld [vmem:[#allocation5 + $0xa40] sm:$0xff]  ;;  %v379_v51 = vld [vmem:[#allocation5 + $0xa08] sm:$0xff] }
  0x5f   :  { %11029 = vmatpush1.bf16.msra.mxu0 %v15137_v28  ;;  %11529 = vmatpush1.bf16.msra.mxu1 %v15387_v29  ;;  %v15151_v28 = vcombine.low %v314_v14, %v322_v15  ;;  %v15152_v29 = vcombine.high %v330_v23, %v338_v24  ;;  %v387_v52 = vld [vmem:[#allocation5 + $0xa48] sm:$0xff]  ;;  %v394_v58 = vld [vmem:[#allocation5 + $0xa80] sm:$0xff] }
  0x60   :  { %11031 = vmatprep.subr.bf16.mxu0 %v15138_v30  ;;  %11531 = vmatprep.subr.bf16.mxu1 %v15388_v31  ;;  %v15402_v30 = vcombine.high %v331_v26, %v339_v27  ;;  %v346_v31 = vld [vmem:[#allocation5 + $0x900] sm:$0xff]  ;;  %v395_v61 = vld [vmem:[#allocation5 + $0xa88] sm:$0xff] }
  0x61   :  { %v402_v60 = vld [vmem:[#allocation5 + $0xac0] sm:$0xff]  ;;  %v403_v62 = vld [vmem:[#allocation5 + $0xac8] sm:$0xff] }
  0x62   :  { %v410_v5 = vld [vmem:[#allocation5 + $0xb00] sm:$0xff]  ;;  %v411_v7 = vld [vmem:[#allocation5 + $0xb08] sm:$0xff] }
  0x63   :  { %11033 = vmatpush1.bf16.msra.mxu0 %v15139_v36  ;;  %11533 = vmatpush1.bf16.msra.mxu1 %v15389_v37  ;;  %v15153_v36 = vcombine.low %v330_v23, %v338_v24  ;;  %v15403_v37 = vcombine.low %v331_v26, %v339_v27  ;;  %v418_v6 = vld [vmem:[#allocation5 + $0xb40] sm:$0xff]  ;;  %v419_v8 = vld [vmem:[#allocation5 + $0xb48] sm:$0xff] }
  0x64   :  { %11035 = vmatprep.subr.bf16.mxu0 %v15140_v38  ;;  %11535 = vmatprep.subr.bf16.mxu1 %v15390_v39  ;;  %v15154_v38 = vcombine.high %v346_v31, %v354_v32  ;;  %v15404_v39 = vcombine.high %v347_v34, %v355_v35  ;;  %v426_v14 = vld [vmem:[#allocation5 + $0xb80] sm:$0xff]  ;;  %v427_v16 = vld [vmem:[#allocation5 + $0xb88] sm:$0xff]  ;;  %v15163_v18 = vcombine.low %v410_v5, %v418_v6 }
  0x65   :  { %v434_v15 = vld [vmem:[#allocation5 + $0xbc0] sm:$0xff]  ;;  %v435_v17 = vld [vmem:[#allocation5 + $0xbc8] sm:$0xff] }
  0x66   :  { %v450_v23 = vld [vmem:[#allocation5 + $0xc40] sm:$0xff]  ;;  %v443_v24 = vld [vmem:[#allocation5 + $0xc08] sm:$0xff]  ;;  %v15165_v27 = vcombine.low %v426_v14, %v434_v15 }
  0x67   :  { %11037 = vmatpush1.bf16.msra.mxu0 %v15141_v44  ;;  %11537 = vmatpush1.bf16.msra.mxu1 %v15391_v45  ;;  %v15155_v44 = vcombine.low %v346_v31, %v354_v32  ;;  %v15405_v45 = vcombine.low %v347_v34, %v355_v35  ;;  %v451_v26 = vld [vmem:[#allocation5 + $0xc48] sm:$0xff]  ;;  %v466_v31 = vld [vmem:[#allocation5 + $0xcc0] sm:$0xff] }
  0x68   :  { %11039 = vmatprep.subr.bf16.mxu0 %v15142_v47  ;;  %11539 = vmatprep.subr.bf16.mxu1 %v15392_v48  ;;  %v15156_v47 = vcombine.high %v362_v40, %v370_v41  ;;  %v15406_v48 = vcombine.high %v363_v42, %v371_v43  ;;  %v459_v32 = vld [vmem:[#allocation5 + $0xc88] sm:$0xff] }
  0x69   :  { %v467_v34 = vld [vmem:[#allocation5 + $0xcc8] sm:$0xff] }
  0x6b   :  { %11041 = vmatpush1.bf16.msra.mxu0 %v15143_v53  ;;  %11541 = vmatpush1.bf16.msra.mxu1 %v15393_v54  ;;  %v15157_v53 = vcombine.low %v362_v40, %v370_v41  ;;  %v15407_v54 = vcombine.low %v363_v42, %v371_v43  ;;  %v482_v40 = vld [vmem:[#allocation5 + $0xd40] sm:$0xff]  ;;  %v475_v41 = vld [vmem:[#allocation5 + $0xd08] sm:$0xff] }
  0x6c   :  { %11043 = vmatprep.subr.bf16.mxu0 %v15144_v55  ;;  %11543 = vmatprep.subr.bf16.mxu1 %v15394_v57  ;;  %v15158_v55 = vcombine.high %v378_v49, %v386_v50  ;;  %v15408_v57 = vcombine.high %v379_v51, %v387_v52  ;;  %v483_v42 = vld [vmem:[#allocation5 + $0xd48] sm:$0xff] }
  0x6f   :  { %11045 = vmatpush1.bf16.msra.mxu0 %v15145_v0  ;;  %11545 = vmatpush1.bf16.msra.mxu1 %v15395_v1  ;;  %v15159_v0 = vcombine.low %v378_v49, %v386_v50  ;;  %v15409_v1 = vcombine.low %v379_v51, %v387_v52  ;;  %v498_v49 = vld [vmem:[#allocation5 + $0xdc0] sm:$0xff]  ;;  %v491_v50 = vld [vmem:[#allocation5 + $0xd88] sm:$0xff] }
  0x70   :  { %11047 = vmatprep.subr.bf16.mxu0 %v15146_v2  ;;  %11547 = vmatprep.subr.bf16.mxu1 %v15396_v4  ;;  %v15160_v2 = vcombine.high %v394_v58, %v402_v60  ;;  %v15410_v4 = vcombine.high %v395_v61, %v403_v62  ;;  %v499_v51 = vld [vmem:[#allocation5 + $0xdc8] sm:$0xff] }
  0x73   :  { %11049 = vmatpush1.bf16.msra.mxu0 %v15147_v10  ;;  %11549 = vmatpush1.bf16.msra.mxu1 %v15397_v11  ;;  %v15161_v10 = vcombine.low %v394_v58, %v402_v60  ;;  %v15411_v11 = vcombine.low %v395_v61, %v403_v62  ;;  %v514_v58 = vld [vmem:[#allocation5 + $0xe40] sm:$0xff]  ;;  %v507_v60 = vld [vmem:[#allocation5 + $0xe08] sm:$0xff] }
  0x74   :  { %11051 = vmatprep.subr.bf16.mxu0 %v15148_v12  ;;  %11551 = vmatprep.subr.bf16.mxu1 %v15398_v13  ;;  %v15162_v12 = vcombine.high %v410_v5, %v418_v6  ;;  %v15412_v13 = vcombine.high %v411_v7, %v419_v8  ;;  %v515_v61 = vld [vmem:[#allocation5 + $0xe48] sm:$0xff]  ;;  %v530_v5 = vld [vmem:[#allocation5 + $0xec0] sm:$0xff] }
  0x75   :  { %v523_v6 = vld [vmem:[#allocation5 + $0xe88] sm:$0xff] }
  0x77   :  { %11053 = vmatpush1.bf16.msra.mxu0 %v15149_v19  ;;  %11553 = vmatpush1.bf16.msra.mxu1 %v15399_v20  ;;  %v15413_v19 = vcombine.low %v411_v7, %v419_v8  ;;  %v15164_v20 = vcombine.high %v426_v14, %v434_v15  ;;  %v531_v7 = vld [vmem:[#allocation5 + $0xec8] sm:$0xff]  ;;  %v546_v14 = vld [vmem:[#allocation5 + $0xf40] sm:$0xff] }
  0x78   :  { %11055 = vmatprep.subr.bf16.mxu0 %v15150_v21  ;;  %11555 = vmatprep.subr.bf16.mxu1 %v15400_v22  ;;  %v15414_v21 = vcombine.high %v427_v16, %v435_v17  ;;  %v442_v22 = vld [vmem:[#allocation5 + $0xc00] sm:$0xff]  ;;  %v539_v15 = vld [vmem:[#allocation5 + $0xf08] sm:$0xff] }
  0x79   :  { %v15167_v35 = vcombine.low %v442_v22, %v450_v23 }
  0x7a   :  { %6297 = vmatmul.mubr.f32.vlgmr.msra.gmra.mrb[0].mxu0 %v17298_v3  ;;  %6865 = vmatmul.mubr.f32.vlgmr.msra.gmra.mrb[0].mxu1 %v17298_v3 }
  0x7b   :  { %11057 = vmatpush1.bf16.msra.mxu0 %v15151_v28  ;;  %11557 = vmatpush1.bf16.msra.mxu1 %v15401_v63  ;;  %v15415_v28 = vcombine.low %v427_v16, %v435_v17  ;;  %v15166_v63 = vcombine.high %v442_v22, %v450_v23  ;;  %v547_v16 = vld [vmem:[#allocation5 + $0xf48] sm:$0xff]  ;;  %v562_v22 = vld [vmem:[#allocation5 + $0xfc0] sm:$0xff] }
  0x7c   :  { %11059 = vmatprep.subr.bf16.mxu0 %v15152_v29  ;;  %11559 = vmatprep.subr.bf16.mxu1 %v15402_v30  ;;  %v15416_v29 = vcombine.high %v443_v24, %v451_v26  ;;  %v458_v30 = vld [vmem:[#allocation5 + $0xc80] sm:$0xff]  ;;  %v555_v23 = vld [vmem:[#allocation5 + $0xf88] sm:$0xff] }
  0x7d   :  { %6367 = vmatprep.mubr.f32.mxu0 %v17313_v33  ;;  %6935 = vmatprep.mubr.f32.mxu1 %v17313_v33  ;;  %v15169_v43 = vcombine.low %v458_v30, %v466_v31 }
  0x7f   :  { %11061 = vmatpush1.bf16.msra.mxu0 %v15153_v36  ;;  %11561 = vmatpush1.bf16.msra.mxu1 %v15403_v37  ;;  %v15417_v36 = vcombine.low %v443_v24, %v451_v26  ;;  %v15168_v37 = vcombine.high %v458_v30, %v466_v31  ;;  %v563_v24 = vld [vmem:[#allocation5 + $0xfc8] sm:$0xff]  ;;  %v578_v30 = vld [vmem:[#allocation5 + $0x1040] sm:$0xff]  ;;  %v17320_v31 = vunpack.c.h.bf16 %v17291_v59 }
  0x80   :  { %11063 = vmatprep.subr.bf16.mxu0 %v15154_v38  ;;  %11563 = vmatprep.subr.bf16.mxu1 %v15404_v39  ;;  %v15418_v38 = vcombine.high %v459_v32, %v467_v34  ;;  %v474_v39 = vld [vmem:[#allocation5 + $0xd00] sm:$0xff] }
  0x81   :  { %v15171_v52 = vcombine.low %v474_v39, %v482_v40 }
  0x83   :  { %11065 = vmatpush1.bf16.msra.mxu0 %v15155_v44  ;;  %11565 = vmatpush1.bf16.msra.mxu1 %v15405_v45  ;;  %v15419_v44 = vcombine.low %v459_v32, %v467_v34  ;;  %v15170_v45 = vcombine.high %v474_v39, %v482_v40  ;;  %v571_v32 = vld [vmem:[#allocation5 + $0x1008] sm:$0xff]  ;;  %v586_v39 = vld [vmem:[#allocation5 + $0x1080] sm:$0xff] }
  0x84   :  { %11067 = vmatprep.subr.bf16.mxu0 %v15156_v47  ;;  %11567 = vmatprep.subr.bf16.mxu1 %v15406_v48  ;;  %v15420_v47 = vcombine.high %v475_v41, %v483_v42  ;;  %v490_v48 = vld [vmem:[#allocation5 + $0xd80] sm:$0xff]  ;;  %v579_v34 = vld [vmem:[#allocation5 + $0x1048] sm:$0xff] }
  0x85   :  { %v15173_v62 = vcombine.low %v490_v48, %v498_v49  ;;  %v594_v40 = vld [vmem:[#allocation5 + $0x10c0] sm:$0xff] }
  0x87   :  { %11069 = vmatpush1.bf16.msra.mxu0 %v15157_v53  ;;  %11569 = vmatpush1.bf16.msra.mxu1 %v15407_v54  ;;  %v15421_v53 = vcombine.low %v475_v41, %v483_v42  ;;  %v15172_v54 = vcombine.high %v490_v48, %v498_v49  ;;  %v17324_v41 = vrot.slane %v17320_v31, %v17289_v56  ;;  %v587_v42 = vld [vmem:[#allocation5 + $0x1088] sm:$0xff]  ;;  %v602_v48 = vld [vmem:[#allocation5 + $0x1100] sm:$0xff] }
  0x88   :  { %11071 = vmatprep.subr.bf16.mxu0 %v15158_v55  ;;  %11571 = vmatprep.subr.bf16.mxu1 %v15408_v57  ;;  %v15422_v55 = vcombine.high %v491_v50, %v499_v51  ;;  %v506_v57 = vld [vmem:[#allocation5 + $0xe00] sm:$0xff] }
  0x89   :  { %v15175_v8 = vcombine.low %v506_v57, %v514_v58  ;;  %v610_v49 = vld [vmem:[#allocation5 + $0x1140] sm:$0xff] }
  0x8b   :  { %11073 = vmatpush1.bf16.msra.mxu0 %v15159_v0  ;;  %11573 = vmatpush1.bf16.msra.mxu1 %v15409_v1  ;;  %v15423_v0 = vcombine.low %v491_v50, %v499_v51  ;;  %v15174_v1 = vcombine.high %v506_v57, %v514_v58  ;;  %v17328_v50 = vcombine.high %v17324_v41, %v17324_v41  ;;  %v603_v51 = vld [vmem:[#allocation5 + $0x1108] sm:$0xff]  ;;  %v618_v58 = vld [vmem:[#allocation5 + $0x1180] sm:$0xff] }
  0x8c   :  { %11075 = vmatprep.subr.bf16.mxu0 %v15160_v2  ;;  %11575 = vmatprep.subr.bf16.mxu1 %v15410_v4  ;;  %v15424_v2 = vcombine.high %v507_v60, %v515_v61  ;;  %v522_v4 = vld [vmem:[#allocation5 + $0xe80] sm:$0xff] }
  0x8d   :  { %v15177_v17 = vcombine.low %v522_v4, %v530_v5 }
  0x8f   :  { %11077 = vmatpush1.bf16.msra.mxu0 %v15161_v10  ;;  %11577 = vmatpush1.bf16.msra.mxu1 %v15411_v11  ;;  %v15425_v10 = vcombine.low %v507_v60, %v515_v61  ;;  %v15176_v11 = vcombine.high %v522_v4, %v530_v5  ;;  %v626_v60 = vld [vmem:[#allocation5 + $0x11c0] sm:$0xff]  ;;  %v619_v61 = vld [vmem:[#allocation5 + $0x1188] sm:$0xff] }
  0x90   :  { %11079 = vmatprep.subr.bf16.mxu0 %v15162_v12  ;;  %11579 = vmatprep.subr.bf16.mxu1 %v15412_v13  ;;  %v15426_v12 = vcombine.high %v523_v6, %v531_v7  ;;  %v538_v13 = vld [vmem:[#allocation5 + $0xf00] sm:$0xff] }
  0x91   :  { %v15179_v26 = vcombine.low %v538_v13, %v546_v14  ;;  %v634_v5 = vld [vmem:[#allocation5 + $0x1200] sm:$0xff] }
  0x93   :  { %11081 = vmatpush1.bf16.msra.mxu0 %v15163_v18  ;;  %11581 = vmatpush1.bf16.msra.mxu1 %v15413_v19  ;;  %v15427_v18 = vcombine.low %v523_v6, %v531_v7  ;;  %v15178_v19 = vcombine.high %v538_v13, %v546_v14  ;;  %v642_v6 = vld [vmem:[#allocation5 + $0x1240] sm:$0xff]  ;;  %v635_v7 = vld [vmem:[#allocation5 + $0x1208] sm:$0xff] }
  0x94   :  { %11083 = vmatprep.subr.bf16.mxu0 %v15164_v20  ;;  %11583 = vmatprep.subr.bf16.mxu1 %v15414_v21  ;;  %v15428_v20 = vcombine.high %v539_v15, %v547_v16  ;;  %v554_v21 = vld [vmem:[#allocation5 + $0xf80] sm:$0xff] }
  0x95   :  { %v650_v14 = vld [vmem:[#allocation5 + $0x1280] sm:$0xff] }
  0x97   :  { %11085 = vmatpush1.bf16.msra.mxu0 %v15165_v27  ;;  %11585 = vmatpush1.bf16.msra.mxu1 %v15415_v28  ;;  %v15429_v27 = vcombine.low %v539_v15, %v547_v16  ;;  %v15180_v28 = vcombine.high %v554_v21, %v562_v22  ;;  %v658_v15 = vld [vmem:[#allocation5 + $0x12c0] sm:$0xff]  ;;  %v651_v16 = vld [vmem:[#allocation5 + $0x1288] sm:$0xff] }
  0x98   :  { %11087 = vmatprep.subr.bf16.mxu0 %v15166_v63  ;;  %11587 = vmatprep.subr.bf16.mxu1 %v15416_v29  ;;  %v15430_v63 = vcombine.high %v555_v23, %v563_v24  ;;  %v570_v29 = vld [vmem:[#allocation5 + $0x1000] sm:$0xff] }
  0x99   :  { %v15183_v59 = vcombine.low %v570_v29, %v578_v30 }
  0x9b   :  { %11089 = vmatpush1.bf16.msra.mxu0 %v15167_v35  ;;  %11589 = vmatpush1.bf16.msra.mxu1 %v15417_v36  ;;  %v15181_v35 = vcombine.low %v554_v21, %v562_v22  ;;  %v15431_v36 = vcombine.low %v555_v23, %v563_v24  ;;  %v666_v22 = vld [vmem:[#allocation5 + $0x1300] sm:$0xff]  ;;  %v667_v24 = vld [vmem:[#allocation5 + $0x1308] sm:$0xff] }
  0x9c   :  { %11091 = vmatprep.subr.bf16.mxu0 %v15168_v37  ;;  %11591 = vmatprep.subr.bf16.mxu1 %v15418_v38  ;;  %v15182_v37 = vcombine.high %v570_v29, %v578_v30  ;;  %v15432_v38 = vcombine.high %v571_v32, %v579_v34  ;;  %v674_v23 = vld [vmem:[#allocation5 + $0x1340] sm:$0xff] }
  0x9d   :  { %v682_v30 = vld [vmem:[#allocation5 + $0x1380] sm:$0xff] }
  0x9f   :  { %11093 = vmatpush1.bf16.msra.mxu0 %v15169_v43  ;;  %11593 = vmatpush1.bf16.msra.mxu1 %v15419_v44  ;;  %v595_v43 = vld [vmem:[#allocation5 + $0x10c8] sm:$0xff]  ;;  %v15433_v44 = vcombine.low %v571_v32, %v579_v34  ;;  %v690_v32 = vld [vmem:[#allocation5 + $0x13c0] sm:$0xff] }
  0xa0   :  { %11095 = vmatprep.subr.bf16.mxu0 %v15170_v45  ;;  %11595 = vmatprep.subr.bf16.mxu1 %v15420_v47  ;;  %v15184_v45 = vcombine.high %v586_v39, %v594_v40  ;;  %v15434_v47 = vcombine.high %v587_v42, %v595_v43  ;;  %v683_v34 = vld [vmem:[#allocation5 + $0x1388] sm:$0xff] }
  0xa3   :  { %11097 = vmatpush1.bf16.msra.mxu0 %v15171_v52  ;;  %11597 = vmatpush1.bf16.msra.mxu1 %v15421_v53  ;;  %v611_v52 = vld [vmem:[#allocation5 + $0x1148] sm:$0xff]  ;;  %v15185_v53 = vcombine.low %v586_v39, %v594_v40  ;;  %v698_v40 = vld [vmem:[#allocation5 + $0x1400] sm:$0xff] }
  0xa4   :  { %11099 = vmatprep.subr.bf16.mxu0 %v15172_v54  ;;  %11599 = vmatprep.subr.bf16.mxu1 %v15422_v55  ;;  %v15435_v54 = vcombine.low %v587_v42, %v595_v43  ;;  %v15186_v55 = vcombine.high %v602_v48, %v610_v49  ;;  %v15436_v57 = vcombine.high %v603_v51, %v611_v52  ;;  %v706_v42 = vld [vmem:[#allocation5 + $0x1440] sm:$0xff]  ;;  %v699_v43 = vld [vmem:[#allocation5 + $0x1408] sm:$0xff] }
  0xa7   :  { %11101 = vmatpush1.bf16.msra.mxu0 %v15173_v62  ;;  %11601 = vmatpush1.bf16.msra.mxu1 %v15423_v0  ;;  %v627_v62 = vld [vmem:[#allocation5 + $0x11c8] sm:$0xff]  ;;  %v15187_v0 = vcombine.low %v602_v48, %v610_v49  ;;  %v714_v49 = vld [vmem:[#allocation5 + $0x1480] sm:$0xff] }
  0xa8   :  { %11103 = vmatprep.subr.bf16.mxu0 %v15174_v1  ;;  %11603 = vmatprep.subr.bf16.mxu1 %v15424_v2  ;;  %v15437_v1 = vcombine.low %v603_v51, %v611_v52  ;;  %v15188_v2 = vcombine.high %v618_v58, %v626_v60  ;;  %v15438_v4 = vcombine.high %v619_v61, %v627_v62  ;;  %v722_v51 = vld [vmem:[#allocation5 + $0x14c0] sm:$0xff]  ;;  %v715_v52 = vld [vmem:[#allocation5 + $0x1488] sm:$0xff] }
  0xab   :  { %11105 = vmatpush1.bf16.msra.mxu0 %v15175_v8  ;;  %11605 = vmatpush1.bf16.msra.mxu1 %v15425_v10  ;;  %v643_v8 = vld [vmem:[#allocation5 + $0x1248] sm:$0xff]  ;;  %v15189_v10 = vcombine.low %v618_v58, %v626_v60  ;;  %v730_v60 = vld [vmem:[#allocation5 + $0x1500] sm:$0xff] }
  0xac   :  { %11107 = vmatprep.subr.bf16.mxu0 %v15176_v11  ;;  %11607 = vmatprep.subr.bf16.mxu1 %v15426_v12  ;;  %v15439_v11 = vcombine.low %v619_v61, %v627_v62  ;;  %v15190_v12 = vcombine.high %v634_v5, %v642_v6  ;;  %v15440_v13 = vcombine.high %v635_v7, %v643_v8  ;;  %v738_v61 = vld [vmem:[#allocation5 + $0x1540] sm:$0xff]  ;;  %v731_v62 = vld [vmem:[#allocation5 + $0x1508] sm:$0xff] }
  0xaf   :  { %11109 = vmatpush1.bf16.msra.mxu0 %v15177_v17  ;;  %11609 = vmatpush1.bf16.msra.mxu1 %v15427_v18  ;;  %v659_v17 = vld [vmem:[#allocation5 + $0x12c8] sm:$0xff]  ;;  %v15191_v18 = vcombine.low %v634_v5, %v642_v6  ;;  %v746_v6 = vld [vmem:[#allocation5 + $0x1580] sm:$0xff] }
  0xb0   :  { %11111 = vmatprep.subr.bf16.mxu0 %v15178_v19  ;;  %11611 = vmatprep.subr.bf16.mxu1 %v15428_v20  ;;  %v15441_v19 = vcombine.low %v635_v7, %v643_v8  ;;  %v15192_v20 = vcombine.high %v650_v14, %v658_v15  ;;  %v15442_v21 = vcombine.high %v651_v16, %v659_v17  ;;  %v754_v7 = vld [vmem:[#allocation5 + $0x15c0] sm:$0xff]  ;;  %v747_v8 = vld [vmem:[#allocation5 + $0x1588] sm:$0xff] }
  0xb3   :  { %11113 = vmatpush1.bf16.msra.mxu0 %v15179_v26  ;;  %11613 = vmatpush1.bf16.msra.mxu1 %v15429_v27  ;;  %v675_v26 = vld [vmem:[#allocation5 + $0x1348] sm:$0xff]  ;;  %v15193_v27 = vcombine.low %v650_v14, %v658_v15  ;;  %v762_v15 = vld [vmem:[#allocation5 + $0x1600] sm:$0xff] }
  0xb4   :  { %11115 = vmatprep.subr.bf16.mxu0 %v15180_v28  ;;  %11615 = vmatprep.subr.bf16.mxu1 %v15430_v63  ;;  %v15443_v28 = vcombine.low %v651_v16, %v659_v17  ;;  %v15194_v63 = vcombine.high %v666_v22, %v674_v23  ;;  %v15444_v29 = vcombine.high %v667_v24, %v675_v26  ;;  %v770_v16 = vld [vmem:[#allocation5 + $0x1640] sm:$0xff]  ;;  %v763_v17 = vld [vmem:[#allocation5 + $0x1608] sm:$0xff] }
  0xb7   :  { %11117 = vmatpush1.bf16.msra.mxu0 %v15181_v35  ;;  %11617 = vmatpush1.bf16.msra.mxu1 %v15431_v36  ;;  %v691_v35 = vld [vmem:[#allocation5 + $0x13c8] sm:$0xff]  ;;  %v15195_v36 = vcombine.low %v666_v22, %v674_v23  ;;  %v778_v23 = vld [vmem:[#allocation5 + $0x1680] sm:$0xff] }
  0xb8   :  { %11119 = vmatprep.subr.bf16.mxu0 %v15182_v37  ;;  %11619 = vmatprep.subr.bf16.mxu1 %v15432_v38  ;;  %v15445_v37 = vcombine.low %v667_v24, %v675_v26  ;;  %v15196_v38 = vcombine.high %v682_v30, %v690_v32  ;;  %v15446_v39 = vcombine.high %v683_v34, %v691_v35  ;;  %v786_v24 = vld [vmem:[#allocation5 + $0x16c0] sm:$0xff]  ;;  %v779_v26 = vld [vmem:[#allocation5 + $0x1688] sm:$0xff] }
  0xba   :  { %6368 = vmatmul.mubr.f32.vlgmr.msra.gmra.mrb[0].mxu0 %v17309_v25  ;;  %6936 = vmatmul.mubr.f32.vlgmr.msra.gmra.mrb[0].mxu1 %v17309_v25 }
  0xbb   :  { %11121 = vmatpush1.bf16.msra.mxu0 %v15183_v59  ;;  %11621 = vmatpush1.bf16.msra.mxu1 %v15433_v44  ;;  %v707_v59 = vld [vmem:[#allocation5 + $0x1448] sm:$0xff]  ;;  %v15197_v44 = vcombine.low %v682_v30, %v690_v32  ;;  %v794_v32 = vld [vmem:[#allocation5 + $0x1700] sm:$0xff] }
  0xbc   :  { %11123 = vmatprep.subr.bf16.mxu0 %v15184_v45  ;;  %11623 = vmatprep.subr.bf16.mxu1 %v15434_v47  ;;  %v15447_v45 = vcombine.low %v683_v34, %v691_v35  ;;  %v15198_v47 = vcombine.high %v698_v40, %v706_v42  ;;  %v15448_v48 = vcombine.high %v699_v43, %v707_v59  ;;  %v802_v34 = vld [vmem:[#allocation5 + $0x1740] sm:$0xff]  ;;  %v795_v35 = vld [vmem:[#allocation5 + $0x1708] sm:$0xff] }
  0xbd   :  { %6438 = vmatprep.mubr.f32.mxu0 %v17328_v50  ;;  %7006 = vmatprep.mubr.f32.mxu1 %v17328_v50 }
  0xbf   :  { %11125 = vmatpush1.bf16.msra.mxu0 %v15185_v53  ;;  %11625 = vmatpush1.bf16.msra.mxu1 %v15435_v54  ;;  %v723_v53 = vld [vmem:[#allocation5 + $0x14c8] sm:$0xff]  ;;  %v15199_v54 = vcombine.low %v698_v40, %v706_v42  ;;  %v810_v42 = vld [vmem:[#allocation5 + $0x1780] sm:$0xff] }
  0xc0   :  { %11127 = vmatprep.subr.bf16.mxu0 %v15186_v55  ;;  %11627 = vmatprep.subr.bf16.mxu1 %v15436_v57  ;;  %v15449_v55 = vcombine.low %v699_v43, %v707_v59  ;;  %v15200_v57 = vcombine.high %v714_v49, %v722_v51  ;;  %v15450_v58 = vcombine.high %v715_v52, %v723_v53  ;;  %v818_v43 = vld [vmem:[#allocation5 + $0x17c0] sm:$0xff]  ;;  %v811_v59 = vld [vmem:[#allocation5 + $0x1788] sm:$0xff] }
  0xc3   :  { %11129 = vmatpush1.bf16.msra.mxu0 %v15187_v0  ;;  %11629 = vmatpush1.bf16.msra.mxu1 %v15437_v1  ;;  %v739_v0 = vld [vmem:[#allocation5 + $0x1548] sm:$0xff]  ;;  %v15201_v1 = vcombine.low %v714_v49, %v722_v51  ;;  %v826_v51 = vld [vmem:[#allocation5 + $0x1800] sm:$0xff] }
  0xc4   :  { %11131 = vmatprep.subr.bf16.mxu0 %v15188_v2  ;;  %11631 = vmatprep.subr.bf16.mxu1 %v15438_v4  ;;  %v15451_v2 = vcombine.low %v715_v52, %v723_v53  ;;  %v15202_v4 = vcombine.high %v730_v60, %v738_v61  ;;  %v15452_v5 = vcombine.high %v731_v62, %v739_v0  ;;  %v834_v52 = vld [vmem:[#allocation5 + $0x1840] sm:$0xff] }
  0xc5   :  { %v6163_v53 = vcombine.high %v17320_v31, %v17320_v31 }
  0xc7   :  { %11133 = vmatpush1.bf16.msra.mxu0 %v15189_v10  ;;  %11633 = vmatpush1.bf16.msra.mxu1 %v15439_v11  ;;  %v755_v10 = vld [vmem:[#allocation5 + $0x15c8] sm:$0xff]  ;;  %v15203_v11 = vcombine.low %v730_v60, %v738_v61  ;;  %v15214_v60 = vcombine.high %v826_v51, %v834_v52 }
  0xc8   :  { %11135 = vmatprep.subr.bf16.mxu0 %v15190_v12  ;;  %11635 = vmatprep.subr.bf16.mxu1 %v15440_v13  ;;  %v15453_v12 = vcombine.low %v731_v62, %v739_v0  ;;  %v15204_v13 = vcombine.high %v746_v6, %v754_v7  ;;  %v15454_v14 = vcombine.high %v747_v8, %v755_v10  ;;  %v842_v62 = vld [vmem:[#allocation5 + $0x1880] sm:$0xff] }
  0xc9   :  { %v850_v0 = vld [vmem:[#allocation5 + $0x18c0] sm:$0xff] }
  0xcb   :  { %11137 = vmatpush1.bf16.msra.mxu0 %v15191_v18  ;;  %11637 = vmatpush1.bf16.msra.mxu1 %v15441_v19  ;;  %v771_v18 = vld [vmem:[#allocation5 + $0x1648] sm:$0xff]  ;;  %v15205_v19 = vcombine.low %v746_v6, %v754_v7  ;;  %v15216_v6 = vcombine.high %v842_v62, %v850_v0 }
  0xcc   :  { %11139 = vmatprep.subr.bf16.mxu0 %v15192_v20  ;;  %11639 = vmatprep.subr.bf16.mxu1 %v15442_v21  ;;  %v15455_v20 = vcombine.low %v747_v8, %v755_v10  ;;  %v15206_v21 = vcombine.high %v762_v15, %v770_v16  ;;  %v15456_v22 = vcombine.high %v763_v17, %v771_v18  ;;  %v858_v8 = vld [vmem:[#allocation5 + $0x1900] sm:$0xff] }
  0xcd   :  { %v866_v10 = vld [vmem:[#allocation5 + $0x1940] sm:$0xff] }
  0xcf   :  { %11141 = vmatpush1.bf16.msra.mxu0 %v15193_v27  ;;  %11641 = vmatpush1.bf16.msra.mxu1 %v15443_v28  ;;  %v787_v27 = vld [vmem:[#allocation5 + $0x16c8] sm:$0xff]  ;;  %v15207_v28 = vcombine.low %v762_v15, %v770_v16  ;;  %v15218_v16 = vcombine.high %v858_v8, %v866_v10 }
  0xd0   :  { %11143 = vmatprep.subr.bf16.mxu0 %v15194_v63  ;;  %11643 = vmatprep.subr.bf16.mxu1 %v15444_v29  ;;  %v15457_v63 = vcombine.low %v763_v17, %v771_v18  ;;  %v15208_v29 = vcombine.high %v778_v23, %v786_v24  ;;  %v15458_v30 = vcombine.high %v779_v26, %v787_v27  ;;  %v874_v18 = vld [vmem:[#allocation5 + $0x1980] sm:$0xff] }
  0xd3   :  { %11145 = vmatpush1.bf16.msra.mxu0 %v15195_v36  ;;  %11645 = vmatpush1.bf16.msra.mxu1 %v15445_v37  ;;  %v803_v36 = vld [vmem:[#allocation5 + $0x1748] sm:$0xff]  ;;  %v15209_v37 = vcombine.low %v778_v23, %v786_v24 }
  0xd4   :  { %11147 = vmatprep.subr.bf16.mxu0 %v15196_v38  ;;  %11647 = vmatprep.subr.bf16.mxu1 %v15446_v39  ;;  %v15459_v38 = vcombine.low %v779_v26, %v787_v27  ;;  %v15210_v39 = vcombine.high %v794_v32, %v802_v34  ;;  %v15460_v40 = vcombine.high %v795_v35, %v803_v36  ;;  %v890_v27 = vld [vmem:[#allocation5 + $0x1a00] sm:$0xff] }
  0xd7   :  { %11149 = vmatpush1.bf16.msra.mxu0 %v15197_v44  ;;  %11649 = vmatpush1.bf16.msra.mxu1 %v15447_v45  ;;  %v819_v44 = vld [vmem:[#allocation5 + $0x17c8] sm:$0xff]  ;;  %v15211_v45 = vcombine.low %v794_v32, %v802_v34 }
  0xd8   :  { %11151 = vmatprep.subr.bf16.mxu0 %v15198_v47  ;;  %11651 = vmatprep.subr.bf16.mxu1 %v15448_v48  ;;  %v15461_v47 = vcombine.low %v795_v35, %v803_v36  ;;  %v15212_v48 = vcombine.high %v810_v42, %v818_v43  ;;  %v15462_v49 = vcombine.high %v811_v59, %v819_v44  ;;  %v906_v36 = vld [vmem:[#allocation5 + $0x1a80] sm:$0xff] }
  0xdb   :  { %11153 = vmatpush1.bf16.msra.mxu0 %v15199_v54  ;;  %11653 = vmatpush1.bf16.msra.mxu1 %v15449_v55  ;;  %v827_v54 = vld [vmem:[#allocation5 + $0x1808] sm:$0xff] }
  0xdc   :  { %11155 = vmatprep.subr.bf16.mxu0 %v15200_v57  ;;  %11655 = vmatprep.subr.bf16.mxu1 %v15450_v58  ;;  %v835_v55 = vld [vmem:[#allocation5 + $0x1848] sm:$0xff]  ;;  %v15213_v57 = vcombine.low %v810_v42, %v818_v43  ;;  %v15463_v58 = vcombine.low %v811_v59, %v819_v44  ;;  %v922_v44 = vld [vmem:[#allocation5 + $0x1b00] sm:$0xff] }
  0xdd   :  { %v15464_v61 = vcombine.high %v827_v54, %v835_v55  ;;  %v15465_v31 = vcombine.low %v827_v54, %v835_v55  ;;  %v938_v54 = vld [vmem:[#allocation5 + $0x1b80] sm:$0xff] }
  0xde   :  { %v946_v55 = vld [vmem:[#allocation5 + $0x1bc0] sm:$0xff] }
  0xdf   :  { %11157 = vmatpush1.bf16.msra.mxu0 %v15201_v1  ;;  %11657 = vmatpush1.bf16.msra.mxu1 %v15451_v2  ;;  %v17337_v1 = vrot.slane %v6163_v53, %v17289_v56  ;;  %v843_v2 = vld [vmem:[#allocation5 + $0x1888] sm:$0xff] }
  0xe0   :  { %11159 = vmatprep.subr.bf16.mxu0 %v15202_v4  ;;  %11659 = vmatprep.subr.bf16.mxu1 %v15452_v5  ;;  %v851_v4 = vld [vmem:[#allocation5 + $0x18c8] sm:$0xff]  ;;  %v15215_v5 = vcombine.low %v826_v51, %v834_v52 }
  0xe1   :  { %v15466_v7 = vcombine.high %v843_v2, %v851_v4  ;;  %v15467_v15 = vcombine.low %v843_v2, %v851_v4  ;;  %v954_v2 = vld [vmem:[#allocation5 + $0x1c00] sm:$0xff] }
  0xe2   :  { %v962_v4 = vld [vmem:[#allocation5 + $0x1c40] sm:$0xff] }
  0xe3   :  { %11161 = vmatpush1.bf16.msra.mxu0 %v15203_v11  ;;  %11661 = vmatpush1.bf16.msra.mxu1 %v15453_v12  ;;  %v17341_v11 = vcombine.high %v17337_v1, %v17337_v1  ;;  %v859_v12 = vld [vmem:[#allocation5 + $0x1908] sm:$0xff] }
  0xe4   :  { %11163 = vmatprep.subr.bf16.mxu0 %v15204_v13  ;;  %11663 = vmatprep.subr.bf16.mxu1 %v15454_v14  ;;  %v867_v13 = vld [vmem:[#allocation5 + $0x1948] sm:$0xff]  ;;  %v15217_v14 = vcombine.low %v842_v62, %v850_v0  ;;  %v15228_v62 = vcombine.high %v938_v54, %v946_v55 }
  0xe5   :  { %v15468_v17 = vcombine.high %v859_v12, %v867_v13  ;;  %v15469_v23 = vcombine.low %v859_v12, %v867_v13  ;;  %v970_v12 = vld [vmem:[#allocation5 + $0x1c80] sm:$0xff] }
  0xe6   :  { %v978_v13 = vld [vmem:[#allocation5 + $0x1cc0] sm:$0xff] }
  0xe7   :  { %11165 = vmatpush1.bf16.msra.mxu0 %v15205_v19  ;;  %11665 = vmatpush1.bf16.msra.mxu1 %v15455_v20  ;;  %v882_v19 = vld [vmem:[#allocation5 + $0x19c0] sm:$0xff]  ;;  %v875_v20 = vld [vmem:[#allocation5 + $0x1988] sm:$0xff] }
  0xe8   :  { %11167 = vmatprep.subr.bf16.mxu0 %v15206_v21  ;;  %11667 = vmatprep.subr.bf16.mxu1 %v15456_v22  ;;  %v883_v21 = vld [vmem:[#allocation5 + $0x19c8] sm:$0xff]  ;;  %v15219_v22 = vcombine.low %v858_v8, %v866_v10  ;;  %v15220_v24 = vcombine.high %v874_v18, %v882_v19  ;;  %v15230_v8 = vcombine.high %v954_v2, %v962_v4 }
  0xe9   :  { %v15470_v26 = vcombine.high %v875_v20, %v883_v21  ;;  %v15471_v32 = vcombine.low %v875_v20, %v883_v21  ;;  %v986_v20 = vld [vmem:[#allocation5 + $0x1d00] sm:$0xff] }
  0xea   :  { %v994_v21 = vld [vmem:[#allocation5 + $0x1d40] sm:$0xff] }
  0xeb   :  { %11169 = vmatpush1.bf16.msra.mxu0 %v15207_v28  ;;  %11669 = vmatpush1.bf16.msra.mxu1 %v15457_v63  ;;  %v898_v28 = vld [vmem:[#allocation5 + $0x1a40] sm:$0xff]  ;;  %v891_v63 = vld [vmem:[#allocation5 + $0x1a08] sm:$0xff] }
  0xec   :  { %11171 = vmatprep.subr.bf16.mxu0 %v15208_v29  ;;  %11671 = vmatprep.subr.bf16.mxu1 %v15458_v30  ;;  %v899_v29 = vld [vmem:[#allocation5 + $0x1a48] sm:$0xff]  ;;  %v15221_v30 = vcombine.low %v874_v18, %v882_v19  ;;  %v15222_v34 = vcombine.high %v890_v27, %v898_v28  ;;  %v15232_v18 = vcombine.high %v970_v12, %v978_v13 }
  0xed   :  { %v15472_v35 = vcombine.high %v891_v63, %v899_v29  ;;  %v15473_v42 = vcombine.low %v891_v63, %v899_v29  ;;  %v1002_v63 = vld [vmem:[#allocation5 + $0x1d80] sm:$0xff] }
  0xee   :  { %v1010_v29 = vld [vmem:[#allocation5 + $0x1dc0] sm:$0xff] }
  0xef   :  { %11173 = vmatpush1.bf16.msra.mxu0 %v15209_v37  ;;  %11673 = vmatpush1.bf16.msra.mxu1 %v15459_v38  ;;  %v914_v37 = vld [vmem:[#allocation5 + $0x1ac0] sm:$0xff]  ;;  %v907_v38 = vld [vmem:[#allocation5 + $0x1a88] sm:$0xff] }
  0xf0   :  { %11175 = vmatprep.subr.bf16.mxu0 %v15210_v39  ;;  %11675 = vmatprep.subr.bf16.mxu1 %v15460_v40  ;;  %v915_v39 = vld [vmem:[#allocation5 + $0x1ac8] sm:$0xff]  ;;  %v15223_v40 = vcombine.low %v890_v27, %v898_v28  ;;  %v15224_v43 = vcombine.high %v906_v36, %v914_v37  ;;  %v15234_v27 = vcombine.high %v986_v20, %v994_v21 }
  0xf1   :  { %v15474_v59 = vcombine.high %v907_v38, %v915_v39  ;;  %v15475_v51 = vcombine.low %v907_v38, %v915_v39  ;;  %v1018_v38 = vld [vmem:[#allocation5 + $0x1e00] sm:$0xff] }
  0xf2   :  { %v1026_v39 = vld [vmem:[#allocation5 + $0x1e40] sm:$0xff] }
  0xf3   :  { %11177 = vmatpush1.bf16.msra.mxu0 %v15211_v45  ;;  %11677 = vmatpush1.bf16.msra.mxu1 %v15461_v47  ;;  %v930_v45 = vld [vmem:[#allocation5 + $0x1b40] sm:$0xff]  ;;  %v923_v47 = vld [vmem:[#allocation5 + $0x1b08] sm:$0xff] }
  0xf4   :  { %11179 = vmatprep.subr.bf16.mxu0 %v15212_v48  ;;  %11679 = vmatprep.subr.bf16.mxu1 %v15462_v49  ;;  %v931_v48 = vld [vmem:[#allocation5 + $0x1b48] sm:$0xff]  ;;  %v15225_v49 = vcombine.low %v906_v36, %v914_v37  ;;  %v15226_v52 = vcombine.high %v922_v44, %v930_v45  ;;  %v15236_v36 = vcombine.high %v1002_v63, %v1010_v29 }
  0xf5   :  { %v15476_v53 = vcombine.high %v923_v47, %v931_v48 }
  0xf7   :  { %11181 = vmatpush1.bf16.msra.mxu0 %v15213_v57  ;;  %11681 = vmatpush1.bf16.msra.mxu1 %v15463_v58  ;;  %v939_v57 = vld [vmem:[#allocation5 + $0x1b88] sm:$0xff] }
  0xf8   :  { %11183 = vmatprep.subr.bf16.mxu0 %v15214_v60  ;;  %11683 = vmatprep.subr.bf16.mxu1 %v15464_v61  ;;  %v947_v58 = vld [vmem:[#allocation5 + $0x1bc8] sm:$0xff]  ;;  %v15227_v60 = vcombine.low %v922_v44, %v930_v45  ;;  %v15477_v61 = vcombine.low %v923_v47, %v931_v48  ;;  %v15238_v44 = vcombine.high %v1018_v38, %v1026_v39  ;;  %v1034_v47 = vld [vmem:[#allocation5 + $0x1e80] sm:$0xff] }
  0xf9   :  { %v15478_v0 = vcombine.high %v939_v57, %v947_v58  ;;  %v1042_v48 = vld [vmem:[#allocation5 + $0x1ec0] sm:$0xff] }
  0xfa   :  { %6439 = vmatmul.mubr.f32.vlgmr.msra.gmra.mrb[0].mxu0 %v17324_v41  ;;  %7007 = vmatmul.mubr.f32.vlgmr.msra.gmra.mrb[0].mxu1 %v17324_v41 }
  0xfb   :  { %11185 = vmatpush1.bf16.msra.mxu0 %v15215_v5  ;;  %11685 = vmatpush1.bf16.msra.mxu1 %v15465_v31  ;;  %v955_v5 = vld [vmem:[#allocation5 + $0x1c08] sm:$0xff] }
  0xfc   :  { %11187 = vmatprep.subr.bf16.mxu0 %v15216_v6  ;;  %11687 = vmatprep.subr.bf16.mxu1 %v15466_v7  ;;  %v963_v31 = vld [vmem:[#allocation5 + $0x1c48] sm:$0xff]  ;;  %v15229_v6 = vcombine.low %v938_v54, %v946_v55  ;;  %v15479_v7 = vcombine.low %v939_v57, %v947_v58  ;;  %v15240_v54 = vcombine.high %v1034_v47, %v1042_v48  ;;  %v1050_v57 = vld [vmem:[#allocation5 + $0x1f00] sm:$0xff] }
  0xfd   :  { %6509 = vmatprep.mubr.f32.mxu0 %v17341_v11  ;;  %7077 = vmatprep.mubr.f32.mxu1 %v17341_v11  ;;  %v15480_v10 = vcombine.high %v955_v5, %v963_v31  ;;  %v1058_v58 = vld [vmem:[#allocation5 + $0x1f40] sm:$0xff] }
  0xff   :  { %11189 = vmatpush1.bf16.msra.mxu0 %v15217_v14  ;;  %11689 = vmatpush1.bf16.msra.mxu1 %v15467_v15  ;;  %v971_v14 = vld [vmem:[#allocation5 + $0x1c88] sm:$0xff] }
 0x100   :  { %11191 = vmatprep.subr.bf16.mxu0 %v15218_v16  ;;  %11691 = vmatprep.subr.bf16.mxu1 %v15468_v17  ;;  %v979_v15 = vld [vmem:[#allocation5 + $0x1cc8] sm:$0xff]  ;;  %v15231_v16 = vcombine.low %v954_v2, %v962_v4  ;;  %v15481_v17 = vcombine.low %v955_v5, %v963_v31  ;;  %v15242_v2 = vcombine.high %v1050_v57, %v1058_v58  ;;  %v1066_v5 = vld [vmem:[#allocation5 + $0x1f80] sm:$0xff] }
 0x101   :  { %v15482_v19 = vcombine.high %v971_v14, %v979_v15  ;;  %v1074_v31 = vld [vmem:[#allocation5 + $0x1fc0] sm:$0xff] }
 0x103   :  { %11193 = vmatpush1.bf16.msra.mxu0 %v15219_v22  ;;  %11693 = vmatpush1.bf16.msra.mxu1 %v15469_v23  ;;  %v987_v22 = vld [vmem:[#allocation5 + $0x1d08] sm:$0xff] }
 0x104   :  { %11195 = vmatprep.subr.bf16.mxu0 %v15220_v24  ;;  %11695 = vmatprep.subr.bf16.mxu1 %v15470_v26  ;;  %v995_v23 = vld [vmem:[#allocation5 + $0x1d48] sm:$0xff]  ;;  %v15233_v24 = vcombine.low %v970_v12, %v978_v13  ;;  %v15483_v26 = vcombine.low %v971_v14, %v979_v15  ;;  %v15244_v13 = vcombine.high %v1066_v5, %v1074_v31  ;;  %v1082_v15 = vld [vmem:[#allocation5 + $0x2000] sm:$0xff] }
 0x105   :  { %v15484_v28 = vcombine.high %v987_v22, %v995_v23 }
 0x107   :  { %11197 = vmatpush1.bf16.msra.mxu0 %v15221_v30  ;;  %11697 = vmatpush1.bf16.msra.mxu1 %v15471_v32  ;;  %v1003_v30 = vld [vmem:[#allocation5 + $0x1d88] sm:$0xff] }
 0x108   :  { %11199 = vmatprep.subr.bf16.mxu0 %v15222_v34  ;;  %11699 = vmatprep.subr.bf16.mxu1 %v15472_v35  ;;  %v1011_v32 = vld [vmem:[#allocation5 + $0x1dc8] sm:$0xff]  ;;  %v15235_v34 = vcombine.low %v986_v20, %v994_v21  ;;  %v15485_v35 = vcombine.low %v987_v22, %v995_v23  ;;  %v15245_v20 = vcombine.low %v1066_v5, %v1074_v31 }
 0x109   :  { %v15486_v37 = vcombine.high %v1003_v30, %v1011_v32  ;;  %v1163_v5 = vld [vmem:[#allocation5 + $0x2288] sm:$0xff] }
 0x10a   :  { %v1171_v31 = vld [vmem:[#allocation5 + $0x22c8] sm:$0xff] }
 0x10b   :  { %11201 = vmatpush1.bf16.msra.mxu0 %v15223_v40  ;;  %11701 = vmatpush1.bf16.msra.mxu1 %v15473_v42  ;;  %v1019_v40 = vld [vmem:[#allocation5 + $0x1e08] sm:$0xff] }
 0x10c   :  { %11203 = vmatprep.subr.bf16.mxu0 %v15224_v43  ;;  %11703 = vmatprep.subr.bf16.mxu1 %v15474_v59  ;;  %v1027_v42 = vld [vmem:[#allocation5 + $0x1e48] sm:$0xff]  ;;  %v15237_v43 = vcombine.low %v1002_v63, %v1010_v29  ;;  %v15487_v59 = vcombine.low %v1003_v30, %v1011_v32 }
 0x10d   :  { %v15488_v45 = vcombine.high %v1019_v40, %v1027_v42  ;;  %v1107_v63 = vld [vmem:[#allocation5 + $0x20c8] sm:$0xff] }
 0x10f   :  { %11205 = vmatpush1.bf16.msra.mxu0 %v15225_v49  ;;  %11705 = vmatpush1.bf16.msra.mxu1 %v15475_v51  ;;  %v1035_v49 = vld [vmem:[#allocation5 + $0x1e88] sm:$0xff] }
 0x110   :  { %11207 = vmatprep.subr.bf16.mxu0 %v15226_v52  ;;  %11707 = vmatprep.subr.bf16.mxu1 %v15476_v53  ;;  %v1043_v51 = vld [vmem:[#allocation5 + $0x1ec8] sm:$0xff]  ;;  %v15239_v52 = vcombine.low %v1018_v38, %v1026_v39  ;;  %v15489_v53 = vcombine.low %v1019_v40, %v1027_v42 }
 0x111   :  { %v15490_v55 = vcombine.high %v1035_v49, %v1043_v51  ;;  %v1115_v38 = vld [vmem:[#allocation5 + $0x2108] sm:$0xff] }
 0x112   :  { %v1123_v39 = vld [vmem:[#allocation5 + $0x2148] sm:$0xff] }
 0x113   :  { %11209 = vmatpush1.bf16.msra.mxu0 %v15227_v60  ;;  %11709 = vmatpush1.bf16.msra.mxu1 %v15477_v61  ;;  %v1051_v60 = vld [vmem:[#allocation5 + $0x1f08] sm:$0xff] }
 0x114   :  { %11211 = vmatprep.subr.bf16.mxu0 %v15228_v62  ;;  %11711 = vmatprep.subr.bf16.mxu1 %v15478_v0  ;;  %v1059_v61 = vld [vmem:[#allocation5 + $0x1f48] sm:$0xff]  ;;  %v15241_v62 = vcombine.low %v1034_v47, %v1042_v48  ;;  %v15491_v0 = vcombine.low %v1035_v49, %v1043_v51  ;;  %v15501_v51 = vcombine.low %v1115_v38, %v1123_v39 }
 0x115   :  { %v15492_v4 = vcombine.high %v1051_v60, %v1059_v61  ;;  %v15493_v12 = vcombine.low %v1051_v60, %v1059_v61  ;;  %v1131_v47 = vld [vmem:[#allocation5 + $0x2188] sm:$0xff] }
 0x116   :  { %v1139_v48 = vld [vmem:[#allocation5 + $0x21c8] sm:$0xff] }
 0x117   :  { %11213 = vmatpush1.bf16.msra.mxu0 %v15229_v6  ;;  %11713 = vmatpush1.bf16.msra.mxu1 %v15479_v7  ;;  %v1067_v6 = vld [vmem:[#allocation5 + $0x1f88] sm:$0xff]  ;;  %v15503_v61 = vcombine.low %v1131_v47, %v1139_v48 }
 0x118   :  { %11215 = vmatprep.subr.bf16.mxu0 %v15230_v8  ;;  %11715 = vmatprep.subr.bf16.mxu1 %v15480_v10  ;;  %v1075_v7 = vld [vmem:[#allocation5 + $0x1fc8] sm:$0xff]  ;;  %v17347_v8 = vld [vmem:[#allocation2 + $0x8] sm:$0xff]  ;;  %v15243_v10 = vcombine.low %v1050_v57, %v1058_v58 }
 0x119   :  { %v15494_v14 = vcombine.high %v1067_v6, %v1075_v7  ;;  %v15495_v21 = vcombine.low %v1067_v6, %v1075_v7  ;;  %v1147_v57 = vld [vmem:[#allocation5 + $0x2208] sm:$0xff] }
 0x11a   :  { %v1155_v58 = vld [vmem:[#allocation5 + $0x2248] sm:$0xff] }
 0x11b   :  { %11217 = vmatpush1.bf16.msra.mxu0 %v15231_v16  ;;  %11717 = vmatpush1.bf16.msra.mxu1 %v15481_v17  ;;  %v1090_v16 = vld [vmem:[#allocation5 + $0x2040] sm:$0xff]  ;;  %v17350_v17 = vunpack.c.l.bf16 %v17347_v8  ;;  %v15505_v7 = vcombine.low %v1147_v57, %v1155_v58 }
 0x11c   :  { %11219 = vmatprep.subr.bf16.mxu0 %v15232_v18  ;;  %11719 = vmatprep.subr.bf16.mxu1 %v15482_v19  ;;  %v1083_v18 = vld [vmem:[#allocation5 + $0x2008] sm:$0xff]  ;;  %v15246_v22 = vcombine.high %v1082_v15, %v1090_v16  ;;  %v15247_v29 = vcombine.low %v1082_v15, %v1090_v16 }
 0x11d   :  { %v1091_v19 = vld [vmem:[#allocation5 + $0x2048] sm:$0xff] }
 0x11e   :  { %v15496_v23 = vcombine.high %v1083_v18, %v1091_v19  ;;  %v15497_v30 = vcombine.low %v1083_v18, %v1091_v19  ;;  %v1179_v15 = vld [vmem:[#allocation5 + $0x2308] sm:$0xff]  ;;  %v15507_v19 = vcombine.low %v1163_v5, %v1171_v31 }
 0x11f   :  { %11221 = vmatpush1.bf16.msra.mxu0 %v15233_v24  ;;  %11721 = vmatpush1.bf16.msra.mxu1 %v15483_v26  ;;  %v1098_v24 = vld [vmem:[#allocation5 + $0x2080] sm:$0xff]  ;;  %v1187_v16 = vld [vmem:[#allocation5 + $0x2348] sm:$0xff] }
 0x120   :  { %11223 = vmatprep.subr.bf16.mxu0 %v15234_v27  ;;  %11723 = vmatprep.subr.bf16.mxu1 %v15484_v28  ;;  %v1106_v26 = vld [vmem:[#allocation5 + $0x20c0] sm:$0xff]  ;;  %v17354_v27 = vrot.slane %v17350_v17, %v17289_v56  ;;  %v1099_v28 = vld [vmem:[#allocation5 + $0x2088] sm:$0xff] }
 0x121   :  { %v15248_v32 = vcombine.high %v1098_v24, %v1106_v26  ;;  %v15249_v40 = vcombine.low %v1098_v24, %v1106_v26  ;;  %v15499_v42 = vcombine.low %v1099_v28, %v1107_v63  ;;  %v1195_v24 = vld [vmem:[#allocation5 + $0x2388] sm:$0xff] }
 0x122   :  { %v1203_v26 = vld [vmem:[#allocation5 + $0x23c8] sm:$0xff] }
 0x123   :  { %11225 = vmatpush1.bf16.msra.mxu0 %v15235_v34  ;;  %11725 = vmatpush1.bf16.msra.mxu1 %v15485_v35  ;;  %v15498_v34 = vcombine.high %v1099_v28, %v1107_v63  ;;  %v1114_v35 = vld [vmem:[#allocation5 + $0x2100] sm:$0xff]  ;;  %v15509_v63 = vcombine.low %v1179_v15, %v1187_v16 }
 0x124   :  { %11227 = vmatprep.subr.bf16.mxu0 %v15236_v36  ;;  %11727 = vmatprep.subr.bf16.mxu1 %v15486_v37  ;;  %v1122_v36 = vld [vmem:[#allocation5 + $0x2140] sm:$0xff]  ;;  %v17358_v37 = vcombine.high %v17354_v27, %v17354_v27 }
 0x125   :  { %v15251_v49 = vcombine.low %v1114_v35, %v1122_v36 }
 0x127   :  { %11229 = vmatpush1.bf16.msra.mxu0 %v15237_v43  ;;  %11729 = vmatpush1.bf16.msra.mxu1 %v15487_v59  ;;  %v15250_v43 = vcombine.high %v1114_v35, %v1122_v36  ;;  %v15500_v59 = vcombine.high %v1115_v38, %v1123_v39  ;;  %v1211_v35 = vld [vmem:[#allocation5 + $0x2408] sm:$0xff]  ;;  %v15511_v39 = vcombine.low %v1195_v24, %v1203_v26 }
 0x128   :  { %11231 = vmatprep.subr.bf16.mxu0 %v15238_v44  ;;  %11731 = vmatprep.subr.bf16.mxu1 %v15488_v45  ;;  %v1130_v44 = vld [vmem:[#allocation5 + $0x2180] sm:$0xff]  ;;  %v1219_v36 = vld [vmem:[#allocation5 + $0x2448] sm:$0xff] }
 0x129   :  { %v1138_v45 = vld [vmem:[#allocation5 + $0x21c0] sm:$0xff] }
 0x12a   :  { %v15253_v60 = vcombine.low %v1130_v44, %v1138_v45 }
 0x12b   :  { %11233 = vmatpush1.bf16.msra.mxu0 %v15239_v52  ;;  %11733 = vmatpush1.bf16.msra.mxu1 %v15489_v53  ;;  %v15252_v52 = vcombine.high %v1130_v44, %v1138_v45  ;;  %v15502_v53 = vcombine.high %v1131_v47, %v1139_v48  ;;  %v1227_v44 = vld [vmem:[#allocation5 + $0x2488] sm:$0xff]  ;;  %v15513_v48 = vcombine.low %v1211_v35, %v1219_v36 }
 0x12c   :  { %11235 = vmatprep.subr.bf16.mxu0 %v15240_v54  ;;  %11735 = vmatprep.subr.bf16.mxu1 %v15490_v55  ;;  %v1146_v54 = vld [vmem:[#allocation5 + $0x2200] sm:$0xff]  ;;  %v1235_v45 = vld [vmem:[#allocation5 + $0x24c8] sm:$0xff] }
 0x12d   :  { %v1154_v55 = vld [vmem:[#allocation5 + $0x2240] sm:$0xff] }
 0x12e   :  { %v15255_v6 = vcombine.low %v1146_v54, %v1154_v55 }
 0x12f   :  { %11237 = vmatpush1.bf16.msra.mxu0 %v15241_v62  ;;  %11737 = vmatpush1.bf16.msra.mxu1 %v15491_v0  ;;  %v15254_v62 = vcombine.high %v1146_v54, %v1154_v55  ;;  %v15504_v0 = vcombine.high %v1147_v57, %v1155_v58  ;;  %v1243_v54 = vld [vmem:[#allocation5 + $0x2508] sm:$0xff]  ;;  %v15515_v58 = vcombine.low %v1227_v44, %v1235_v45 }
 0x130   :  { %11239 = vmatprep.subr.bf16.mxu0 %v15242_v2  ;;  %11739 = vmatprep.subr.bf16.mxu1 %v15492_v4  ;;  %v1162_v2 = vld [vmem:[#allocation5 + $0x2280] sm:$0xff]  ;;  %v1251_v55 = vld [vmem:[#allocation5 + $0x2548] sm:$0xff] }
 0x131   :  { %v1170_v4 = vld [vmem:[#allocation5 + $0x22c0] sm:$0xff] }
 0x132   :  { %v15257_v18 = vcombine.low %v1162_v2, %v1170_v4 }
 0x133   :  { %11241 = vmatpush1.bf16.msra.mxu0 %v15243_v10  ;;  %11741 = vmatpush1.bf16.msra.mxu1 %v15493_v12  ;;  %v15256_v10 = vcombine.high %v1162_v2, %v1170_v4  ;;  %v15506_v12 = vcombine.high %v1163_v5, %v1171_v31  ;;  %v1259_v2 = vld [vmem:[#allocation5 + $0x2588] sm:$0xff]  ;;  %v15517_v31 = vcombine.low %v1243_v54, %v1251_v55 }
 0x134   :  { %11243 = vmatprep.subr.bf16.mxu0 %v15244_v13  ;;  %11743 = vmatprep.subr.bf16.mxu1 %v15494_v14  ;;  %v1178_v13 = vld [vmem:[#allocation5 + $0x2300] sm:$0xff]  ;;  %v1267_v4 = vld [vmem:[#allocation5 + $0x25c8] sm:$0xff] }
 0x135   :  { %v1186_v14 = vld [vmem:[#allocation5 + $0x2340] sm:$0xff] }
 0x136   :  { %v15259_v28 = vcombine.low %v1178_v13, %v1186_v14 }
 0x137   :  { %11245 = vmatpush1.bf16.msra.mxu0 %v15245_v20  ;;  %11745 = vmatpush1.bf16.msra.mxu1 %v15495_v21  ;;  %v15258_v20 = vcombine.high %v1178_v13, %v1186_v14  ;;  %v15508_v21 = vcombine.high %v1179_v15, %v1187_v16  ;;  %v1275_v13 = vld [vmem:[#allocation5 + $0x2608] sm:$0xff]  ;;  %v15519_v16 = vcombine.low %v1259_v2, %v1267_v4 }
 0x138   :  { %11247 = vmatprep.subr.bf16.mxu0 %v15246_v22  ;;  %11747 = vmatprep.subr.bf16.mxu1 %v15496_v23  ;;  %v1194_v22 = vld [vmem:[#allocation5 + $0x2380] sm:$0xff]  ;;  %v1283_v14 = vld [vmem:[#allocation5 + $0x2648] sm:$0xff] }
 0x139   :  { %v1202_v23 = vld [vmem:[#allocation5 + $0x23c0] sm:$0xff] }
 0x13a   :  { %6510 = vmatmul.mubr.f32.vlgmr.msra.gmra.mrb[0].mxu0 %v17337_v1  ;;  %7078 = vmatmul.mubr.f32.vlgmr.msra.gmra.mrb[0].mxu1 %v17337_v1  ;;  %v15261_v38 = vcombine.low %v1194_v22, %v1202_v23 }
 0x13b   :  { %11249 = vmatpush1.bf16.msra.mxu0 %v15247_v29  ;;  %11749 = vmatpush1.bf16.msra.mxu1 %v15497_v30  ;;  %v15260_v29 = vcombine.high %v1194_v22, %v1202_v23  ;;  %v15510_v30 = vcombine.high %v1195_v24, %v1203_v26  ;;  %v1291_v22 = vld [vmem:[#allocation5 + $0x2688] sm:$0xff]  ;;  %v15521_v26 = vcombine.low %v1275_v13, %v1283_v14 }
 0x13c   :  { %11251 = vmatprep.subr.bf16.mxu0 %v15248_v32  ;;  %11751 = vmatprep.subr.bf16.mxu1 %v15498_v34  ;;  %v1210_v32 = vld [vmem:[#allocation5 + $0x2400] sm:$0xff]  ;;  %v1299_v23 = vld [vmem:[#allocation5 + $0x26c8] sm:$0xff] }
 0x13d   :  { %6580 = vmatprep.mubr.f32.mxu0 %v17358_v37  ;;  %7148 = vmatprep.mubr.f32.mxu1 %v17358_v37  ;;  %v1218_v34 = vld [vmem:[#allocation5 + $0x2440] sm:$0xff] }
 0x13e   :  { %v15263_v47 = vcombine.low %v1210_v32, %v1218_v34 }
 0x13f   :  { %11253 = vmatpush1.bf16.msra.mxu0 %v15249_v40  ;;  %11753 = vmatpush1.bf16.msra.mxu1 %v15499_v42  ;;  %v15262_v40 = vcombine.high %v1210_v32, %v1218_v34  ;;  %v15512_v42 = vcombine.high %v1211_v35, %v1219_v36  ;;  %v1307_v32 = vld [vmem:[#allocation5 + $0x2708] sm:$0xff]  ;;  %v15523_v36 = vcombine.low %v1291_v22, %v1299_v23 }
 0x140   :  { %11255 = vmatprep.subr.bf16.mxu0 %v15250_v43  ;;  %11755 = vmatprep.subr.bf16.mxu1 %v15500_v59  ;;  %v1226_v43 = vld [vmem:[#allocation5 + $0x2480] sm:$0xff]  ;;  %v1315_v34 = vld [vmem:[#allocation5 + $0x2748] sm:$0xff] }
 0x141   :  { %v1234_v59 = vld [vmem:[#allocation5 + $0x24c0] sm:$0xff] }
 0x142   :  { %v15265_v57 = vcombine.low %v1226_v43, %v1234_v59 }
 0x143   :  { %11257 = vmatpush1.bf16.msra.mxu0 %v15251_v49  ;;  %11757 = vmatpush1.bf16.msra.mxu1 %v15501_v51  ;;  %v15264_v49 = vcombine.high %v1226_v43, %v1234_v59  ;;  %v15514_v51 = vcombine.high %v1227_v44, %v1235_v45  ;;  %v1323_v43 = vld [vmem:[#allocation5 + $0x2788] sm:$0xff]  ;;  %v15525_v45 = vcombine.low %v1307_v32, %v1315_v34 }
 0x144   :  { %11259 = vmatprep.subr.bf16.mxu0 %v15252_v52  ;;  %11759 = vmatprep.subr.bf16.mxu1 %v15502_v53  ;;  %v1242_v52 = vld [vmem:[#allocation5 + $0x2500] sm:$0xff]  ;;  %v1331_v59 = vld [vmem:[#allocation5 + $0x27c8] sm:$0xff] }
 0x145   :  { %v1250_v53 = vld [vmem:[#allocation5 + $0x2540] sm:$0xff] }
 0x146   :  { %v15267_v5 = vcombine.low %v1242_v52, %v1250_v53 }
 0x147   :  { %11261 = vmatpush1.bf16.msra.mxu0 %v15253_v60  ;;  %11761 = vmatpush1.bf16.msra.mxu1 %v15503_v61  ;;  %v15266_v60 = vcombine.high %v1242_v52, %v1250_v53  ;;  %v15516_v61 = vcombine.high %v1243_v54, %v1251_v55  ;;  %v6180_v52 = vcombine.high %v17350_v17, %v17350_v17  ;;  %v1339_v53 = vld [vmem:[#allocation5 + $0x2808] sm:$0xff] }
 0x148   :  { %11263 = vmatprep.subr.bf16.mxu0 %v15254_v62  ;;  %11763 = vmatprep.subr.bf16.mxu1 %v15504_v0  ;;  %v1258_v62 = vld [vmem:[#allocation5 + $0x2580] sm:$0xff]  ;;  %v1347_v54 = vld [vmem:[#allocation5 + $0x2848] sm:$0xff] }
 0x149   :  { %v1266_v0 = vld [vmem:[#allocation5 + $0x25c0] sm:$0xff]  ;;  %v15529_v17 = vcombine.low %v1339_v53, %v1347_v54 }
 0x14a   :  { %v15269_v15 = vcombine.low %v1258_v62, %v1266_v0 }
 0x14b   :  { %11265 = vmatpush1.bf16.msra.mxu0 %v15255_v6  ;;  %11765 = vmatpush1.bf16.msra.mxu1 %v15505_v7  ;;  %v15268_v6 = vcombine.high %v1258_v62, %v1266_v0  ;;  %v15518_v7 = vcombine.high %v1259_v2, %v1267_v4  ;;  %v1362_v62 = vld [vmem:[#allocation5 + $0x28c0] sm:$0xff]  ;;  %v17367_v0 = vrot.slane %v6180_v52, %v17289_v56  ;;  %v1355_v2 = vld [vmem:[#allocation5 + $0x2888] sm:$0xff] }
 0x14c   :  { %11267 = vmatprep.subr.bf16.mxu0 %v15256_v10  ;;  %11767 = vmatprep.subr.bf16.mxu1 %v15506_v12  ;;  %v1274_v10 = vld [vmem:[#allocation5 + $0x2600] sm:$0xff]  ;;  %v1363_v4 = vld [vmem:[#allocation5 + $0x28c8] sm:$0xff] }
 0x14d   :  { %v1282_v12 = vld [vmem:[#allocation5 + $0x2640] sm:$0xff]  ;;  %v1435_v52 = vld [vmem:[#allocation5 + $0x2b08] sm:$0xff] }
 0x14e   :  { %v15271_v24 = vcombine.low %v1274_v10, %v1282_v12 }
 0x14f   :  { %11269 = vmatpush1.bf16.msra.mxu0 %v15257_v18  ;;  %11769 = vmatpush1.bf16.msra.mxu1 %v15507_v19  ;;  %v15270_v18 = vcombine.high %v1274_v10, %v1282_v12  ;;  %v15520_v19 = vcombine.high %v1275_v13, %v1283_v14  ;;  %v1378_v10 = vld [vmem:[#allocation5 + $0x2940] sm:$0xff]  ;;  %v17371_v12 = vcombine.high %v17367_v0, %v17367_v0  ;;  %v1371_v13 = vld [vmem:[#allocation5 + $0x2908] sm:$0xff] }
 0x150   :  { %11271 = vmatprep.subr.bf16.mxu0 %v15258_v20  ;;  %11771 = vmatprep.subr.bf16.mxu1 %v15508_v21  ;;  %v1290_v20 = vld [vmem:[#allocation5 + $0x2680] sm:$0xff]  ;;  %v1379_v14 = vld [vmem:[#allocation5 + $0x2948] sm:$0xff] }
 0x151   :  { %v1298_v21 = vld [vmem:[#allocation5 + $0x26c0] sm:$0xff] }
 0x152   :  { %v15273_v35 = vcombine.low %v1290_v20, %v1298_v21 }
 0x153   :  { %11273 = vmatpush1.bf16.msra.mxu0 %v15259_v28  ;;  %11773 = vmatpush1.bf16.msra.mxu1 %v15509_v63  ;;  %v15272_v28 = vcombine.high %v1290_v20, %v1298_v21  ;;  %v15522_v63 = vcombine.high %v1291_v22, %v1299_v23  ;;  %v1386_v20 = vld [vmem:[#allocation5 + $0x2980] sm:$0xff]  ;;  %v1387_v22 = vld [vmem:[#allocation5 + $0x2988] sm:$0xff] }
 0x154   :  { %11275 = vmatprep.subr.bf16.mxu0 %v15260_v29  ;;  %11775 = vmatprep.subr.bf16.mxu1 %v15510_v30  ;;  %v1306_v29 = vld [vmem:[#allocation5 + $0x2700] sm:$0xff]  ;;  %v1395_v23 = vld [vmem:[#allocation5 + $0x29c8] sm:$0xff] }
 0x155   :  { %v1314_v30 = vld [vmem:[#allocation5 + $0x2740] sm:$0xff] }
 0x156   :  { %v15275_v44 = vcombine.low %v1306_v29, %v1314_v30  ;;  %v1394_v21 = vld [vmem:[#allocation5 + $0x29c0] sm:$0xff] }
 0x157   :  { %11277 = vmatpush1.bf16.msra.mxu0 %v15261_v38  ;;  %11777 = vmatpush1.bf16.msra.mxu1 %v15511_v39  ;;  %v15274_v38 = vcombine.high %v1306_v29, %v1314_v30  ;;  %v15524_v39 = vcombine.high %v1307_v32, %v1315_v34  ;;  %v1402_v29 = vld [vmem:[#allocation5 + $0x2a00] sm:$0xff]  ;;  %v1403_v32 = vld [vmem:[#allocation5 + $0x2a08] sm:$0xff] }
 0x158   :  { %11279 = vmatprep.subr.bf16.mxu0 %v15262_v40  ;;  %11779 = vmatprep.subr.bf16.mxu1 %v15512_v42  ;;  %v1322_v40 = vld [vmem:[#allocation5 + $0x2780] sm:$0xff]  ;;  %v1411_v34 = vld [vmem:[#allocation5 + $0x2a48] sm:$0xff] }
 0x159   :  { %v1330_v42 = vld [vmem:[#allocation5 + $0x27c0] sm:$0xff] }
 0x15a   :  { %v15277_v55 = vcombine.low %v1322_v40, %v1330_v42  ;;  %v1410_v30 = vld [vmem:[#allocation5 + $0x2a40] sm:$0xff] }
 0x15b   :  { %11281 = vmatpush1.bf16.msra.mxu0 %v15263_v47  ;;  %11781 = vmatpush1.bf16.msra.mxu1 %v15513_v48  ;;  %v15276_v47 = vcombine.high %v1322_v40, %v1330_v42  ;;  %v15526_v48 = vcombine.high %v1323_v43, %v1331_v59  ;;  %v1418_v40 = vld [vmem:[#allocation5 + $0x2a80] sm:$0xff] }
 0x15c   :  { %11283 = vmatprep.subr.bf16.mxu0 %v15264_v49  ;;  %11783 = vmatprep.subr.bf16.mxu1 %v15514_v51  ;;  %v1338_v49 = vld [vmem:[#allocation5 + $0x2800] sm:$0xff] }
 0x15d   :  { %v1346_v51 = vld [vmem:[#allocation5 + $0x2840] sm:$0xff] }
 0x15e   :  { %v1426_v42 = vld [vmem:[#allocation5 + $0x2ac0] sm:$0xff] }
 0x15f   :  { %11285 = vmatpush1.bf16.msra.mxu0 %v15265_v57  ;;  %11785 = vmatpush1.bf16.msra.mxu1 %v15515_v58  ;;  %v15527_v57 = vcombine.low %v1323_v43, %v1331_v59  ;;  %v15278_v58 = vcombine.high %v1338_v49, %v1346_v51  ;;  %v1419_v43 = vld [vmem:[#allocation5 + $0x2a88] sm:$0xff] }
 0x160   :  { %11287 = vmatprep.subr.bf16.mxu0 %v15266_v60  ;;  %11787 = vmatprep.subr.bf16.mxu1 %v15516_v61  ;;  %v15528_v60 = vcombine.high %v1339_v53, %v1347_v54  ;;  %v1354_v61 = vld [vmem:[#allocation5 + $0x2880] sm:$0xff]  ;;  %v1427_v59 = vld [vmem:[#allocation5 + $0x2ac8] sm:$0xff]  ;;  %v15289_v54 = vcombine.low %v1418_v40, %v1426_v42 }
 0x161   :  { %v1443_v53 = vld [vmem:[#allocation5 + $0x2b48] sm:$0xff] }
 0x163   :  { %11289 = vmatpush1.bf16.msra.mxu0 %v15267_v5  ;;  %11789 = vmatpush1.bf16.msra.mxu1 %v15517_v31  ;;  %v15279_v5 = vcombine.low %v1338_v49, %v1346_v51  ;;  %v15280_v31 = vcombine.high %v1354_v61, %v1362_v62  ;;  %v1434_v49 = vld [vmem:[#allocation5 + $0x2b00] sm:$0xff] }
 0x164   :  { %11291 = vmatprep.subr.bf16.mxu0 %v15268_v6  ;;  %11791 = vmatprep.subr.bf16.mxu1 %v15518_v7  ;;  %v15530_v6 = vcombine.high %v1355_v2, %v1363_v4  ;;  %v1370_v7 = vld [vmem:[#allocation5 + $0x2900] sm:$0xff] }
 0x165   :  { %v1442_v51 = vld [vmem:[#allocation5 + $0x2b40] sm:$0xff] }
 0x167   :  { %11293 = vmatpush1.bf16.msra.mxu0 %v15269_v15  ;;  %11793 = vmatpush1.bf16.msra.mxu1 %v15519_v16  ;;  %v15281_v15 = vcombine.low %v1354_v61, %v1362_v62  ;;  %v15531_v16 = vcombine.low %v1355_v2, %v1363_v4  ;;  %v1458_v61 = vld [vmem:[#allocation5 + $0x2bc0] sm:$0xff]  ;;  %v1451_v62 = vld [vmem:[#allocation5 + $0x2b88] sm:$0xff]  ;;  %v15291_v4 = vcombine.low %v1434_v49, %v1442_v51 }
 0x168   :  { %11295 = vmatprep.subr.bf16.mxu0 %v15270_v18  ;;  %11795 = vmatprep.subr.bf16.mxu1 %v15520_v19  ;;  %v15282_v18 = vcombine.high %v1370_v7, %v1378_v10  ;;  %v15532_v19 = vcombine.high %v1371_v13, %v1379_v14  ;;  %v1459_v2 = vld [vmem:[#allocation5 + $0x2bc8] sm:$0xff] }
 0x16b   :  { %11297 = vmatpush1.bf16.msra.mxu0 %v15271_v24  ;;  %11797 = vmatpush1.bf16.msra.mxu1 %v15521_v26  ;;  %v15283_v24 = vcombine.low %v1370_v7, %v1378_v10  ;;  %v15533_v26 = vcombine.low %v1371_v13, %v1379_v14  ;;  %v1474_v7 = vld [vmem:[#allocation5 + $0x2c40] sm:$0xff]  ;;  %v1467_v10 = vld [vmem:[#allocation5 + $0x2c08] sm:$0xff] }
 0x16c   :  { %11299 = vmatprep.subr.bf16.mxu0 %v15272_v28  ;;  %11799 = vmatprep.subr.bf16.mxu1 %v15522_v63  ;;  %v15284_v28 = vcombine.high %v1386_v20, %v1394_v21  ;;  %v15534_v63 = vcombine.high %v1387_v22, %v1395_v23  ;;  %v1475_v13 = vld [vmem:[#allocation5 + $0x2c48] sm:$0xff] }
 0x16f   :  { %11301 = vmatpush1.bf16.msra.mxu0 %v15273_v35  ;;  %11801 = vmatpush1.bf16.msra.mxu1 %v15523_v36  ;;  %v15285_v35 = vcombine.low %v1386_v20, %v1394_v21  ;;  %v15535_v36 = vcombine.low %v1387_v22, %v1395_v23  ;;  %v1490_v20 = vld [vmem:[#allocation5 + $0x2cc0] sm:$0xff]  ;;  %v1483_v21 = vld [vmem:[#allocation5 + $0x2c88] sm:$0xff] }
 0x170   :  { %11303 = vmatprep.subr.bf16.mxu0 %v15274_v38  ;;  %11803 = vmatprep.subr.bf16.mxu1 %v15524_v39  ;;  %v15286_v38 = vcombine.high %v1402_v29, %v1410_v30  ;;  %v15536_v39 = vcombine.high %v1403_v32, %v1411_v34  ;;  %v1491_v22 = vld [vmem:[#allocation5 + $0x2cc8] sm:$0xff] }
 0x173   :  { %11305 = vmatpush1.bf16.msra.mxu0 %v15275_v44  ;;  %11805 = vmatpush1.bf16.msra.mxu1 %v15525_v45  ;;  %v15287_v44 = vcombine.low %v1402_v29, %v1410_v30  ;;  %v15537_v45 = vcombine.low %v1403_v32, %v1411_v34  ;;  %v1506_v29 = vld [vmem:[#allocation5 + $0x2d40] sm:$0xff]  ;;  %v1499_v30 = vld [vmem:[#allocation5 + $0x2d08] sm:$0xff] }
 0x174   :  { %11307 = vmatprep.subr.bf16.mxu0 %v15276_v47  ;;  %11807 = vmatprep.subr.bf16.mxu1 %v15526_v48  ;;  %v15288_v47 = vcombine.high %v1418_v40, %v1426_v42  ;;  %v15538_v48 = vcombine.high %v1419_v43, %v1427_v59  ;;  %v1507_v32 = vld [vmem:[#allocation5 + $0x2d48] sm:$0xff]  ;;  %v1522_v40 = vld [vmem:[#allocation5 + $0x2dc0] sm:$0xff] }
 0x175   :  { %v1515_v42 = vld [vmem:[#allocation5 + $0x2d88] sm:$0xff] }
 0x177   :  { %11309 = vmatpush1.bf16.msra.mxu0 %v15277_v55  ;;  %11809 = vmatpush1.bf16.msra.mxu1 %v15527_v57  ;;  %v15539_v55 = vcombine.low %v1419_v43, %v1427_v59  ;;  %v15290_v57 = vcombine.high %v1434_v49, %v1442_v51  ;;  %v1523_v43 = vld [vmem:[#allocation5 + $0x2dc8] sm:$0xff]  ;;  %v1538_v49 = vld [vmem:[#allocation5 + $0x2e40] sm:$0xff] }
 0x178   :  { %11311 = vmatprep.subr.bf16.mxu0 %v15278_v58  ;;  %11811 = vmatprep.subr.bf16.mxu1 %v15528_v60  ;;  %v15540_v58 = vcombine.high %v1435_v52, %v1443_v53  ;;  %v1450_v60 = vld [vmem:[#allocation5 + $0x2b80] sm:$0xff]  ;;  %v1531_v51 = vld [vmem:[#allocation5 + $0x2e08] sm:$0xff] }
 0x179   :  { %v15293_v14 = vcombine.low %v1450_v60, %v1458_v61 }
 0x17a   :  { %6581 = vmatmul.mubr.f32.vlgmr.msra.gmra.mrb[0].mxu0 %v17354_v27  ;;  %7149 = vmatmul.mubr.f32.vlgmr.msra.gmra.mrb[0].mxu1 %v17354_v27 }
 0x17b   :  { %11313 = vmatpush1.bf16.msra.mxu0 %v15279_v5  ;;  %11813 = vmatpush1.bf16.msra.mxu1 %v15529_v17  ;;  %v15541_v5 = vcombine.low %v1435_v52, %v1443_v53  ;;  %v15292_v17 = vcombine.high %v1450_v60, %v1458_v61  ;;  %v1539_v52 = vld [vmem:[#allocation5 + $0x2e48] sm:$0xff]  ;;  %v1554_v60 = vld [vmem:[#allocation5 + $0x2ec0] sm:$0xff] }
 0x17c   :  { %11315 = vmatprep.subr.bf16.mxu0 %v15280_v31  ;;  %11815 = vmatprep.subr.bf16.mxu1 %v15530_v6  ;;  %v15542_v31 = vcombine.high %v1451_v62, %v1459_v2  ;;  %v1466_v6 = vld [vmem:[#allocation5 + $0x2c00] sm:$0xff]  ;;  %v1547_v61 = vld [vmem:[#allocation5 + $0x2e88] sm:$0xff] }
 0x17d   :  { %6651 = vmatprep.mubr.f32.mxu0 %v17371_v12  ;;  %7219 = vmatprep.mubr.f32.mxu1 %v17371_v12  ;;  %v15295_v23 = vcombine.low %v1466_v6, %v1474_v7 }
 0x17f   :  { %11317 = vmatpush1.bf16.msra.mxu0 %v15281_v15  ;;  %11817 = vmatpush1.bf16.msra.mxu1 %v15531_v16  ;;  %v15543_v15 = vcombine.low %v1451_v62, %v1459_v2  ;;  %v15294_v16 = vcombine.high %v1466_v6, %v1474_v7  ;;  %v1555_v62 = vld [vmem:[#allocation5 + $0x2ec8] sm:$0xff]  ;;  %v1570_v6 = vld [vmem:[#allocation5 + $0x2f40] sm:$0xff] }
 0x180   :  { %11319 = vmatprep.subr.bf16.mxu0 %v15282_v18  ;;  %11819 = vmatprep.subr.bf16.mxu1 %v15532_v19  ;;  %v15544_v18 = vcombine.high %v1467_v10, %v1475_v13  ;;  %v1482_v19 = vld [vmem:[#allocation5 + $0x2c80] sm:$0xff]  ;;  %v1563_v7 = vld [vmem:[#allocation5 + $0x2f08] sm:$0xff] }
 0x181   :  { %v15297_v34 = vcombine.low %v1482_v19, %v1490_v20 }
 0x183   :  { %11321 = vmatpush1.bf16.msra.mxu0 %v15283_v24  ;;  %11821 = vmatpush1.bf16.msra.mxu1 %v15533_v26  ;;  %v15545_v24 = vcombine.low %v1467_v10, %v1475_v13  ;;  %v15296_v26 = vcombine.high %v1482_v19, %v1490_v20  ;;  %v1571_v10 = vld [vmem:[#allocation5 + $0x2f48] sm:$0xff]  ;;  %v1586_v19 = vld [vmem:[#allocation5 + $0x2fc0] sm:$0xff] }
 0x184   :  { %11323 = vmatprep.subr.bf16.mxu0 %v15284_v28  ;;  %11823 = vmatprep.subr.bf16.mxu1 %v15534_v63  ;;  %v15546_v28 = vcombine.high %v1483_v21, %v1491_v22  ;;  %v1498_v63 = vld [vmem:[#allocation5 + $0x2d00] sm:$0xff]  ;;  %v1579_v20 = vld [vmem:[#allocation5 + $0x2f88] sm:$0xff] }
 0x185   :  { %v15299_v59 = vcombine.low %v1498_v63, %v1506_v29 }
 0x187   :  { %11325 = vmatpush1.bf16.msra.mxu0 %v15285_v35  ;;  %11825 = vmatpush1.bf16.msra.mxu1 %v15535_v36  ;;  %v15547_v35 = vcombine.low %v1483_v21, %v1491_v22  ;;  %v15298_v36 = vcombine.high %v1498_v63, %v1506_v29  ;;  %v1587_v21 = vld [vmem:[#allocation5 + $0x2fc8] sm:$0xff]  ;;  %v1602_v63 = vld [vmem:[#allocation5 + $0x3040] sm:$0xff]  ;;  %v17378_v29 = vunpack.c.h.bf16 %v17347_v8 }
 0x188   :  { %11327 = vmatprep.subr.bf16.mxu0 %v15286_v38  ;;  %11827 = vmatprep.subr.bf16.mxu1 %v15536_v39  ;;  %v15548_v38 = vcombine.high %v1499_v30, %v1507_v32  ;;  %v1514_v39 = vld [vmem:[#allocation5 + $0x2d80] sm:$0xff] }
 0x189   :  { %v15301_v53 = vcombine.low %v1514_v39, %v1522_v40 }
 0x18b   :  { %11329 = vmatpush1.bf16.msra.mxu0 %v15287_v44  ;;  %11829 = vmatpush1.bf16.msra.mxu1 %v15537_v45  ;;  %v15549_v44 = vcombine.low %v1499_v30, %v1507_v32  ;;  %v15300_v45 = vcombine.high %v1514_v39, %v1522_v40  ;;  %v1595_v30 = vld [vmem:[#allocation5 + $0x3008] sm:$0xff]  ;;  %v1610_v39 = vld [vmem:[#allocation5 + $0x3080] sm:$0xff] }
 0x18c   :  { %11331 = vmatprep.subr.bf16.mxu0 %v15288_v47  ;;  %11831 = vmatprep.subr.bf16.mxu1 %v15538_v48  ;;  %v15550_v47 = vcombine.high %v1515_v42, %v1523_v43  ;;  %v1530_v48 = vld [vmem:[#allocation5 + $0x2e00] sm:$0xff]  ;;  %v1603_v32 = vld [vmem:[#allocation5 + $0x3048] sm:$0xff] }
 0x18d   :  { %v15303_v2 = vcombine.low %v1530_v48, %v1538_v49  ;;  %v1618_v40 = vld [vmem:[#allocation5 + $0x30c0] sm:$0xff] }
 0x18f   :  { %11333 = vmatpush1.bf16.msra.mxu0 %v15289_v54  ;;  %11833 = vmatpush1.bf16.msra.mxu1 %v15539_v55  ;;  %v15551_v54 = vcombine.low %v1515_v42, %v1523_v43  ;;  %v15302_v55 = vcombine.high %v1530_v48, %v1538_v49  ;;  %v17382_v42 = vrot.slane %v17378_v29, %v17289_v56  ;;  %v1611_v43 = vld [vmem:[#allocation5 + $0x3088] sm:$0xff]  ;;  %v1626_v48 = vld [vmem:[#allocation5 + $0x3100] sm:$0xff] }
 0x190   :  { %11335 = vmatprep.subr.bf16.mxu0 %v15290_v57  ;;  %11835 = vmatprep.subr.bf16.mxu1 %v15540_v58  ;;  %v15552_v57 = vcombine.high %v1531_v51, %v1539_v52  ;;  %v1546_v58 = vld [vmem:[#allocation5 + $0x2e80] sm:$0xff] }
 0x191   :  { %v15305_v13 = vcombine.low %v1546_v58, %v1554_v60  ;;  %v1634_v49 = vld [vmem:[#allocation5 + $0x3140] sm:$0xff] }
 0x193   :  { %11337 = vmatpush1.bf16.msra.mxu0 %v15291_v4  ;;  %11837 = vmatpush1.bf16.msra.mxu1 %v15541_v5  ;;  %v15553_v4 = vcombine.low %v1531_v51, %v1539_v52  ;;  %v15304_v5 = vcombine.high %v1546_v58, %v1554_v60  ;;  %v17386_v51 = vcombine.high %v17382_v42, %v17382_v42  ;;  %v1627_v52 = vld [vmem:[#allocation5 + $0x3108] sm:$0xff]  ;;  %v1642_v60 = vld [vmem:[#allocation5 + $0x3180] sm:$0xff] }
 0x194   :  { %11339 = vmatprep.subr.bf16.mxu0 %v15292_v17  ;;  %11839 = vmatprep.subr.bf16.mxu1 %v15542_v31  ;;  %v15554_v17 = vcombine.high %v1547_v61, %v1555_v62  ;;  %v1562_v31 = vld [vmem:[#allocation5 + $0x2f00] sm:$0xff] }
 0x195   :  { %v15307_v22 = vcombine.low %v1562_v31, %v1570_v6 }
 0x197   :  { %11341 = vmatpush1.bf16.msra.mxu0 %v15293_v14  ;;  %11841 = vmatpush1.bf16.msra.mxu1 %v15543_v15  ;;  %v15555_v14 = vcombine.low %v1547_v61, %v1555_v62  ;;  %v15306_v15 = vcombine.high %v1562_v31, %v1570_v6  ;;  %v1650_v61 = vld [vmem:[#allocation5 + $0x31c0] sm:$0xff]  ;;  %v1643_v62 = vld [vmem:[#allocation5 + $0x3188] sm:$0xff] }
 0x198   :  { %11343 = vmatprep.subr.bf16.mxu0 %v15294_v16  ;;  %11843 = vmatprep.subr.bf16.mxu1 %v15544_v18  ;;  %v15556_v16 = vcombine.high %v1563_v7, %v1571_v10  ;;  %v1578_v18 = vld [vmem:[#allocation5 + $0x2f80] sm:$0xff] }
 0x199   :  { %v1658_v6 = vld [vmem:[#allocation5 + $0x3200] sm:$0xff] }
 0x19b   :  { %11345 = vmatpush1.bf16.msra.mxu0 %v15295_v23  ;;  %11845 = vmatpush1.bf16.msra.mxu1 %v15545_v24  ;;  %v15557_v23 = vcombine.low %v1563_v7, %v1571_v10  ;;  %v15308_v24 = vcombine.high %v1578_v18, %v1586_v19  ;;  %v1666_v7 = vld [vmem:[#allocation5 + $0x3240] sm:$0xff]  ;;  %v1659_v10 = vld [vmem:[#allocation5 + $0x3208] sm:$0xff] }
 0x19c   :  { %11347 = vmatprep.subr.bf16.mxu0 %v15296_v26  ;;  %11847 = vmatprep.subr.bf16.mxu1 %v15546_v28  ;;  %v15558_v26 = vcombine.high %v1579_v20, %v1587_v21  ;;  %v1594_v28 = vld [vmem:[#allocation5 + $0x3000] sm:$0xff] }
 0x19d   :  { %v15311_v8 = vcombine.low %v1594_v28, %v1602_v63 }
 0x19f   :  { %11349 = vmatpush1.bf16.msra.mxu0 %v15297_v34  ;;  %11849 = vmatpush1.bf16.msra.mxu1 %v15547_v35  ;;  %v15309_v34 = vcombine.low %v1578_v18, %v1586_v19  ;;  %v15559_v35 = vcombine.low %v1579_v20, %v1587_v21  ;;  %v1674_v19 = vld [vmem:[#allocation5 + $0x3280] sm:$0xff]  ;;  %v1675_v21 = vld [vmem:[#allocation5 + $0x3288] sm:$0xff] }
 0x1a0   :  { %11351 = vmatprep.subr.bf16.mxu0 %v15298_v36  ;;  %11851 = vmatprep.subr.bf16.mxu1 %v15548_v38  ;;  %v15310_v36 = vcombine.high %v1594_v28, %v1602_v63  ;;  %v15560_v38 = vcombine.high %v1595_v30, %v1603_v32  ;;  %v1682_v20 = vld [vmem:[#allocation5 + $0x32c0] sm:$0xff] }
 0x1a1   :  { %v1690_v63 = vld [vmem:[#allocation5 + $0x3300] sm:$0xff] }
 0x1a3   :  { %11353 = vmatpush1.bf16.msra.mxu0 %v15299_v59  ;;  %11853 = vmatpush1.bf16.msra.mxu1 %v15549_v44  ;;  %v1619_v59 = vld [vmem:[#allocation5 + $0x30c8] sm:$0xff]  ;;  %v15561_v44 = vcombine.low %v1595_v30, %v1603_v32  ;;  %v1698_v30 = vld [vmem:[#allocation5 + $0x3340] sm:$0xff] }
 0x1a4   :  { %11355 = vmatprep.subr.bf16.mxu0 %v15300_v45  ;;  %11855 = vmatprep.subr.bf16.mxu1 %v15550_v47  ;;  %v15312_v45 = vcombine.high %v1610_v39, %v1618_v40  ;;  %v15562_v47 = vcombine.high %v1611_v43, %v1619_v59  ;;  %v1691_v32 = vld [vmem:[#allocation5 + $0x3308] sm:$0xff] }
 0x1a7   :  { %11357 = vmatpush1.bf16.msra.mxu0 %v15301_v53  ;;  %11857 = vmatpush1.bf16.msra.mxu1 %v15551_v54  ;;  %v1635_v53 = vld [vmem:[#allocation5 + $0x3148] sm:$0xff]  ;;  %v15313_v54 = vcombine.low %v1610_v39, %v1618_v40  ;;  %v1706_v40 = vld [vmem:[#allocation5 + $0x3380] sm:$0xff] }
 0x1a8   :  { %11359 = vmatprep.subr.bf16.mxu0 %v15302_v55  ;;  %11859 = vmatprep.subr.bf16.mxu1 %v15552_v57  ;;  %v15563_v55 = vcombine.low %v1611_v43, %v1619_v59  ;;  %v15314_v57 = vcombine.high %v1626_v48, %v1634_v49  ;;  %v15564_v58 = vcombine.high %v1627_v52, %v1635_v53  ;;  %v1714_v43 = vld [vmem:[#allocation5 + $0x33c0] sm:$0xff]  ;;  %v1707_v59 = vld [vmem:[#allocation5 + $0x3388] sm:$0xff] }
 0x1ab   :  { %11361 = vmatpush1.bf16.msra.mxu0 %v15303_v2  ;;  %11861 = vmatpush1.bf16.msra.mxu1 %v15553_v4  ;;  %v1651_v2 = vld [vmem:[#allocation5 + $0x31c8] sm:$0xff]  ;;  %v15315_v4 = vcombine.low %v1626_v48, %v1634_v49  ;;  %v1722_v49 = vld [vmem:[#allocation5 + $0x3400] sm:$0xff] }
 0x1ac   :  { %11363 = vmatprep.subr.bf16.mxu0 %v15304_v5  ;;  %11863 = vmatprep.subr.bf16.mxu1 %v15554_v17  ;;  %v15565_v5 = vcombine.low %v1627_v52, %v1635_v53  ;;  %v15316_v17 = vcombine.high %v1642_v60, %v1650_v61  ;;  %v15566_v31 = vcombine.high %v1643_v62, %v1651_v2  ;;  %v1730_v52 = vld [vmem:[#allocation5 + $0x3440] sm:$0xff]  ;;  %v1723_v53 = vld [vmem:[#allocation5 + $0x3408] sm:$0xff] }
 0x1af   :  { %11365 = vmatpush1.bf16.msra.mxu0 %v15305_v13  ;;  %11865 = vmatpush1.bf16.msra.mxu1 %v15555_v14  ;;  %v1667_v13 = vld [vmem:[#allocation5 + $0x3248] sm:$0xff]  ;;  %v15317_v14 = vcombine.low %v1642_v60, %v1650_v61  ;;  %v1738_v61 = vld [vmem:[#allocation5 + $0x3480] sm:$0xff] }
 0x1b0   :  { %11367 = vmatprep.subr.bf16.mxu0 %v15306_v15  ;;  %11867 = vmatprep.subr.bf16.mxu1 %v15556_v16  ;;  %v15567_v15 = vcombine.low %v1643_v62, %v1651_v2  ;;  %v15318_v16 = vcombine.high %v1658_v6, %v1666_v7  ;;  %v15568_v18 = vcombine.high %v1659_v10, %v1667_v13  ;;  %v1746_v62 = vld [vmem:[#allocation5 + $0x34c0] sm:$0xff]  ;;  %v1739_v2 = vld [vmem:[#allocation5 + $0x3488] sm:$0xff] }
 0x1b3   :  { %11369 = vmatpush1.bf16.msra.mxu0 %v15307_v22  ;;  %11869 = vmatpush1.bf16.msra.mxu1 %v15557_v23  ;;  %v1683_v22 = vld [vmem:[#allocation5 + $0x32c8] sm:$0xff]  ;;  %v15319_v23 = vcombine.low %v1658_v6, %v1666_v7  ;;  %v1754_v7 = vld [vmem:[#allocation5 + $0x3500] sm:$0xff] }
 0x1b4   :  { %11371 = vmatprep.subr.bf16.mxu0 %v15308_v24  ;;  %11871 = vmatprep.subr.bf16.mxu1 %v15558_v26  ;;  %v15569_v24 = vcombine.low %v1659_v10, %v1667_v13  ;;  %v15320_v26 = vcombine.high %v1674_v19, %v1682_v20  ;;  %v15570_v28 = vcombine.high %v1675_v21, %v1683_v22  ;;  %v1762_v10 = vld [vmem:[#allocation5 + $0x3540] sm:$0xff]  ;;  %v1755_v13 = vld [vmem:[#allocation5 + $0x3508] sm:$0xff] }
 0x1b7   :  { %11373 = vmatpush1.bf16.msra.mxu0 %v15309_v34  ;;  %11873 = vmatpush1.bf16.msra.mxu1 %v15559_v35  ;;  %v1699_v34 = vld [vmem:[#allocation5 + $0x3348] sm:$0xff]  ;;  %v15321_v35 = vcombine.low %v1674_v19, %v1682_v20  ;;  %v1770_v20 = vld [vmem:[#allocation5 + $0x3580] sm:$0xff] }
 0x1b8   :  { %11375 = vmatprep.subr.bf16.mxu0 %v15310_v36  ;;  %11875 = vmatprep.subr.bf16.mxu1 %v15560_v38  ;;  %v15571_v36 = vcombine.low %v1675_v21, %v1683_v22  ;;  %v15322_v38 = vcombine.high %v1690_v63, %v1698_v30  ;;  %v15572_v39 = vcombine.high %v1691_v32, %v1699_v34  ;;  %v1778_v21 = vld [vmem:[#allocation5 + $0x35c0] sm:$0xff]  ;;  %v1771_v22 = vld [vmem:[#allocation5 + $0x3588] sm:$0xff] }
 0x1ba   :  { %6652 = vmatmul.mubr.f32.vlgmr.msra.gmra.mrb[0].mxu0 %v17367_v0  ;;  %7220 = vmatmul.mubr.f32.vlgmr.msra.gmra.mrb[0].mxu1 %v17367_v0 }
 0x1bb   :  { %11377 = vmatpush1.bf16.msra.mxu0 %v15311_v8  ;;  %11877 = vmatpush1.bf16.msra.mxu1 %v15561_v44  ;;  %v1715_v8 = vld [vmem:[#allocation5 + $0x33c8] sm:$0xff]  ;;  %v15323_v44 = vcombine.low %v1690_v63, %v1698_v30  ;;  %v1786_v30 = vld [vmem:[#allocation5 + $0x3600] sm:$0xff] }
 0x1bc   :  { %11379 = vmatprep.subr.bf16.mxu0 %v15312_v45  ;;  %11879 = vmatprep.subr.bf16.mxu1 %v15562_v47  ;;  %v15573_v45 = vcombine.low %v1691_v32, %v1699_v34  ;;  %v15324_v47 = vcombine.high %v1706_v40, %v1714_v43  ;;  %v15574_v48 = vcombine.high %v1707_v59, %v1715_v8  ;;  %v1794_v32 = vld [vmem:[#allocation5 + $0x3640] sm:$0xff]  ;;  %v1787_v34 = vld [vmem:[#allocation5 + $0x3608] sm:$0xff] }
 0x1bd   :  { %6722 = vmatprep.mubr.f32.mxu0 %v17386_v51  ;;  %7290 = vmatprep.mubr.f32.mxu1 %v17386_v51 }
 0x1bf   :  { %11381 = vmatpush1.bf16.msra.mxu0 %v15313_v54  ;;  %11881 = vmatpush1.bf16.msra.mxu1 %v15563_v55  ;;  %v1731_v54 = vld [vmem:[#allocation5 + $0x3448] sm:$0xff]  ;;  %v15325_v55 = vcombine.low %v1706_v40, %v1714_v43  ;;  %v1802_v43 = vld [vmem:[#allocation5 + $0x3680] sm:$0xff] }
 0x1c0   :  { %11383 = vmatprep.subr.bf16.mxu0 %v15314_v57  ;;  %11883 = vmatprep.subr.bf16.mxu1 %v15564_v58  ;;  %v15575_v57 = vcombine.low %v1707_v59, %v1715_v8  ;;  %v15326_v58 = vcombine.high %v1722_v49, %v1730_v52  ;;  %v15576_v60 = vcombine.high %v1723_v53, %v1731_v54  ;;  %v1810_v59 = vld [vmem:[#allocation5 + $0x36c0] sm:$0xff]  ;;  %v1803_v8 = vld [vmem:[#allocation5 + $0x3688] sm:$0xff] }
 0x1c3   :  { %11385 = vmatpush1.bf16.msra.mxu0 %v15315_v4  ;;  %11885 = vmatpush1.bf16.msra.mxu1 %v15565_v5  ;;  %v1747_v4 = vld [vmem:[#allocation5 + $0x34c8] sm:$0xff]  ;;  %v15327_v5 = vcombine.low %v1722_v49, %v1730_v52  ;;  %v1818_v52 = vld [vmem:[#allocation5 + $0x3700] sm:$0xff] }
 0x1c4   :  { %11387 = vmatprep.subr.bf16.mxu0 %v15316_v17  ;;  %11887 = vmatprep.subr.bf16.mxu1 %v15566_v31  ;;  %v15577_v17 = vcombine.low %v1723_v53, %v1731_v54  ;;  %v15328_v31 = vcombine.high %v1738_v61, %v1746_v62  ;;  %v15578_v6 = vcombine.high %v1739_v2, %v1747_v4  ;;  %v1826_v53 = vld [vmem:[#allocation5 + $0x3740] sm:$0xff]  ;;  %v1819_v54 = vld [vmem:[#allocation5 + $0x3708] sm:$0xff] }
 0x1c7   :  { %11389 = vmatpush1.bf16.msra.mxu0 %v15317_v14  ;;  %11889 = vmatpush1.bf16.msra.mxu1 %v15567_v15  ;;  %v1763_v14 = vld [vmem:[#allocation5 + $0x3548] sm:$0xff]  ;;  %v15329_v15 = vcombine.low %v1738_v61, %v1746_v62  ;;  %v1834_v62 = vld [vmem:[#allocation5 + $0x3780] sm:$0xff] }
 0x1c8   :  { %11391 = vmatprep.subr.bf16.mxu0 %v15318_v16  ;;  %11891 = vmatprep.subr.bf16.mxu1 %v15568_v18  ;;  %v15579_v16 = vcombine.low %v1739_v2, %v1747_v4  ;;  %v15330_v18 = vcombine.high %v1754_v7, %v1762_v10  ;;  %v15580_v19 = vcombine.high %v1755_v13, %v1763_v14  ;;  %v1842_v2 = vld [vmem:[#allocation5 + $0x37c0] sm:$0xff]  ;;  %v1835_v4 = vld [vmem:[#allocation5 + $0x3788] sm:$0xff] }
 0x1cb   :  { %11393 = vmatpush1.bf16.msra.mxu0 %v15319_v23  ;;  %11893 = vmatpush1.bf16.msra.mxu1 %v15569_v24  ;;  %v1779_v23 = vld [vmem:[#allocation5 + $0x35c8] sm:$0xff]  ;;  %v15331_v24 = vcombine.low %v1754_v7, %v1762_v10  ;;  %v1850_v10 = vld [vmem:[#allocation5 + $0x3800] sm:$0xff] }
 0x1cc   :  { %11395 = vmatprep.subr.bf16.mxu0 %v15320_v26  ;;  %11895 = vmatprep.subr.bf16.mxu1 %v15570_v28  ;;  %v15581_v26 = vcombine.low %v1755_v13, %v1763_v14  ;;  %v15332_v28 = vcombine.high %v1770_v20, %v1778_v21  ;;  %v15582_v63 = vcombine.high %v1771_v22, %v1779_v23  ;;  %v1858_v13 = vld [vmem:[#allocation5 + $0x3840] sm:$0xff] }
 0x1cd   :  { %v6197_v14 = vcombine.high %v17378_v29, %v17378_v29 }
 0x1cf   :  { %11397 = vmatpush1.bf16.msra.mxu0 %v15321_v35  ;;  %11897 = vmatpush1.bf16.msra.mxu1 %v15571_v36  ;;  %v1795_v35 = vld [vmem:[#allocation5 + $0x3648] sm:$0xff]  ;;  %v15333_v36 = vcombine.low %v1770_v20, %v1778_v21  ;;  %v15342_v20 = vcombine.high %v1850_v10, %v1858_v13 }
 0x1d0   :  { %11399 = vmatprep.subr.bf16.mxu0 %v15322_v38  ;;  %11899 = vmatprep.subr.bf16.mxu1 %v15572_v39  ;;  %v15583_v38 = vcombine.low %v1771_v22, %v1779_v23  ;;  %v15334_v39 = vcombine.high %v1786_v30, %v1794_v32  ;;  %v15584_v40 = vcombine.high %v1787_v34, %v1795_v35  ;;  %v1866_v22 = vld [vmem:[#allocation5 + $0x3880] sm:$0xff] }
 0x1d1   :  { %v1874_v23 = vld [vmem:[#allocation5 + $0x38c0] sm:$0xff] }
 0x1d3   :  { %11401 = vmatpush1.bf16.msra.mxu0 %v15323_v44  ;;  %11901 = vmatpush1.bf16.msra.mxu1 %v15573_v45  ;;  %v1811_v44 = vld [vmem:[#allocation5 + $0x36c8] sm:$0xff]  ;;  %v15335_v45 = vcombine.low %v1786_v30, %v1794_v32  ;;  %v15344_v30 = vcombine.high %v1866_v22, %v1874_v23 }
 0x1d4   :  { %11403 = vmatprep.subr.bf16.mxu0 %v15324_v47  ;;  %11903 = vmatprep.subr.bf16.mxu1 %v15574_v48  ;;  %v15585_v47 = vcombine.low %v1787_v34, %v1795_v35  ;;  %v15336_v48 = vcombine.high %v1802_v43, %v1810_v59  ;;  %v15586_v49 = vcombine.high %v1803_v8, %v1811_v44  ;;  %v1882_v34 = vld [vmem:[#allocation5 + $0x3900] sm:$0xff] }
 0x1d5   :  { %v1890_v35 = vld [vmem:[#allocation5 + $0x3940] sm:$0xff] }
 0x1d7   :  { %11405 = vmatpush1.bf16.msra.mxu0 %v15325_v55  ;;  %11905 = vmatpush1.bf16.msra.mxu1 %v15575_v57  ;;  %v1827_v55 = vld [vmem:[#allocation5 + $0x3748] sm:$0xff]  ;;  %v15337_v57 = vcombine.low %v1802_v43, %v1810_v59  ;;  %v15346_v43 = vcombine.high %v1882_v34, %v1890_v35 }
 0x1d8   :  { %11407 = vmatprep.subr.bf16.mxu0 %v15326_v58  ;;  %11907 = vmatprep.subr.bf16.mxu1 %v15576_v60  ;;  %v15587_v58 = vcombine.low %v1803_v8, %v1811_v44  ;;  %v15338_v60 = vcombine.high %v1818_v52, %v1826_v53  ;;  %v15588_v61 = vcombine.high %v1819_v54, %v1827_v55  ;;  %v1898_v8 = vld [vmem:[#allocation5 + $0x3980] sm:$0xff] }
 0x1d9   :  { %v1906_v44 = vld [vmem:[#allocation5 + $0x39c0] sm:$0xff] }
 0x1db   :  { %11409 = vmatpush1.bf16.msra.mxu0 %v15327_v5  ;;  %11909 = vmatpush1.bf16.msra.mxu1 %v15577_v17  ;;  %v1843_v5 = vld [vmem:[#allocation5 + $0x37c8] sm:$0xff]  ;;  %v15339_v17 = vcombine.low %v1818_v52, %v1826_v53  ;;  %v15348_v52 = vcombine.high %v1898_v8, %v1906_v44 }
 0x1dc   :  { %11411 = vmatprep.subr.bf16.mxu0 %v15328_v31  ;;  %11911 = vmatprep.subr.bf16.mxu1 %v15578_v6  ;;  %v15589_v31 = vcombine.low %v1819_v54, %v1827_v55  ;;  %v15340_v6 = vcombine.high %v1834_v62, %v1842_v2  ;;  %v15590_v7 = vcombine.high %v1835_v4, %v1843_v5  ;;  %v1914_v54 = vld [vmem:[#allocation5 + $0x3a00] sm:$0xff] }
 0x1dd   :  { %v1922_v55 = vld [vmem:[#allocation5 + $0x3a40] sm:$0xff] }
 0x1df   :  { %11413 = vmatpush1.bf16.msra.mxu0 %v15329_v15  ;;  %11913 = vmatpush1.bf16.msra.mxu1 %v15579_v16  ;;  %v1851_v15 = vld [vmem:[#allocation5 + $0x3808] sm:$0xff] }
 0x1e0   :  { %11415 = vmatprep.subr.bf16.mxu0 %v15330_v18  ;;  %11915 = vmatprep.subr.bf16.mxu1 %v15580_v19  ;;  %v1859_v16 = vld [vmem:[#allocation5 + $0x3848] sm:$0xff]  ;;  %v15341_v18 = vcombine.low %v1834_v62, %v1842_v2  ;;  %v15591_v19 = vcombine.low %v1835_v4, %v1843_v5  ;;  %v15350_v62 = vcombine.high %v1914_v54, %v1922_v55  ;;  %v1930_v4 = vld [vmem:[#allocation5 + $0x3a80] sm:$0xff] }
 0x1e1   :  { %v15592_v21 = vcombine.high %v1851_v15, %v1859_v16  ;;  %v15593_v29 = vcombine.low %v1851_v15, %v1859_v16  ;;  %v1938_v5 = vld [vmem:[#allocation5 + $0x3ac0] sm:$0xff]  ;;  %v1947_v16 = vld [vmem:[#allocation5 + $0x3b08] sm:$0xff] }
 0x1e2   :  { %v1954_v15 = vld [vmem:[#allocation5 + $0x3b40] sm:$0xff] }
 0x1e3   :  { %11417 = vmatpush1.bf16.msra.mxu0 %v15331_v24  ;;  %11917 = vmatpush1.bf16.msra.mxu1 %v15581_v26  ;;  %v17395_v24 = vrot.slane %v6197_v14, %v17289_v56  ;;  %v1867_v26 = vld [vmem:[#allocation5 + $0x3888] sm:$0xff]  ;;  %v1946_v14 = vld [vmem:[#allocation5 + $0x3b00] sm:$0xff] }
 0x1e4   :  { %11419 = vmatprep.subr.bf16.mxu0 %v15332_v28  ;;  %11919 = vmatprep.subr.bf16.mxu1 %v15582_v63  ;;  %v1875_v28 = vld [vmem:[#allocation5 + $0x38c8] sm:$0xff]  ;;  %v15343_v63 = vcombine.low %v1850_v10, %v1858_v13  ;;  %v15352_v10 = vcombine.high %v1930_v4, %v1938_v5 }
 0x1e5   :  { %v15594_v32 = vcombine.high %v1867_v26, %v1875_v28  ;;  %v1883_v56 = vld [vmem:[#allocation5 + $0x3908] sm:$0xff] }
 0x1e7   :  { %11421 = vmatpush1.bf16.msra.mxu0 %v15333_v36  ;;  %11921 = vmatpush1.bf16.msra.mxu1 %v15583_v38  ;;  %v17399_v36 = vcombine.high %v17395_v24, %v17395_v24  ;;  %v1891_v38 = vld [vmem:[#allocation5 + $0x3948] sm:$0xff] }
 0x1e8   :  { %11423 = vmatprep.subr.bf16.mxu0 %v15334_v39  ;;  %11923 = vmatprep.subr.bf16.mxu1 %v15584_v40  ;;  %v15345_v39 = vcombine.low %v1866_v22, %v1874_v23  ;;  %v15595_v40 = vcombine.low %v1867_v26, %v1875_v28  ;;  %v15596_v59 = vcombine.high %v1883_v56, %v1891_v38  ;;  %v1962_v23 = vld [vmem:[#allocation5 + $0x3b80] sm:$0xff]  ;;  %v1963_v28 = vld [vmem:[#allocation5 + $0x3b88] sm:$0xff] }
 0x1e9   :  { %v1970_v26 = vld [vmem:[#allocation5 + $0x3bc0] sm:$0xff] }
 0x1eb   :  { %11425 = vmatpush1.bf16.msra.mxu0 %v15335_v45  ;;  %11925 = vmatpush1.bf16.msra.mxu1 %v15585_v47  ;;  %v1899_v45 = vld [vmem:[#allocation5 + $0x3988] sm:$0xff] }
 0x1ec   :  { %11427 = vmatprep.subr.bf16.mxu0 %v15336_v48  ;;  %11927 = vmatprep.subr.bf16.mxu1 %v15586_v49  ;;  %v1907_v47 = vld [vmem:[#allocation5 + $0x39c8] sm:$0xff]  ;;  %v15347_v48 = vcombine.low %v1882_v34, %v1890_v35  ;;  %v15597_v49 = vcombine.low %v1883_v56, %v1891_v38  ;;  %v1978_v35 = vld [vmem:[#allocation5 + $0x3c00] sm:$0xff] }
 0x1ed   :  { %v15598_v53 = vcombine.high %v1899_v45, %v1907_v47  ;;  %v1986_v56 = vld [vmem:[#allocation5 + $0x3c40] sm:$0xff]  ;;  %v1979_v38 = vld [vmem:[#allocation5 + $0x3c08] sm:$0xff] }
 0x1ef   :  { %11429 = vmatpush1.bf16.msra.mxu0 %v15337_v57  ;;  %11929 = vmatpush1.bf16.msra.mxu1 %v15587_v58  ;;  %v1915_v57 = vld [vmem:[#allocation5 + $0x3a08] sm:$0xff] }
 0x1f0   :  { %11431 = vmatprep.subr.bf16.mxu0 %v15338_v60  ;;  %11931 = vmatprep.subr.bf16.mxu1 %v15588_v61  ;;  %v1923_v58 = vld [vmem:[#allocation5 + $0x3a48] sm:$0xff]  ;;  %v15349_v60 = vcombine.low %v1898_v8, %v1906_v44  ;;  %v15599_v61 = vcombine.low %v1899_v45, %v1907_v47  ;;  %v1994_v44 = vld [vmem:[#allocation5 + $0x3c80] sm:$0xff] }
 0x1f1   :  { %v15600_v2 = vcombine.high %v1915_v57, %v1923_v58  ;;  %v2002_v45 = vld [vmem:[#allocation5 + $0x3cc0] sm:$0xff]  ;;  %v1995_v47 = vld [vmem:[#allocation5 + $0x3c88] sm:$0xff] }
 0x1f3   :  { %11433 = vmatpush1.bf16.msra.mxu0 %v15339_v17  ;;  %11933 = vmatpush1.bf16.msra.mxu1 %v15589_v31  ;;  %v1931_v17 = vld [vmem:[#allocation5 + $0x3a88] sm:$0xff] }
 0x1f4   :  { %11435 = vmatprep.subr.bf16.mxu0 %v15340_v6  ;;  %11935 = vmatprep.subr.bf16.mxu1 %v15590_v7  ;;  %v1939_v31 = vld [vmem:[#allocation5 + $0x3ac8] sm:$0xff]  ;;  %v15351_v6 = vcombine.low %v1914_v54, %v1922_v55  ;;  %v15601_v7 = vcombine.low %v1915_v57, %v1923_v58  ;;  %v2010_v55 = vld [vmem:[#allocation5 + $0x3d00] sm:$0xff] }
 0x1f5   :  { %v15602_v13 = vcombine.high %v1931_v17, %v1939_v31  ;;  %v2018_v57 = vld [vmem:[#allocation5 + $0x3d40] sm:$0xff]  ;;  %v2011_v58 = vld [vmem:[#allocation5 + $0x3d08] sm:$0xff] }
 0x1f7   :  { %11437 = vmatpush1.bf16.msra.mxu0 %v15341_v18  ;;  %11937 = vmatpush1.bf16.msra.mxu1 %v15591_v19  ;;  %v1955_v18 = vld [vmem:[#allocation5 + $0x3b48] sm:$0xff]  ;;  %v15353_v19 = vcombine.low %v1930_v4, %v1938_v5  ;;  %v2026_v5 = vld [vmem:[#allocation5 + $0x3d80] sm:$0xff] }
 0x1f8   :  { %11439 = vmatprep.subr.bf16.mxu0 %v15342_v20  ;;  %11939 = vmatprep.subr.bf16.mxu1 %v15592_v21  ;;  %v15603_v20 = vcombine.low %v1931_v17, %v1939_v31  ;;  %v15354_v21 = vcombine.high %v1946_v14, %v1954_v15  ;;  %v15604_v22 = vcombine.high %v1947_v16, %v1955_v18  ;;  %v2034_v17 = vld [vmem:[#allocation5 + $0x3dc0] sm:$0xff]  ;;  %v2027_v31 = vld [vmem:[#allocation5 + $0x3d88] sm:$0xff] }
 0x1fa   :  { %6723 = vmatmul.mubr.f32.vlgmr.msra.gmra.mrb[0].mxu0 %v17382_v42  ;;  %7291 = vmatmul.mubr.f32.vlgmr.msra.gmra.mrb[0].mxu1 %v17382_v42 }
 0x1fb   :  { %11441 = vmatpush1.bf16.msra.mxu0 %v15343_v63  ;;  %11941 = vmatpush1.bf16.msra.mxu1 %v15593_v29  ;;  %v1971_v63 = vld [vmem:[#allocation5 + $0x3bc8] sm:$0xff]  ;;  %v15355_v29 = vcombine.low %v1946_v14, %v1954_v15  ;;  %v2042_v15 = vld [vmem:[#allocation5 + $0x3e00] sm:$0xff] }
 0x1fc   :  { %11443 = vmatprep.subr.bf16.mxu0 %v15344_v30  ;;  %11943 = vmatprep.subr.bf16.mxu1 %v15594_v32  ;;  %v15605_v30 = vcombine.low %v1947_v16, %v1955_v18  ;;  %v15356_v32 = vcombine.high %v1962_v23, %v1970_v26  ;;  %v15606_v34 = vcombine.high %v1963_v28, %v1971_v63  ;;  %v2050_v16 = vld [vmem:[#allocation5 + $0x3e40] sm:$0xff]  ;;  %v2043_v18 = vld [vmem:[#allocation5 + $0x3e08] sm:$0xff] }
 0x1fd   :  { %10974 = vmatprep.mubr.msk.f32.mxu0 %vm6229_vm0, %v17399_v36  ;;  %10975 = vmatprep.mubr.msk.f32.mxu1 %vm6229_vm0, %v17399_v36 }
 0x1ff   :  { %11445 = vmatpush1.bf16.msra.mxu0 %v15345_v39  ;;  %11945 = vmatpush1.bf16.msra.mxu1 %v15595_v40  ;;  %v1987_v39 = vld [vmem:[#allocation5 + $0x3c48] sm:$0xff]  ;;  %v15357_v40 = vcombine.low %v1962_v23, %v1970_v26  ;;  %v60_v26 = vld [vmem:[#allocation5 + $0x10] sm:$0xff] }
 0x200   :  { %11447 = vmatprep.subr.bf16.mxu0 %v15346_v43  ;;  %11947 = vmatprep.subr.bf16.mxu1 %v15596_v59  ;;  %v15607_v43 = vcombine.low %v1963_v28, %v1971_v63  ;;  %v15358_v59 = vcombine.high %v1978_v35, %v1986_v56  ;;  %v15608_v8 = vcombine.high %v1979_v38, %v1987_v39  ;;  %v68_v28 = vld [vmem:[#allocation5 + $0x50] sm:$0xff]  ;;  %v61_v63 = vld [vmem:[#allocation5 + $0x18] sm:$0xff] }
 0x203   :  { %11449 = vmatpush1.bf16.msra.mxu0 %v15347_v48  ;;  %11949 = vmatpush1.bf16.msra.mxu1 %v15597_v49  ;;  %v2003_v48 = vld [vmem:[#allocation5 + $0x3cc8] sm:$0xff]  ;;  %v15359_v49 = vcombine.low %v1978_v35, %v1986_v56  ;;  %v76_v56 = vld [vmem:[#allocation5 + $0x90] sm:$0xff] }
 0x204   :  { %11451 = vmatprep.subr.bf16.mxu0 %v15348_v52  ;;  %11951 = vmatprep.subr.bf16.mxu1 %v15598_v53  ;;  %v15609_v52 = vcombine.low %v1979_v38, %v1987_v39  ;;  %v15360_v53 = vcombine.high %v1994_v44, %v2002_v45  ;;  %v15610_v54 = vcombine.high %v1995_v47, %v2003_v48  ;;  %v84_v38 = vld [vmem:[#allocation5 + $0xd0] sm:$0xff]  ;;  %v77_v39 = vld [vmem:[#allocation5 + $0x98] sm:$0xff] }
 0x207   :  { %11453 = vmatpush1.bf16.msra.mxu0 %v15349_v60  ;;  %11953 = vmatpush1.bf16.msra.mxu1 %v15599_v61  ;;  %v2019_v60 = vld [vmem:[#allocation5 + $0x3d48] sm:$0xff]  ;;  %v15361_v61 = vcombine.low %v1994_v44, %v2002_v45  ;;  %v92_v45 = vld [vmem:[#allocation5 + $0x110] sm:$0xff] }
 0x208   :  { %11455 = vmatprep.subr.bf16.mxu0 %v15350_v62  ;;  %11955 = vmatprep.subr.bf16.mxu1 %v15600_v2  ;;  %v15611_v62 = vcombine.low %v1995_v47, %v2003_v48  ;;  %v15362_v2 = vcombine.high %v2010_v55, %v2018_v57  ;;  %v15612_v4 = vcombine.high %v2011_v58, %v2019_v60  ;;  %v100_v47 = vld [vmem:[#allocation5 + $0x150] sm:$0xff]  ;;  %v93_v48 = vld [vmem:[#allocation5 + $0x118] sm:$0xff] }
 0x20b   :  { %11457 = vmatpush1.bf16.msra.mxu0 %v15351_v6  ;;  %11957 = vmatpush1.bf16.msra.mxu1 %v15601_v7  ;;  %v2035_v6 = vld [vmem:[#allocation5 + $0x3dc8] sm:$0xff]  ;;  %v15363_v7 = vcombine.low %v2010_v55, %v2018_v57  ;;  %v108_v57 = vld [vmem:[#allocation5 + $0x190] sm:$0xff] }
 0x20c   :  { %11459 = vmatprep.subr.bf16.mxu0 %v15352_v10  ;;  %11959 = vmatprep.subr.bf16.mxu1 %v15602_v13  ;;  %v15613_v10 = vcombine.low %v2011_v58, %v2019_v60  ;;  %v15364_v13 = vcombine.high %v2026_v5, %v2034_v17  ;;  %v15614_v14 = vcombine.high %v2027_v31, %v2035_v6  ;;  %v116_v58 = vld [vmem:[#allocation5 + $0x1d0] sm:$0xff]  ;;  %v109_v60 = vld [vmem:[#allocation5 + $0x198] sm:$0xff] }
 0x20f   :  { %11461 = vmatpush1.bf16.msra.mxu0 %v15353_v19  ;;  %11961 = vmatpush1.bf16.msra.mxu1 %v15603_v20  ;;  %v2051_v19 = vld [vmem:[#allocation5 + $0x3e48] sm:$0xff]  ;;  %v15365_v20 = vcombine.low %v2026_v5, %v2034_v17  ;;  %v124_v17 = vld [vmem:[#allocation5 + $0x210] sm:$0xff] }
 0x210   :  { %11463 = vmatprep.subr.bf16.mxu0 %v15354_v21  ;;  %11963 = vmatprep.subr.bf16.mxu1 %v15604_v22  ;;  %v15615_v21 = vcombine.low %v2027_v31, %v2035_v6  ;;  %v15366_v22 = vcombine.high %v2042_v15, %v2050_v16  ;;  %v15616_v23 = vcombine.high %v2043_v18, %v2051_v19  ;;  %v132_v31 = vld [vmem:[#allocation5 + $0x250] sm:$0xff]  ;;  %v125_v6 = vld [vmem:[#allocation5 + $0x218] sm:$0xff] }
 0x213   :  { %11465 = vmatpush1.bf16.msra.mxu0 %v15355_v29  ;;  %11965 = vmatpush1.bf16.msra.mxu1 %v15605_v30  ;;  %v69_v29 = vld [vmem:[#allocation5 + $0x58] sm:$0xff]  ;;  %v15367_v30 = vcombine.low %v2042_v15, %v2050_v16  ;;  %v140_v16 = vld [vmem:[#allocation5 + $0x290] sm:$0xff] }
 0x214   :  { %11467 = vmatprep.subr.bf16.mxu0 %v15356_v32  ;;  %11967 = vmatprep.subr.bf16.mxu1 %v15606_v34  ;;  %v15617_v32 = vcombine.low %v2043_v18, %v2051_v19  ;;  %v15618_v34 = vcombine.high %v60_v26, %v68_v28  ;;  %v15868_v35 = vcombine.high %v61_v63, %v69_v29  ;;  %v148_v18 = vld [vmem:[#allocation5 + $0x2d0] sm:$0xff]  ;;  %v141_v19 = vld [vmem:[#allocation5 + $0x298] sm:$0xff] }
 0x217   :  { %11469 = vmatpush1.bf16.msra.mxu0 %v15357_v40  ;;  %11969 = vmatpush1.bf16.msra.mxu1 %v15607_v43  ;;  %v85_v40 = vld [vmem:[#allocation5 + $0xd8] sm:$0xff]  ;;  %v15619_v43 = vcombine.low %v60_v26, %v68_v28  ;;  %v156_v28 = vld [vmem:[#allocation5 + $0x310] sm:$0xff] }
 0x218   :  { %11471 = vmatprep.subr.bf16.mxu0 %v15358_v59  ;;  %11971 = vmatprep.subr.bf16.mxu1 %v15608_v8  ;;  %v15869_v59 = vcombine.low %v61_v63, %v69_v29  ;;  %v15620_v8 = vcombine.high %v76_v56, %v84_v38  ;;  %v15870_v44 = vcombine.high %v77_v39, %v85_v40  ;;  %v164_v63 = vld [vmem:[#allocation5 + $0x350] sm:$0xff]  ;;  %v157_v29 = vld [vmem:[#allocation5 + $0x318] sm:$0xff] }
 0x21b   :  { %11473 = vmatpush1.bf16.msra.mxu0 %v15359_v49  ;;  %11973 = vmatpush1.bf16.msra.mxu1 %v15609_v52  ;;  %v101_v49 = vld [vmem:[#allocation5 + $0x158] sm:$0xff]  ;;  %v15621_v52 = vcombine.low %v76_v56, %v84_v38  ;;  %v172_v38 = vld [vmem:[#allocation5 + $0x390] sm:$0xff] }
 0x21c   :  { %11475 = vmatprep.subr.bf16.mxu0 %v15360_v53  ;;  %11975 = vmatprep.subr.bf16.mxu1 %v15610_v54  ;;  %v15871_v53 = vcombine.low %v77_v39, %v85_v40  ;;  %v15622_v54 = vcombine.high %v92_v45, %v100_v47  ;;  %v15872_v55 = vcombine.high %v93_v48, %v101_v49  ;;  %v180_v39 = vld [vmem:[#allocation5 + $0x3d0] sm:$0xff]  ;;  %v173_v40 = vld [vmem:[#allocation5 + $0x398] sm:$0xff] }
 0x21f   :  { %11477 = vmatpush1.bf16.msra.mxu0 %v15361_v61  ;;  %11977 = vmatpush1.bf16.msra.mxu1 %v15611_v62  ;;  %v117_v61 = vld [vmem:[#allocation5 + $0x1d8] sm:$0xff]  ;;  %v15623_v62 = vcombine.low %v92_v45, %v100_v47  ;;  %v188_v47 = vld [vmem:[#allocation5 + $0x410] sm:$0xff] }
 0x220   :  { %11479 = vmatprep.subr.bf16.mxu0 %v15362_v2  ;;  %11979 = vmatprep.subr.bf16.mxu1 %v15612_v4  ;;  %v15873_v2 = vcombine.low %v93_v48, %v101_v49  ;;  %v15624_v4 = vcombine.high %v108_v57, %v116_v58  ;;  %v15874_v5 = vcombine.high %v109_v60, %v117_v61  ;;  %v196_v48 = vld [vmem:[#allocation5 + $0x450] sm:$0xff]  ;;  %v189_v49 = vld [vmem:[#allocation5 + $0x418] sm:$0xff] }
 0x223   :  { %11481 = vmatpush1.bf16.msra.mxu0 %v15363_v7  ;;  %11981 = vmatpush1.bf16.msra.mxu1 %v15613_v10  ;;  %v133_v7 = vld [vmem:[#allocation5 + $0x258] sm:$0xff]  ;;  %v15625_v10 = vcombine.low %v108_v57, %v116_v58  ;;  %v204_v58 = vld [vmem:[#allocation5 + $0x490] sm:$0xff] }
 0x224   :  { %11483 = vmatprep.subr.bf16.mxu0 %v15364_v13  ;;  %11983 = vmatprep.subr.bf16.mxu1 %v15614_v14  ;;  %v15875_v13 = vcombine.low %v109_v60, %v117_v61  ;;  %v15626_v14 = vcombine.high %v124_v17, %v132_v31  ;;  %v15876_v15 = vcombine.high %v125_v6, %v133_v7  ;;  %v212_v60 = vld [vmem:[#allocation5 + $0x4d0] sm:$0xff]  ;;  %v205_v61 = vld [vmem:[#allocation5 + $0x498] sm:$0xff] }
 0x227   :  { %11485 = vmatpush1.bf16.msra.mxu0 %v15365_v20  ;;  %11985 = vmatpush1.bf16.msra.mxu1 %v15615_v21  ;;  %v149_v20 = vld [vmem:[#allocation5 + $0x2d8] sm:$0xff]  ;;  %v15627_v21 = vcombine.low %v124_v17, %v132_v31  ;;  %v220_v31 = vld [vmem:[#allocation5 + $0x510] sm:$0xff] }
 0x228   :  { %11487 = vmatprep.subr.bf16.mxu0 %v15366_v22  ;;  %11987 = vmatprep.subr.bf16.mxu1 %v15616_v23  ;;  %v15877_v22 = vcombine.low %v125_v6, %v133_v7  ;;  %v15628_v23 = vcombine.high %v140_v16, %v148_v18  ;;  %v15878_v26 = vcombine.high %v141_v19, %v149_v20  ;;  %v228_v6 = vld [vmem:[#allocation5 + $0x550] sm:$0xff]  ;;  %v221_v7 = vld [vmem:[#allocation5 + $0x518] sm:$0xff] }
 0x22b   :  { %11489 = vmatpush1.bf16.msra.mxu0 %v15367_v30  ;;  %11989 = vmatpush1.bf16.msra.mxu1 %v15617_v32  ;;  %v165_v30 = vld [vmem:[#allocation5 + $0x358] sm:$0xff]  ;;  %v15629_v32 = vcombine.low %v140_v16, %v148_v18  ;;  %v236_v18 = vld [vmem:[#allocation5 + $0x590] sm:$0xff] }
 0x22c   :  { %11991 = vmatprep.subr.bf16.mxu0 %v15618_v34  ;;  %12491 = vmatprep.subr.bf16.mxu1 %v15868_v35  ;;  %v15879_v34 = vcombine.low %v141_v19, %v149_v20  ;;  %v15630_v35 = vcombine.high %v156_v28, %v164_v63  ;;  %v15880_v56 = vcombine.high %v157_v29, %v165_v30  ;;  %v244_v19 = vld [vmem:[#allocation5 + $0x5d0] sm:$0xff]  ;;  %v237_v20 = vld [vmem:[#allocation5 + $0x598] sm:$0xff] }
 0x22e   :  { %6794 = vmatmul.mubr.f32.vlgmr.msra.gmra.mrb[0].mxu0 %v17395_v24  ;;  %7362 = vmatmul.mubr.f32.vlgmr.msra.gmra.mrb[0].mxu1 %v17395_v24 }
 0x22f   :  { %11993 = vmatpush1.bf16.msra.mxu0 %v15619_v43  ;;  %12493 = vmatpush1.bf16.msra.mxu1 %v15869_v59  ;;  %v181_v43 = vld [vmem:[#allocation5 + $0x3d8] sm:$0xff]  ;;  %v15631_v59 = vcombine.low %v156_v28, %v164_v63  ;;  %v252_v63 = vld [vmem:[#allocation5 + $0x610] sm:$0xff] }
 0x230   :  { %11995 = vmatprep.subr.bf16.mxu0 %v15620_v8  ;;  %12495 = vmatprep.subr.bf16.mxu1 %v15870_v44  ;;  %v15881_v8 = vcombine.low %v157_v29, %v165_v30  ;;  %v15632_v44 = vcombine.high %v172_v38, %v180_v39  ;;  %v15882_v45 = vcombine.high %v173_v40, %v181_v43  ;;  %v260_v29 = vld [vmem:[#allocation5 + $0x650] sm:$0xff]  ;;  %v253_v30 = vld [vmem:[#allocation5 + $0x618] sm:$0xff] }
 0x231   :  { %7432 = vmatprep.mubr.f32.mxu0 %v17302_v9  ;;  %8000 = vmatprep.mubr.f32.mxu1 %v17302_v9 }
 0x233   :  { %11997 = vmatpush1.bf16.msra.mxu0 %v15621_v52  ;;  %12497 = vmatpush1.bf16.msra.mxu1 %v15871_v53  ;;  %v197_v52 = vld [vmem:[#allocation5 + $0x458] sm:$0xff]  ;;  %v15633_v53 = vcombine.low %v172_v38, %v180_v39  ;;  %v268_v39 = vld [vmem:[#allocation5 + $0x690] sm:$0xff] }
 0x234   :  { %11999 = vmatprep.subr.bf16.mxu0 %v15622_v54  ;;  %12499 = vmatprep.subr.bf16.mxu1 %v15872_v55  ;;  %v15883_v54 = vcombine.low %v173_v40, %v181_v43  ;;  %v15634_v55 = vcombine.high %v188_v47, %v196_v48  ;;  %v15884_v57 = vcombine.high %v189_v49, %v197_v52  ;;  %v276_v40 = vld [vmem:[#allocation5 + $0x6d0] sm:$0xff]  ;;  %v269_v43 = vld [vmem:[#allocation5 + $0x698] sm:$0xff] }
 0x237   :  { %12001 = vmatpush1.bf16.msra.mxu0 %v15623_v62  ;;  %12501 = vmatpush1.bf16.msra.mxu1 %v15873_v2  ;;  %v213_v62 = vld [vmem:[#allocation5 + $0x4d8] sm:$0xff]  ;;  %v15635_v2 = vcombine.low %v188_v47, %v196_v48  ;;  %v284_v48 = vld [vmem:[#allocation5 + $0x710] sm:$0xff] }
 0x238   :  { %12003 = vmatprep.subr.bf16.mxu0 %v15624_v4  ;;  %12503 = vmatprep.subr.bf16.mxu1 %v15874_v5  ;;  %v15885_v4 = vcombine.low %v189_v49, %v197_v52  ;;  %v15636_v5 = vcombine.high %v204_v58, %v212_v60  ;;  %v15886_v17 = vcombine.high %v205_v61, %v213_v62  ;;  %v292_v49 = vld [vmem:[#allocation5 + $0x750] sm:$0xff]  ;;  %v285_v52 = vld [vmem:[#allocation5 + $0x718] sm:$0xff] }
 0x23b   :  { %12005 = vmatpush1.bf16.msra.mxu0 %v15625_v10  ;;  %12505 = vmatpush1.bf16.msra.mxu1 %v15875_v13  ;;  %v229_v10 = vld [vmem:[#allocation5 + $0x558] sm:$0xff]  ;;  %v15637_v13 = vcombine.low %v204_v58, %v212_v60  ;;  %v300_v60 = vld [vmem:[#allocation5 + $0x790] sm:$0xff] }
 0x23c   :  { %12007 = vmatprep.subr.bf16.mxu0 %v15626_v14  ;;  %12507 = vmatprep.subr.bf16.mxu1 %v15876_v15  ;;  %v15887_v14 = vcombine.low %v205_v61, %v213_v62  ;;  %v15638_v15 = vcombine.high %v220_v31, %v228_v6  ;;  %v15888_v16 = vcombine.high %v221_v7, %v229_v10  ;;  %v308_v61 = vld [vmem:[#allocation5 + $0x7d0] sm:$0xff]  ;;  %v301_v62 = vld [vmem:[#allocation5 + $0x798] sm:$0xff] }
 0x23f   :  { %12009 = vmatpush1.bf16.msra.mxu0 %v15627_v21  ;;  %12509 = vmatpush1.bf16.msra.mxu1 %v15877_v22  ;;  %v245_v21 = vld [vmem:[#allocation5 + $0x5d8] sm:$0xff]  ;;  %v15639_v22 = vcombine.low %v220_v31, %v228_v6  ;;  %v316_v6 = vld [vmem:[#allocation5 + $0x810] sm:$0xff] }
 0x240   :  { %12011 = vmatprep.subr.bf16.mxu0 %v15628_v23  ;;  %12511 = vmatprep.subr.bf16.mxu1 %v15878_v26  ;;  %v15889_v23 = vcombine.low %v221_v7, %v229_v10  ;;  %v15640_v26 = vcombine.high %v236_v18, %v244_v19  ;;  %v15890_v28 = vcombine.high %v237_v20, %v245_v21  ;;  %v324_v7 = vld [vmem:[#allocation5 + $0x850] sm:$0xff]  ;;  %v317_v10 = vld [vmem:[#allocation5 + $0x818] sm:$0xff] }
 0x243   :  { %12013 = vmatpush1.bf16.msra.mxu0 %v15629_v32  ;;  %12513 = vmatpush1.bf16.msra.mxu1 %v15879_v34  ;;  %v261_v32 = vld [vmem:[#allocation5 + $0x658] sm:$0xff]  ;;  %v15641_v34 = vcombine.low %v236_v18, %v244_v19  ;;  %v332_v19 = vld [vmem:[#allocation5 + $0x890] sm:$0xff] }
 0x244   :  { %12015 = vmatprep.subr.bf16.mxu0 %v15630_v35  ;;  %12515 = vmatprep.subr.bf16.mxu1 %v15880_v56  ;;  %v15891_v35 = vcombine.low %v237_v20, %v245_v21  ;;  %v15642_v56 = vcombine.high %v252_v63, %v260_v29  ;;  %v15892_v38 = vcombine.high %v253_v30, %v261_v32  ;;  %v340_v20 = vld [vmem:[#allocation5 + $0x8d0] sm:$0xff]  ;;  %v333_v21 = vld [vmem:[#allocation5 + $0x898] sm:$0xff] }
 0x247   :  { %12017 = vmatpush1.bf16.msra.mxu0 %v15631_v59  ;;  %12517 = vmatpush1.bf16.msra.mxu1 %v15881_v8  ;;  %v277_v59 = vld [vmem:[#allocation5 + $0x6d8] sm:$0xff]  ;;  %v15643_v8 = vcombine.low %v252_v63, %v260_v29  ;;  %v348_v29 = vld [vmem:[#allocation5 + $0x910] sm:$0xff] }
 0x248   :  { %12019 = vmatprep.subr.bf16.mxu0 %v15632_v44  ;;  %12519 = vmatprep.subr.bf16.mxu1 %v15882_v45  ;;  %v15893_v44 = vcombine.low %v253_v30, %v261_v32  ;;  %v15644_v45 = vcombine.high %v268_v39, %v276_v40  ;;  %v15894_v47 = vcombine.high %v269_v43, %v277_v59  ;;  %v356_v30 = vld [vmem:[#allocation5 + $0x950] sm:$0xff]  ;;  %v349_v32 = vld [vmem:[#allocation5 + $0x918] sm:$0xff] }
 0x24b   :  { %12021 = vmatpush1.bf16.msra.mxu0 %v15633_v53  ;;  %12521 = vmatpush1.bf16.msra.mxu1 %v15883_v54  ;;  %v293_v53 = vld [vmem:[#allocation5 + $0x758] sm:$0xff]  ;;  %v15645_v54 = vcombine.low %v268_v39, %v276_v40  ;;  %v364_v40 = vld [vmem:[#allocation5 + $0x990] sm:$0xff] }
 0x24c   :  { %12023 = vmatprep.subr.bf16.mxu0 %v15634_v55  ;;  %12523 = vmatprep.subr.bf16.mxu1 %v15884_v57  ;;  %v15895_v55 = vcombine.low %v269_v43, %v277_v59  ;;  %v15646_v57 = vcombine.high %v284_v48, %v292_v49  ;;  %v15896_v58 = vcombine.high %v285_v52, %v293_v53  ;;  %v372_v43 = vld [vmem:[#allocation5 + $0x9d0] sm:$0xff]  ;;  %v365_v59 = vld [vmem:[#allocation5 + $0x998] sm:$0xff] }
 0x24f   :  { %12025 = vmatpush1.bf16.msra.mxu0 %v15635_v2  ;;  %12525 = vmatpush1.bf16.msra.mxu1 %v15885_v4  ;;  %v309_v2 = vld [vmem:[#allocation5 + $0x7d8] sm:$0xff]  ;;  %v15647_v4 = vcombine.low %v284_v48, %v292_v49  ;;  %v380_v49 = vld [vmem:[#allocation5 + $0xa10] sm:$0xff] }
 0x250   :  { %12027 = vmatprep.subr.bf16.mxu0 %v15636_v5  ;;  %12527 = vmatprep.subr.bf16.mxu1 %v15886_v17  ;;  %v15897_v5 = vcombine.low %v285_v52, %v293_v53  ;;  %v15648_v17 = vcombine.high %v300_v60, %v308_v61  ;;  %v15898_v31 = vcombine.high %v301_v62, %v309_v2  ;;  %v388_v52 = vld [vmem:[#allocation5 + $0xa50] sm:$0xff]  ;;  %v381_v53 = vld [vmem:[#allocation5 + $0xa18] sm:$0xff] }
 0x253   :  { %12029 = vmatpush1.bf16.msra.mxu0 %v15637_v13  ;;  %12529 = vmatpush1.bf16.msra.mxu1 %v15887_v14  ;;  %v325_v13 = vld [vmem:[#allocation5 + $0x858] sm:$0xff]  ;;  %v15649_v14 = vcombine.low %v300_v60, %v308_v61  ;;  %v396_v61 = vld [vmem:[#allocation5 + $0xa90] sm:$0xff] }
 0x254   :  { %12031 = vmatprep.subr.bf16.mxu0 %v15638_v15  ;;  %12531 = vmatprep.subr.bf16.mxu1 %v15888_v16  ;;  %v15899_v15 = vcombine.low %v301_v62, %v309_v2  ;;  %v15650_v16 = vcombine.high %v316_v6, %v324_v7  ;;  %v15900_v18 = vcombine.high %v317_v10, %v325_v13  ;;  %v404_v62 = vld [vmem:[#allocation5 + $0xad0] sm:$0xff]  ;;  %v397_v2 = vld [vmem:[#allocation5 + $0xa98] sm:$0xff] }
 0x257   :  { %12033 = vmatpush1.bf16.msra.mxu0 %v15639_v22  ;;  %12533 = vmatpush1.bf16.msra.mxu1 %v15889_v23  ;;  %v341_v22 = vld [vmem:[#allocation5 + $0x8d8] sm:$0xff]  ;;  %v15651_v23 = vcombine.low %v316_v6, %v324_v7  ;;  %v412_v7 = vld [vmem:[#allocation5 + $0xb10] sm:$0xff] }
 0x258   :  { %12035 = vmatprep.subr.bf16.mxu0 %v15640_v26  ;;  %12535 = vmatprep.subr.bf16.mxu1 %v15890_v28  ;;  %v15901_v26 = vcombine.low %v317_v10, %v325_v13  ;;  %v15652_v28 = vcombine.high %v332_v19, %v340_v20  ;;  %v15902_v63 = vcombine.high %v333_v21, %v341_v22  ;;  %v420_v10 = vld [vmem:[#allocation5 + $0xb50] sm:$0xff]  ;;  %v413_v13 = vld [vmem:[#allocation5 + $0xb18] sm:$0xff] }
 0x25b   :  { %12037 = vmatpush1.bf16.msra.mxu0 %v15641_v34  ;;  %12537 = vmatpush1.bf16.msra.mxu1 %v15891_v35  ;;  %v357_v34 = vld [vmem:[#allocation5 + $0x958] sm:$0xff]  ;;  %v15653_v35 = vcombine.low %v332_v19, %v340_v20  ;;  %v428_v20 = vld [vmem:[#allocation5 + $0xb90] sm:$0xff] }
 0x25c   :  { %12039 = vmatprep.subr.bf16.mxu0 %v15642_v56  ;;  %12539 = vmatprep.subr.bf16.mxu1 %v15892_v38  ;;  %v15903_v56 = vcombine.low %v333_v21, %v341_v22  ;;  %v15654_v38 = vcombine.high %v348_v29, %v356_v30  ;;  %v15904_v39 = vcombine.high %v349_v32, %v357_v34  ;;  %v436_v21 = vld [vmem:[#allocation5 + $0xbd0] sm:$0xff]  ;;  %v429_v22 = vld [vmem:[#allocation5 + $0xb98] sm:$0xff] }
 0x25f   :  { %12041 = vmatpush1.bf16.msra.mxu0 %v15643_v8  ;;  %12541 = vmatpush1.bf16.msra.mxu1 %v15893_v44  ;;  %v373_v8 = vld [vmem:[#allocation5 + $0x9d8] sm:$0xff]  ;;  %v15655_v44 = vcombine.low %v348_v29, %v356_v30  ;;  %v444_v30 = vld [vmem:[#allocation5 + $0xc10] sm:$0xff] }
 0x260   :  { %12043 = vmatprep.subr.bf16.mxu0 %v15644_v45  ;;  %12543 = vmatprep.subr.bf16.mxu1 %v15894_v47  ;;  %v15905_v45 = vcombine.low %v349_v32, %v357_v34  ;;  %v15656_v47 = vcombine.high %v364_v40, %v372_v43  ;;  %v15906_v48 = vcombine.high %v365_v59, %v373_v8  ;;  %v452_v32 = vld [vmem:[#allocation5 + $0xc50] sm:$0xff]  ;;  %v445_v34 = vld [vmem:[#allocation5 + $0xc18] sm:$0xff] }
 0x263   :  { %12045 = vmatpush1.bf16.msra.mxu0 %v15645_v54  ;;  %12545 = vmatpush1.bf16.msra.mxu1 %v15895_v55  ;;  %v389_v54 = vld [vmem:[#allocation5 + $0xa58] sm:$0xff]  ;;  %v15657_v55 = vcombine.low %v364_v40, %v372_v43  ;;  %v460_v43 = vld [vmem:[#allocation5 + $0xc90] sm:$0xff] }
 0x264   :  { %12047 = vmatprep.subr.bf16.mxu0 %v15646_v57  ;;  %12547 = vmatprep.subr.bf16.mxu1 %v15896_v58  ;;  %v15907_v57 = vcombine.low %v365_v59, %v373_v8  ;;  %v15658_v58 = vcombine.high %v380_v49, %v388_v52  ;;  %v15908_v60 = vcombine.high %v381_v53, %v389_v54  ;;  %v468_v59 = vld [vmem:[#allocation5 + $0xcd0] sm:$0xff]  ;;  %v461_v8 = vld [vmem:[#allocation5 + $0xc98] sm:$0xff] }
 0x267   :  { %12049 = vmatpush1.bf16.msra.mxu0 %v15647_v4  ;;  %12549 = vmatpush1.bf16.msra.mxu1 %v15897_v5  ;;  %v405_v4 = vld [vmem:[#allocation5 + $0xad8] sm:$0xff]  ;;  %v15659_v5 = vcombine.low %v380_v49, %v388_v52  ;;  %v476_v52 = vld [vmem:[#allocation5 + $0xd10] sm:$0xff] }
 0x268   :  { %12051 = vmatprep.subr.bf16.mxu0 %v15648_v17  ;;  %12551 = vmatprep.subr.bf16.mxu1 %v15898_v31  ;;  %v15909_v17 = vcombine.low %v381_v53, %v389_v54  ;;  %v15660_v31 = vcombine.high %v396_v61, %v404_v62  ;;  %v15910_v6 = vcombine.high %v397_v2, %v405_v4  ;;  %v484_v53 = vld [vmem:[#allocation5 + $0xd50] sm:$0xff]  ;;  %v477_v54 = vld [vmem:[#allocation5 + $0xd18] sm:$0xff] }
 0x26b   :  { %12053 = vmatpush1.bf16.msra.mxu0 %v15649_v14  ;;  %12553 = vmatpush1.bf16.msra.mxu1 %v15899_v15  ;;  %v421_v14 = vld [vmem:[#allocation5 + $0xb58] sm:$0xff]  ;;  %v15661_v15 = vcombine.low %v396_v61, %v404_v62  ;;  %v492_v62 = vld [vmem:[#allocation5 + $0xd90] sm:$0xff] }
 0x26c   :  { %12055 = vmatprep.subr.bf16.mxu0 %v15650_v16  ;;  %12555 = vmatprep.subr.bf16.mxu1 %v15900_v18  ;;  %v15911_v16 = vcombine.low %v397_v2, %v405_v4  ;;  %v15662_v18 = vcombine.high %v412_v7, %v420_v10  ;;  %v15912_v19 = vcombine.high %v413_v13, %v421_v14  ;;  %v500_v2 = vld [vmem:[#allocation5 + $0xdd0] sm:$0xff]  ;;  %v493_v4 = vld [vmem:[#allocation5 + $0xd98] sm:$0xff] }
 0x26e   :  { %7433 = vmatmul.mubr.f32.vlgmr.msra.gmra.mrb[2].mxu0 %v17298_v3  ;;  %8001 = vmatmul.mubr.f32.vlgmr.msra.gmra.mrb[2].mxu1 %v17298_v3 }
 0x26f   :  { %12057 = vmatpush1.bf16.msra.mxu0 %v15651_v23  ;;  %12557 = vmatpush1.bf16.msra.mxu1 %v15901_v26  ;;  %v437_v23 = vld [vmem:[#allocation5 + $0xbd8] sm:$0xff]  ;;  %v15663_v26 = vcombine.low %v412_v7, %v420_v10  ;;  %v508_v10 = vld [vmem:[#allocation5 + $0xe10] sm:$0xff] }
 0x270   :  { %12059 = vmatprep.subr.bf16.mxu0 %v15652_v28  ;;  %12559 = vmatprep.subr.bf16.mxu1 %v15902_v63  ;;  %v15913_v28 = vcombine.low %v413_v13, %v421_v14  ;;  %v15664_v63 = vcombine.high %v428_v20, %v436_v21  ;;  %v15914_v29 = vcombine.high %v429_v22, %v437_v23  ;;  %v516_v13 = vld [vmem:[#allocation5 + $0xe50] sm:$0xff]  ;;  %v509_v14 = vld [vmem:[#allocation5 + $0xe18] sm:$0xff] }
 0x271   :  { %7503 = vmatprep.mubr.f32.mxu0 %v17313_v33  ;;  %8071 = vmatprep.mubr.f32.mxu1 %v17313_v33 }
 0x273   :  { %12061 = vmatpush1.bf16.msra.mxu0 %v15653_v35  ;;  %12561 = vmatpush1.bf16.msra.mxu1 %v15903_v56  ;;  %v453_v35 = vld [vmem:[#allocation5 + $0xc58] sm:$0xff]  ;;  %v15665_v56 = vcombine.low %v428_v20, %v436_v21  ;;  %v524_v21 = vld [vmem:[#allocation5 + $0xe90] sm:$0xff] }
 0x274   :  { %12063 = vmatprep.subr.bf16.mxu0 %v15654_v38  ;;  %12563 = vmatprep.subr.bf16.mxu1 %v15904_v39  ;;  %v15915_v38 = vcombine.low %v429_v22, %v437_v23  ;;  %v15666_v39 = vcombine.high %v444_v30, %v452_v32  ;;  %v15916_v40 = vcombine.high %v445_v34, %v453_v35  ;;  %v532_v22 = vld [vmem:[#allocation5 + $0xed0] sm:$0xff]  ;;  %v525_v23 = vld [vmem:[#allocation5 + $0xe98] sm:$0xff] }
 0x277   :  { %12065 = vmatpush1.bf16.msra.mxu0 %v15655_v44  ;;  %12565 = vmatpush1.bf16.msra.mxu1 %v15905_v45  ;;  %v469_v44 = vld [vmem:[#allocation5 + $0xcd8] sm:$0xff]  ;;  %v15667_v45 = vcombine.low %v444_v30, %v452_v32  ;;  %v540_v32 = vld [vmem:[#allocation5 + $0xf10] sm:$0xff] }
 0x278   :  { %12067 = vmatprep.subr.bf16.mxu0 %v15656_v47  ;;  %12567 = vmatprep.subr.bf16.mxu1 %v15906_v48  ;;  %v15917_v47 = vcombine.low %v445_v34, %v453_v35  ;;  %v15668_v48 = vcombine.high %v460_v43, %v468_v59  ;;  %v15918_v49 = vcombine.high %v461_v8, %v469_v44  ;;  %v548_v34 = vld [vmem:[#allocation5 + $0xf50] sm:$0xff]  ;;  %v541_v35 = vld [vmem:[#allocation5 + $0xf18] sm:$0xff] }
 0x27b   :  { %12069 = vmatpush1.bf16.msra.mxu0 %v15657_v55  ;;  %12569 = vmatpush1.bf16.msra.mxu1 %v15907_v57  ;;  %v485_v55 = vld [vmem:[#allocation5 + $0xd58] sm:$0xff]  ;;  %v15669_v57 = vcombine.low %v460_v43, %v468_v59  ;;  %v556_v59 = vld [vmem:[#allocation5 + $0xf90] sm:$0xff] }
 0x27c   :  { %12071 = vmatprep.subr.bf16.mxu0 %v15658_v58  ;;  %12571 = vmatprep.subr.bf16.mxu1 %v15908_v60  ;;  %v15919_v58 = vcombine.low %v461_v8, %v469_v44  ;;  %v15670_v60 = vcombine.high %v476_v52, %v484_v53  ;;  %v15920_v61 = vcombine.high %v477_v54, %v485_v55  ;;  %v564_v8 = vld [vmem:[#allocation5 + $0xfd0] sm:$0xff]  ;;  %v557_v44 = vld [vmem:[#allocation5 + $0xf98] sm:$0xff] }
 0x27f   :  { %12073 = vmatpush1.bf16.msra.mxu0 %v15659_v5  ;;  %12573 = vmatpush1.bf16.msra.mxu1 %v15909_v17  ;;  %v501_v5 = vld [vmem:[#allocation5 + $0xdd8] sm:$0xff]  ;;  %v15671_v17 = vcombine.low %v476_v52, %v484_v53  ;;  %v572_v53 = vld [vmem:[#allocation5 + $0x1010] sm:$0xff] }
 0x280   :  { %12075 = vmatprep.subr.bf16.mxu0 %v15660_v31  ;;  %12575 = vmatprep.subr.bf16.mxu1 %v15910_v6  ;;  %v15921_v31 = vcombine.low %v477_v54, %v485_v55  ;;  %v15672_v6 = vcombine.high %v492_v62, %v500_v2  ;;  %v15922_v7 = vcombine.high %v493_v4, %v501_v5  ;;  %v580_v54 = vld [vmem:[#allocation5 + $0x1050] sm:$0xff]  ;;  %v573_v55 = vld [vmem:[#allocation5 + $0x1018] sm:$0xff] }
 0x283   :  { %12077 = vmatpush1.bf16.msra.mxu0 %v15661_v15  ;;  %12577 = vmatpush1.bf16.msra.mxu1 %v15911_v16  ;;  %v517_v15 = vld [vmem:[#allocation5 + $0xe58] sm:$0xff]  ;;  %v15673_v16 = vcombine.low %v492_v62, %v500_v2  ;;  %v588_v2 = vld [vmem:[#allocation5 + $0x1090] sm:$0xff] }
 0x284   :  { %12079 = vmatprep.subr.bf16.mxu0 %v15662_v18  ;;  %12579 = vmatprep.subr.bf16.mxu1 %v15912_v19  ;;  %v15923_v18 = vcombine.low %v493_v4, %v501_v5  ;;  %v15674_v19 = vcombine.high %v508_v10, %v516_v13  ;;  %v15924_v20 = vcombine.high %v509_v14, %v517_v15  ;;  %v596_v4 = vld [vmem:[#allocation5 + $0x10d0] sm:$0xff]  ;;  %v589_v5 = vld [vmem:[#allocation5 + $0x1098] sm:$0xff] }
 0x287   :  { %12081 = vmatpush1.bf16.msra.mxu0 %v15663_v26  ;;  %12581 = vmatpush1.bf16.msra.mxu1 %v15913_v28  ;;  %v533_v26 = vld [vmem:[#allocation5 + $0xed8] sm:$0xff]  ;;  %v15675_v28 = vcombine.low %v508_v10, %v516_v13  ;;  %v604_v13 = vld [vmem:[#allocation5 + $0x1110] sm:$0xff] }
 0x288   :  { %12083 = vmatprep.subr.bf16.mxu0 %v15664_v63  ;;  %12583 = vmatprep.subr.bf16.mxu1 %v15914_v29  ;;  %v15925_v63 = vcombine.low %v509_v14, %v517_v15  ;;  %v15676_v29 = vcombine.high %v524_v21, %v532_v22  ;;  %v15926_v30 = vcombine.high %v525_v23, %v533_v26  ;;  %v612_v14 = vld [vmem:[#allocation5 + $0x1150] sm:$0xff]  ;;  %v605_v15 = vld [vmem:[#allocation5 + $0x1118] sm:$0xff] }
 0x28b   :  { %12085 = vmatpush1.bf16.msra.mxu0 %v15665_v56  ;;  %12585 = vmatpush1.bf16.msra.mxu1 %v15915_v38  ;;  %v549_v56 = vld [vmem:[#allocation5 + $0xf58] sm:$0xff]  ;;  %v15677_v38 = vcombine.low %v524_v21, %v532_v22  ;;  %v620_v22 = vld [vmem:[#allocation5 + $0x1190] sm:$0xff] }
 0x28c   :  { %12087 = vmatprep.subr.bf16.mxu0 %v15666_v39  ;;  %12587 = vmatprep.subr.bf16.mxu1 %v15916_v40  ;;  %v15927_v39 = vcombine.low %v525_v23, %v533_v26  ;;  %v15678_v40 = vcombine.high %v540_v32, %v548_v34  ;;  %v15928_v43 = vcombine.high %v541_v35, %v549_v56  ;;  %v628_v23 = vld [vmem:[#allocation5 + $0x11d0] sm:$0xff]  ;;  %v621_v26 = vld [vmem:[#allocation5 + $0x1198] sm:$0xff] }
 0x28f   :  { %12089 = vmatpush1.bf16.msra.mxu0 %v15667_v45  ;;  %12589 = vmatpush1.bf16.msra.mxu1 %v15917_v47  ;;  %v565_v45 = vld [vmem:[#allocation5 + $0xfd8] sm:$0xff]  ;;  %v15679_v47 = vcombine.low %v540_v32, %v548_v34  ;;  %v636_v34 = vld [vmem:[#allocation5 + $0x1210] sm:$0xff] }
 0x290   :  { %12091 = vmatprep.subr.bf16.mxu0 %v15668_v48  ;;  %12591 = vmatprep.subr.bf16.mxu1 %v15918_v49  ;;  %v15929_v48 = vcombine.low %v541_v35, %v549_v56  ;;  %v15680_v49 = vcombine.high %v556_v59, %v564_v8  ;;  %v15930_v52 = vcombine.high %v557_v44, %v565_v45  ;;  %v644_v35 = vld [vmem:[#allocation5 + $0x1250] sm:$0xff]  ;;  %v637_v56 = vld [vmem:[#allocation5 + $0x1218] sm:$0xff] }
 0x293   :  { %12093 = vmatpush1.bf16.msra.mxu0 %v15669_v57  ;;  %12593 = vmatpush1.bf16.msra.mxu1 %v15919_v58  ;;  %v581_v57 = vld [vmem:[#allocation5 + $0x1058] sm:$0xff]  ;;  %v15681_v58 = vcombine.low %v556_v59, %v564_v8  ;;  %v652_v8 = vld [vmem:[#allocation5 + $0x1290] sm:$0xff] }
 0x294   :  { %12095 = vmatprep.subr.bf16.mxu0 %v15670_v60  ;;  %12595 = vmatprep.subr.bf16.mxu1 %v15920_v61  ;;  %v15931_v60 = vcombine.low %v557_v44, %v565_v45  ;;  %v15682_v61 = vcombine.high %v572_v53, %v580_v54  ;;  %v15932_v62 = vcombine.high %v573_v55, %v581_v57  ;;  %v660_v44 = vld [vmem:[#allocation5 + $0x12d0] sm:$0xff]  ;;  %v653_v45 = vld [vmem:[#allocation5 + $0x1298] sm:$0xff] }
 0x297   :  { %12097 = vmatpush1.bf16.msra.mxu0 %v15671_v17  ;;  %12597 = vmatpush1.bf16.msra.mxu1 %v15921_v31  ;;  %v597_v17 = vld [vmem:[#allocation5 + $0x10d8] sm:$0xff]  ;;  %v15683_v31 = vcombine.low %v572_v53, %v580_v54  ;;  %v668_v54 = vld [vmem:[#allocation5 + $0x1310] sm:$0xff] }
 0x298   :  { %12099 = vmatprep.subr.bf16.mxu0 %v15672_v6  ;;  %12599 = vmatprep.subr.bf16.mxu1 %v15922_v7  ;;  %v15933_v6 = vcombine.low %v573_v55, %v581_v57  ;;  %v15684_v7 = vcombine.high %v588_v2, %v596_v4  ;;  %v15934_v10 = vcombine.high %v589_v5, %v597_v17  ;;  %v676_v55 = vld [vmem:[#allocation5 + $0x1350] sm:$0xff]  ;;  %v669_v57 = vld [vmem:[#allocation5 + $0x1318] sm:$0xff] }
 0x29b   :  { %12101 = vmatpush1.bf16.msra.mxu0 %v15673_v16  ;;  %12601 = vmatpush1.bf16.msra.mxu1 %v15923_v18  ;;  %v613_v16 = vld [vmem:[#allocation5 + $0x1158] sm:$0xff]  ;;  %v15685_v18 = vcombine.low %v588_v2, %v596_v4  ;;  %v684_v4 = vld [vmem:[#allocation5 + $0x1390] sm:$0xff] }
 0x29c   :  { %12103 = vmatprep.subr.bf16.mxu0 %v15674_v19  ;;  %12603 = vmatprep.subr.bf16.mxu1 %v15924_v20  ;;  %v15935_v19 = vcombine.low %v589_v5, %v597_v17  ;;  %v15686_v20 = vcombine.high %v604_v13, %v612_v14  ;;  %v15936_v21 = vcombine.high %v605_v15, %v613_v16  ;;  %v692_v5 = vld [vmem:[#allocation5 + $0x13d0] sm:$0xff]  ;;  %v685_v17 = vld [vmem:[#allocation5 + $0x1398] sm:$0xff] }
 0x29f   :  { %12105 = vmatpush1.bf16.msra.mxu0 %v15675_v28  ;;  %12605 = vmatpush1.bf16.msra.mxu1 %v15925_v63  ;;  %v629_v28 = vld [vmem:[#allocation5 + $0x11d8] sm:$0xff]  ;;  %v15687_v63 = vcombine.low %v604_v13, %v612_v14  ;;  %v700_v14 = vld [vmem:[#allocation5 + $0x1410] sm:$0xff] }
 0x2a0   :  { %12107 = vmatprep.subr.bf16.mxu0 %v15676_v29  ;;  %12607 = vmatprep.subr.bf16.mxu1 %v15926_v30  ;;  %v15937_v29 = vcombine.low %v605_v15, %v613_v16  ;;  %v15688_v30 = vcombine.high %v620_v22, %v628_v23  ;;  %v15938_v32 = vcombine.high %v621_v26, %v629_v28  ;;  %v708_v15 = vld [vmem:[#allocation5 + $0x1450] sm:$0xff]  ;;  %v701_v16 = vld [vmem:[#allocation5 + $0x1418] sm:$0xff] }
 0x2a3   :  { %12109 = vmatpush1.bf16.msra.mxu0 %v15677_v38  ;;  %12609 = vmatpush1.bf16.msra.mxu1 %v15927_v39  ;;  %v645_v38 = vld [vmem:[#allocation5 + $0x1258] sm:$0xff]  ;;  %v15689_v39 = vcombine.low %v620_v22, %v628_v23  ;;  %v716_v23 = vld [vmem:[#allocation5 + $0x1490] sm:$0xff] }
 0x2a4   :  { %12111 = vmatprep.subr.bf16.mxu0 %v15678_v40  ;;  %12611 = vmatprep.subr.bf16.mxu1 %v15928_v43  ;;  %v15939_v40 = vcombine.low %v621_v26, %v629_v28  ;;  %v15690_v43 = vcombine.high %v636_v34, %v644_v35  ;;  %v15940_v59 = vcombine.high %v637_v56, %v645_v38  ;;  %v724_v26 = vld [vmem:[#allocation5 + $0x14d0] sm:$0xff]  ;;  %v717_v28 = vld [vmem:[#allocation5 + $0x1498] sm:$0xff] }
 0x2a7   :  { %12113 = vmatpush1.bf16.msra.mxu0 %v15679_v47  ;;  %12613 = vmatpush1.bf16.msra.mxu1 %v15929_v48  ;;  %v661_v47 = vld [vmem:[#allocation5 + $0x12d8] sm:$0xff]  ;;  %v15691_v48 = vcombine.low %v636_v34, %v644_v35  ;;  %v732_v35 = vld [vmem:[#allocation5 + $0x1510] sm:$0xff] }
 0x2a8   :  { %12115 = vmatprep.subr.bf16.mxu0 %v15680_v49  ;;  %12615 = vmatprep.subr.bf16.mxu1 %v15930_v52  ;;  %v15941_v49 = vcombine.low %v637_v56, %v645_v38  ;;  %v15692_v52 = vcombine.high %v652_v8, %v660_v44  ;;  %v15942_v53 = vcombine.high %v653_v45, %v661_v47  ;;  %v740_v56 = vld [vmem:[#allocation5 + $0x1550] sm:$0xff]  ;;  %v733_v38 = vld [vmem:[#allocation5 + $0x1518] sm:$0xff] }
 0x2ab   :  { %12117 = vmatpush1.bf16.msra.mxu0 %v15681_v58  ;;  %12617 = vmatpush1.bf16.msra.mxu1 %v15931_v60  ;;  %v677_v58 = vld [vmem:[#allocation5 + $0x1358] sm:$0xff]  ;;  %v15693_v60 = vcombine.low %v652_v8, %v660_v44  ;;  %v748_v44 = vld [vmem:[#allocation5 + $0x1590] sm:$0xff] }
 0x2ac   :  { %12119 = vmatprep.subr.bf16.mxu0 %v15682_v61  ;;  %12619 = vmatprep.subr.bf16.mxu1 %v15932_v62  ;;  %v15943_v61 = vcombine.low %v653_v45, %v661_v47  ;;  %v15694_v62 = vcombine.high %v668_v54, %v676_v55  ;;  %v15944_v2 = vcombine.high %v669_v57, %v677_v58  ;;  %v756_v45 = vld [vmem:[#allocation5 + $0x15d0] sm:$0xff]  ;;  %v749_v47 = vld [vmem:[#allocation5 + $0x1598] sm:$0xff] }
 0x2ae   :  { %7504 = vmatmul.mubr.f32.vlgmr.msra.gmra.mrb[2].mxu0 %v17309_v25  ;;  %8072 = vmatmul.mubr.f32.vlgmr.msra.gmra.mrb[2].mxu1 %v17309_v25 }
 0x2af   :  { %12121 = vmatpush1.bf16.msra.mxu0 %v15683_v31  ;;  %12621 = vmatpush1.bf16.msra.mxu1 %v15933_v6  ;;  %v693_v31 = vld [vmem:[#allocation5 + $0x13d8] sm:$0xff]  ;;  %v15695_v6 = vcombine.low %v668_v54, %v676_v55  ;;  %v764_v55 = vld [vmem:[#allocation5 + $0x1610] sm:$0xff] }
 0x2b0   :  { %12123 = vmatprep.subr.bf16.mxu0 %v15684_v7  ;;  %12623 = vmatprep.subr.bf16.mxu1 %v15934_v10  ;;  %v15945_v7 = vcombine.low %v669_v57, %v677_v58  ;;  %v15696_v10 = vcombine.high %v684_v4, %v692_v5  ;;  %v15946_v13 = vcombine.high %v685_v17, %v693_v31  ;;  %v772_v57 = vld [vmem:[#allocation5 + $0x1650] sm:$0xff]  ;;  %v765_v58 = vld [vmem:[#allocation5 + $0x1618] sm:$0xff] }
 0x2b1   :  { %7574 = vmatprep.mubr.f32.mxu0 %v17328_v50  ;;  %8142 = vmatprep.mubr.f32.mxu1 %v17328_v50 }
 0x2b3   :  { %12125 = vmatpush1.bf16.msra.mxu0 %v15685_v18  ;;  %12625 = vmatpush1.bf16.msra.mxu1 %v15935_v19  ;;  %v709_v18 = vld [vmem:[#allocation5 + $0x1458] sm:$0xff]  ;;  %v15697_v19 = vcombine.low %v684_v4, %v692_v5  ;;  %v780_v5 = vld [vmem:[#allocation5 + $0x1690] sm:$0xff] }
 0x2b4   :  { %12127 = vmatprep.subr.bf16.mxu0 %v15686_v20  ;;  %12627 = vmatprep.subr.bf16.mxu1 %v15936_v21  ;;  %v15947_v20 = vcombine.low %v685_v17, %v693_v31  ;;  %v15698_v21 = vcombine.high %v700_v14, %v708_v15  ;;  %v15948_v22 = vcombine.high %v701_v16, %v709_v18  ;;  %v788_v17 = vld [vmem:[#allocation5 + $0x16d0] sm:$0xff]  ;;  %v781_v31 = vld [vmem:[#allocation5 + $0x1698] sm:$0xff] }
 0x2b7   :  { %12129 = vmatpush1.bf16.msra.mxu0 %v15687_v63  ;;  %12629 = vmatpush1.bf16.msra.mxu1 %v15937_v29  ;;  %v725_v63 = vld [vmem:[#allocation5 + $0x14d8] sm:$0xff]  ;;  %v15699_v29 = vcombine.low %v700_v14, %v708_v15  ;;  %v796_v15 = vld [vmem:[#allocation5 + $0x1710] sm:$0xff] }
 0x2b8   :  { %12131 = vmatprep.subr.bf16.mxu0 %v15688_v30  ;;  %12631 = vmatprep.subr.bf16.mxu1 %v15938_v32  ;;  %v15949_v30 = vcombine.low %v701_v16, %v709_v18  ;;  %v15700_v32 = vcombine.high %v716_v23, %v724_v26  ;;  %v15950_v34 = vcombine.high %v717_v28, %v725_v63  ;;  %v804_v16 = vld [vmem:[#allocation5 + $0x1750] sm:$0xff]  ;;  %v797_v18 = vld [vmem:[#allocation5 + $0x1718] sm:$0xff] }
 0x2bb   :  { %12133 = vmatpush1.bf16.msra.mxu0 %v15689_v39  ;;  %12633 = vmatpush1.bf16.msra.mxu1 %v15939_v40  ;;  %v741_v39 = vld [vmem:[#allocation5 + $0x1558] sm:$0xff]  ;;  %v15701_v40 = vcombine.low %v716_v23, %v724_v26  ;;  %v812_v26 = vld [vmem:[#allocation5 + $0x1790] sm:$0xff] }
 0x2bc   :  { %12135 = vmatprep.subr.bf16.mxu0 %v15690_v43  ;;  %12635 = vmatprep.subr.bf16.mxu1 %v15940_v59  ;;  %v15951_v43 = vcombine.low %v717_v28, %v725_v63  ;;  %v15702_v59 = vcombine.high %v732_v35, %v740_v56  ;;  %v15952_v8 = vcombine.high %v733_v38, %v741_v39  ;;  %v820_v28 = vld [vmem:[#allocation5 + $0x17d0] sm:$0xff]  ;;  %v813_v63 = vld [vmem:[#allocation5 + $0x1798] sm:$0xff] }
 0x2bf   :  { %12137 = vmatpush1.bf16.msra.mxu0 %v15691_v48  ;;  %12637 = vmatpush1.bf16.msra.mxu1 %v15941_v49  ;;  %v757_v48 = vld [vmem:[#allocation5 + $0x15d8] sm:$0xff]  ;;  %v15703_v49 = vcombine.low %v732_v35, %v740_v56  ;;  %v828_v56 = vld [vmem:[#allocation5 + $0x1810] sm:$0xff] }
 0x2c0   :  { %12139 = vmatprep.subr.bf16.mxu0 %v15692_v52  ;;  %12639 = vmatprep.subr.bf16.mxu1 %v15942_v53  ;;  %v15953_v52 = vcombine.low %v733_v38, %v741_v39  ;;  %v15704_v53 = vcombine.high %v748_v44, %v756_v45  ;;  %v15954_v54 = vcombine.high %v749_v47, %v757_v48  ;;  %v836_v38 = vld [vmem:[#allocation5 + $0x1850] sm:$0xff]  ;;  %v829_v39 = vld [vmem:[#allocation5 + $0x1818] sm:$0xff] }
 0x2c3   :  { %12141 = vmatpush1.bf16.msra.mxu0 %v15693_v60  ;;  %12641 = vmatpush1.bf16.msra.mxu1 %v15943_v61  ;;  %v773_v60 = vld [vmem:[#allocation5 + $0x1658] sm:$0xff]  ;;  %v15705_v61 = vcombine.low %v748_v44, %v756_v45  ;;  %v844_v45 = vld [vmem:[#allocation5 + $0x1890] sm:$0xff] }
 0x2c4   :  { %12143 = vmatprep.subr.bf16.mxu0 %v15694_v62  ;;  %12643 = vmatprep.subr.bf16.mxu1 %v15944_v2  ;;  %v15955_v62 = vcombine.low %v749_v47, %v757_v48  ;;  %v15706_v2 = vcombine.high %v764_v55, %v772_v57  ;;  %v15956_v4 = vcombine.high %v765_v58, %v773_v60  ;;  %v852_v47 = vld [vmem:[#allocation5 + $0x18d0] sm:$0xff]  ;;  %v845_v48 = vld [vmem:[#allocation5 + $0x1898] sm:$0xff] }
 0x2c7   :  { %12145 = vmatpush1.bf16.msra.mxu0 %v15695_v6  ;;  %12645 = vmatpush1.bf16.msra.mxu1 %v15945_v7  ;;  %v789_v6 = vld [vmem:[#allocation5 + $0x16d8] sm:$0xff]  ;;  %v15707_v7 = vcombine.low %v764_v55, %v772_v57  ;;  %v860_v57 = vld [vmem:[#allocation5 + $0x1910] sm:$0xff] }
 0x2c8   :  { %12147 = vmatprep.subr.bf16.mxu0 %v15696_v10  ;;  %12647 = vmatprep.subr.bf16.mxu1 %v15946_v13  ;;  %v15957_v10 = vcombine.low %v765_v58, %v773_v60  ;;  %v15708_v13 = vcombine.high %v780_v5, %v788_v17  ;;  %v15958_v14 = vcombine.high %v781_v31, %v789_v6  ;;  %v868_v58 = vld [vmem:[#allocation5 + $0x1950] sm:$0xff]  ;;  %v861_v60 = vld [vmem:[#allocation5 + $0x1918] sm:$0xff] }
 0x2cb   :  { %12149 = vmatpush1.bf16.msra.mxu0 %v15697_v19  ;;  %12649 = vmatpush1.bf16.msra.mxu1 %v15947_v20  ;;  %v805_v19 = vld [vmem:[#allocation5 + $0x1758] sm:$0xff]  ;;  %v15709_v20 = vcombine.low %v780_v5, %v788_v17  ;;  %v876_v17 = vld [vmem:[#allocation5 + $0x1990] sm:$0xff] }
 0x2cc   :  { %12151 = vmatprep.subr.bf16.mxu0 %v15698_v21  ;;  %12651 = vmatprep.subr.bf16.mxu1 %v15948_v22  ;;  %v15959_v21 = vcombine.low %v781_v31, %v789_v6  ;;  %v15710_v22 = vcombine.high %v796_v15, %v804_v16  ;;  %v15960_v23 = vcombine.high %v797_v18, %v805_v19  ;;  %v884_v31 = vld [vmem:[#allocation5 + $0x19d0] sm:$0xff]  ;;  %v877_v6 = vld [vmem:[#allocation5 + $0x1998] sm:$0xff] }
 0x2cf   :  { %12153 = vmatpush1.bf16.msra.mxu0 %v15699_v29  ;;  %12653 = vmatpush1.bf16.msra.mxu1 %v15949_v30  ;;  %v821_v29 = vld [vmem:[#allocation5 + $0x17d8] sm:$0xff]  ;;  %v15711_v30 = vcombine.low %v796_v15, %v804_v16  ;;  %v892_v16 = vld [vmem:[#allocation5 + $0x1a10] sm:$0xff] }
 0x2d0   :  { %12155 = vmatprep.subr.bf16.mxu0 %v15700_v32  ;;  %12655 = vmatprep.subr.bf16.mxu1 %v15950_v34  ;;  %v15961_v32 = vcombine.low %v797_v18, %v805_v19  ;;  %v15712_v34 = vcombine.high %v812_v26, %v820_v28  ;;  %v15962_v35 = vcombine.high %v813_v63, %v821_v29  ;;  %v900_v18 = vld [vmem:[#allocation5 + $0x1a50] sm:$0xff]  ;;  %v893_v19 = vld [vmem:[#allocation5 + $0x1a18] sm:$0xff] }
 0x2d3   :  { %12157 = vmatpush1.bf16.msra.mxu0 %v15701_v40  ;;  %12657 = vmatpush1.bf16.msra.mxu1 %v15951_v43  ;;  %v837_v40 = vld [vmem:[#allocation5 + $0x1858] sm:$0xff]  ;;  %v15713_v43 = vcombine.low %v812_v26, %v820_v28  ;;  %v908_v28 = vld [vmem:[#allocation5 + $0x1a90] sm:$0xff] }
 0x2d4   :  { %12159 = vmatprep.subr.bf16.mxu0 %v15702_v59  ;;  %12659 = vmatprep.subr.bf16.mxu1 %v15952_v8  ;;  %v15963_v59 = vcombine.low %v813_v63, %v821_v29  ;;  %v15714_v8 = vcombine.high %v828_v56, %v836_v38  ;;  %v15964_v44 = vcombine.high %v829_v39, %v837_v40  ;;  %v916_v63 = vld [vmem:[#allocation5 + $0x1ad0] sm:$0xff]  ;;  %v6064_v29 = vsub.s32 0, %v17286_v46 }
 0x2d7   :  { %12161 = vmatpush1.bf16.msra.mxu0 %v15703_v49  ;;  %12661 = vmatpush1.bf16.msra.mxu1 %v15953_v52  ;;  %v853_v49 = vld [vmem:[#allocation5 + $0x18d8] sm:$0xff]  ;;  %v15715_v52 = vcombine.low %v828_v56, %v836_v38  ;;  %v6072_v56 = vsub.s32 2, %v17286_v46  ;;  %v6068_v38 = vsub.s32 1, %v17286_v46 }
 0x2d8   :  { %12163 = vmatprep.subr.bf16.mxu0 %v15704_v53  ;;  %12663 = vmatprep.subr.bf16.mxu1 %v15954_v54  ;;  %v15965_v53 = vcombine.low %v829_v39, %v837_v40  ;;  %v15716_v54 = vcombine.high %v844_v45, %v852_v47  ;;  %v15966_v55 = vcombine.high %v845_v48, %v853_v49  ;;  %v6076_v40 = vsub.s32 3, %v17286_v46 }
 0x2db   :  { %12165 = vmatpush1.bf16.msra.mxu0 %v15705_v61  ;;  %12665 = vmatpush1.bf16.msra.mxu1 %v15955_v62  ;;  %v869_v61 = vld [vmem:[#allocation5 + $0x1958] sm:$0xff]  ;;  %v15717_v62 = vcombine.low %v844_v45, %v852_v47  ;;  %v17228_v47 = vmov 1966171168  }
 0x2dc   :  { %12167 = vmatprep.subr.bf16.mxu0 %v15706_v2  ;;  %12667 = vmatprep.subr.bf16.mxu1 %v15956_v4  ;;  %v15967_v2 = vcombine.low %v845_v48, %v853_v49  ;;  %v15718_v4 = vcombine.high %v860_v57, %v868_v58  ;;  %v15968_v5 = vcombine.high %v861_v60, %v869_v61  ;;  %v10861_v48 = vunpack.c.l.s4 %v17228_v47  ;;  %v925_v49 = vld [vmem:[#allocation5 + $0x1b18] sm:$0xff] }
 0x2df   :  { %12169 = vmatpush1.bf16.msra.mxu0 %v15707_v7  ;;  %12669 = vmatpush1.bf16.msra.mxu1 %v15957_v10  ;;  %v885_v7 = vld [vmem:[#allocation5 + $0x19d8] sm:$0xff]  ;;  %v15719_v10 = vcombine.low %v860_v57, %v868_v58 }
 0x2e0   :  { %12171 = vmatprep.subr.bf16.mxu0 %v15708_v13  ;;  %12671 = vmatprep.subr.bf16.mxu1 %v15958_v14  ;;  %v15969_v13 = vcombine.low %v861_v60, %v869_v61  ;;  %v15720_v14 = vcombine.high %v876_v17, %v884_v31  ;;  %v15970_v15 = vcombine.high %v877_v6, %v885_v7  ;;  %v940_v61 = vld [vmem:[#allocation5 + $0x1b90] sm:$0xff] }
 0x2e3   :  { %12173 = vmatpush1.bf16.msra.mxu0 %v15709_v20  ;;  %12673 = vmatpush1.bf16.msra.mxu1 %v15959_v21  ;;  %v901_v20 = vld [vmem:[#allocation5 + $0x1a58] sm:$0xff]  ;;  %v15721_v21 = vcombine.low %v876_v17, %v884_v31 }
 0x2e4   :  { %12175 = vmatprep.subr.bf16.mxu0 %v15710_v22  ;;  %12675 = vmatprep.subr.bf16.mxu1 %v15960_v23  ;;  %v15971_v22 = vcombine.low %v877_v6, %v885_v7  ;;  %v15722_v23 = vcombine.high %v892_v16, %v900_v18  ;;  %v15972_v26 = vcombine.high %v893_v19, %v901_v20  ;;  %v949_v17 = vld [vmem:[#allocation5 + $0x1bd8] sm:$0xff] }
 0x2e5   :  { %v15973_v39 = vcombine.low %v893_v19, %v901_v20 }
 0x2e7   :  { %12177 = vmatpush1.bf16.msra.mxu0 %v15711_v30  ;;  %12677 = vmatpush1.bf16.msra.mxu1 %v15961_v32  ;;  %v909_v30 = vld [vmem:[#allocation5 + $0x1a98] sm:$0xff] }
 0x2e8   :  { %12179 = vmatprep.subr.bf16.mxu0 %v15712_v34  ;;  %12679 = vmatprep.subr.bf16.mxu1 %v15962_v35  ;;  %v917_v32 = vld [vmem:[#allocation5 + $0x1ad8] sm:$0xff]  ;;  %v15723_v34 = vcombine.low %v892_v16, %v900_v18  ;;  %v6058_v35 = vld [vmem:[#allocation7] sm:$0xff] }
 0x2e9   :  { %v6065_v45 = vrot.slane %v6058_v35, %v6064_v29  ;;  %v6077_v57 = vrot.slane %v6058_v35, %v6076_v40  ;;  %v15975_v58 = vcombine.low %v909_v30, %v917_v32 }
 0x2eb   :  { %12181 = vmatpush1.bf16.msra.mxu0 %v15713_v43  ;;  %12681 = vmatpush1.bf16.msra.mxu1 %v15963_v59  ;;  %v15724_v43 = vcombine.high %v908_v28, %v916_v63  ;;  %v15974_v59 = vcombine.high %v909_v30, %v917_v32 }
 0x2ec   :  { %12183 = vmatprep.subr.bf16.mxu0 %v15714_v8  ;;  %12683 = vmatprep.subr.bf16.mxu1 %v15964_v44  ;;  %v924_v8 = vld [vmem:[#allocation5 + $0x1b10] sm:$0xff] }
 0x2ed   :  { %v932_v44 = vld [vmem:[#allocation5 + $0x1b50] sm:$0xff] }
 0x2ee   :  { %7575 = vmatmul.mubr.f32.vlgmr.msra.gmra.mrb[2].mxu0 %v17324_v41  ;;  %8143 = vmatmul.mubr.f32.vlgmr.msra.gmra.mrb[2].mxu1 %v17324_v41  ;;  %v15726_v60 = vcombine.high %v924_v8, %v932_v44 }
 0x2ef   :  { %12185 = vmatpush1.bf16.msra.mxu0 %v15715_v52  ;;  %12685 = vmatpush1.bf16.msra.mxu1 %v15965_v53  ;;  %v933_v52 = vld [vmem:[#allocation5 + $0x1b58] sm:$0xff]  ;;  %v6073_v53 = vrot.slane %v6058_v35, %v6072_v56 }
 0x2f0   :  { %12187 = vmatprep.subr.bf16.mxu0 %v15716_v54  ;;  %12687 = vmatprep.subr.bf16.mxu1 %v15966_v55  ;;  %v6069_v54 = vrot.slane %v6058_v35, %v6068_v38  ;;  %v15725_v55 = vcombine.low %v908_v28, %v916_v63  ;;  %v15977_v18 = vcombine.low %v925_v49, %v933_v52  ;;  %v957_v35 = vld [vmem:[#allocation5 + $0x1c18] sm:$0xff] }
 0x2f1   :  { %7645 = vmatprep.mubr.f32.mxu0 %v17341_v11  ;;  %8213 = vmatprep.mubr.f32.mxu1 %v17341_v11 }
 0x2f3   :  { %12189 = vmatpush1.bf16.msra.mxu0 %v15717_v62  ;;  %12689 = vmatpush1.bf16.msra.mxu1 %v15967_v2  ;;  %v948_v62 = vld [vmem:[#allocation5 + $0x1bd0] sm:$0xff] }
 0x2f4   :  { %12191 = vmatprep.subr.bf16.mxu0 %v15718_v4  ;;  %12691 = vmatprep.subr.bf16.mxu1 %v15968_v5  ;;  %v15976_v4 = vcombine.high %v925_v49, %v933_v52  ;;  %v941_v5 = vld [vmem:[#allocation5 + $0x1b98] sm:$0xff]  ;;  %v15728_v19 = vcombine.high %v940_v61, %v948_v62 }
 0x2f7   :  { %12193 = vmatpush1.bf16.msra.mxu0 %v15719_v10  ;;  %12693 = vmatpush1.bf16.msra.mxu1 %v15969_v13  ;;  %v10862_v10 = vunpack.c.0.s8 %v10861_v48  ;;  %v15727_v13 = vcombine.low %v924_v8, %v932_v44  ;;  %v15729_v8 = vcombine.low %v940_v61, %v948_v62  ;;  %v15979_v44 = vcombine.low %v941_v5, %v949_v17 }
 0x2f8   :  { %12195 = vmatprep.subr.bf16.mxu0 %v15720_v14  ;;  %12695 = vmatprep.subr.bf16.mxu1 %v15970_v15 }
 0x2f9   :  { %v17436_v32 = vsub.s32 %v10862_v10, %v17286_v46 }
 0x2fb   :  { %12197 = vmatpush1.bf16.msra.mxu0 %v15721_v21  ;;  %12697 = vmatpush1.bf16.msra.mxu1 %v15971_v22  ;;  %v15978_v22 = vcombine.high %v941_v5, %v949_v17  ;;  %v988_v5 = vld [vmem:[#allocation5 + $0x1d10] sm:$0xff] }
 0x2fc   :  { %12199 = vmatprep.subr.bf16.mxu0 %v15722_v23  ;;  %12699 = vmatprep.subr.bf16.mxu1 %v15972_v26  ;;  %v956_v23 = vld [vmem:[#allocation5 + $0x1c10] sm:$0xff] }
 0x2fd   :  { %v964_v26 = vld [vmem:[#allocation5 + $0x1c50] sm:$0xff] }
 0x2fe   :  { %v15730_v48 = vcombine.high %v956_v23, %v964_v26  ;;  %v15731_v61 = vcombine.low %v956_v23, %v964_v26  ;;  %v996_v17 = vld [vmem:[#allocation5 + $0x1d50] sm:$0xff] }
 0x2ff   :  { %12201 = vmatpush1.bf16.msra.mxu0 %v15723_v34  ;;  %12701 = vmatpush1.bf16.msra.mxu1 %v15973_v39  ;;  %v965_v39 = vld [vmem:[#allocation5 + $0x1c58] sm:$0xff] }
 0x300   :  { %12203 = vmatprep.subr.bf16.mxu0 %v15724_v43  ;;  %12703 = vmatprep.subr.bf16.mxu1 %v15974_v59  ;;  %v15980_v52 = vcombine.high %v957_v35, %v965_v39  ;;  %v15981_v62 = vcombine.low %v957_v35, %v965_v39 }
 0x301   :  { %v6795_v2 = vpop.f32.mrb[0].mxu0  ;;  %v7363_v6 = vpop.f32.mrb[0].mxu1 }
 0x302   :  { %v14990_v31 = vadd.f32 %v6795_v2, %v6065_v45  ;;  %v6797_v7 = vpop.f32.mrb[1].mxu0  ;;  %v14992_v14 = vadd.f32 %v7363_v6, %v6073_v53  ;;  %v7365_v16 = vpop.f32.mrb[1].mxu1  ;;  %v972_v53 = vld [vmem:[#allocation5 + $0x1c90] sm:$0xff]  ;;  %v989_v6 = vld [vmem:[#allocation5 + $0x1d18] sm:$0xff] }
 0x303   :  { %v14991_v15 = vadd.f32 %v6797_v7, %v6069_v54  ;;  %12205 = vmatpush1.bf16.msra.mxu0 %v15725_v55  ;;  %v14993_v21 = vadd.f32 %v7365_v16, %v6077_v57  ;;  %12705 = vmatpush1.bf16.msra.mxu1 %v15975_v58  ;;  %v980_v54 = vld [vmem:[#allocation5 + $0x1cd0] sm:$0xff]  ;;  %v973_v57 = vld [vmem:[#allocation5 + $0x1c98] sm:$0xff] }
 0x304   :  { %vm10776_vm1 = vcmp.ge.f32.partialorder %v14990_v31, 0.0  ;;  %v10792_v20 = vmul.f32 0.01, %v14990_v31  ;;  %12207 = vmatprep.subr.bf16.mxu0 %v15726_v60  ;;  %vm10778_vm2 = vcmp.ge.f32.partialorder %v14992_v14, 0.0  ;;  %v10794_v28 = vmul.f32 0.01, %v14992_v14  ;;  %12707 = vmatprep.subr.bf16.mxu1 %v15976_v4 }
 0x305   :  { %vm10777_vm3 = vcmp.ge.f32.partialorder %v14991_v15, 0.0  ;;  %v10793_v63 = vmul.f32 0.01, %v14991_v15  ;;  %vm10779_vm4 = vcmp.ge.f32.partialorder %v14993_v21, 0.0  ;;  %v10795_v34 = vmul.f32 0.01, %v14993_v21 }
 0x306   :  { %v10808_v30 = vsel %vm10776_vm1, %v14990_v31, %v10792_v20  ;;  %v10810_v43 = vsel %vm10778_vm2, %v14992_v14, %v10794_v28  ;;  %v981_v58 = vld [vmem:[#allocation5 + $0x1cd8] sm:$0xff]  ;;  %v15732_v2 = vcombine.high %v972_v53, %v980_v54  ;;  %v15733_v10 = vcombine.low %v972_v53, %v980_v54  ;;  %v1004_v16 = vld [vmem:[#allocation5 + $0x1d90] sm:$0xff] }
 0x307   :  { %v10809_v59 = vsel %vm10777_vm3, %v14991_v15, %v10793_v63  ;;  %12209 = vmatpush1.bf16.msra.mxu0 %v15727_v13  ;;  %v10811_v47 = vsel %vm10779_vm4, %v14993_v21, %v10795_v34  ;;  %12709 = vmatpush1.bf16.msra.mxu1 %v15977_v18  ;;  %v15982_v4 = vcombine.high %v973_v57, %v981_v58  ;;  %v997_v7 = vld [vmem:[#allocation5 + $0x1d58] sm:$0xff]  ;;  %v1012_v18 = vld [vmem:[#allocation5 + $0x1dd0] sm:$0xff] }
 0x308   :  { %v10982_v45 = vpack.c.bf16 %v10809_v59, %v10808_v30  ;;  %12211 = vmatprep.subr.bf16.mxu0 %v15728_v19  ;;  %v10983_v49 = vpack.c.bf16 %v10811_v47, %v10810_v43  ;;  %12711 = vmatprep.subr.bf16.mxu1 %v15978_v22  ;;  %v15983_v13 = vcombine.low %v973_v57, %v981_v58  ;;  %v1005_v19 = vld [vmem:[#allocation5 + $0x1d98] sm:$0xff]  ;;  %v1020_v28 = vld [vmem:[#allocation5 + $0x1e10] sm:$0xff] }
 0x309   :  { %v15734_v14 = vcombine.high %v988_v5, %v996_v17  ;;  %v15984_v15 = vcombine.high %v989_v6, %v997_v7  ;;  %v1013_v20 = vld [vmem:[#allocation5 + $0x1dd8] sm:$0xff]  ;;  %v15735_v21 = vcombine.low %v988_v5, %v996_v17  ;;  %v15985_v22 = vcombine.low %v989_v6, %v997_v7  ;;  %v1028_v63 = vld [vmem:[#allocation5 + $0x1e50] sm:$0xff] }
 0x30a   :  { %v17439_v55 = vrot.slane %v10982_v45, %v17436_v32  ;;  %v17442_v60 = vrot.slane %v10983_v49, %v17436_v32  ;;  %v15736_v23 = vcombine.high %v1004_v16, %v1012_v18  ;;  %v15986_v26 = vcombine.high %v1005_v19, %v1013_v20  ;;  %v1021_v30 = vld [vmem:[#allocation5 + $0x1e18] sm:$0xff]  ;;  %v1052_v54 = vld [vmem:[#allocation5 + $0x1f10] sm:$0xff] }
 0x30b   :  { %12213 = vmatpush1.bf16.msra.mxu0 %v15729_v8  ;;  %12713 = vmatpush1.bf16.msra.mxu1 %v15979_v44  ;;  %v1029_v34 = vld [vmem:[#allocation5 + $0x1e58] sm:$0xff]  ;;  %v15737_v35 = vcombine.low %v1004_v16, %v1012_v18  ;;  %v15987_v39 = vcombine.low %v1005_v19, %v1013_v20  ;;  %v15738_v43 = vcombine.high %v1020_v28, %v1028_v63  ;;  %v1036_v8 = vld [vmem:[#allocation5 + $0x1e90] sm:$0xff] }
 0x30c   :  { %12215 = vmatprep.subr.bf16.mxu0 %v15730_v48  ;;  %12715 = vmatprep.subr.bf16.mxu1 %v15980_v52  ;;  %v10888_v31 = vcombine.low %v17439_v55, %v17442_v60  ;;  %v15988_v59 = vcombine.high %v1021_v30, %v1029_v34  ;;  %v1044_v44 = vld [vmem:[#allocation5 + $0x1ed0] sm:$0xff]  ;;  %v1037_v45 = vld [vmem:[#allocation5 + $0x1e98] sm:$0xff]  ;;  %v15739_v48 = vcombine.low %v1020_v28, %v1028_v63 }
 0x30d   :  { %v1045_v47 = vld [vmem:[#allocation5 + $0x1ed8] sm:$0xff]  ;;  %v15989_v49 = vcombine.low %v1021_v30, %v1029_v34  ;;  %v15740_v52 = vcombine.high %v1036_v8, %v1044_v44  ;;  %v1060_v57 = vld [vmem:[#allocation5 + $0x1f50] sm:$0xff] }
 0x30e   :  { %v15990_v53 = vcombine.high %v1037_v45, %v1045_v47  ;;  %v1053_v58 = vld [vmem:[#allocation5 + $0x1f18] sm:$0xff]  ;;  %v1068_v17 = vld [vmem:[#allocation5 + $0x1f90] sm:$0xff] }
 0x30f   :  { %12217 = vmatpush1.bf16.msra.mxu0 %v15731_v61  ;;  %12717 = vmatpush1.bf16.msra.mxu1 %v15981_v62  ;;  %v1061_v61 = vld [vmem:[#allocation5 + $0x1f58] sm:$0xff]  ;;  %v15741_v62 = vcombine.low %v1036_v8, %v1044_v44  ;;  %v1076_v6 = vld [vmem:[#allocation5 + $0x1fd0] sm:$0xff] }
 0x310   :  { %12219 = vmatprep.subr.bf16.mxu0 %v15732_v2  ;;  %12719 = vmatprep.subr.bf16.mxu1 %v15982_v4  ;;  %v15991_v2 = vcombine.low %v1037_v45, %v1045_v47  ;;  %v15742_v4 = vcombine.high %v1052_v54, %v1060_v57  ;;  %v15992_v5 = vcombine.high %v1053_v58, %v1061_v61  ;;  %v1069_v7 = vld [vmem:[#allocation5 + $0x1f98] sm:$0xff]  ;;  %v1084_v18 = vld [vmem:[#allocation5 + $0x2010] sm:$0xff] }
 0x311   :  { %v1092_v19 = vld [vmem:[#allocation5 + $0x2050] sm:$0xff]  ;;  %v1085_v20 = vld [vmem:[#allocation5 + $0x2018] sm:$0xff] }
 0x312   :  { %v1100_v63 = vld [vmem:[#allocation5 + $0x2090] sm:$0xff]  ;;  %v1101_v34 = vld [vmem:[#allocation5 + $0x2098] sm:$0xff] }
 0x313   :  { %12221 = vmatpush1.bf16.msra.mxu0 %v15733_v10  ;;  %12721 = vmatpush1.bf16.msra.mxu1 %v15983_v13  ;;  %v1077_v10 = vld [vmem:[#allocation5 + $0x1fd8] sm:$0xff]  ;;  %v15743_v13 = vcombine.low %v1052_v54, %v1060_v57  ;;  %v1108_v30 = vld [vmem:[#allocation5 + $0x20d0] sm:$0xff] }
 0x314   :  { %12223 = vmatprep.subr.bf16.mxu0 %v15734_v14  ;;  %12723 = vmatprep.subr.bf16.mxu1 %v15984_v15  ;;  %v15993_v14 = vcombine.low %v1053_v58, %v1061_v61  ;;  %v15744_v15 = vcombine.high %v1068_v17, %v1076_v6  ;;  %v15994_v16 = vcombine.high %v1069_v7, %v1077_v10  ;;  %v1116_v44 = vld [vmem:[#allocation5 + $0x2110] sm:$0xff]  ;;  %v1117_v47 = vld [vmem:[#allocation5 + $0x2118] sm:$0xff] }
 0x315   :  { %v1124_v45 = vld [vmem:[#allocation5 + $0x2150] sm:$0xff]  ;;  %v1133_v61 = vld [vmem:[#allocation5 + $0x2198] sm:$0xff] }
 0x316   :  { %v1132_v57 = vld [vmem:[#allocation5 + $0x2190] sm:$0xff] }
 0x317   :  { %12225 = vmatpush1.bf16.msra.mxu0 %v15735_v21  ;;  %12725 = vmatpush1.bf16.msra.mxu1 %v15985_v22  ;;  %v1093_v21 = vld [vmem:[#allocation5 + $0x2058] sm:$0xff]  ;;  %v15745_v22 = vcombine.low %v1068_v17, %v1076_v6  ;;  %v1140_v58 = vld [vmem:[#allocation5 + $0x21d0] sm:$0xff] }
 0x318   :  { %12227 = vmatprep.subr.bf16.mxu0 %v15736_v23  ;;  %12727 = vmatprep.subr.bf16.mxu1 %v15986_v26  ;;  %v15995_v23 = vcombine.low %v1069_v7, %v1077_v10  ;;  %v15746_v26 = vcombine.high %v1084_v18, %v1092_v19  ;;  %v15996_v28 = vcombine.high %v1085_v20, %v1093_v21  ;;  %v1148_v6 = vld [vmem:[#allocation5 + $0x2210] sm:$0xff]  ;;  %v1149_v10 = vld [vmem:[#allocation5 + $0x2218] sm:$0xff] }
 0x319   :  { %v1156_v7 = vld [vmem:[#allocation5 + $0x2250] sm:$0xff] }
 0x31b   :  { %12229 = vmatpush1.bf16.msra.mxu0 %v15737_v35  ;;  %12729 = vmatpush1.bf16.msra.mxu1 %v15987_v39  ;;  %v1109_v35 = vld [vmem:[#allocation5 + $0x20d8] sm:$0xff]  ;;  %v15747_v39 = vcombine.low %v1084_v18, %v1092_v19  ;;  %v1164_v19 = vld [vmem:[#allocation5 + $0x2290] sm:$0xff] }
 0x31c   :  { %12231 = vmatprep.subr.bf16.mxu0 %v15738_v43  ;;  %12731 = vmatprep.subr.bf16.mxu1 %v15988_v59  ;;  %v15997_v43 = vcombine.low %v1085_v20, %v1093_v21  ;;  %v15748_v59 = vcombine.high %v1100_v63, %v1108_v30  ;;  %v15998_v8 = vcombine.high %v1101_v34, %v1109_v35  ;;  %v1172_v20 = vld [vmem:[#allocation5 + $0x22d0] sm:$0xff]  ;;  %v1165_v21 = vld [vmem:[#allocation5 + $0x2298] sm:$0xff] }
 0x31f   :  { %12233 = vmatpush1.bf16.msra.mxu0 %v15739_v48  ;;  %12733 = vmatpush1.bf16.msra.mxu1 %v15989_v49  ;;  %v1125_v48 = vld [vmem:[#allocation5 + $0x2158] sm:$0xff]  ;;  %v15749_v49 = vcombine.low %v1100_v63, %v1108_v30  ;;  %v1180_v30 = vld [vmem:[#allocation5 + $0x2310] sm:$0xff] }
 0x320   :  { %12235 = vmatprep.subr.bf16.mxu0 %v15740_v52  ;;  %12735 = vmatprep.subr.bf16.mxu1 %v15990_v53  ;;  %v15999_v52 = vcombine.low %v1101_v34, %v1109_v35  ;;  %v15750_v53 = vcombine.high %v1116_v44, %v1124_v45  ;;  %v16000_v54 = vcombine.high %v1117_v47, %v1125_v48  ;;  %v1188_v34 = vld [vmem:[#allocation5 + $0x2350] sm:$0xff]  ;;  %v1181_v35 = vld [vmem:[#allocation5 + $0x2318] sm:$0xff] }
 0x323   :  { %12237 = vmatpush1.bf16.msra.mxu0 %v15741_v62  ;;  %12737 = vmatpush1.bf16.msra.mxu1 %v15991_v2  ;;  %v1141_v62 = vld [vmem:[#allocation5 + $0x21d8] sm:$0xff]  ;;  %v15751_v2 = vcombine.low %v1116_v44, %v1124_v45  ;;  %v1196_v45 = vld [vmem:[#allocation5 + $0x2390] sm:$0xff] }
 0x324   :  { %12239 = vmatprep.subr.bf16.mxu0 %v15742_v4  ;;  %12739 = vmatprep.subr.bf16.mxu1 %v15992_v5  ;;  %v16001_v4 = vcombine.low %v1117_v47, %v1125_v48  ;;  %v15752_v5 = vcombine.high %v1132_v57, %v1140_v58  ;;  %v16002_v17 = vcombine.high %v1133_v61, %v1141_v62  ;;  %v1204_v47 = vld [vmem:[#allocation5 + $0x23d0] sm:$0xff]  ;;  %v1197_v48 = vld [vmem:[#allocation5 + $0x2398] sm:$0xff] }
 0x327   :  { %12241 = vmatpush1.bf16.msra.mxu0 %v15743_v13  ;;  %12741 = vmatpush1.bf16.msra.mxu1 %v15993_v14  ;;  %v1157_v13 = vld [vmem:[#allocation5 + $0x2258] sm:$0xff]  ;;  %v15753_v14 = vcombine.low %v1132_v57, %v1140_v58  ;;  %v1212_v58 = vld [vmem:[#allocation5 + $0x2410] sm:$0xff] }
 0x328   :  { %12243 = vmatprep.subr.bf16.mxu0 %v15744_v15  ;;  %12743 = vmatprep.subr.bf16.mxu1 %v15994_v16  ;;  %v16003_v15 = vcombine.low %v1133_v61, %v1141_v62  ;;  %v15754_v16 = vcombine.high %v1148_v6, %v1156_v7  ;;  %v16004_v18 = vcombine.high %v1149_v10, %v1157_v13  ;;  %v1220_v61 = vld [vmem:[#allocation5 + $0x2450] sm:$0xff]  ;;  %v1213_v62 = vld [vmem:[#allocation5 + $0x2418] sm:$0xff] }
 0x32b   :  { %12245 = vmatpush1.bf16.msra.mxu0 %v15745_v22  ;;  %12745 = vmatpush1.bf16.msra.mxu1 %v15995_v23  ;;  %v1173_v22 = vld [vmem:[#allocation5 + $0x22d8] sm:$0xff]  ;;  %v15755_v23 = vcombine.low %v1148_v6, %v1156_v7  ;;  %v1228_v7 = vld [vmem:[#allocation5 + $0x2490] sm:$0xff] }
 0x32c   :  { %12247 = vmatprep.subr.bf16.mxu0 %v15746_v26  ;;  %12747 = vmatprep.subr.bf16.mxu1 %v15996_v28  ;;  %v16005_v26 = vcombine.low %v1149_v10, %v1157_v13  ;;  %v15756_v28 = vcombine.high %v1164_v19, %v1172_v20  ;;  %v16006_v63 = vcombine.high %v1165_v21, %v1173_v22  ;;  %v1236_v10 = vld [vmem:[#allocation5 + $0x24d0] sm:$0xff]  ;;  %v1229_v13 = vld [vmem:[#allocation5 + $0x2498] sm:$0xff] }
 0x32e   :  { %7646 = vmatmul.mubr.f32.vlgmr.msra.gmra.mrb[2].mxu0 %v17337_v1  ;;  %8214 = vmatmul.mubr.f32.vlgmr.msra.gmra.mrb[2].mxu1 %v17337_v1 }
 0x32f   :  { %12249 = vmatpush1.bf16.msra.mxu0 %v15747_v39  ;;  %12749 = vmatpush1.bf16.msra.mxu1 %v15997_v43  ;;  %v1189_v39 = vld [vmem:[#allocation5 + $0x2358] sm:$0xff]  ;;  %v15757_v43 = vcombine.low %v1164_v19, %v1172_v20  ;;  %v1244_v20 = vld [vmem:[#allocation5 + $0x2510] sm:$0xff] }
 0x330   :  { %12251 = vmatprep.subr.bf16.mxu0 %v15748_v59  ;;  %12751 = vmatprep.subr.bf16.mxu1 %v15998_v8  ;;  %v16007_v59 = vcombine.low %v1165_v21, %v1173_v22  ;;  %v15758_v8 = vcombine.high %v1180_v30, %v1188_v34  ;;  %v16008_v44 = vcombine.high %v1181_v35, %v1189_v39  ;;  %v1252_v21 = vld [vmem:[#allocation5 + $0x2550] sm:$0xff]  ;;  %v1245_v22 = vld [vmem:[#allocation5 + $0x2518] sm:$0xff] }
 0x331   :  { %7716 = vmatprep.mubr.f32.mxu0 %v17358_v37  ;;  %8284 = vmatprep.mubr.f32.mxu1 %v17358_v37 }
 0x333   :  { %12253 = vmatpush1.bf16.msra.mxu0 %v15749_v49  ;;  %12753 = vmatpush1.bf16.msra.mxu1 %v15999_v52  ;;  %v1205_v49 = vld [vmem:[#allocation5 + $0x23d8] sm:$0xff]  ;;  %v15759_v52 = vcombine.low %v1180_v30, %v1188_v34  ;;  %v1260_v34 = vld [vmem:[#allocation5 + $0x2590] sm:$0xff] }
 0x334   :  { %12255 = vmatprep.subr.bf16.mxu0 %v15750_v53  ;;  %12755 = vmatprep.subr.bf16.mxu1 %v16000_v54  ;;  %v16009_v53 = vcombine.low %v1181_v35, %v1189_v39  ;;  %v15760_v54 = vcombine.high %v1196_v45, %v1204_v47  ;;  %v16010_v57 = vcombine.high %v1197_v48, %v1205_v49  ;;  %v1268_v35 = vld [vmem:[#allocation5 + $0x25d0] sm:$0xff]  ;;  %v1261_v39 = vld [vmem:[#allocation5 + $0x2598] sm:$0xff] }
 0x337   :  { %12257 = vmatpush1.bf16.msra.mxu0 %v15751_v2  ;;  %12757 = vmatpush1.bf16.msra.mxu1 %v16001_v4  ;;  %v1221_v2 = vld [vmem:[#allocation5 + $0x2458] sm:$0xff]  ;;  %v15761_v4 = vcombine.low %v1196_v45, %v1204_v47  ;;  %v1276_v47 = vld [vmem:[#allocation5 + $0x2610] sm:$0xff] }
 0x338   :  { %12259 = vmatprep.subr.bf16.mxu0 %v15752_v5  ;;  %12759 = vmatprep.subr.bf16.mxu1 %v16002_v17  ;;  %v16011_v5 = vcombine.low %v1197_v48, %v1205_v49  ;;  %v15762_v17 = vcombine.high %v1212_v58, %v1220_v61  ;;  %v16012_v6 = vcombine.high %v1213_v62, %v1221_v2  ;;  %v1284_v48 = vld [vmem:[#allocation5 + $0x2650] sm:$0xff]  ;;  %v1277_v49 = vld [vmem:[#allocation5 + $0x2618] sm:$0xff] }
 0x33b   :  { %12261 = vmatpush1.bf16.msra.mxu0 %v15753_v14  ;;  %12761 = vmatpush1.bf16.msra.mxu1 %v16003_v15  ;;  %v1237_v14 = vld [vmem:[#allocation5 + $0x24d8] sm:$0xff]  ;;  %v15763_v15 = vcombine.low %v1212_v58, %v1220_v61  ;;  %v1292_v61 = vld [vmem:[#allocation5 + $0x2690] sm:$0xff] }
 0x33c   :  { %12263 = vmatprep.subr.bf16.mxu0 %v15754_v16  ;;  %12763 = vmatprep.subr.bf16.mxu1 %v16004_v18  ;;  %v16013_v16 = vcombine.low %v1213_v62, %v1221_v2  ;;  %v15764_v18 = vcombine.high %v1228_v7, %v1236_v10  ;;  %v16014_v19 = vcombine.high %v1229_v13, %v1237_v14  ;;  %v1300_v62 = vld [vmem:[#allocation5 + $0x26d0] sm:$0xff]  ;;  %v1293_v2 = vld [vmem:[#allocation5 + $0x2698] sm:$0xff] }
 0x33f   :  { %12265 = vmatpush1.bf16.msra.mxu0 %v15755_v23  ;;  %12765 = vmatpush1.bf16.msra.mxu1 %v16005_v26  ;;  %v1253_v23 = vld [vmem:[#allocation5 + $0x2558] sm:$0xff]  ;;  %v15765_v26 = vcombine.low %v1228_v7, %v1236_v10  ;;  %v1308_v10 = vld [vmem:[#allocation5 + $0x2710] sm:$0xff] }
 0x340   :  { %12267 = vmatprep.subr.bf16.mxu0 %v15756_v28  ;;  %12767 = vmatprep.subr.bf16.mxu1 %v16006_v63  ;;  %v16015_v28 = vcombine.low %v1229_v13, %v1237_v14  ;;  %v15766_v63 = vcombine.high %v1244_v20, %v1252_v21  ;;  %v16016_v30 = vcombine.high %v1245_v22, %v1253_v23  ;;  %v1316_v13 = vld [vmem:[#allocation5 + $0x2750] sm:$0xff]  ;;  %v1309_v14 = vld [vmem:[#allocation5 + $0x2718] sm:$0xff] }
 0x343   :  { %12269 = vmatpush1.bf16.msra.mxu0 %v15757_v43  ;;  %12769 = vmatpush1.bf16.msra.mxu1 %v16007_v59  ;;  %v1269_v43 = vld [vmem:[#allocation5 + $0x25d8] sm:$0xff]  ;;  %v15767_v59 = vcombine.low %v1244_v20, %v1252_v21  ;;  %v1324_v21 = vld [vmem:[#allocation5 + $0x2790] sm:$0xff] }
 0x344   :  { %12271 = vmatprep.subr.bf16.mxu0 %v15758_v8  ;;  %12771 = vmatprep.subr.bf16.mxu1 %v16008_v44  ;;  %v16017_v8 = vcombine.low %v1245_v22, %v1253_v23  ;;  %v15768_v44 = vcombine.high %v1260_v34, %v1268_v35  ;;  %v16018_v45 = vcombine.high %v1261_v39, %v1269_v43  ;;  %v1332_v22 = vld [vmem:[#allocation5 + $0x27d0] sm:$0xff]  ;;  %v1325_v23 = vld [vmem:[#allocation5 + $0x2798] sm:$0xff] }
 0x347   :  { %12273 = vmatpush1.bf16.msra.mxu0 %v15759_v52  ;;  %12773 = vmatpush1.bf16.msra.mxu1 %v16009_v53  ;;  %v1285_v52 = vld [vmem:[#allocation5 + $0x2658] sm:$0xff]  ;;  %v15769_v53 = vcombine.low %v1260_v34, %v1268_v35  ;;  %v1340_v35 = vld [vmem:[#allocation5 + $0x2810] sm:$0xff] }
 0x348   :  { %12275 = vmatprep.subr.bf16.mxu0 %v15760_v54  ;;  %12775 = vmatprep.subr.bf16.mxu1 %v16010_v57  ;;  %v16019_v54 = vcombine.low %v1261_v39, %v1269_v43  ;;  %v15770_v57 = vcombine.high %v1276_v47, %v1284_v48  ;;  %v16020_v58 = vcombine.high %v1277_v49, %v1285_v52  ;;  %v1348_v39 = vld [vmem:[#allocation5 + $0x2850] sm:$0xff]  ;;  %v1341_v43 = vld [vmem:[#allocation5 + $0x2818] sm:$0xff] }
 0x34b   :  { %12277 = vmatpush1.bf16.msra.mxu0 %v15761_v4  ;;  %12777 = vmatpush1.bf16.msra.mxu1 %v16011_v5  ;;  %v1301_v4 = vld [vmem:[#allocation5 + $0x26d8] sm:$0xff]  ;;  %v15771_v5 = vcombine.low %v1276_v47, %v1284_v48  ;;  %v1356_v48 = vld [vmem:[#allocation5 + $0x2890] sm:$0xff] }
 0x34c   :  { %12279 = vmatprep.subr.bf16.mxu0 %v15762_v17  ;;  %12779 = vmatprep.subr.bf16.mxu1 %v16012_v6  ;;  %v16021_v17 = vcombine.low %v1277_v49, %v1285_v52  ;;  %v15772_v6 = vcombine.high %v1292_v61, %v1300_v62  ;;  %v16022_v7 = vcombine.high %v1293_v2, %v1301_v4  ;;  %v1364_v49 = vld [vmem:[#allocation5 + $0x28d0] sm:$0xff]  ;;  %v1357_v52 = vld [vmem:[#allocation5 + $0x2898] sm:$0xff] }
 0x34f   :  { %12281 = vmatpush1.bf16.msra.mxu0 %v15763_v15  ;;  %12781 = vmatpush1.bf16.msra.mxu1 %v16013_v16  ;;  %v1317_v15 = vld [vmem:[#allocation5 + $0x2758] sm:$0xff]  ;;  %v15773_v16 = vcombine.low %v1292_v61, %v1300_v62  ;;  %v1372_v62 = vld [vmem:[#allocation5 + $0x2910] sm:$0xff] }
 0x350   :  { %12283 = vmatprep.subr.bf16.mxu0 %v15764_v18  ;;  %12783 = vmatprep.subr.bf16.mxu1 %v16014_v19  ;;  %v16023_v18 = vcombine.low %v1293_v2, %v1301_v4  ;;  %v15774_v19 = vcombine.high %v1308_v10, %v1316_v13  ;;  %v16024_v20 = vcombine.high %v1309_v14, %v1317_v15  ;;  %v1380_v2 = vld [vmem:[#allocation5 + $0x2950] sm:$0xff]  ;;  %v1373_v4 = vld [vmem:[#allocation5 + $0x2918] sm:$0xff] }
 0x353   :  { %12285 = vmatpush1.bf16.msra.mxu0 %v15765_v26  ;;  %12785 = vmatpush1.bf16.msra.mxu1 %v16015_v28  ;;  %v1333_v26 = vld [vmem:[#allocation5 + $0x27d8] sm:$0xff]  ;;  %v15775_v28 = vcombine.low %v1308_v10, %v1316_v13  ;;  %v1388_v13 = vld [vmem:[#allocation5 + $0x2990] sm:$0xff] }
 0x354   :  { %12287 = vmatprep.subr.bf16.mxu0 %v15766_v63  ;;  %12787 = vmatprep.subr.bf16.mxu1 %v16016_v30  ;;  %v16025_v63 = vcombine.low %v1309_v14, %v1317_v15  ;;  %v15776_v30 = vcombine.high %v1324_v21, %v1332_v22  ;;  %v16026_v34 = vcombine.high %v1325_v23, %v1333_v26  ;;  %v1396_v14 = vld [vmem:[#allocation5 + $0x29d0] sm:$0xff]  ;;  %v1389_v15 = vld [vmem:[#allocation5 + $0x2998] sm:$0xff] }
 0x357   :  { %12289 = vmatpush1.bf16.msra.mxu0 %v15767_v59  ;;  %12789 = vmatpush1.bf16.msra.mxu1 %v16017_v8  ;;  %v1349_v59 = vld [vmem:[#allocation5 + $0x2858] sm:$0xff]  ;;  %v15777_v8 = vcombine.low %v1324_v21, %v1332_v22  ;;  %v1404_v22 = vld [vmem:[#allocation5 + $0x2a10] sm:$0xff] }
 0x358   :  { %12291 = vmatprep.subr.bf16.mxu0 %v15768_v44  ;;  %12791 = vmatprep.subr.bf16.mxu1 %v16018_v45  ;;  %v16027_v44 = vcombine.low %v1325_v23, %v1333_v26  ;;  %v15778_v45 = vcombine.high %v1340_v35, %v1348_v39  ;;  %v16028_v47 = vcombine.high %v1341_v43, %v1349_v59  ;;  %v1412_v23 = vld [vmem:[#allocation5 + $0x2a50] sm:$0xff]  ;;  %v1405_v26 = vld [vmem:[#allocation5 + $0x2a18] sm:$0xff] }
 0x35b   :  { %12293 = vmatpush1.bf16.msra.mxu0 %v15769_v53  ;;  %12793 = vmatpush1.bf16.msra.mxu1 %v16019_v54  ;;  %v1365_v53 = vld [vmem:[#allocation5 + $0x28d8] sm:$0xff]  ;;  %v15779_v54 = vcombine.low %v1340_v35, %v1348_v39  ;;  %v1420_v39 = vld [vmem:[#allocation5 + $0x2a90] sm:$0xff] }
 0x35c   :  { %12295 = vmatprep.subr.bf16.mxu0 %v15770_v57  ;;  %12795 = vmatprep.subr.bf16.mxu1 %v16020_v58  ;;  %v16029_v57 = vcombine.low %v1341_v43, %v1349_v59  ;;  %v15780_v58 = vcombine.high %v1356_v48, %v1364_v49  ;;  %v16030_v61 = vcombine.high %v1357_v52, %v1365_v53  ;;  %v1428_v43 = vld [vmem:[#allocation5 + $0x2ad0] sm:$0xff]  ;;  %v1421_v59 = vld [vmem:[#allocation5 + $0x2a98] sm:$0xff] }
 0x35f   :  { %12297 = vmatpush1.bf16.msra.mxu0 %v15771_v5  ;;  %12797 = vmatpush1.bf16.msra.mxu1 %v16021_v17  ;;  %v1381_v5 = vld [vmem:[#allocation5 + $0x2958] sm:$0xff]  ;;  %v15781_v17 = vcombine.low %v1356_v48, %v1364_v49  ;;  %v1436_v49 = vld [vmem:[#allocation5 + $0x2b10] sm:$0xff] }
 0x360   :  { %12299 = vmatprep.subr.bf16.mxu0 %v15772_v6  ;;  %12799 = vmatprep.subr.bf16.mxu1 %v16022_v7  ;;  %v16031_v6 = vcombine.low %v1357_v52, %v1365_v53  ;;  %v15782_v7 = vcombine.high %v1372_v62, %v1380_v2  ;;  %v16032_v10 = vcombine.high %v1373_v4, %v1381_v5  ;;  %v1444_v52 = vld [vmem:[#allocation5 + $0x2b50] sm:$0xff]  ;;  %v1437_v53 = vld [vmem:[#allocation5 + $0x2b18] sm:$0xff] }
 0x363   :  { %12301 = vmatpush1.bf16.msra.mxu0 %v15773_v16  ;;  %12801 = vmatpush1.bf16.msra.mxu1 %v16023_v18  ;;  %v1397_v16 = vld [vmem:[#allocation5 + $0x29d8] sm:$0xff]  ;;  %v15783_v18 = vcombine.low %v1372_v62, %v1380_v2  ;;  %v1452_v2 = vld [vmem:[#allocation5 + $0x2b90] sm:$0xff] }
 0x364   :  { %12303 = vmatprep.subr.bf16.mxu0 %v15774_v19  ;;  %12803 = vmatprep.subr.bf16.mxu1 %v16024_v20  ;;  %v16033_v19 = vcombine.low %v1373_v4, %v1381_v5  ;;  %v15784_v20 = vcombine.high %v1388_v13, %v1396_v14  ;;  %v16034_v21 = vcombine.high %v1389_v15, %v1397_v16  ;;  %v1460_v4 = vld [vmem:[#allocation5 + $0x2bd0] sm:$0xff]  ;;  %v1453_v5 = vld [vmem:[#allocation5 + $0x2b98] sm:$0xff] }
 0x367   :  { %12305 = vmatpush1.bf16.msra.mxu0 %v15775_v28  ;;  %12805 = vmatpush1.bf16.msra.mxu1 %v16025_v63  ;;  %v1413_v28 = vld [vmem:[#allocation5 + $0x2a58] sm:$0xff]  ;;  %v15785_v63 = vcombine.low %v1388_v13, %v1396_v14  ;;  %v1468_v14 = vld [vmem:[#allocation5 + $0x2c10] sm:$0xff] }
 0x368   :  { %12307 = vmatprep.subr.bf16.mxu0 %v15776_v30  ;;  %12807 = vmatprep.subr.bf16.mxu1 %v16026_v34  ;;  %v16035_v30 = vcombine.low %v1389_v15, %v1397_v16  ;;  %v15786_v34 = vcombine.high %v1404_v22, %v1412_v23  ;;  %v16036_v35 = vcombine.high %v1405_v26, %v1413_v28  ;;  %v1476_v15 = vld [vmem:[#allocation5 + $0x2c50] sm:$0xff]  ;;  %v1469_v16 = vld [vmem:[#allocation5 + $0x2c18] sm:$0xff] }
 0x36b   :  { %12309 = vmatpush1.bf16.msra.mxu0 %v15777_v8  ;;  %12809 = vmatpush1.bf16.msra.mxu1 %v16027_v44  ;;  %v1429_v8 = vld [vmem:[#allocation5 + $0x2ad8] sm:$0xff]  ;;  %v15787_v44 = vcombine.low %v1404_v22, %v1412_v23  ;;  %v1484_v23 = vld [vmem:[#allocation5 + $0x2c90] sm:$0xff] }
 0x36c   :  { %12311 = vmatprep.subr.bf16.mxu0 %v15778_v45  ;;  %12811 = vmatprep.subr.bf16.mxu1 %v16028_v47  ;;  %v16037_v45 = vcombine.low %v1405_v26, %v1413_v28  ;;  %v15788_v47 = vcombine.high %v1420_v39, %v1428_v43  ;;  %v16038_v48 = vcombine.high %v1421_v59, %v1429_v8  ;;  %v1492_v26 = vld [vmem:[#allocation5 + $0x2cd0] sm:$0xff]  ;;  %v1485_v28 = vld [vmem:[#allocation5 + $0x2c98] sm:$0xff] }
 0x36e   :  { %7717 = vmatmul.mubr.f32.vlgmr.msra.gmra.mrb[2].mxu0 %v17354_v27  ;;  %8285 = vmatmul.mubr.f32.vlgmr.msra.gmra.mrb[2].mxu1 %v17354_v27 }
 0x36f   :  { %12313 = vmatpush1.bf16.msra.mxu0 %v15779_v54  ;;  %12813 = vmatpush1.bf16.msra.mxu1 %v16029_v57  ;;  %v1445_v54 = vld [vmem:[#allocation5 + $0x2b58] sm:$0xff]  ;;  %v15789_v57 = vcombine.low %v1420_v39, %v1428_v43  ;;  %v1500_v43 = vld [vmem:[#allocation5 + $0x2d10] sm:$0xff] }
 0x370   :  { %12315 = vmatprep.subr.bf16.mxu0 %v15780_v58  ;;  %12815 = vmatprep.subr.bf16.mxu1 %v16030_v61  ;;  %v16039_v58 = vcombine.low %v1421_v59, %v1429_v8  ;;  %v15790_v61 = vcombine.high %v1436_v49, %v1444_v52  ;;  %v16040_v62 = vcombine.high %v1437_v53, %v1445_v54  ;;  %v1508_v59 = vld [vmem:[#allocation5 + $0x2d50] sm:$0xff]  ;;  %v1501_v8 = vld [vmem:[#allocation5 + $0x2d18] sm:$0xff] }
 0x371   :  { %7787 = vmatprep.mubr.f32.mxu0 %v17371_v12  ;;  %8355 = vmatprep.mubr.f32.mxu1 %v17371_v12 }
 0x373   :  { %12317 = vmatpush1.bf16.msra.mxu0 %v15781_v17  ;;  %12817 = vmatpush1.bf16.msra.mxu1 %v16031_v6  ;;  %v1461_v17 = vld [vmem:[#allocation5 + $0x2bd8] sm:$0xff]  ;;  %v15791_v6 = vcombine.low %v1436_v49, %v1444_v52  ;;  %v1516_v52 = vld [vmem:[#allocation5 + $0x2d90] sm:$0xff] }
 0x374   :  { %12319 = vmatprep.subr.bf16.mxu0 %v15782_v7  ;;  %12819 = vmatprep.subr.bf16.mxu1 %v16032_v10  ;;  %v16041_v7 = vcombine.low %v1437_v53, %v1445_v54  ;;  %v15792_v10 = vcombine.high %v1452_v2, %v1460_v4  ;;  %v16042_v13 = vcombine.high %v1453_v5, %v1461_v17  ;;  %v1524_v53 = vld [vmem:[#allocation5 + $0x2dd0] sm:$0xff]  ;;  %v1517_v54 = vld [vmem:[#allocation5 + $0x2d98] sm:$0xff] }
 0x377   :  { %12321 = vmatpush1.bf16.msra.mxu0 %v15783_v18  ;;  %12821 = vmatpush1.bf16.msra.mxu1 %v16033_v19  ;;  %v1477_v18 = vld [vmem:[#allocation5 + $0x2c58] sm:$0xff]  ;;  %v15793_v19 = vcombine.low %v1452_v2, %v1460_v4  ;;  %v1532_v4 = vld [vmem:[#allocation5 + $0x2e10] sm:$0xff] }
 0x378   :  { %12323 = vmatprep.subr.bf16.mxu0 %v15784_v20  ;;  %12823 = vmatprep.subr.bf16.mxu1 %v16034_v21  ;;  %v16043_v20 = vcombine.low %v1453_v5, %v1461_v17  ;;  %v15794_v21 = vcombine.high %v1468_v14, %v1476_v15  ;;  %v16044_v22 = vcombine.high %v1469_v16, %v1477_v18  ;;  %v1540_v5 = vld [vmem:[#allocation5 + $0x2e50] sm:$0xff]  ;;  %v1533_v17 = vld [vmem:[#allocation5 + $0x2e18] sm:$0xff] }
 0x37b   :  { %12325 = vmatpush1.bf16.msra.mxu0 %v15785_v63  ;;  %12825 = vmatpush1.bf16.msra.mxu1 %v16035_v30  ;;  %v1493_v63 = vld [vmem:[#allocation5 + $0x2cd8] sm:$0xff]  ;;  %v15795_v30 = vcombine.low %v1468_v14, %v1476_v15  ;;  %v1548_v15 = vld [vmem:[#allocation5 + $0x2e90] sm:$0xff] }
 0x37c   :  { %12327 = vmatprep.subr.bf16.mxu0 %v15786_v34  ;;  %12827 = vmatprep.subr.bf16.mxu1 %v16036_v35  ;;  %v16045_v34 = vcombine.low %v1469_v16, %v1477_v18  ;;  %v15796_v35 = vcombine.high %v1484_v23, %v1492_v26  ;;  %v16046_v39 = vcombine.high %v1485_v28, %v1493_v63  ;;  %v1556_v16 = vld [vmem:[#allocation5 + $0x2ed0] sm:$0xff]  ;;  %v1549_v18 = vld [vmem:[#allocation5 + $0x2e98] sm:$0xff] }
 0x37f   :  { %12329 = vmatpush1.bf16.msra.mxu0 %v15787_v44  ;;  %12829 = vmatpush1.bf16.msra.mxu1 %v16037_v45  ;;  %v1509_v44 = vld [vmem:[#allocation5 + $0x2d58] sm:$0xff]  ;;  %v15797_v45 = vcombine.low %v1484_v23, %v1492_v26  ;;  %v1564_v26 = vld [vmem:[#allocation5 + $0x2f10] sm:$0xff] }
 0x380   :  { %12331 = vmatprep.subr.bf16.mxu0 %v15788_v47  ;;  %12831 = vmatprep.subr.bf16.mxu1 %v16038_v48  ;;  %v16047_v47 = vcombine.low %v1485_v28, %v1493_v63  ;;  %v15798_v48 = vcombine.high %v1500_v43, %v1508_v59  ;;  %v16048_v49 = vcombine.high %v1501_v8, %v1509_v44  ;;  %v1572_v28 = vld [vmem:[#allocation5 + $0x2f50] sm:$0xff]  ;;  %v1565_v63 = vld [vmem:[#allocation5 + $0x2f18] sm:$0xff] }
 0x383   :  { %12333 = vmatpush1.bf16.msra.mxu0 %v15789_v57  ;;  %12833 = vmatpush1.bf16.msra.mxu1 %v16039_v58  ;;  %v1525_v57 = vld [vmem:[#allocation5 + $0x2dd8] sm:$0xff]  ;;  %v15799_v58 = vcombine.low %v1500_v43, %v1508_v59  ;;  %v1580_v59 = vld [vmem:[#allocation5 + $0x2f90] sm:$0xff] }
 0x384   :  { %12335 = vmatprep.subr.bf16.mxu0 %v15790_v61  ;;  %12835 = vmatprep.subr.bf16.mxu1 %v16040_v62  ;;  %v16049_v61 = vcombine.low %v1501_v8, %v1509_v44  ;;  %v15800_v62 = vcombine.high %v1516_v52, %v1524_v53  ;;  %v16050_v2 = vcombine.high %v1517_v54, %v1525_v57  ;;  %v1588_v8 = vld [vmem:[#allocation5 + $0x2fd0] sm:$0xff]  ;;  %v1581_v44 = vld [vmem:[#allocation5 + $0x2f98] sm:$0xff] }
 0x387   :  { %12337 = vmatpush1.bf16.msra.mxu0 %v15791_v6  ;;  %12837 = vmatpush1.bf16.msra.mxu1 %v16041_v7  ;;  %v1541_v6 = vld [vmem:[#allocation5 + $0x2e58] sm:$0xff]  ;;  %v15801_v7 = vcombine.low %v1516_v52, %v1524_v53  ;;  %v1596_v53 = vld [vmem:[#allocation5 + $0x3010] sm:$0xff] }
 0x388   :  { %12339 = vmatprep.subr.bf16.mxu0 %v15792_v10  ;;  %12839 = vmatprep.subr.bf16.mxu1 %v16042_v13  ;;  %v16051_v10 = vcombine.low %v1517_v54, %v1525_v57  ;;  %v15802_v13 = vcombine.high %v1532_v4, %v1540_v5  ;;  %v16052_v14 = vcombine.high %v1533_v17, %v1541_v6  ;;  %v1604_v54 = vld [vmem:[#allocation5 + $0x3050] sm:$0xff]  ;;  %v1597_v57 = vld [vmem:[#allocation5 + $0x3018] sm:$0xff] }
 0x38b   :  { %12341 = vmatpush1.bf16.msra.mxu0 %v15793_v19  ;;  %12841 = vmatpush1.bf16.msra.mxu1 %v16043_v20  ;;  %v1557_v19 = vld [vmem:[#allocation5 + $0x2ed8] sm:$0xff]  ;;  %v15803_v20 = vcombine.low %v1532_v4, %v1540_v5  ;;  %v1612_v5 = vld [vmem:[#allocation5 + $0x3090] sm:$0xff] }
 0x38c   :  { %12343 = vmatprep.subr.bf16.mxu0 %v15794_v21  ;;  %12843 = vmatprep.subr.bf16.mxu1 %v16044_v22  ;;  %v16053_v21 = vcombine.low %v1533_v17, %v1541_v6  ;;  %v15804_v22 = vcombine.high %v1548_v15, %v1556_v16  ;;  %v16054_v23 = vcombine.high %v1549_v18, %v1557_v19  ;;  %v1620_v17 = vld [vmem:[#allocation5 + $0x30d0] sm:$0xff]  ;;  %v1613_v6 = vld [vmem:[#allocation5 + $0x3098] sm:$0xff] }
 0x38f   :  { %12345 = vmatpush1.bf16.msra.mxu0 %v15795_v30  ;;  %12845 = vmatpush1.bf16.msra.mxu1 %v16045_v34  ;;  %v1573_v30 = vld [vmem:[#allocation5 + $0x2f58] sm:$0xff]  ;;  %v15805_v34 = vcombine.low %v1548_v15, %v1556_v16  ;;  %v1628_v16 = vld [vmem:[#allocation5 + $0x3110] sm:$0xff] }
 0x390   :  { %12347 = vmatprep.subr.bf16.mxu0 %v15796_v35  ;;  %12847 = vmatprep.subr.bf16.mxu1 %v16046_v39  ;;  %v16055_v35 = vcombine.low %v1549_v18, %v1557_v19  ;;  %v15806_v39 = vcombine.high %v1564_v26, %v1572_v28  ;;  %v16056_v43 = vcombine.high %v1565_v63, %v1573_v30  ;;  %v1636_v18 = vld [vmem:[#allocation5 + $0x3150] sm:$0xff]  ;;  %v1629_v19 = vld [vmem:[#allocation5 + $0x3118] sm:$0xff] }
 0x393   :  { %12349 = vmatpush1.bf16.msra.mxu0 %v15797_v45  ;;  %12849 = vmatpush1.bf16.msra.mxu1 %v16047_v47  ;;  %v1589_v45 = vld [vmem:[#allocation5 + $0x2fd8] sm:$0xff]  ;;  %v15807_v47 = vcombine.low %v1564_v26, %v1572_v28  ;;  %v1644_v28 = vld [vmem:[#allocation5 + $0x3190] sm:$0xff] }
 0x394   :  { %12351 = vmatprep.subr.bf16.mxu0 %v15798_v48  ;;  %12851 = vmatprep.subr.bf16.mxu1 %v16048_v49  ;;  %v16057_v48 = vcombine.low %v1565_v63, %v1573_v30  ;;  %v15808_v49 = vcombine.high %v1580_v59, %v1588_v8  ;;  %v16058_v52 = vcombine.high %v1581_v44, %v1589_v45  ;;  %v1652_v63 = vld [vmem:[#allocation5 + $0x31d0] sm:$0xff]  ;;  %v1645_v30 = vld [vmem:[#allocation5 + $0x3198] sm:$0xff] }
 0x397   :  { %12353 = vmatpush1.bf16.msra.mxu0 %v15799_v58  ;;  %12853 = vmatpush1.bf16.msra.mxu1 %v16049_v61  ;;  %v1605_v58 = vld [vmem:[#allocation5 + $0x3058] sm:$0xff]  ;;  %v15809_v61 = vcombine.low %v1580_v59, %v1588_v8  ;;  %v1660_v8 = vld [vmem:[#allocation5 + $0x3210] sm:$0xff] }
 0x398   :  { %12355 = vmatprep.subr.bf16.mxu0 %v15800_v62  ;;  %12855 = vmatprep.subr.bf16.mxu1 %v16050_v2  ;;  %v16059_v62 = vcombine.low %v1581_v44, %v1589_v45  ;;  %v15810_v2 = vcombine.high %v1596_v53, %v1604_v54  ;;  %v16060_v4 = vcombine.high %v1597_v57, %v1605_v58  ;;  %v1668_v44 = vld [vmem:[#allocation5 + $0x3250] sm:$0xff]  ;;  %v1661_v45 = vld [vmem:[#allocation5 + $0x3218] sm:$0xff] }
 0x39b   :  { %12357 = vmatpush1.bf16.msra.mxu0 %v15801_v7  ;;  %12857 = vmatpush1.bf16.msra.mxu1 %v16051_v10  ;;  %v1621_v7 = vld [vmem:[#allocation5 + $0x30d8] sm:$0xff]  ;;  %v15811_v10 = vcombine.low %v1596_v53, %v1604_v54  ;;  %v1676_v54 = vld [vmem:[#allocation5 + $0x3290] sm:$0xff] }
 0x39c   :  { %12359 = vmatprep.subr.bf16.mxu0 %v15802_v13  ;;  %12859 = vmatprep.subr.bf16.mxu1 %v16052_v14  ;;  %v16061_v13 = vcombine.low %v1597_v57, %v1605_v58  ;;  %v15812_v14 = vcombine.high %v1612_v5, %v1620_v17  ;;  %v16062_v15 = vcombine.high %v1613_v6, %v1621_v7  ;;  %v1684_v57 = vld [vmem:[#allocation5 + $0x32d0] sm:$0xff]  ;;  %v1677_v58 = vld [vmem:[#allocation5 + $0x3298] sm:$0xff] }
 0x39f   :  { %12361 = vmatpush1.bf16.msra.mxu0 %v15803_v20  ;;  %12861 = vmatpush1.bf16.msra.mxu1 %v16053_v21  ;;  %v1637_v20 = vld [vmem:[#allocation5 + $0x3158] sm:$0xff]  ;;  %v15813_v21 = vcombine.low %v1612_v5, %v1620_v17  ;;  %v1692_v17 = vld [vmem:[#allocation5 + $0x3310] sm:$0xff] }
 0x3a0   :  { %12363 = vmatprep.subr.bf16.mxu0 %v15804_v22  ;;  %12863 = vmatprep.subr.bf16.mxu1 %v16054_v23  ;;  %v16063_v22 = vcombine.low %v1613_v6, %v1621_v7  ;;  %v15814_v23 = vcombine.high %v1628_v16, %v1636_v18  ;;  %v16064_v26 = vcombine.high %v1629_v19, %v1637_v20  ;;  %v1700_v6 = vld [vmem:[#allocation5 + $0x3350] sm:$0xff]  ;;  %v1693_v7 = vld [vmem:[#allocation5 + $0x3318] sm:$0xff] }
 0x3a3   :  { %12365 = vmatpush1.bf16.msra.mxu0 %v15805_v34  ;;  %12865 = vmatpush1.bf16.msra.mxu1 %v16055_v35  ;;  %v1653_v34 = vld [vmem:[#allocation5 + $0x31d8] sm:$0xff]  ;;  %v15815_v35 = vcombine.low %v1628_v16, %v1636_v18  ;;  %v1708_v18 = vld [vmem:[#allocation5 + $0x3390] sm:$0xff] }
 0x3a4   :  { %12367 = vmatprep.subr.bf16.mxu0 %v15806_v39  ;;  %12867 = vmatprep.subr.bf16.mxu1 %v16056_v43  ;;  %v16065_v39 = vcombine.low %v1629_v19, %v1637_v20  ;;  %v15816_v43 = vcombine.high %v1644_v28, %v1652_v63  ;;  %v16066_v59 = vcombine.high %v1645_v30, %v1653_v34  ;;  %v1716_v19 = vld [vmem:[#allocation5 + $0x33d0] sm:$0xff]  ;;  %v1709_v20 = vld [vmem:[#allocation5 + $0x3398] sm:$0xff] }
 0x3a7   :  { %12369 = vmatpush1.bf16.msra.mxu0 %v15807_v47  ;;  %12869 = vmatpush1.bf16.msra.mxu1 %v16057_v48  ;;  %v1669_v47 = vld [vmem:[#allocation5 + $0x3258] sm:$0xff]  ;;  %v15817_v48 = vcombine.low %v1644_v28, %v1652_v63  ;;  %v1724_v63 = vld [vmem:[#allocation5 + $0x3410] sm:$0xff] }
 0x3a8   :  { %12371 = vmatprep.subr.bf16.mxu0 %v15808_v49  ;;  %12871 = vmatprep.subr.bf16.mxu1 %v16058_v52  ;;  %v16067_v49 = vcombine.low %v1645_v30, %v1653_v34  ;;  %v15818_v52 = vcombine.high %v1660_v8, %v1668_v44  ;;  %v16068_v53 = vcombine.high %v1661_v45, %v1669_v47  ;;  %v1732_v30 = vld [vmem:[#allocation5 + $0x3450] sm:$0xff]  ;;  %v1725_v34 = vld [vmem:[#allocation5 + $0x3418] sm:$0xff] }
 0x3ab   :  { %12373 = vmatpush1.bf16.msra.mxu0 %v15809_v61  ;;  %12873 = vmatpush1.bf16.msra.mxu1 %v16059_v62  ;;  %v1685_v61 = vld [vmem:[#allocation5 + $0x32d8] sm:$0xff]  ;;  %v15819_v62 = vcombine.low %v1660_v8, %v1668_v44  ;;  %v1740_v44 = vld [vmem:[#allocation5 + $0x3490] sm:$0xff] }
 0x3ac   :  { %12375 = vmatprep.subr.bf16.mxu0 %v15810_v2  ;;  %12875 = vmatprep.subr.bf16.mxu1 %v16060_v4  ;;  %v16069_v2 = vcombine.low %v1661_v45, %v1669_v47  ;;  %v15820_v4 = vcombine.high %v1676_v54, %v1684_v57  ;;  %v16070_v5 = vcombine.high %v1677_v58, %v1685_v61  ;;  %v1748_v45 = vld [vmem:[#allocation5 + $0x34d0] sm:$0xff]  ;;  %v1741_v47 = vld [vmem:[#allocation5 + $0x3498] sm:$0xff] }
 0x3ae   :  { %7788 = vmatmul.mubr.f32.vlgmr.msra.gmra.mrb[2].mxu0 %v17367_v0  ;;  %8356 = vmatmul.mubr.f32.vlgmr.msra.gmra.mrb[2].mxu1 %v17367_v0 }
 0x3af   :  { %12377 = vmatpush1.bf16.msra.mxu0 %v15811_v10  ;;  %12877 = vmatpush1.bf16.msra.mxu1 %v16061_v13  ;;  %v1701_v10 = vld [vmem:[#allocation5 + $0x3358] sm:$0xff]  ;;  %v15821_v13 = vcombine.low %v1676_v54, %v1684_v57  ;;  %v1756_v57 = vld [vmem:[#allocation5 + $0x3510] sm:$0xff] }
 0x3b0   :  { %12379 = vmatprep.subr.bf16.mxu0 %v15812_v14  ;;  %12879 = vmatprep.subr.bf16.mxu1 %v16062_v15  ;;  %v16071_v14 = vcombine.low %v1677_v58, %v1685_v61  ;;  %v15822_v15 = vcombine.high %v1692_v17, %v1700_v6  ;;  %v16072_v16 = vcombine.high %v1693_v7, %v1701_v10  ;;  %v1764_v58 = vld [vmem:[#allocation5 + $0x3550] sm:$0xff]  ;;  %v1757_v61 = vld [vmem:[#allocation5 + $0x3518] sm:$0xff] }
 0x3b1   :  { %7858 = vmatprep.mubr.f32.mxu0 %v17386_v51  ;;  %8426 = vmatprep.mubr.f32.mxu1 %v17386_v51 }
 0x3b3   :  { %12381 = vmatpush1.bf16.msra.mxu0 %v15813_v21  ;;  %12881 = vmatpush1.bf16.msra.mxu1 %v16063_v22  ;;  %v1717_v21 = vld [vmem:[#allocation5 + $0x33d8] sm:$0xff]  ;;  %v15823_v22 = vcombine.low %v1692_v17, %v1700_v6  ;;  %v1772_v6 = vld [vmem:[#allocation5 + $0x3590] sm:$0xff] }
 0x3b4   :  { %12383 = vmatprep.subr.bf16.mxu0 %v15814_v23  ;;  %12883 = vmatprep.subr.bf16.mxu1 %v16064_v26  ;;  %v16073_v23 = vcombine.low %v1693_v7, %v1701_v10  ;;  %v15824_v26 = vcombine.high %v1708_v18, %v1716_v19  ;;  %v16074_v28 = vcombine.high %v1709_v20, %v1717_v21  ;;  %v1780_v7 = vld [vmem:[#allocation5 + $0x35d0] sm:$0xff]  ;;  %v1773_v10 = vld [vmem:[#allocation5 + $0x3598] sm:$0xff] }
 0x3b7   :  { %12385 = vmatpush1.bf16.msra.mxu0 %v15815_v35  ;;  %12885 = vmatpush1.bf16.msra.mxu1 %v16065_v39  ;;  %v1733_v35 = vld [vmem:[#allocation5 + $0x3458] sm:$0xff]  ;;  %v15825_v39 = vcombine.low %v1708_v18, %v1716_v19  ;;  %v1788_v19 = vld [vmem:[#allocation5 + $0x3610] sm:$0xff] }
 0x3b8   :  { %12387 = vmatprep.subr.bf16.mxu0 %v15816_v43  ;;  %12887 = vmatprep.subr.bf16.mxu1 %v16066_v59  ;;  %v16075_v43 = vcombine.low %v1709_v20, %v1717_v21  ;;  %v15826_v59 = vcombine.high %v1724_v63, %v1732_v30  ;;  %v16076_v8 = vcombine.high %v1725_v34, %v1733_v35  ;;  %v1796_v20 = vld [vmem:[#allocation5 + $0x3650] sm:$0xff]  ;;  %v1789_v21 = vld [vmem:[#allocation5 + $0x3618] sm:$0xff] }
 0x3bb   :  { %12389 = vmatpush1.bf16.msra.mxu0 %v15817_v48  ;;  %12889 = vmatpush1.bf16.msra.mxu1 %v16067_v49  ;;  %v1749_v48 = vld [vmem:[#allocation5 + $0x34d8] sm:$0xff]  ;;  %v15827_v49 = vcombine.low %v1724_v63, %v1732_v30  ;;  %v1804_v30 = vld [vmem:[#allocation5 + $0x3690] sm:$0xff] }
 0x3bc   :  { %12391 = vmatprep.subr.bf16.mxu0 %v15818_v52  ;;  %12891 = vmatprep.subr.bf16.mxu1 %v16068_v53  ;;  %v16077_v52 = vcombine.low %v1725_v34, %v1733_v35  ;;  %v15828_v53 = vcombine.high %v1740_v44, %v1748_v45  ;;  %v16078_v54 = vcombine.high %v1741_v47, %v1749_v48  ;;  %v1812_v34 = vld [vmem:[#allocation5 + $0x36d0] sm:$0xff]  ;;  %v1805_v35 = vld [vmem:[#allocation5 + $0x3698] sm:$0xff] }
 0x3bf   :  { %12393 = vmatpush1.bf16.msra.mxu0 %v15819_v62  ;;  %12893 = vmatpush1.bf16.msra.mxu1 %v16069_v2  ;;  %v1765_v62 = vld [vmem:[#allocation5 + $0x3558] sm:$0xff]  ;;  %v15829_v2 = vcombine.low %v1740_v44, %v1748_v45  ;;  %v1820_v45 = vld [vmem:[#allocation5 + $0x3710] sm:$0xff] }
 0x3c0   :  { %12395 = vmatprep.subr.bf16.mxu0 %v15820_v4  ;;  %12895 = vmatprep.subr.bf16.mxu1 %v16070_v5  ;;  %v16079_v4 = vcombine.low %v1741_v47, %v1749_v48  ;;  %v15830_v5 = vcombine.high %v1756_v57, %v1764_v58  ;;  %v16080_v17 = vcombine.high %v1757_v61, %v1765_v62  ;;  %v1828_v47 = vld [vmem:[#allocation5 + $0x3750] sm:$0xff]  ;;  %v1821_v48 = vld [vmem:[#allocation5 + $0x3718] sm:$0xff] }
 0x3c3   :  { %12397 = vmatpush1.bf16.msra.mxu0 %v15821_v13  ;;  %12897 = vmatpush1.bf16.msra.mxu1 %v16071_v14  ;;  %v1781_v13 = vld [vmem:[#allocation5 + $0x35d8] sm:$0xff]  ;;  %v15831_v14 = vcombine.low %v1756_v57, %v1764_v58  ;;  %v1836_v58 = vld [vmem:[#allocation5 + $0x3790] sm:$0xff] }
 0x3c4   :  { %12399 = vmatprep.subr.bf16.mxu0 %v15822_v15  ;;  %12899 = vmatprep.subr.bf16.mxu1 %v16072_v16  ;;  %v16081_v15 = vcombine.low %v1757_v61, %v1765_v62  ;;  %v15832_v16 = vcombine.high %v1772_v6, %v1780_v7  ;;  %v16082_v18 = vcombine.high %v1773_v10, %v1781_v13  ;;  %v1844_v61 = vld [vmem:[#allocation5 + $0x37d0] sm:$0xff]  ;;  %v1837_v62 = vld [vmem:[#allocation5 + $0x3798] sm:$0xff] }
 0x3c7   :  { %12401 = vmatpush1.bf16.msra.mxu0 %v15823_v22  ;;  %12901 = vmatpush1.bf16.msra.mxu1 %v16073_v23  ;;  %v1797_v22 = vld [vmem:[#allocation5 + $0x3658] sm:$0xff]  ;;  %v15833_v23 = vcombine.low %v1772_v6, %v1780_v7  ;;  %v1852_v7 = vld [vmem:[#allocation5 + $0x3810] sm:$0xff] }
 0x3c8   :  { %12403 = vmatprep.subr.bf16.mxu0 %v15824_v26  ;;  %12903 = vmatprep.subr.bf16.mxu1 %v16074_v28  ;;  %v16083_v26 = vcombine.low %v1773_v10, %v1781_v13  ;;  %v15834_v28 = vcombine.high %v1788_v19, %v1796_v20  ;;  %v16084_v63 = vcombine.high %v1789_v21, %v1797_v22  ;;  %v1860_v10 = vld [vmem:[#allocation5 + $0x3850] sm:$0xff]  ;;  %v1853_v13 = vld [vmem:[#allocation5 + $0x3818] sm:$0xff] }
 0x3cb   :  { %12405 = vmatpush1.bf16.msra.mxu0 %v15825_v39  ;;  %12905 = vmatpush1.bf16.msra.mxu1 %v16075_v43  ;;  %v1813_v39 = vld [vmem:[#allocation5 + $0x36d8] sm:$0xff]  ;;  %v15835_v43 = vcombine.low %v1788_v19, %v1796_v20  ;;  %v1868_v20 = vld [vmem:[#allocation5 + $0x3890] sm:$0xff] }
 0x3cc   :  { %12407 = vmatprep.subr.bf16.mxu0 %v15826_v59  ;;  %12907 = vmatprep.subr.bf16.mxu1 %v16076_v8  ;;  %v16085_v59 = vcombine.low %v1789_v21, %v1797_v22  ;;  %v15836_v8 = vcombine.high %v1804_v30, %v1812_v34  ;;  %v16086_v44 = vcombine.high %v1805_v35, %v1813_v39  ;;  %v1876_v21 = vld [vmem:[#allocation5 + $0x38d0] sm:$0xff]  ;;  %v1869_v22 = vld [vmem:[#allocation5 + $0x3898] sm:$0xff] }
 0x3cf   :  { %12409 = vmatpush1.bf16.msra.mxu0 %v15827_v49  ;;  %12909 = vmatpush1.bf16.msra.mxu1 %v16077_v52  ;;  %v1829_v49 = vld [vmem:[#allocation5 + $0x3758] sm:$0xff]  ;;  %v15837_v52 = vcombine.low %v1804_v30, %v1812_v34  ;;  %v1884_v34 = vld [vmem:[#allocation5 + $0x3910] sm:$0xff] }
 0x3d0   :  { %12411 = vmatprep.subr.bf16.mxu0 %v15828_v53  ;;  %12911 = vmatprep.subr.bf16.mxu1 %v16078_v54  ;;  %v16087_v53 = vcombine.low %v1805_v35, %v1813_v39  ;;  %v15838_v54 = vcombine.high %v1820_v45, %v1828_v47  ;;  %v16088_v57 = vcombine.high %v1821_v48, %v1829_v49  ;;  %v1892_v35 = vld [vmem:[#allocation5 + $0x3950] sm:$0xff]  ;;  %v1885_v39 = vld [vmem:[#allocation5 + $0x3918] sm:$0xff] }
 0x3d3   :  { %12413 = vmatpush1.bf16.msra.mxu0 %v15829_v2  ;;  %12913 = vmatpush1.bf16.msra.mxu1 %v16079_v4  ;;  %v1845_v2 = vld [vmem:[#allocation5 + $0x37d8] sm:$0xff]  ;;  %v15839_v4 = vcombine.low %v1820_v45, %v1828_v47  ;;  %v1900_v47 = vld [vmem:[#allocation5 + $0x3990] sm:$0xff] }
 0x3d4   :  { %12415 = vmatprep.subr.bf16.mxu0 %v15830_v5  ;;  %12915 = vmatprep.subr.bf16.mxu1 %v16080_v17  ;;  %v16089_v5 = vcombine.low %v1821_v48, %v1829_v49  ;;  %v15840_v17 = vcombine.high %v1836_v58, %v1844_v61  ;;  %v16090_v6 = vcombine.high %v1837_v62, %v1845_v2  ;;  %v1908_v48 = vld [vmem:[#allocation5 + $0x39d0] sm:$0xff]  ;;  %v1901_v49 = vld [vmem:[#allocation5 + $0x3998] sm:$0xff] }
 0x3d7   :  { %12417 = vmatpush1.bf16.msra.mxu0 %v15831_v14  ;;  %12917 = vmatpush1.bf16.msra.mxu1 %v16081_v15  ;;  %v1861_v14 = vld [vmem:[#allocation5 + $0x3858] sm:$0xff]  ;;  %v15841_v15 = vcombine.low %v1836_v58, %v1844_v61  ;;  %v1916_v61 = vld [vmem:[#allocation5 + $0x3a10] sm:$0xff] }
 0x3d8   :  { %12419 = vmatprep.subr.bf16.mxu0 %v15832_v16  ;;  %12919 = vmatprep.subr.bf16.mxu1 %v16082_v18  ;;  %v16091_v16 = vcombine.low %v1837_v62, %v1845_v2  ;;  %v15842_v18 = vcombine.high %v1852_v7, %v1860_v10  ;;  %v16092_v19 = vcombine.high %v1853_v13, %v1861_v14  ;;  %v1924_v62 = vld [vmem:[#allocation5 + $0x3a50] sm:$0xff]  ;;  %v1917_v2 = vld [vmem:[#allocation5 + $0x3a18] sm:$0xff] }
 0x3db   :  { %12421 = vmatpush1.bf16.msra.mxu0 %v15833_v23  ;;  %12921 = vmatpush1.bf16.msra.mxu1 %v16083_v26  ;;  %v1877_v23 = vld [vmem:[#allocation5 + $0x38d8] sm:$0xff]  ;;  %v15843_v26 = vcombine.low %v1852_v7, %v1860_v10  ;;  %v1932_v10 = vld [vmem:[#allocation5 + $0x3a90] sm:$0xff] }
 0x3dc   :  { %12423 = vmatprep.subr.bf16.mxu0 %v15834_v28  ;;  %12923 = vmatprep.subr.bf16.mxu1 %v16084_v63  ;;  %v16093_v28 = vcombine.low %v1853_v13, %v1861_v14  ;;  %v15844_v63 = vcombine.high %v1868_v20, %v1876_v21  ;;  %v16094_v30 = vcombine.high %v1869_v22, %v1877_v23  ;;  %v1940_v13 = vld [vmem:[#allocation5 + $0x3ad0] sm:$0xff]  ;;  %v1933_v14 = vld [vmem:[#allocation5 + $0x3a98] sm:$0xff] }
 0x3df   :  { %12425 = vmatpush1.bf16.msra.mxu0 %v15835_v43  ;;  %12925 = vmatpush1.bf16.msra.mxu1 %v16085_v59  ;;  %v1893_v43 = vld [vmem:[#allocation5 + $0x3958] sm:$0xff]  ;;  %v15845_v59 = vcombine.low %v1868_v20, %v1876_v21  ;;  %v1948_v21 = vld [vmem:[#allocation5 + $0x3b10] sm:$0xff] }
 0x3e0   :  { %12427 = vmatprep.subr.bf16.mxu0 %v15836_v8  ;;  %12927 = vmatprep.subr.bf16.mxu1 %v16086_v44  ;;  %v16095_v8 = vcombine.low %v1869_v22, %v1877_v23  ;;  %v15846_v44 = vcombine.high %v1884_v34, %v1892_v35  ;;  %v16096_v45 = vcombine.high %v1885_v39, %v1893_v43  ;;  %v1956_v22 = vld [vmem:[#allocation5 + $0x3b50] sm:$0xff]  ;;  %v1949_v23 = vld [vmem:[#allocation5 + $0x3b18] sm:$0xff] }
 0x3e3   :  { %12429 = vmatpush1.bf16.msra.mxu0 %v15837_v52  ;;  %12929 = vmatpush1.bf16.msra.mxu1 %v16087_v53  ;;  %v1909_v52 = vld [vmem:[#allocation5 + $0x39d8] sm:$0xff]  ;;  %v15847_v53 = vcombine.low %v1884_v34, %v1892_v35  ;;  %v1964_v35 = vld [vmem:[#allocation5 + $0x3b90] sm:$0xff] }
 0x3e4   :  { %12431 = vmatprep.subr.bf16.mxu0 %v15838_v54  ;;  %12931 = vmatprep.subr.bf16.mxu1 %v16088_v57  ;;  %v16097_v54 = vcombine.low %v1885_v39, %v1893_v43  ;;  %v15848_v57 = vcombine.high %v1900_v47, %v1908_v48  ;;  %v16098_v58 = vcombine.high %v1901_v49, %v1909_v52  ;;  %v1972_v39 = vld [vmem:[#allocation5 + $0x3bd0] sm:$0xff]  ;;  %v1965_v43 = vld [vmem:[#allocation5 + $0x3b98] sm:$0xff] }
 0x3e7   :  { %12433 = vmatpush1.bf16.msra.mxu0 %v15839_v4  ;;  %12933 = vmatpush1.bf16.msra.mxu1 %v16089_v5  ;;  %v1925_v4 = vld [vmem:[#allocation5 + $0x3a58] sm:$0xff]  ;;  %v15849_v5 = vcombine.low %v1900_v47, %v1908_v48  ;;  %v1980_v48 = vld [vmem:[#allocation5 + $0x3c10] sm:$0xff] }
 0x3e8   :  { %12435 = vmatprep.subr.bf16.mxu0 %v15840_v17  ;;  %12935 = vmatprep.subr.bf16.mxu1 %v16090_v6  ;;  %v16099_v17 = vcombine.low %v1901_v49, %v1909_v52  ;;  %v15850_v6 = vcombine.high %v1916_v61, %v1924_v62  ;;  %v16100_v7 = vcombine.high %v1917_v2, %v1925_v4  ;;  %v1988_v49 = vld [vmem:[#allocation5 + $0x3c50] sm:$0xff]  ;;  %v1981_v52 = vld [vmem:[#allocation5 + $0x3c18] sm:$0xff] }
 0x3eb   :  { %12437 = vmatpush1.bf16.msra.mxu0 %v15841_v15  ;;  %12937 = vmatpush1.bf16.msra.mxu1 %v16091_v16  ;;  %v1941_v15 = vld [vmem:[#allocation5 + $0x3ad8] sm:$0xff]  ;;  %v15851_v16 = vcombine.low %v1916_v61, %v1924_v62  ;;  %v1996_v62 = vld [vmem:[#allocation5 + $0x3c90] sm:$0xff] }
 0x3ec   :  { %12439 = vmatprep.subr.bf16.mxu0 %v15842_v18  ;;  %12939 = vmatprep.subr.bf16.mxu1 %v16092_v19  ;;  %v16101_v18 = vcombine.low %v1917_v2, %v1925_v4  ;;  %v15852_v19 = vcombine.high %v1932_v10, %v1940_v13  ;;  %v16102_v20 = vcombine.high %v1933_v14, %v1941_v15  ;;  %v2004_v2 = vld [vmem:[#allocation5 + $0x3cd0] sm:$0xff]  ;;  %v1997_v4 = vld [vmem:[#allocation5 + $0x3c98] sm:$0xff] }
 0x3ee   :  { %7859 = vmatmul.mubr.f32.vlgmr.msra.gmra.mrb[2].mxu0 %v17382_v42  ;;  %8427 = vmatmul.mubr.f32.vlgmr.msra.gmra.mrb[2].mxu1 %v17382_v42 }
 0x3ef   :  { %12441 = vmatpush1.bf16.msra.mxu0 %v15843_v26  ;;  %12941 = vmatpush1.bf16.msra.mxu1 %v16093_v28  ;;  %v1957_v26 = vld [vmem:[#allocation5 + $0x3b58] sm:$0xff]  ;;  %v15853_v28 = vcombine.low %v1932_v10, %v1940_v13  ;;  %v2012_v13 = vld [vmem:[#allocation5 + $0x3d10] sm:$0xff] }
 0x3f0   :  { %12443 = vmatprep.subr.bf16.mxu0 %v15844_v63  ;;  %12943 = vmatprep.subr.bf16.mxu1 %v16094_v30  ;;  %v16103_v63 = vcombine.low %v1933_v14, %v1941_v15  ;;  %v15854_v30 = vcombine.high %v1948_v21, %v1956_v22  ;;  %v16104_v34 = vcombine.high %v1949_v23, %v1957_v26  ;;  %v2020_v14 = vld [vmem:[#allocation5 + $0x3d50] sm:$0xff]  ;;  %v2013_v15 = vld [vmem:[#allocation5 + $0x3d18] sm:$0xff] }
 0x3f1   :  { %10976 = vmatprep.mubr.msk.f32.mxu0 %vm6229_vm0, %v17399_v36  ;;  %10977 = vmatprep.mubr.msk.f32.mxu1 %vm6229_vm0, %v17399_v36 }
 0x3f3   :  { %12445 = vmatpush1.bf16.msra.mxu0 %v15845_v59  ;;  %12945 = vmatpush1.bf16.msra.mxu1 %v16095_v8  ;;  %v1973_v59 = vld [vmem:[#allocation5 + $0x3bd8] sm:$0xff]  ;;  %v15855_v8 = vcombine.low %v1948_v21, %v1956_v22  ;;  %v2028_v22 = vld [vmem:[#allocation5 + $0x3d90] sm:$0xff] }
 0x3f4   :  { %12447 = vmatprep.subr.bf16.mxu0 %v15846_v44  ;;  %12947 = vmatprep.subr.bf16.mxu1 %v16096_v45  ;;  %v16105_v44 = vcombine.low %v1949_v23, %v1957_v26  ;;  %v15856_v45 = vcombine.high %v1964_v35, %v1972_v39  ;;  %v16106_v47 = vcombine.high %v1965_v43, %v1973_v59  ;;  %v2036_v23 = vld [vmem:[#allocation5 + $0x3dd0] sm:$0xff]  ;;  %v2029_v26 = vld [vmem:[#allocation5 + $0x3d98] sm:$0xff] }
 0x3f7   :  { %12449 = vmatpush1.bf16.msra.mxu0 %v15847_v53  ;;  %12949 = vmatpush1.bf16.msra.mxu1 %v16097_v54  ;;  %v1989_v53 = vld [vmem:[#allocation5 + $0x3c58] sm:$0xff]  ;;  %v15857_v54 = vcombine.low %v1964_v35, %v1972_v39  ;;  %v2044_v39 = vld [vmem:[#allocation5 + $0x3e10] sm:$0xff] }
 0x3f8   :  { %12451 = vmatprep.subr.bf16.mxu0 %v15848_v57  ;;  %12951 = vmatprep.subr.bf16.mxu1 %v16098_v58  ;;  %v16107_v57 = vcombine.low %v1965_v43, %v1973_v59  ;;  %v15858_v58 = vcombine.high %v1980_v48, %v1988_v49  ;;  %v16108_v61 = vcombine.high %v1981_v52, %v1989_v53  ;;  %v2052_v43 = vld [vmem:[#allocation5 + $0x3e50] sm:$0xff]  ;;  %v2045_v59 = vld [vmem:[#allocation5 + $0x3e18] sm:$0xff] }
 0x3fb   :  { %12453 = vmatpush1.bf16.msra.mxu0 %v15849_v5  ;;  %12953 = vmatpush1.bf16.msra.mxu1 %v16099_v17  ;;  %v2005_v5 = vld [vmem:[#allocation5 + $0x3cd8] sm:$0xff]  ;;  %v15859_v17 = vcombine.low %v1980_v48, %v1988_v49  ;;  %v62_v49 = vld [vmem:[#allocation5 + $0x20] sm:$0xff] }
 0x3fc   :  { %12455 = vmatprep.subr.bf16.mxu0 %v15850_v6  ;;  %12955 = vmatprep.subr.bf16.mxu1 %v16100_v7  ;;  %v16109_v6 = vcombine.low %v1981_v52, %v1989_v53  ;;  %v15860_v7 = vcombine.high %v1996_v62, %v2004_v2  ;;  %v16110_v10 = vcombine.high %v1997_v4, %v2005_v5  ;;  %v70_v52 = vld [vmem:[#allocation5 + $0x60] sm:$0xff]  ;;  %v63_v53 = vld [vmem:[#allocation5 + $0x28] sm:$0xff] }
 0x3ff   :  { %12457 = vmatpush1.bf16.msra.mxu0 %v15851_v16  ;;  %12957 = vmatpush1.bf16.msra.mxu1 %v16101_v18  ;;  %v2021_v16 = vld [vmem:[#allocation5 + $0x3d58] sm:$0xff]  ;;  %v15861_v18 = vcombine.low %v1996_v62, %v2004_v2  ;;  %v78_v2 = vld [vmem:[#allocation5 + $0xa0] sm:$0xff] }
 0x400   :  { %12459 = vmatprep.subr.bf16.mxu0 %v15852_v19  ;;  %12959 = vmatprep.subr.bf16.mxu1 %v16102_v20  ;;  %v16111_v19 = vcombine.low %v1997_v4, %v2005_v5  ;;  %v15862_v20 = vcombine.high %v2012_v13, %v2020_v14  ;;  %v16112_v21 = vcombine.high %v2013_v15, %v2021_v16  ;;  %v86_v4 = vld [vmem:[#allocation5 + $0xe0] sm:$0xff]  ;;  %v79_v5 = vld [vmem:[#allocation5 + $0xa8] sm:$0xff] }
 0x403   :  { %12461 = vmatpush1.bf16.msra.mxu0 %v15853_v28  ;;  %12961 = vmatpush1.bf16.msra.mxu1 %v16103_v63  ;;  %v2037_v28 = vld [vmem:[#allocation5 + $0x3dd8] sm:$0xff]  ;;  %v15863_v63 = vcombine.low %v2012_v13, %v2020_v14  ;;  %v94_v14 = vld [vmem:[#allocation5 + $0x120] sm:$0xff] }
 0x404   :  { %12463 = vmatprep.subr.bf16.mxu0 %v15854_v30  ;;  %12963 = vmatprep.subr.bf16.mxu1 %v16104_v34  ;;  %v16113_v30 = vcombine.low %v2013_v15, %v2021_v16  ;;  %v15864_v34 = vcombine.high %v2028_v22, %v2036_v23  ;;  %v16114_v35 = vcombine.high %v2029_v26, %v2037_v28  ;;  %v102_v15 = vld [vmem:[#allocation5 + $0x160] sm:$0xff]  ;;  %v95_v16 = vld [vmem:[#allocation5 + $0x128] sm:$0xff] }
 0x407   :  { %12465 = vmatpush1.bf16.msra.mxu0 %v15855_v8  ;;  %12965 = vmatpush1.bf16.msra.mxu1 %v16105_v44  ;;  %v2053_v8 = vld [vmem:[#allocation5 + $0x3e58] sm:$0xff]  ;;  %v15865_v44 = vcombine.low %v2028_v22, %v2036_v23  ;;  %v110_v23 = vld [vmem:[#allocation5 + $0x1a0] sm:$0xff] }
 0x408   :  { %12467 = vmatprep.subr.bf16.mxu0 %v15856_v45  ;;  %12967 = vmatprep.subr.bf16.mxu1 %v16106_v47  ;;  %v16115_v45 = vcombine.low %v2029_v26, %v2037_v28  ;;  %v15866_v47 = vcombine.high %v2044_v39, %v2052_v43  ;;  %v16116_v48 = vcombine.high %v2045_v59, %v2053_v8  ;;  %v118_v26 = vld [vmem:[#allocation5 + $0x1e0] sm:$0xff]  ;;  %v111_v28 = vld [vmem:[#allocation5 + $0x1a8] sm:$0xff] }
 0x40b   :  { %12469 = vmatpush1.bf16.msra.mxu0 %v15857_v54  ;;  %12969 = vmatpush1.bf16.msra.mxu1 %v16107_v57  ;;  %v71_v54 = vld [vmem:[#allocation5 + $0x68] sm:$0xff]  ;;  %v15867_v57 = vcombine.low %v2044_v39, %v2052_v43  ;;  %v126_v43 = vld [vmem:[#allocation5 + $0x220] sm:$0xff] }
 0x40c   :  { %12471 = vmatprep.subr.bf16.mxu0 %v15858_v58  ;;  %12971 = vmatprep.subr.bf16.mxu1 %v16108_v61  ;;  %v16117_v58 = vcombine.low %v2045_v59, %v2053_v8  ;;  %v16118_v61 = vcombine.high %v62_v49, %v70_v52  ;;  %v16368_v62 = vcombine.high %v63_v53, %v71_v54  ;;  %v134_v59 = vld [vmem:[#allocation5 + $0x260] sm:$0xff]  ;;  %v127_v8 = vld [vmem:[#allocation5 + $0x228] sm:$0xff] }
 0x40f   :  { %12473 = vmatpush1.bf16.msra.mxu0 %v15859_v17  ;;  %12973 = vmatpush1.bf16.msra.mxu1 %v16109_v6  ;;  %v87_v17 = vld [vmem:[#allocation5 + $0xe8] sm:$0xff]  ;;  %v16119_v6 = vcombine.low %v62_v49, %v70_v52  ;;  %v142_v52 = vld [vmem:[#allocation5 + $0x2a0] sm:$0xff] }
 0x410   :  { %12475 = vmatprep.subr.bf16.mxu0 %v15860_v7  ;;  %12975 = vmatprep.subr.bf16.mxu1 %v16110_v10  ;;  %v16369_v7 = vcombine.low %v63_v53, %v71_v54  ;;  %v16120_v10 = vcombine.high %v78_v2, %v86_v4  ;;  %v16370_v13 = vcombine.high %v79_v5, %v87_v17  ;;  %v150_v53 = vld [vmem:[#allocation5 + $0x2e0] sm:$0xff]  ;;  %v143_v54 = vld [vmem:[#allocation5 + $0x2a8] sm:$0xff] }
 0x413   :  { %12477 = vmatpush1.bf16.msra.mxu0 %v15861_v18  ;;  %12977 = vmatpush1.bf16.msra.mxu1 %v16111_v19  ;;  %v103_v18 = vld [vmem:[#allocation5 + $0x168] sm:$0xff]  ;;  %v16121_v19 = vcombine.low %v78_v2, %v86_v4  ;;  %v158_v4 = vld [vmem:[#allocation5 + $0x320] sm:$0xff] }
 0x414   :  { %12479 = vmatprep.subr.bf16.mxu0 %v15862_v20  ;;  %12979 = vmatprep.subr.bf16.mxu1 %v16112_v21  ;;  %v16371_v20 = vcombine.low %v79_v5, %v87_v17  ;;  %v16122_v21 = vcombine.high %v94_v14, %v102_v15  ;;  %v16372_v22 = vcombine.high %v95_v16, %v103_v18  ;;  %v166_v5 = vld [vmem:[#allocation5 + $0x360] sm:$0xff]  ;;  %v159_v17 = vld [vmem:[#allocation5 + $0x328] sm:$0xff] }
 0x417   :  { %12481 = vmatpush1.bf16.msra.mxu0 %v15863_v63  ;;  %12981 = vmatpush1.bf16.msra.mxu1 %v16113_v30  ;;  %v119_v63 = vld [vmem:[#allocation5 + $0x1e8] sm:$0xff]  ;;  %v16123_v30 = vcombine.low %v94_v14, %v102_v15  ;;  %v174_v15 = vld [vmem:[#allocation5 + $0x3a0] sm:$0xff] }
 0x418   :  { %12483 = vmatprep.subr.bf16.mxu0 %v15864_v34  ;;  %12983 = vmatprep.subr.bf16.mxu1 %v16114_v35  ;;  %v16373_v34 = vcombine.low %v95_v16, %v103_v18  ;;  %v16124_v35 = vcombine.high %v110_v23, %v118_v26  ;;  %v16374_v39 = vcombine.high %v111_v28, %v119_v63  ;;  %v182_v16 = vld [vmem:[#allocation5 + $0x3e0] sm:$0xff]  ;;  %v175_v18 = vld [vmem:[#allocation5 + $0x3a8] sm:$0xff] }
 0x41b   :  { %12485 = vmatpush1.bf16.msra.mxu0 %v15865_v44  ;;  %12985 = vmatpush1.bf16.msra.mxu1 %v16115_v45  ;;  %v135_v44 = vld [vmem:[#allocation5 + $0x268] sm:$0xff]  ;;  %v16125_v45 = vcombine.low %v110_v23, %v118_v26  ;;  %v190_v26 = vld [vmem:[#allocation5 + $0x420] sm:$0xff] }
 0x41c   :  { %12487 = vmatprep.subr.bf16.mxu0 %v15866_v47  ;;  %12987 = vmatprep.subr.bf16.mxu1 %v16116_v48  ;;  %v16375_v47 = vcombine.low %v111_v28, %v119_v63  ;;  %v16126_v48 = vcombine.high %v126_v43, %v134_v59  ;;  %v16376_v49 = vcombine.high %v127_v8, %v135_v44  ;;  %v198_v28 = vld [vmem:[#allocation5 + $0x460] sm:$0xff]  ;;  %v191_v63 = vld [vmem:[#allocation5 + $0x428] sm:$0xff] }
 0x41f   :  { %12489 = vmatpush1.bf16.msra.mxu0 %v15867_v57  ;;  %12989 = vmatpush1.bf16.msra.mxu1 %v16117_v58  ;;  %v151_v57 = vld [vmem:[#allocation5 + $0x2e8] sm:$0xff]  ;;  %v16127_v58 = vcombine.low %v126_v43, %v134_v59  ;;  %v206_v59 = vld [vmem:[#allocation5 + $0x4a0] sm:$0xff] }
 0x420   :  { %12991 = vmatprep.subr.bf16.mxu0 %v16118_v61  ;;  %13491 = vmatprep.subr.bf16.mxu1 %v16368_v62  ;;  %v16377_v61 = vcombine.low %v127_v8, %v135_v44  ;;  %v16128_v62 = vcombine.high %v142_v52, %v150_v53  ;;  %v16378_v2 = vcombine.high %v143_v54, %v151_v57  ;;  %v214_v8 = vld [vmem:[#allocation5 + $0x4e0] sm:$0xff]  ;;  %v207_v44 = vld [vmem:[#allocation5 + $0x4a8] sm:$0xff] }
 0x422   :  { %7930 = vmatmul.mubr.f32.vlgmr.msra.gmra.mrb[2].mxu0 %v17395_v24  ;;  %8498 = vmatmul.mubr.f32.vlgmr.msra.gmra.mrb[2].mxu1 %v17395_v24 }
 0x423   :  { %12993 = vmatpush1.bf16.msra.mxu0 %v16119_v6  ;;  %13493 = vmatpush1.bf16.msra.mxu1 %v16369_v7  ;;  %v167_v6 = vld [vmem:[#allocation5 + $0x368] sm:$0xff]  ;;  %v16129_v7 = vcombine.low %v142_v52, %v150_v53  ;;  %v222_v53 = vld [vmem:[#allocation5 + $0x520] sm:$0xff] }
 0x424   :  { %12995 = vmatprep.subr.bf16.mxu0 %v16120_v10  ;;  %13495 = vmatprep.subr.bf16.mxu1 %v16370_v13  ;;  %v16379_v10 = vcombine.low %v143_v54, %v151_v57  ;;  %v16130_v13 = vcombine.high %v158_v4, %v166_v5  ;;  %v16380_v14 = vcombine.high %v159_v17, %v167_v6  ;;  %v230_v54 = vld [vmem:[#allocation5 + $0x560] sm:$0xff]  ;;  %v223_v57 = vld [vmem:[#allocation5 + $0x528] sm:$0xff] }
 0x425   :  { %8568 = vmatprep.mubr.f32.mxu0 %v17302_v9  ;;  %9136 = vmatprep.mubr.f32.mxu1 %v17302_v9 }
 0x427   :  { %12997 = vmatpush1.bf16.msra.mxu0 %v16121_v19  ;;  %13497 = vmatpush1.bf16.msra.mxu1 %v16371_v20  ;;  %v183_v19 = vld [vmem:[#allocation5 + $0x3e8] sm:$0xff]  ;;  %v16131_v20 = vcombine.low %v158_v4, %v166_v5  ;;  %v238_v5 = vld [vmem:[#allocation5 + $0x5a0] sm:$0xff] }
 0x428   :  { %12999 = vmatprep.subr.bf16.mxu0 %v16122_v21  ;;  %13499 = vmatprep.subr.bf16.mxu1 %v16372_v22  ;;  %v16381_v21 = vcombine.low %v159_v17, %v167_v6  ;;  %v16132_v22 = vcombine.high %v174_v15, %v182_v16  ;;  %v16382_v23 = vcombine.high %v175_v18, %v183_v19  ;;  %v246_v17 = vld [vmem:[#allocation5 + $0x5e0] sm:$0xff]  ;;  %v239_v6 = vld [vmem:[#allocation5 + $0x5a8] sm:$0xff] }
 0x42b   :  { %13001 = vmatpush1.bf16.msra.mxu0 %v16123_v30  ;;  %13501 = vmatpush1.bf16.msra.mxu1 %v16373_v34  ;;  %v199_v30 = vld [vmem:[#allocation5 + $0x468] sm:$0xff]  ;;  %v16133_v34 = vcombine.low %v174_v15, %v182_v16  ;;  %v254_v16 = vld [vmem:[#allocation5 + $0x620] sm:$0xff] }
 0x42c   :  { %13003 = vmatprep.subr.bf16.mxu0 %v16124_v35  ;;  %13503 = vmatprep.subr.bf16.mxu1 %v16374_v39  ;;  %v16383_v35 = vcombine.low %v175_v18, %v183_v19  ;;  %v16134_v39 = vcombine.high %v190_v26, %v198_v28  ;;  %v16384_v43 = vcombine.high %v191_v63, %v199_v30  ;;  %v262_v18 = vld [vmem:[#allocation5 + $0x660] sm:$0xff]  ;;  %v255_v19 = vld [vmem:[#allocation5 + $0x628] sm:$0xff] }
 0x42f   :  { %13005 = vmatpush1.bf16.msra.mxu0 %v16125_v45  ;;  %13505 = vmatpush1.bf16.msra.mxu1 %v16375_v47  ;;  %v215_v45 = vld [vmem:[#allocation5 + $0x4e8] sm:$0xff]  ;;  %v16135_v47 = vcombine.low %v190_v26, %v198_v28  ;;  %v270_v28 = vld [vmem:[#allocation5 + $0x6a0] sm:$0xff] }
 0x430   :  { %13007 = vmatprep.subr.bf16.mxu0 %v16126_v48  ;;  %13507 = vmatprep.subr.bf16.mxu1 %v16376_v49  ;;  %v16385_v48 = vcombine.low %v191_v63, %v199_v30  ;;  %v16136_v49 = vcombine.high %v206_v59, %v214_v8  ;;  %v16386_v52 = vcombine.high %v207_v44, %v215_v45  ;;  %v278_v63 = vld [vmem:[#allocation5 + $0x6e0] sm:$0xff]  ;;  %v271_v30 = vld [vmem:[#allocation5 + $0x6a8] sm:$0xff] }
 0x433   :  { %13009 = vmatpush1.bf16.msra.mxu0 %v16127_v58  ;;  %13509 = vmatpush1.bf16.msra.mxu1 %v16377_v61  ;;  %v231_v58 = vld [vmem:[#allocation5 + $0x568] sm:$0xff]  ;;  %v16137_v61 = vcombine.low %v206_v59, %v214_v8  ;;  %v286_v8 = vld [vmem:[#allocation5 + $0x720] sm:$0xff] }
 0x434   :  { %13011 = vmatprep.subr.bf16.mxu0 %v16128_v62  ;;  %13511 = vmatprep.subr.bf16.mxu1 %v16378_v2  ;;  %v16387_v62 = vcombine.low %v207_v44, %v215_v45  ;;  %v16138_v2 = vcombine.high %v222_v53, %v230_v54  ;;  %v16388_v4 = vcombine.high %v223_v57, %v231_v58  ;;  %v294_v44 = vld [vmem:[#allocation5 + $0x760] sm:$0xff]  ;;  %v287_v45 = vld [vmem:[#allocation5 + $0x728] sm:$0xff] }
 0x437   :  { %13013 = vmatpush1.bf16.msra.mxu0 %v16129_v7  ;;  %13513 = vmatpush1.bf16.msra.mxu1 %v16379_v10  ;;  %v247_v7 = vld [vmem:[#allocation5 + $0x5e8] sm:$0xff]  ;;  %v16139_v10 = vcombine.low %v222_v53, %v230_v54  ;;  %v302_v54 = vld [vmem:[#allocation5 + $0x7a0] sm:$0xff] }
 0x438   :  { %13015 = vmatprep.subr.bf16.mxu0 %v16130_v13  ;;  %13515 = vmatprep.subr.bf16.mxu1 %v16380_v14  ;;  %v16389_v13 = vcombine.low %v223_v57, %v231_v58  ;;  %v16140_v14 = vcombine.high %v238_v5, %v246_v17  ;;  %v16390_v15 = vcombine.high %v239_v6, %v247_v7  ;;  %v310_v57 = vld [vmem:[#allocation5 + $0x7e0] sm:$0xff]  ;;  %v303_v58 = vld [vmem:[#allocation5 + $0x7a8] sm:$0xff] }
 0x43b   :  { %13017 = vmatpush1.bf16.msra.mxu0 %v16131_v20  ;;  %13517 = vmatpush1.bf16.msra.mxu1 %v16381_v21  ;;  %v263_v20 = vld [vmem:[#allocation5 + $0x668] sm:$0xff]  ;;  %v16141_v21 = vcombine.low %v238_v5, %v246_v17  ;;  %v318_v17 = vld [vmem:[#allocation5 + $0x820] sm:$0xff] }
 0x43c   :  { %13019 = vmatprep.subr.bf16.mxu0 %v16132_v22  ;;  %13519 = vmatprep.subr.bf16.mxu1 %v16382_v23  ;;  %v16391_v22 = vcombine.low %v239_v6, %v247_v7  ;;  %v16142_v23 = vcombine.high %v254_v16, %v262_v18  ;;  %v16392_v26 = vcombine.high %v255_v19, %v263_v20  ;;  %v326_v6 = vld [vmem:[#allocation5 + $0x860] sm:$0xff]  ;;  %v319_v7 = vld [vmem:[#allocation5 + $0x828] sm:$0xff] }
 0x43f   :  { %13021 = vmatpush1.bf16.msra.mxu0 %v16133_v34  ;;  %13521 = vmatpush1.bf16.msra.mxu1 %v16383_v35  ;;  %v279_v34 = vld [vmem:[#allocation5 + $0x6e8] sm:$0xff]  ;;  %v16143_v35 = vcombine.low %v254_v16, %v262_v18  ;;  %v334_v18 = vld [vmem:[#allocation5 + $0x8a0] sm:$0xff] }
 0x440   :  { %13023 = vmatprep.subr.bf16.mxu0 %v16134_v39  ;;  %13523 = vmatprep.subr.bf16.mxu1 %v16384_v43  ;;  %v16393_v39 = vcombine.low %v255_v19, %v263_v20  ;;  %v16144_v43 = vcombine.high %v270_v28, %v278_v63  ;;  %v16394_v59 = vcombine.high %v271_v30, %v279_v34  ;;  %v342_v19 = vld [vmem:[#allocation5 + $0x8e0] sm:$0xff]  ;;  %v335_v20 = vld [vmem:[#allocation5 + $0x8a8] sm:$0xff] }
 0x443   :  { %13025 = vmatpush1.bf16.msra.mxu0 %v16135_v47  ;;  %13525 = vmatpush1.bf16.msra.mxu1 %v16385_v48  ;;  %v295_v47 = vld [vmem:[#allocation5 + $0x768] sm:$0xff]  ;;  %v16145_v48 = vcombine.low %v270_v28, %v278_v63  ;;  %v350_v63 = vld [vmem:[#allocation5 + $0x920] sm:$0xff] }
 0x444   :  { %13027 = vmatprep.subr.bf16.mxu0 %v16136_v49  ;;  %13527 = vmatprep.subr.bf16.mxu1 %v16386_v52  ;;  %v16395_v49 = vcombine.low %v271_v30, %v279_v34  ;;  %v16146_v52 = vcombine.high %v286_v8, %v294_v44  ;;  %v16396_v53 = vcombine.high %v287_v45, %v295_v47  ;;  %v358_v30 = vld [vmem:[#allocation5 + $0x960] sm:$0xff]  ;;  %v351_v34 = vld [vmem:[#allocation5 + $0x928] sm:$0xff] }
 0x447   :  { %13029 = vmatpush1.bf16.msra.mxu0 %v16137_v61  ;;  %13529 = vmatpush1.bf16.msra.mxu1 %v16387_v62  ;;  %v311_v61 = vld [vmem:[#allocation5 + $0x7e8] sm:$0xff]  ;;  %v16147_v62 = vcombine.low %v286_v8, %v294_v44  ;;  %v366_v44 = vld [vmem:[#allocation5 + $0x9a0] sm:$0xff] }
 0x448   :  { %13031 = vmatprep.subr.bf16.mxu0 %v16138_v2  ;;  %13531 = vmatprep.subr.bf16.mxu1 %v16388_v4  ;;  %v16397_v2 = vcombine.low %v287_v45, %v295_v47  ;;  %v16148_v4 = vcombine.high %v302_v54, %v310_v57  ;;  %v16398_v5 = vcombine.high %v303_v58, %v311_v61  ;;  %v374_v45 = vld [vmem:[#allocation5 + $0x9e0] sm:$0xff]  ;;  %v367_v47 = vld [vmem:[#allocation5 + $0x9a8] sm:$0xff] }
 0x44b   :  { %13033 = vmatpush1.bf16.msra.mxu0 %v16139_v10  ;;  %13533 = vmatpush1.bf16.msra.mxu1 %v16389_v13  ;;  %v327_v10 = vld [vmem:[#allocation5 + $0x868] sm:$0xff]  ;;  %v16149_v13 = vcombine.low %v302_v54, %v310_v57  ;;  %v382_v57 = vld [vmem:[#allocation5 + $0xa20] sm:$0xff] }
 0x44c   :  { %13035 = vmatprep.subr.bf16.mxu0 %v16140_v14  ;;  %13535 = vmatprep.subr.bf16.mxu1 %v16390_v15  ;;  %v16399_v14 = vcombine.low %v303_v58, %v311_v61  ;;  %v16150_v15 = vcombine.high %v318_v17, %v326_v6  ;;  %v16400_v16 = vcombine.high %v319_v7, %v327_v10  ;;  %v390_v58 = vld [vmem:[#allocation5 + $0xa60] sm:$0xff]  ;;  %v383_v61 = vld [vmem:[#allocation5 + $0xa28] sm:$0xff] }
 0x44f   :  { %13037 = vmatpush1.bf16.msra.mxu0 %v16141_v21  ;;  %13537 = vmatpush1.bf16.msra.mxu1 %v16391_v22  ;;  %v343_v21 = vld [vmem:[#allocation5 + $0x8e8] sm:$0xff]  ;;  %v16151_v22 = vcombine.low %v318_v17, %v326_v6  ;;  %v398_v6 = vld [vmem:[#allocation5 + $0xaa0] sm:$0xff] }
 0x450   :  { %13039 = vmatprep.subr.bf16.mxu0 %v16142_v23  ;;  %13539 = vmatprep.subr.bf16.mxu1 %v16392_v26  ;;  %v16401_v23 = vcombine.low %v319_v7, %v327_v10  ;;  %v16152_v26 = vcombine.high %v334_v18, %v342_v19  ;;  %v16402_v28 = vcombine.high %v335_v20, %v343_v21  ;;  %v406_v7 = vld [vmem:[#allocation5 + $0xae0] sm:$0xff]  ;;  %v399_v10 = vld [vmem:[#allocation5 + $0xaa8] sm:$0xff] }
 0x453   :  { %13041 = vmatpush1.bf16.msra.mxu0 %v16143_v35  ;;  %13541 = vmatpush1.bf16.msra.mxu1 %v16393_v39  ;;  %v359_v35 = vld [vmem:[#allocation5 + $0x968] sm:$0xff]  ;;  %v16153_v39 = vcombine.low %v334_v18, %v342_v19  ;;  %v414_v19 = vld [vmem:[#allocation5 + $0xb20] sm:$0xff] }
 0x454   :  { %13043 = vmatprep.subr.bf16.mxu0 %v16144_v43  ;;  %13543 = vmatprep.subr.bf16.mxu1 %v16394_v59  ;;  %v16403_v43 = vcombine.low %v335_v20, %v343_v21  ;;  %v16154_v59 = vcombine.high %v350_v63, %v358_v30  ;;  %v16404_v8 = vcombine.high %v351_v34, %v359_v35  ;;  %v422_v20 = vld [vmem:[#allocation5 + $0xb60] sm:$0xff]  ;;  %v415_v21 = vld [vmem:[#allocation5 + $0xb28] sm:$0xff] }
 0x457   :  { %13045 = vmatpush1.bf16.msra.mxu0 %v16145_v48  ;;  %13545 = vmatpush1.bf16.msra.mxu1 %v16395_v49  ;;  %v375_v48 = vld [vmem:[#allocation5 + $0x9e8] sm:$0xff]  ;;  %v16155_v49 = vcombine.low %v350_v63, %v358_v30  ;;  %v430_v30 = vld [vmem:[#allocation5 + $0xba0] sm:$0xff] }
 0x458   :  { %13047 = vmatprep.subr.bf16.mxu0 %v16146_v52  ;;  %13547 = vmatprep.subr.bf16.mxu1 %v16396_v53  ;;  %v16405_v52 = vcombine.low %v351_v34, %v359_v35  ;;  %v16156_v53 = vcombine.high %v366_v44, %v374_v45  ;;  %v16406_v54 = vcombine.high %v367_v47, %v375_v48  ;;  %v438_v34 = vld [vmem:[#allocation5 + $0xbe0] sm:$0xff]  ;;  %v431_v35 = vld [vmem:[#allocation5 + $0xba8] sm:$0xff] }
 0x45b   :  { %13049 = vmatpush1.bf16.msra.mxu0 %v16147_v62  ;;  %13549 = vmatpush1.bf16.msra.mxu1 %v16397_v2  ;;  %v391_v62 = vld [vmem:[#allocation5 + $0xa68] sm:$0xff]  ;;  %v16157_v2 = vcombine.low %v366_v44, %v374_v45  ;;  %v446_v45 = vld [vmem:[#allocation5 + $0xc20] sm:$0xff] }
 0x45c   :  { %13051 = vmatprep.subr.bf16.mxu0 %v16148_v4  ;;  %13551 = vmatprep.subr.bf16.mxu1 %v16398_v5  ;;  %v16407_v4 = vcombine.low %v367_v47, %v375_v48  ;;  %v16158_v5 = vcombine.high %v382_v57, %v390_v58  ;;  %v16408_v17 = vcombine.high %v383_v61, %v391_v62  ;;  %v454_v47 = vld [vmem:[#allocation5 + $0xc60] sm:$0xff]  ;;  %v447_v48 = vld [vmem:[#allocation5 + $0xc28] sm:$0xff] }
 0x45f   :  { %13053 = vmatpush1.bf16.msra.mxu0 %v16149_v13  ;;  %13553 = vmatpush1.bf16.msra.mxu1 %v16399_v14  ;;  %v407_v13 = vld [vmem:[#allocation5 + $0xae8] sm:$0xff]  ;;  %v16159_v14 = vcombine.low %v382_v57, %v390_v58  ;;  %v462_v58 = vld [vmem:[#allocation5 + $0xca0] sm:$0xff] }
 0x460   :  { %13055 = vmatprep.subr.bf16.mxu0 %v16150_v15  ;;  %13555 = vmatprep.subr.bf16.mxu1 %v16400_v16  ;;  %v16409_v15 = vcombine.low %v383_v61, %v391_v62  ;;  %v16160_v16 = vcombine.high %v398_v6, %v406_v7  ;;  %v16410_v18 = vcombine.high %v399_v10, %v407_v13  ;;  %v470_v61 = vld [vmem:[#allocation5 + $0xce0] sm:$0xff]  ;;  %v463_v62 = vld [vmem:[#allocation5 + $0xca8] sm:$0xff] }
 0x462   :  { %8569 = vmatmul.mubr.f32.vlgmr.msra.gmra.mrb[4].mxu0 %v17298_v3  ;;  %9137 = vmatmul.mubr.f32.vlgmr.msra.gmra.mrb[4].mxu1 %v17298_v3 }
 0x463   :  { %13057 = vmatpush1.bf16.msra.mxu0 %v16151_v22  ;;  %13557 = vmatpush1.bf16.msra.mxu1 %v16401_v23  ;;  %v423_v22 = vld [vmem:[#allocation5 + $0xb68] sm:$0xff]  ;;  %v16161_v23 = vcombine.low %v398_v6, %v406_v7  ;;  %v478_v7 = vld [vmem:[#allocation5 + $0xd20] sm:$0xff] }
 0x464   :  { %13059 = vmatprep.subr.bf16.mxu0 %v16152_v26  ;;  %13559 = vmatprep.subr.bf16.mxu1 %v16402_v28  ;;  %v16411_v26 = vcombine.low %v399_v10, %v407_v13  ;;  %v16162_v28 = vcombine.high %v414_v19, %v422_v20  ;;  %v16412_v63 = vcombine.high %v415_v21, %v423_v22  ;;  %v486_v10 = vld [vmem:[#allocation5 + $0xd60] sm:$0xff]  ;;  %v479_v13 = vld [vmem:[#allocation5 + $0xd28] sm:$0xff] }
 0x465   :  { %8639 = vmatprep.mubr.f32.mxu0 %v17313_v33  ;;  %9207 = vmatprep.mubr.f32.mxu1 %v17313_v33 }
 0x467   :  { %13061 = vmatpush1.bf16.msra.mxu0 %v16153_v39  ;;  %13561 = vmatpush1.bf16.msra.mxu1 %v16403_v43  ;;  %v439_v39 = vld [vmem:[#allocation5 + $0xbe8] sm:$0xff]  ;;  %v16163_v43 = vcombine.low %v414_v19, %v422_v20  ;;  %v494_v20 = vld [vmem:[#allocation5 + $0xda0] sm:$0xff] }
 0x468   :  { %13063 = vmatprep.subr.bf16.mxu0 %v16154_v59  ;;  %13563 = vmatprep.subr.bf16.mxu1 %v16404_v8  ;;  %v16413_v59 = vcombine.low %v415_v21, %v423_v22  ;;  %v16164_v8 = vcombine.high %v430_v30, %v438_v34  ;;  %v16414_v44 = vcombine.high %v431_v35, %v439_v39  ;;  %v502_v21 = vld [vmem:[#allocation5 + $0xde0] sm:$0xff]  ;;  %v495_v22 = vld [vmem:[#allocation5 + $0xda8] sm:$0xff] }
 0x46b   :  { %13065 = vmatpush1.bf16.msra.mxu0 %v16155_v49  ;;  %13565 = vmatpush1.bf16.msra.mxu1 %v16405_v52  ;;  %v455_v49 = vld [vmem:[#allocation5 + $0xc68] sm:$0xff]  ;;  %v16165_v52 = vcombine.low %v430_v30, %v438_v34  ;;  %v510_v34 = vld [vmem:[#allocation5 + $0xe20] sm:$0xff] }
 0x46c   :  { %13067 = vmatprep.subr.bf16.mxu0 %v16156_v53  ;;  %13567 = vmatprep.subr.bf16.mxu1 %v16406_v54  ;;  %v16415_v53 = vcombine.low %v431_v35, %v439_v39  ;;  %v16166_v54 = vcombine.high %v446_v45, %v454_v47  ;;  %v16416_v57 = vcombine.high %v447_v48, %v455_v49  ;;  %v518_v35 = vld [vmem:[#allocation5 + $0xe60] sm:$0xff]  ;;  %v511_v39 = vld [vmem:[#allocation5 + $0xe28] sm:$0xff] }
 0x46f   :  { %13069 = vmatpush1.bf16.msra.mxu0 %v16157_v2  ;;  %13569 = vmatpush1.bf16.msra.mxu1 %v16407_v4  ;;  %v471_v2 = vld [vmem:[#allocation5 + $0xce8] sm:$0xff]  ;;  %v16167_v4 = vcombine.low %v446_v45, %v454_v47  ;;  %v526_v47 = vld [vmem:[#allocation5 + $0xea0] sm:$0xff] }
 0x470   :  { %13071 = vmatprep.subr.bf16.mxu0 %v16158_v5  ;;  %13571 = vmatprep.subr.bf16.mxu1 %v16408_v17  ;;  %v16417_v5 = vcombine.low %v447_v48, %v455_v49  ;;  %v16168_v17 = vcombine.high %v462_v58, %v470_v61  ;;  %v16418_v6 = vcombine.high %v463_v62, %v471_v2  ;;  %v534_v48 = vld [vmem:[#allocation5 + $0xee0] sm:$0xff]  ;;  %v527_v49 = vld [vmem:[#allocation5 + $0xea8] sm:$0xff] }
 0x473   :  { %13073 = vmatpush1.bf16.msra.mxu0 %v16159_v14  ;;  %13573 = vmatpush1.bf16.msra.mxu1 %v16409_v15  ;;  %v487_v14 = vld [vmem:[#allocation5 + $0xd68] sm:$0xff]  ;;  %v16169_v15 = vcombine.low %v462_v58, %v470_v61  ;;  %v542_v61 = vld [vmem:[#allocation5 + $0xf20] sm:$0xff] }
 0x474   :  { %13075 = vmatprep.subr.bf16.mxu0 %v16160_v16  ;;  %13575 = vmatprep.subr.bf16.mxu1 %v16410_v18  ;;  %v16419_v16 = vcombine.low %v463_v62, %v471_v2  ;;  %v16170_v18 = vcombine.high %v478_v7, %v486_v10  ;;  %v16420_v19 = vcombine.high %v479_v13, %v487_v14  ;;  %v550_v62 = vld [vmem:[#allocation5 + $0xf60] sm:$0xff]  ;;  %v543_v2 = vld [vmem:[#allocation5 + $0xf28] sm:$0xff] }
 0x477   :  { %13077 = vmatpush1.bf16.msra.mxu0 %v16161_v23  ;;  %13577 = vmatpush1.bf16.msra.mxu1 %v16411_v26  ;;  %v503_v23 = vld [vmem:[#allocation5 + $0xde8] sm:$0xff]  ;;  %v16171_v26 = vcombine.low %v478_v7, %v486_v10  ;;  %v558_v10 = vld [vmem:[#allocation5 + $0xfa0] sm:$0xff] }
 0x478   :  { %13079 = vmatprep.subr.bf16.mxu0 %v16162_v28  ;;  %13579 = vmatprep.subr.bf16.mxu1 %v16412_v63  ;;  %v16421_v28 = vcombine.low %v479_v13, %v487_v14  ;;  %v16172_v63 = vcombine.high %v494_v20, %v502_v21  ;;  %v16422_v30 = vcombine.high %v495_v22, %v503_v23  ;;  %v566_v13 = vld [vmem:[#allocation5 + $0xfe0] sm:$0xff]  ;;  %v559_v14 = vld [vmem:[#allocation5 + $0xfa8] sm:$0xff] }
 0x47b   :  { %13081 = vmatpush1.bf16.msra.mxu0 %v16163_v43  ;;  %13581 = vmatpush1.bf16.msra.mxu1 %v16413_v59  ;;  %v519_v43 = vld [vmem:[#allocation5 + $0xe68] sm:$0xff]  ;;  %v16173_v59 = vcombine.low %v494_v20, %v502_v21  ;;  %v574_v21 = vld [vmem:[#allocation5 + $0x1020] sm:$0xff] }
 0x47c   :  { %13083 = vmatprep.subr.bf16.mxu0 %v16164_v8  ;;  %13583 = vmatprep.subr.bf16.mxu1 %v16414_v44  ;;  %v16423_v8 = vcombine.low %v495_v22, %v503_v23  ;;  %v16174_v44 = vcombine.high %v510_v34, %v518_v35  ;;  %v16424_v45 = vcombine.high %v511_v39, %v519_v43  ;;  %v582_v22 = vld [vmem:[#allocation5 + $0x1060] sm:$0xff]  ;;  %v575_v23 = vld [vmem:[#allocation5 + $0x1028] sm:$0xff] }
 0x47f   :  { %13085 = vmatpush1.bf16.msra.mxu0 %v16165_v52  ;;  %13585 = vmatpush1.bf16.msra.mxu1 %v16415_v53  ;;  %v535_v52 = vld [vmem:[#allocation5 + $0xee8] sm:$0xff]  ;;  %v16175_v53 = vcombine.low %v510_v34, %v518_v35  ;;  %v590_v35 = vld [vmem:[#allocation5 + $0x10a0] sm:$0xff] }
 0x480   :  { %13087 = vmatprep.subr.bf16.mxu0 %v16166_v54  ;;  %13587 = vmatprep.subr.bf16.mxu1 %v16416_v57  ;;  %v16425_v54 = vcombine.low %v511_v39, %v519_v43  ;;  %v16176_v57 = vcombine.high %v526_v47, %v534_v48  ;;  %v16426_v58 = vcombine.high %v527_v49, %v535_v52  ;;  %v598_v39 = vld [vmem:[#allocation5 + $0x10e0] sm:$0xff]  ;;  %v591_v43 = vld [vmem:[#allocation5 + $0x10a8] sm:$0xff] }
 0x483   :  { %13089 = vmatpush1.bf16.msra.mxu0 %v16167_v4  ;;  %13589 = vmatpush1.bf16.msra.mxu1 %v16417_v5  ;;  %v551_v4 = vld [vmem:[#allocation5 + $0xf68] sm:$0xff]  ;;  %v16177_v5 = vcombine.low %v526_v47, %v534_v48  ;;  %v606_v48 = vld [vmem:[#allocation5 + $0x1120] sm:$0xff] }
 0x484   :  { %13091 = vmatprep.subr.bf16.mxu0 %v16168_v17  ;;  %13591 = vmatprep.subr.bf16.mxu1 %v16418_v6  ;;  %v16427_v17 = vcombine.low %v527_v49, %v535_v52  ;;  %v16178_v6 = vcombine.high %v542_v61, %v550_v62  ;;  %v16428_v7 = vcombine.high %v543_v2, %v551_v4  ;;  %v614_v49 = vld [vmem:[#allocation5 + $0x1160] sm:$0xff]  ;;  %v607_v52 = vld [vmem:[#allocation5 + $0x1128] sm:$0xff] }
 0x487   :  { %13093 = vmatpush1.bf16.msra.mxu0 %v16169_v15  ;;  %13593 = vmatpush1.bf16.msra.mxu1 %v16419_v16  ;;  %v567_v15 = vld [vmem:[#allocation5 + $0xfe8] sm:$0xff]  ;;  %v16179_v16 = vcombine.low %v542_v61, %v550_v62  ;;  %v622_v62 = vld [vmem:[#allocation5 + $0x11a0] sm:$0xff] }
 0x488   :  { %13095 = vmatprep.subr.bf16.mxu0 %v16170_v18  ;;  %13595 = vmatprep.subr.bf16.mxu1 %v16420_v19  ;;  %v16429_v18 = vcombine.low %v543_v2, %v551_v4  ;;  %v16180_v19 = vcombine.high %v558_v10, %v566_v13  ;;  %v16430_v20 = vcombine.high %v559_v14, %v567_v15  ;;  %v630_v2 = vld [vmem:[#allocation5 + $0x11e0] sm:$0xff]  ;;  %v623_v4 = vld [vmem:[#allocation5 + $0x11a8] sm:$0xff] }
 0x48b   :  { %13097 = vmatpush1.bf16.msra.mxu0 %v16171_v26  ;;  %13597 = vmatpush1.bf16.msra.mxu1 %v16421_v28  ;;  %v583_v26 = vld [vmem:[#allocation5 + $0x1068] sm:$0xff]  ;;  %v16181_v28 = vcombine.low %v558_v10, %v566_v13  ;;  %v638_v13 = vld [vmem:[#allocation5 + $0x1220] sm:$0xff] }
 0x48c   :  { %13099 = vmatprep.subr.bf16.mxu0 %v16172_v63  ;;  %13599 = vmatprep.subr.bf16.mxu1 %v16422_v30  ;;  %v16431_v63 = vcombine.low %v559_v14, %v567_v15  ;;  %v16182_v30 = vcombine.high %v574_v21, %v582_v22  ;;  %v16432_v34 = vcombine.high %v575_v23, %v583_v26  ;;  %v646_v14 = vld [vmem:[#allocation5 + $0x1260] sm:$0xff]  ;;  %v639_v15 = vld [vmem:[#allocation5 + $0x1228] sm:$0xff] }
 0x48f   :  { %13101 = vmatpush1.bf16.msra.mxu0 %v16173_v59  ;;  %13601 = vmatpush1.bf16.msra.mxu1 %v16423_v8  ;;  %v599_v59 = vld [vmem:[#allocation5 + $0x10e8] sm:$0xff]  ;;  %v16183_v8 = vcombine.low %v574_v21, %v582_v22  ;;  %v654_v22 = vld [vmem:[#allocation5 + $0x12a0] sm:$0xff] }
 0x490   :  { %13103 = vmatprep.subr.bf16.mxu0 %v16174_v44  ;;  %13603 = vmatprep.subr.bf16.mxu1 %v16424_v45  ;;  %v16433_v44 = vcombine.low %v575_v23, %v583_v26  ;;  %v16184_v45 = vcombine.high %v590_v35, %v598_v39  ;;  %v16434_v47 = vcombine.high %v591_v43, %v599_v59  ;;  %v662_v23 = vld [vmem:[#allocation5 + $0x12e0] sm:$0xff]  ;;  %v655_v26 = vld [vmem:[#allocation5 + $0x12a8] sm:$0xff] }
 0x493   :  { %13105 = vmatpush1.bf16.msra.mxu0 %v16175_v53  ;;  %13605 = vmatpush1.bf16.msra.mxu1 %v16425_v54  ;;  %v615_v53 = vld [vmem:[#allocation5 + $0x1168] sm:$0xff]  ;;  %v16185_v54 = vcombine.low %v590_v35, %v598_v39  ;;  %v670_v39 = vld [vmem:[#allocation5 + $0x1320] sm:$0xff] }
 0x494   :  { %13107 = vmatprep.subr.bf16.mxu0 %v16176_v57  ;;  %13607 = vmatprep.subr.bf16.mxu1 %v16426_v58  ;;  %v16435_v57 = vcombine.low %v591_v43, %v599_v59  ;;  %v16186_v58 = vcombine.high %v606_v48, %v614_v49  ;;  %v16436_v61 = vcombine.high %v607_v52, %v615_v53  ;;  %v678_v43 = vld [vmem:[#allocation5 + $0x1360] sm:$0xff]  ;;  %v671_v59 = vld [vmem:[#allocation5 + $0x1328] sm:$0xff] }
 0x497   :  { %13109 = vmatpush1.bf16.msra.mxu0 %v16177_v5  ;;  %13609 = vmatpush1.bf16.msra.mxu1 %v16427_v17  ;;  %v631_v5 = vld [vmem:[#allocation5 + $0x11e8] sm:$0xff]  ;;  %v16187_v17 = vcombine.low %v606_v48, %v614_v49  ;;  %v686_v49 = vld [vmem:[#allocation5 + $0x13a0] sm:$0xff] }
 0x498   :  { %13111 = vmatprep.subr.bf16.mxu0 %v16178_v6  ;;  %13611 = vmatprep.subr.bf16.mxu1 %v16428_v7  ;;  %v16437_v6 = vcombine.low %v607_v52, %v615_v53  ;;  %v16188_v7 = vcombine.high %v622_v62, %v630_v2  ;;  %v16438_v10 = vcombine.high %v623_v4, %v631_v5  ;;  %v694_v52 = vld [vmem:[#allocation5 + $0x13e0] sm:$0xff]  ;;  %v687_v53 = vld [vmem:[#allocation5 + $0x13a8] sm:$0xff] }
 0x49b   :  { %13113 = vmatpush1.bf16.msra.mxu0 %v16179_v16  ;;  %13613 = vmatpush1.bf16.msra.mxu1 %v16429_v18  ;;  %v647_v16 = vld [vmem:[#allocation5 + $0x1268] sm:$0xff]  ;;  %v16189_v18 = vcombine.low %v622_v62, %v630_v2  ;;  %v702_v2 = vld [vmem:[#allocation5 + $0x1420] sm:$0xff] }
 0x49c   :  { %13115 = vmatprep.subr.bf16.mxu0 %v16180_v19  ;;  %13615 = vmatprep.subr.bf16.mxu1 %v16430_v20  ;;  %v16439_v19 = vcombine.low %v623_v4, %v631_v5  ;;  %v16190_v20 = vcombine.high %v638_v13, %v646_v14  ;;  %v16440_v21 = vcombine.high %v639_v15, %v647_v16  ;;  %v710_v4 = vld [vmem:[#allocation5 + $0x1460] sm:$0xff]  ;;  %v703_v5 = vld [vmem:[#allocation5 + $0x1428] sm:$0xff] }
 0x49f   :  { %13117 = vmatpush1.bf16.msra.mxu0 %v16181_v28  ;;  %13617 = vmatpush1.bf16.msra.mxu1 %v16431_v63  ;;  %v663_v28 = vld [vmem:[#allocation5 + $0x12e8] sm:$0xff]  ;;  %v16191_v63 = vcombine.low %v638_v13, %v646_v14  ;;  %v718_v14 = vld [vmem:[#allocation5 + $0x14a0] sm:$0xff] }
 0x4a0   :  { %13119 = vmatprep.subr.bf16.mxu0 %v16182_v30  ;;  %13619 = vmatprep.subr.bf16.mxu1 %v16432_v34  ;;  %v16441_v30 = vcombine.low %v639_v15, %v647_v16  ;;  %v16192_v34 = vcombine.high %v654_v22, %v662_v23  ;;  %v16442_v35 = vcombine.high %v655_v26, %v663_v28  ;;  %v726_v15 = vld [vmem:[#allocation5 + $0x14e0] sm:$0xff]  ;;  %v719_v16 = vld [vmem:[#allocation5 + $0x14a8] sm:$0xff] }
 0x4a2   :  { %8640 = vmatmul.mubr.f32.vlgmr.msra.gmra.mrb[4].mxu0 %v17309_v25  ;;  %9208 = vmatmul.mubr.f32.vlgmr.msra.gmra.mrb[4].mxu1 %v17309_v25 }
 0x4a3   :  { %13121 = vmatpush1.bf16.msra.mxu0 %v16183_v8  ;;  %13621 = vmatpush1.bf16.msra.mxu1 %v16433_v44  ;;  %v679_v8 = vld [vmem:[#allocation5 + $0x1368] sm:$0xff]  ;;  %v16193_v44 = vcombine.low %v654_v22, %v662_v23  ;;  %v734_v23 = vld [vmem:[#allocation5 + $0x1520] sm:$0xff] }
 0x4a4   :  { %13123 = vmatprep.subr.bf16.mxu0 %v16184_v45  ;;  %13623 = vmatprep.subr.bf16.mxu1 %v16434_v47  ;;  %v16443_v45 = vcombine.low %v655_v26, %v663_v28  ;;  %v16194_v47 = vcombine.high %v670_v39, %v678_v43  ;;  %v16444_v48 = vcombine.high %v671_v59, %v679_v8  ;;  %v742_v26 = vld [vmem:[#allocation5 + $0x1560] sm:$0xff]  ;;  %v735_v28 = vld [vmem:[#allocation5 + $0x1528] sm:$0xff] }
 0x4a5   :  { %8710 = vmatprep.mubr.f32.mxu0 %v17328_v50  ;;  %9278 = vmatprep.mubr.f32.mxu1 %v17328_v50 }
 0x4a7   :  { %13125 = vmatpush1.bf16.msra.mxu0 %v16185_v54  ;;  %13625 = vmatpush1.bf16.msra.mxu1 %v16435_v57  ;;  %v695_v54 = vld [vmem:[#allocation5 + $0x13e8] sm:$0xff]  ;;  %v16195_v57 = vcombine.low %v670_v39, %v678_v43  ;;  %v750_v43 = vld [vmem:[#allocation5 + $0x15a0] sm:$0xff] }
 0x4a8   :  { %13127 = vmatprep.subr.bf16.mxu0 %v16186_v58  ;;  %13627 = vmatprep.subr.bf16.mxu1 %v16436_v61  ;;  %v16445_v58 = vcombine.low %v671_v59, %v679_v8  ;;  %v16196_v61 = vcombine.high %v686_v49, %v694_v52  ;;  %v16446_v62 = vcombine.high %v687_v53, %v695_v54  ;;  %v758_v59 = vld [vmem:[#allocation5 + $0x15e0] sm:$0xff]  ;;  %v751_v8 = vld [vmem:[#allocation5 + $0x15a8] sm:$0xff] }
 0x4ab   :  { %13129 = vmatpush1.bf16.msra.mxu0 %v16187_v17  ;;  %13629 = vmatpush1.bf16.msra.mxu1 %v16437_v6  ;;  %v711_v17 = vld [vmem:[#allocation5 + $0x1468] sm:$0xff]  ;;  %v16197_v6 = vcombine.low %v686_v49, %v694_v52  ;;  %v766_v52 = vld [vmem:[#allocation5 + $0x1620] sm:$0xff] }
 0x4ac   :  { %13131 = vmatprep.subr.bf16.mxu0 %v16188_v7  ;;  %13631 = vmatprep.subr.bf16.mxu1 %v16438_v10  ;;  %v16447_v7 = vcombine.low %v687_v53, %v695_v54  ;;  %v16198_v10 = vcombine.high %v702_v2, %v710_v4  ;;  %v16448_v13 = vcombine.high %v703_v5, %v711_v17  ;;  %v774_v53 = vld [vmem:[#allocation5 + $0x1660] sm:$0xff]  ;;  %v767_v54 = vld [vmem:[#allocation5 + $0x1628] sm:$0xff] }
 0x4af   :  { %13133 = vmatpush1.bf16.msra.mxu0 %v16189_v18  ;;  %13633 = vmatpush1.bf16.msra.mxu1 %v16439_v19  ;;  %v727_v18 = vld [vmem:[#allocation5 + $0x14e8] sm:$0xff]  ;;  %v16199_v19 = vcombine.low %v702_v2, %v710_v4  ;;  %v782_v4 = vld [vmem:[#allocation5 + $0x16a0] sm:$0xff] }
 0x4b0   :  { %13135 = vmatprep.subr.bf16.mxu0 %v16190_v20  ;;  %13635 = vmatprep.subr.bf16.mxu1 %v16440_v21  ;;  %v16449_v20 = vcombine.low %v703_v5, %v711_v17  ;;  %v16200_v21 = vcombine.high %v718_v14, %v726_v15  ;;  %v16450_v22 = vcombine.high %v719_v16, %v727_v18  ;;  %v790_v5 = vld [vmem:[#allocation5 + $0x16e0] sm:$0xff]  ;;  %v783_v17 = vld [vmem:[#allocation5 + $0x16a8] sm:$0xff] }
 0x4b3   :  { %13137 = vmatpush1.bf16.msra.mxu0 %v16191_v63  ;;  %13637 = vmatpush1.bf16.msra.mxu1 %v16441_v30  ;;  %v743_v63 = vld [vmem:[#allocation5 + $0x1568] sm:$0xff]  ;;  %v16201_v30 = vcombine.low %v718_v14, %v726_v15  ;;  %v798_v15 = vld [vmem:[#allocation5 + $0x1720] sm:$0xff] }
 0x4b4   :  { %13139 = vmatprep.subr.bf16.mxu0 %v16192_v34  ;;  %13639 = vmatprep.subr.bf16.mxu1 %v16442_v35  ;;  %v16451_v34 = vcombine.low %v719_v16, %v727_v18  ;;  %v16202_v35 = vcombine.high %v734_v23, %v742_v26  ;;  %v16452_v39 = vcombine.high %v735_v28, %v743_v63  ;;  %v806_v16 = vld [vmem:[#allocation5 + $0x1760] sm:$0xff]  ;;  %v799_v18 = vld [vmem:[#allocation5 + $0x1728] sm:$0xff] }
 0x4b7   :  { %13141 = vmatpush1.bf16.msra.mxu0 %v16193_v44  ;;  %13641 = vmatpush1.bf16.msra.mxu1 %v16443_v45  ;;  %v759_v44 = vld [vmem:[#allocation5 + $0x15e8] sm:$0xff]  ;;  %v16203_v45 = vcombine.low %v734_v23, %v742_v26  ;;  %v814_v26 = vld [vmem:[#allocation5 + $0x17a0] sm:$0xff] }
 0x4b8   :  { %13143 = vmatprep.subr.bf16.mxu0 %v16194_v47  ;;  %13643 = vmatprep.subr.bf16.mxu1 %v16444_v48  ;;  %v16453_v47 = vcombine.low %v735_v28, %v743_v63  ;;  %v16204_v48 = vcombine.high %v750_v43, %v758_v59  ;;  %v16454_v49 = vcombine.high %v751_v8, %v759_v44  ;;  %v822_v28 = vld [vmem:[#allocation5 + $0x17e0] sm:$0xff]  ;;  %v815_v63 = vld [vmem:[#allocation5 + $0x17a8] sm:$0xff] }
 0x4bb   :  { %13145 = vmatpush1.bf16.msra.mxu0 %v16195_v57  ;;  %13645 = vmatpush1.bf16.msra.mxu1 %v16445_v58  ;;  %v775_v57 = vld [vmem:[#allocation5 + $0x1668] sm:$0xff]  ;;  %v16205_v58 = vcombine.low %v750_v43, %v758_v59  ;;  %v830_v59 = vld [vmem:[#allocation5 + $0x1820] sm:$0xff] }
 0x4bc   :  { %13147 = vmatprep.subr.bf16.mxu0 %v16196_v61  ;;  %13647 = vmatprep.subr.bf16.mxu1 %v16446_v62  ;;  %v16455_v61 = vcombine.low %v751_v8, %v759_v44  ;;  %v16206_v62 = vcombine.high %v766_v52, %v774_v53  ;;  %v16456_v2 = vcombine.high %v767_v54, %v775_v57  ;;  %v838_v8 = vld [vmem:[#allocation5 + $0x1860] sm:$0xff]  ;;  %v831_v44 = vld [vmem:[#allocation5 + $0x1828] sm:$0xff] }
 0x4bf   :  { %13149 = vmatpush1.bf16.msra.mxu0 %v16197_v6  ;;  %13649 = vmatpush1.bf16.msra.mxu1 %v16447_v7  ;;  %v791_v6 = vld [vmem:[#allocation5 + $0x16e8] sm:$0xff]  ;;  %v16207_v7 = vcombine.low %v766_v52, %v774_v53  ;;  %v846_v53 = vld [vmem:[#allocation5 + $0x18a0] sm:$0xff] }
 0x4c0   :  { %13151 = vmatprep.subr.bf16.mxu0 %v16198_v10  ;;  %13651 = vmatprep.subr.bf16.mxu1 %v16448_v13  ;;  %v16457_v10 = vcombine.low %v767_v54, %v775_v57  ;;  %v16208_v13 = vcombine.high %v782_v4, %v790_v5  ;;  %v16458_v14 = vcombine.high %v783_v17, %v791_v6  ;;  %v854_v54 = vld [vmem:[#allocation5 + $0x18e0] sm:$0xff]  ;;  %v847_v57 = vld [vmem:[#allocation5 + $0x18a8] sm:$0xff] }
 0x4c3   :  { %13153 = vmatpush1.bf16.msra.mxu0 %v16199_v19  ;;  %13653 = vmatpush1.bf16.msra.mxu1 %v16449_v20  ;;  %v807_v19 = vld [vmem:[#allocation5 + $0x1768] sm:$0xff]  ;;  %v16209_v20 = vcombine.low %v782_v4, %v790_v5  ;;  %v862_v5 = vld [vmem:[#allocation5 + $0x1920] sm:$0xff] }
 0x4c4   :  { %13155 = vmatprep.subr.bf16.mxu0 %v16200_v21  ;;  %13655 = vmatprep.subr.bf16.mxu1 %v16450_v22  ;;  %v16459_v21 = vcombine.low %v783_v17, %v791_v6  ;;  %v16210_v22 = vcombine.high %v798_v15, %v806_v16  ;;  %v16460_v23 = vcombine.high %v799_v18, %v807_v19  ;;  %v870_v17 = vld [vmem:[#allocation5 + $0x1960] sm:$0xff]  ;;  %v863_v6 = vld [vmem:[#allocation5 + $0x1928] sm:$0xff] }
 0x4c7   :  { %13157 = vmatpush1.bf16.msra.mxu0 %v16201_v30  ;;  %13657 = vmatpush1.bf16.msra.mxu1 %v16451_v34  ;;  %v823_v30 = vld [vmem:[#allocation5 + $0x17e8] sm:$0xff]  ;;  %v16211_v34 = vcombine.low %v798_v15, %v806_v16  ;;  %v878_v16 = vld [vmem:[#allocation5 + $0x19a0] sm:$0xff] }
 0x4c8   :  { %13159 = vmatprep.subr.bf16.mxu0 %v16202_v35  ;;  %13659 = vmatprep.subr.bf16.mxu1 %v16452_v39  ;;  %v16461_v35 = vcombine.low %v799_v18, %v807_v19  ;;  %v16212_v39 = vcombine.high %v814_v26, %v822_v28  ;;  %v16462_v43 = vcombine.high %v815_v63, %v823_v30  ;;  %v886_v18 = vld [vmem:[#allocation5 + $0x19e0] sm:$0xff]  ;;  %v879_v19 = vld [vmem:[#allocation5 + $0x19a8] sm:$0xff] }
 0x4cb   :  { %13161 = vmatpush1.bf16.msra.mxu0 %v16203_v45  ;;  %13661 = vmatpush1.bf16.msra.mxu1 %v16453_v47  ;;  %v839_v45 = vld [vmem:[#allocation5 + $0x1868] sm:$0xff]  ;;  %v16213_v47 = vcombine.low %v814_v26, %v822_v28  ;;  %v894_v28 = vld [vmem:[#allocation5 + $0x1a20] sm:$0xff] }
 0x4cc   :  { %13163 = vmatprep.subr.bf16.mxu0 %v16204_v48  ;;  %13663 = vmatprep.subr.bf16.mxu1 %v16454_v49  ;;  %v16463_v48 = vcombine.low %v815_v63, %v823_v30  ;;  %v16214_v49 = vcombine.high %v830_v59, %v838_v8  ;;  %v16464_v52 = vcombine.high %v831_v44, %v839_v45  ;;  %v902_v63 = vld [vmem:[#allocation5 + $0x1a60] sm:$0xff]  ;;  %v895_v30 = vld [vmem:[#allocation5 + $0x1a28] sm:$0xff] }
 0x4cf   :  { %13165 = vmatpush1.bf16.msra.mxu0 %v16205_v58  ;;  %13665 = vmatpush1.bf16.msra.mxu1 %v16455_v61  ;;  %v855_v58 = vld [vmem:[#allocation5 + $0x18e8] sm:$0xff]  ;;  %v16215_v61 = vcombine.low %v830_v59, %v838_v8  ;;  %v910_v8 = vld [vmem:[#allocation5 + $0x1aa0] sm:$0xff] }
 0x4d0   :  { %13167 = vmatprep.subr.bf16.mxu0 %v16206_v62  ;;  %13667 = vmatprep.subr.bf16.mxu1 %v16456_v2  ;;  %v16465_v62 = vcombine.low %v831_v44, %v839_v45  ;;  %v16216_v2 = vcombine.high %v846_v53, %v854_v54  ;;  %v16466_v4 = vcombine.high %v847_v57, %v855_v58  ;;  %v918_v44 = vld [vmem:[#allocation5 + $0x1ae0] sm:$0xff]  ;;  %v6080_v45 = vsub.s32 4, %v17286_v46 }
 0x4d3   :  { %13169 = vmatpush1.bf16.msra.mxu0 %v16207_v7  ;;  %13669 = vmatpush1.bf16.msra.mxu1 %v16457_v10  ;;  %v871_v7 = vld [vmem:[#allocation5 + $0x1968] sm:$0xff]  ;;  %v16217_v10 = vcombine.low %v846_v53, %v854_v54  ;;  %v6084_v53 = vsub.s32 5, %v17286_v46 }
 0x4d4   :  { %13171 = vmatprep.subr.bf16.mxu0 %v16208_v13  ;;  %13671 = vmatprep.subr.bf16.mxu1 %v16458_v14  ;;  %v16467_v13 = vcombine.low %v847_v57, %v855_v58  ;;  %v16218_v14 = vcombine.high %v862_v5, %v870_v17  ;;  %v16468_v15 = vcombine.high %v863_v6, %v871_v7  ;;  %v6092_v57 = vsub.s32 7, %v17286_v46 }
 0x4d5   :  { %v16224_v58 = vcombine.high %v910_v8, %v918_v44 }
 0x4d7   :  { %13173 = vmatpush1.bf16.msra.mxu0 %v16209_v20  ;;  %13673 = vmatpush1.bf16.msra.mxu1 %v16459_v21  ;;  %v887_v20 = vld [vmem:[#allocation5 + $0x19e8] sm:$0xff]  ;;  %v16219_v21 = vcombine.low %v862_v5, %v870_v17 }
 0x4d8   :  { %13175 = vmatprep.subr.bf16.mxu0 %v16210_v22  ;;  %13675 = vmatprep.subr.bf16.mxu1 %v16460_v23  ;;  %v16469_v22 = vcombine.low %v863_v6, %v871_v7  ;;  %v16220_v23 = vcombine.high %v878_v16, %v886_v18  ;;  %v16470_v26 = vcombine.high %v879_v19, %v887_v20  ;;  %v927_v17 = vld [vmem:[#allocation5 + $0x1b28] sm:$0xff] }
 0x4d9   :  { %v935_v6 = vld [vmem:[#allocation5 + $0x1b68] sm:$0xff] }
 0x4db   :  { %13177 = vmatpush1.bf16.msra.mxu0 %v16211_v34  ;;  %13677 = vmatpush1.bf16.msra.mxu1 %v16461_v35  ;;  %v903_v34 = vld [vmem:[#allocation5 + $0x1a68] sm:$0xff]  ;;  %v16221_v35 = vcombine.low %v878_v16, %v886_v18  ;;  %v942_v18 = vld [vmem:[#allocation5 + $0x1ba0] sm:$0xff] }
 0x4dc   :  { %13179 = vmatprep.subr.bf16.mxu0 %v16212_v39  ;;  %13679 = vmatprep.subr.bf16.mxu1 %v16462_v43  ;;  %v16471_v39 = vcombine.low %v879_v19, %v887_v20  ;;  %v16222_v43 = vcombine.high %v894_v28, %v902_v63  ;;  %v16472_v59 = vcombine.high %v895_v30, %v903_v34  ;;  %v950_v19 = vld [vmem:[#allocation5 + $0x1be0] sm:$0xff] }
 0x4dd   :  { %v16473_v54 = vcombine.low %v895_v30, %v903_v34 }
 0x4df   :  { %13181 = vmatpush1.bf16.msra.mxu0 %v16213_v47  ;;  %13681 = vmatpush1.bf16.msra.mxu1 %v16463_v48  ;;  %v911_v47 = vld [vmem:[#allocation5 + $0x1aa8] sm:$0xff] }
 0x4e0   :  { %13183 = vmatprep.subr.bf16.mxu0 %v16214_v49  ;;  %13683 = vmatprep.subr.bf16.mxu1 %v16464_v52  ;;  %v919_v48 = vld [vmem:[#allocation5 + $0x1ae8] sm:$0xff]  ;;  %v16223_v49 = vcombine.low %v894_v28, %v902_v63  ;;  %v6088_v52 = vsub.s32 6, %v17286_v46 }
 0x4e2   :  { %8711 = vmatmul.mubr.f32.vlgmr.msra.gmra.mrb[4].mxu0 %v17324_v41  ;;  %9279 = vmatmul.mubr.f32.vlgmr.msra.gmra.mrb[4].mxu1 %v17324_v41 }
 0x4e3   :  { %13185 = vmatpush1.bf16.msra.mxu0 %v16215_v61  ;;  %13685 = vmatpush1.bf16.msra.mxu1 %v16465_v62  ;;  %v16474_v61 = vcombine.high %v911_v47, %v919_v48  ;;  %v926_v62 = vld [vmem:[#allocation5 + $0x1b20] sm:$0xff] }
 0x4e4   :  { %13187 = vmatprep.subr.bf16.mxu0 %v16216_v2  ;;  %13687 = vmatprep.subr.bf16.mxu1 %v16466_v4  ;;  %v934_v2 = vld [vmem:[#allocation5 + $0x1b60] sm:$0xff] }
 0x4e5   :  { %8781 = vmatprep.mubr.f32.mxu0 %v17341_v11  ;;  %9349 = vmatprep.mubr.f32.mxu1 %v17341_v11  ;;  %v17126_v4 = vld [vmem:[#allocation7] sm:$0xff]  ;;  %v16226_v16 = vcombine.high %v926_v62, %v934_v2  ;;  %v16227_v30 = vcombine.low %v926_v62, %v934_v2  ;;  %v959_v2 = vld [vmem:[#allocation5 + $0x1c28] sm:$0xff] }
 0x4e6   :  { %v6081_v5 = vrot.slane %v17126_v4, %v6080_v45  ;;  %v6089_v7 = vrot.slane %v17126_v4, %v6088_v52 }
 0x4e7   :  { %13189 = vmatpush1.bf16.msra.mxu0 %v16217_v10  ;;  %13689 = vmatpush1.bf16.msra.mxu1 %v16467_v13  ;;  %v6085_v10 = vrot.slane %v17126_v4, %v6084_v53  ;;  %v16225_v13 = vcombine.low %v910_v8, %v918_v44 }
 0x4e8   :  { %13191 = vmatprep.subr.bf16.mxu0 %v16218_v14  ;;  %13691 = vmatprep.subr.bf16.mxu1 %v16468_v15  ;;  %v6093_v14 = vrot.slane %v17126_v4, %v6092_v57  ;;  %v16475_v15 = vcombine.low %v911_v47, %v919_v48  ;;  %v958_v48 = vld [vmem:[#allocation5 + $0x1c20] sm:$0xff]  ;;  %v967_v4 = vld [vmem:[#allocation5 + $0x1c68] sm:$0xff] }
 0x4eb   :  { %13193 = vmatpush1.bf16.msra.mxu0 %v16219_v21  ;;  %13693 = vmatpush1.bf16.msra.mxu1 %v16469_v22  ;;  %v16476_v21 = vcombine.high %v927_v17, %v935_v6  ;;  %v943_v22 = vld [vmem:[#allocation5 + $0x1ba8] sm:$0xff] }
 0x4ec   :  { %13195 = vmatprep.subr.bf16.mxu0 %v16220_v23  ;;  %13695 = vmatprep.subr.bf16.mxu1 %v16470_v26  ;;  %v951_v23 = vld [vmem:[#allocation5 + $0x1be8] sm:$0xff] }
 0x4ed   :  { %v16478_v47 = vcombine.high %v943_v22, %v951_v23 }
 0x4ef   :  { %13197 = vmatpush1.bf16.msra.mxu0 %v16221_v35  ;;  %13697 = vmatpush1.bf16.msra.mxu1 %v16471_v39 }
 0x4f0   :  { %13199 = vmatprep.subr.bf16.mxu0 %v16222_v43  ;;  %13699 = vmatprep.subr.bf16.mxu1 %v16472_v59  ;;  %v16477_v43 = vcombine.low %v927_v17, %v935_v6  ;;  %v16228_v59 = vcombine.high %v942_v18, %v950_v19  ;;  %v16229_v6 = vcombine.low %v942_v18, %v950_v19 }
 0x4f1   :  { %v16481_v18 = vcombine.low %v959_v2, %v967_v4 }
 0x4f3   :  { %13201 = vmatpush1.bf16.msra.mxu0 %v16223_v49  ;;  %13701 = vmatpush1.bf16.msra.mxu1 %v16473_v54  ;;  %v966_v49 = vld [vmem:[#allocation5 + $0x1c60] sm:$0xff] }
 0x4f4   :  { %13203 = vmatprep.subr.bf16.mxu0 %v16224_v58  ;;  %13703 = vmatprep.subr.bf16.mxu1 %v16474_v61 }
 0x4f5   :  { %v7931_v20 = vpop.f32.mrb[2].mxu0  ;;  %v8499_v28 = vpop.f32.mrb[2].mxu1 }
 0x4f6   :  { %v14994_v26 = vadd.f32 %v7931_v20, %v6081_v5  ;;  %v7933_v63 = vpop.f32.mrb[3].mxu0  ;;  %v14996_v34 = vadd.f32 %v8499_v28, %v6089_v7  ;;  %v8501_v39 = vpop.f32.mrb[3].mxu1  ;;  %v16479_v7 = vcombine.low %v943_v22, %v951_v23  ;;  %v974_v20 = vld [vmem:[#allocation5 + $0x1ca0] sm:$0xff]  ;;  %v975_v28 = vld [vmem:[#allocation5 + $0x1ca8] sm:$0xff] }
 0x4f7   :  { %v14995_v35 = vadd.f32 %v7933_v63, %v6085_v10  ;;  %13205 = vmatpush1.bf16.msra.mxu0 %v16225_v13  ;;  %v14997_v44 = vadd.f32 %v8501_v39, %v6093_v14  ;;  %13705 = vmatpush1.bf16.msra.mxu1 %v16475_v15  ;;  %v16230_v14 = vcombine.high %v958_v48, %v966_v49  ;;  %v983_v63 = vld [vmem:[#allocation5 + $0x1ce8] sm:$0xff]  ;;  %v990_v23 = vld [vmem:[#allocation5 + $0x1d20] sm:$0xff] }
 0x4f8   :  { %vm10780_vm5 = vcmp.ge.f32.partialorder %v14994_v26, 0.0  ;;  %v10796_v8 = vmul.f32 0.01, %v14994_v26  ;;  %13207 = vmatprep.subr.bf16.mxu0 %v16226_v16  ;;  %vm10782_vm6 = vcmp.ge.f32.partialorder %v14996_v34, 0.0  ;;  %v10798_v54 = vmul.f32 0.01, %v14996_v34  ;;  %13707 = vmatprep.subr.bf16.mxu1 %v16476_v21 }
 0x4f9   :  { %vm10781_vm7 = vcmp.ge.f32.partialorder %v14995_v35, 0.0  ;;  %v10797_v58 = vmul.f32 0.01, %v14995_v35  ;;  %vm10783_vm8 = vcmp.ge.f32.partialorder %v14997_v44, 0.0  ;;  %v10799_v62 = vmul.f32 0.01, %v14997_v44 }
 0x4fa   :  { %v10812_v61 = vsel %vm10780_vm5, %v14994_v26, %v10796_v8  ;;  %v10814_v5 = vsel %vm10782_vm6, %v14996_v34, %v10798_v54  ;;  %v16480_v16 = vcombine.high %v959_v2, %v967_v4  ;;  %v982_v21 = vld [vmem:[#allocation5 + $0x1ce0] sm:$0xff]  ;;  %v16482_v22 = vcombine.high %v975_v28, %v983_v63  ;;  %v1007_v2 = vld [vmem:[#allocation5 + $0x1da8] sm:$0xff] }
 0x4fb   :  { %v10813_v17 = vsel %vm10781_vm7, %v14995_v35, %v10797_v58  ;;  %13209 = vmatpush1.bf16.msra.mxu0 %v16227_v30  ;;  %v10815_v13 = vsel %vm10783_vm8, %v14997_v44, %v10799_v62  ;;  %13709 = vmatpush1.bf16.msra.mxu1 %v16477_v43  ;;  %v16231_v30 = vcombine.low %v958_v48, %v966_v49  ;;  %v998_v35 = vld [vmem:[#allocation5 + $0x1d60] sm:$0xff]  ;;  %v991_v43 = vld [vmem:[#allocation5 + $0x1d28] sm:$0xff] }
 0x4fc   :  { %v10984_v10 = vpack.c.bf16 %v10813_v17, %v10812_v61  ;;  %13211 = vmatprep.subr.bf16.mxu0 %v16228_v59  ;;  %v10985_v15 = vpack.c.bf16 %v10815_v13, %v10814_v5  ;;  %13711 = vmatprep.subr.bf16.mxu1 %v16478_v47  ;;  %v16232_v19 = vcombine.high %v974_v20, %v982_v21  ;;  %v999_v59 = vld [vmem:[#allocation5 + $0x1d68] sm:$0xff]  ;;  %v1006_v58 = vld [vmem:[#allocation5 + $0x1da0] sm:$0xff] }
 0x4fd   :  { %v16233_v8 = vcombine.low %v974_v20, %v982_v21  ;;  %v10896_v44 = vrot.slane %v10888_v31, %v17436_v32  ;;  %v16483_v48 = vcombine.low %v975_v28, %v983_v63  ;;  %v16234_v49 = vcombine.high %v990_v23, %v998_v35  ;;  %v1014_v61 = vld [vmem:[#allocation5 + $0x1de0] sm:$0xff]  ;;  %v1015_v4 = vld [vmem:[#allocation5 + $0x1de8] sm:$0xff] }
 0x4fe   :  { %v10880_v26 = vrot.slane %v10984_v10, %v17436_v32  ;;  %v10887_v34 = vrot.slane %v10985_v15, %v17436_v32  ;;  %v16484_v54 = vcombine.high %v991_v43, %v999_v59  ;;  %v16235_v5 = vcombine.low %v990_v23, %v998_v35  ;;  %v1022_v17 = vld [vmem:[#allocation5 + $0x1e20] sm:$0xff]  ;;  %v1031_v10 = vld [vmem:[#allocation5 + $0x1e68] sm:$0xff] }
 0x4ff   :  { %13213 = vmatpush1.bf16.msra.mxu0 %v16229_v6  ;;  %13713 = vmatpush1.bf16.msra.mxu1 %v16479_v7  ;;  %v16485_v55 = vcombine.low %v991_v43, %v999_v59  ;;  %v16236_v60 = vcombine.high %v1006_v58, %v1014_v61  ;;  %v16486_v31 = vcombine.high %v1007_v2, %v1015_v4  ;;  %v1030_v6 = vld [vmem:[#allocation5 + $0x1e60] sm:$0xff]  ;;  %v1023_v7 = vld [vmem:[#allocation5 + $0x1e28] sm:$0xff] }
 0x500   :  { %13215 = vmatprep.subr.bf16.mxu0 %v16230_v14  ;;  %13715 = vmatprep.subr.bf16.mxu1 %v16480_v16  ;;  %v10889_v39 = vcombine.low %v10880_v26, %v10887_v34  ;;  %v16237_v13 = vcombine.low %v1006_v58, %v1014_v61  ;;  %v16487_v14 = vcombine.low %v1007_v2, %v1015_v4  ;;  %v1038_v20 = vld [vmem:[#allocation5 + $0x1ea0] sm:$0xff]  ;;  %v1039_v26 = vld [vmem:[#allocation5 + $0x1ea8] sm:$0xff] }
 0x501   :  { %v16238_v15 = vcombine.high %v1022_v17, %v1030_v6  ;;  %v16488_v16 = vcombine.high %v1023_v7, %v1031_v10  ;;  %v1046_v21 = vld [vmem:[#allocation5 + $0x1ee0] sm:$0xff]  ;;  %v1047_v28 = vld [vmem:[#allocation5 + $0x1ee8] sm:$0xff]  ;;  %v16239_v63 = vcombine.low %v1022_v17, %v1030_v6  ;;  %v16489_v34 = vcombine.low %v1023_v7, %v1031_v10 }
 0x502   :  { %v10903_v47 = vrot.slane %v10889_v39, %v17436_v32  ;;  %v1055_v23 = vld [vmem:[#allocation5 + $0x1f28] sm:$0xff]  ;;  %v16241_v39 = vcombine.low %v1038_v20, %v1046_v21  ;;  %v16491_v43 = vcombine.low %v1039_v26, %v1047_v28  ;;  %v1086_v2 = vld [vmem:[#allocation5 + $0x2020] sm:$0xff] }
 0x503   :  { %13217 = vmatpush1.bf16.msra.mxu0 %v16231_v30  ;;  %13717 = vmatpush1.bf16.msra.mxu1 %v16481_v18  ;;  %v16240_v30 = vcombine.high %v1038_v20, %v1046_v21  ;;  %v16490_v18 = vcombine.high %v1039_v26, %v1047_v28  ;;  %v1063_v35 = vld [vmem:[#allocation5 + $0x1f68] sm:$0xff]  ;;  %v1094_v4 = vld [vmem:[#allocation5 + $0x2060] sm:$0xff] }
 0x504   :  { %13219 = vmatprep.subr.bf16.mxu0 %v16232_v19  ;;  %13719 = vmatprep.subr.bf16.mxu1 %v16482_v22  ;;  %v10904_v62 = vcombine.low %v10896_v44, %v10903_v47  ;;  %v1054_v19 = vld [vmem:[#allocation5 + $0x1f20] sm:$0xff]  ;;  %v16493_v58 = vcombine.low %v1055_v23, %v1063_v35  ;;  %v16246_v17 = vcombine.high %v1086_v2, %v1094_v4 }
 0x505   :  { %v1062_v22 = vld [vmem:[#allocation5 + $0x1f60] sm:$0xff] }
 0x506   :  { %10956 = vst [vmem:[#allocation8] sm:$0xff] %v10904_v62  ;;  %v16242_v59 = vcombine.high %v1054_v19, %v1062_v22  ;;  %v1070_v44 = vld [vmem:[#allocation5 + $0x1fa0] sm:$0xff] }
 0x507   :  { %13221 = vmatpush1.bf16.msra.mxu0 %v16233_v8  ;;  %13721 = vmatpush1.bf16.msra.mxu1 %v16483_v48  ;;  %v16492_v8 = vcombine.high %v1055_v23, %v1063_v35  ;;  %v1078_v47 = vld [vmem:[#allocation5 + $0x1fe0] sm:$0xff]  ;;  %v1071_v48 = vld [vmem:[#allocation5 + $0x1fa8] sm:$0xff] }
 0x508   :  { %13223 = vmatprep.subr.bf16.mxu0 %v16234_v49  ;;  %13723 = vmatprep.subr.bf16.mxu1 %v16484_v54  ;;  %v1079_v49 = vld [vmem:[#allocation5 + $0x1fe8] sm:$0xff]  ;;  %v16243_v54 = vcombine.low %v1054_v19, %v1062_v22  ;;  %v16244_v61 = vcombine.high %v1070_v44, %v1078_v47  ;;  %v1102_v7 = vld [vmem:[#allocation5 + $0x20a0] sm:$0xff] }
 0x509   :  { %v16494_v62 = vcombine.high %v1071_v48, %v1079_v49  ;;  %v1110_v10 = vld [vmem:[#allocation5 + $0x20e0] sm:$0xff] }
 0x50a   :  { %v16248_v20 = vcombine.high %v1102_v7, %v1110_v10  ;;  %v1118_v26 = vld [vmem:[#allocation5 + $0x2120] sm:$0xff] }
 0x50b   :  { %13225 = vmatpush1.bf16.msra.mxu0 %v16235_v5  ;;  %13725 = vmatpush1.bf16.msra.mxu1 %v16485_v55  ;;  %v1087_v5 = vld [vmem:[#allocation5 + $0x2028] sm:$0xff]  ;;  %v1126_v28 = vld [vmem:[#allocation5 + $0x2160] sm:$0xff] }
 0x50c   :  { %13227 = vmatprep.subr.bf16.mxu0 %v16236_v60  ;;  %13727 = vmatprep.subr.bf16.mxu1 %v16486_v31  ;;  %v1095_v55 = vld [vmem:[#allocation5 + $0x2068] sm:$0xff]  ;;  %v16245_v60 = vcombine.low %v1070_v44, %v1078_v47  ;;  %v16495_v31 = vcombine.low %v1071_v48, %v1079_v49  ;;  %v16250_v19 = vcombine.high %v1118_v26, %v1126_v28  ;;  %v1134_v23 = vld [vmem:[#allocation5 + $0x21a0] sm:$0xff] }
 0x50d   :  { %v16496_v6 = vcombine.high %v1087_v5, %v1095_v55  ;;  %v1142_v35 = vld [vmem:[#allocation5 + $0x21e0] sm:$0xff] }
 0x50e   :  { %v16252_v44 = vcombine.high %v1134_v23, %v1142_v35  ;;  %v1150_v48 = vld [vmem:[#allocation5 + $0x2220] sm:$0xff] }
 0x50f   :  { %13229 = vmatpush1.bf16.msra.mxu0 %v16237_v13  ;;  %13729 = vmatpush1.bf16.msra.mxu1 %v16487_v14  ;;  %v1103_v13 = vld [vmem:[#allocation5 + $0x20a8] sm:$0xff]  ;;  %v1158_v49 = vld [vmem:[#allocation5 + $0x2260] sm:$0xff] }
 0x510   :  { %13231 = vmatprep.subr.bf16.mxu0 %v16238_v15  ;;  %13731 = vmatprep.subr.bf16.mxu1 %v16488_v16  ;;  %v1111_v14 = vld [vmem:[#allocation5 + $0x20e8] sm:$0xff]  ;;  %v16247_v15 = vcombine.low %v1086_v2, %v1094_v4  ;;  %v16497_v16 = vcombine.low %v1087_v5, %v1095_v55  ;;  %v16254_v2 = vcombine.high %v1150_v48, %v1158_v49  ;;  %v1166_v5 = vld [vmem:[#allocation5 + $0x22a0] sm:$0xff] }
 0x511   :  { %v16498_v21 = vcombine.high %v1103_v13, %v1111_v14  ;;  %v1174_v55 = vld [vmem:[#allocation5 + $0x22e0] sm:$0xff] }
 0x513   :  { %13233 = vmatpush1.bf16.msra.mxu0 %v16239_v63  ;;  %13733 = vmatpush1.bf16.msra.mxu1 %v16489_v34  ;;  %v1119_v63 = vld [vmem:[#allocation5 + $0x2128] sm:$0xff] }
 0x514   :  { %13235 = vmatprep.subr.bf16.mxu0 %v16240_v30  ;;  %13735 = vmatprep.subr.bf16.mxu1 %v16490_v18  ;;  %v1127_v34 = vld [vmem:[#allocation5 + $0x2168] sm:$0xff]  ;;  %v16249_v30 = vcombine.low %v1102_v7, %v1110_v10  ;;  %v16499_v18 = vcombine.low %v1103_v13, %v1111_v14  ;;  %v16256_v7 = vcombine.high %v1166_v5, %v1174_v55  ;;  %v1182_v13 = vld [vmem:[#allocation5 + $0x2320] sm:$0xff] }
 0x515   :  { %v16500_v22 = vcombine.high %v1119_v63, %v1127_v34  ;;  %v1190_v14 = vld [vmem:[#allocation5 + $0x2360] sm:$0xff] }
 0x517   :  { %13237 = vmatpush1.bf16.msra.mxu0 %v16241_v39  ;;  %13737 = vmatpush1.bf16.msra.mxu1 %v16491_v43  ;;  %v1135_v39 = vld [vmem:[#allocation5 + $0x21a8] sm:$0xff] }
 0x518   :  { %13239 = vmatprep.subr.bf16.mxu0 %v16242_v59  ;;  %13739 = vmatprep.subr.bf16.mxu1 %v16492_v8  ;;  %v1143_v43 = vld [vmem:[#allocation5 + $0x21e8] sm:$0xff]  ;;  %v16251_v59 = vcombine.low %v1118_v26, %v1126_v28  ;;  %v16501_v8 = vcombine.low %v1119_v63, %v1127_v34  ;;  %v16258_v26 = vcombine.high %v1182_v13, %v1190_v14  ;;  %v1198_v63 = vld [vmem:[#allocation5 + $0x23a0] sm:$0xff] }
 0x519   :  { %v16502_v47 = vcombine.high %v1135_v39, %v1143_v43  ;;  %v1206_v34 = vld [vmem:[#allocation5 + $0x23e0] sm:$0xff] }
 0x51b   :  { %13241 = vmatpush1.bf16.msra.mxu0 %v16243_v54  ;;  %13741 = vmatpush1.bf16.msra.mxu1 %v16493_v58  ;;  %v1151_v54 = vld [vmem:[#allocation5 + $0x2228] sm:$0xff] }
 0x51c   :  { %13243 = vmatprep.subr.bf16.mxu0 %v16244_v61  ;;  %13743 = vmatprep.subr.bf16.mxu1 %v16494_v62  ;;  %v1159_v58 = vld [vmem:[#allocation5 + $0x2268] sm:$0xff]  ;;  %v16253_v61 = vcombine.low %v1134_v23, %v1142_v35  ;;  %v16503_v62 = vcombine.low %v1135_v39, %v1143_v43  ;;  %v16260_v23 = vcombine.high %v1198_v63, %v1206_v34  ;;  %v1214_v39 = vld [vmem:[#allocation5 + $0x2420] sm:$0xff] }
 0x51d   :  { %v16504_v4 = vcombine.high %v1151_v54, %v1159_v58  ;;  %v1222_v43 = vld [vmem:[#allocation5 + $0x2460] sm:$0xff] }
 0x51f   :  { %13245 = vmatpush1.bf16.msra.mxu0 %v16245_v60  ;;  %13745 = vmatpush1.bf16.msra.mxu1 %v16495_v31  ;;  %v1167_v60 = vld [vmem:[#allocation5 + $0x22a8] sm:$0xff] }
 0x520   :  { %13247 = vmatprep.subr.bf16.mxu0 %v16246_v17  ;;  %13747 = vmatprep.subr.bf16.mxu1 %v16496_v6  ;;  %v1175_v31 = vld [vmem:[#allocation5 + $0x22e8] sm:$0xff]  ;;  %v16255_v17 = vcombine.low %v1150_v48, %v1158_v49  ;;  %v16505_v6 = vcombine.low %v1151_v54, %v1159_v58  ;;  %v16262_v48 = vcombine.high %v1214_v39, %v1222_v43  ;;  %v1230_v54 = vld [vmem:[#allocation5 + $0x24a0] sm:$0xff] }
 0x521   :  { %v16506_v10 = vcombine.high %v1167_v60, %v1175_v31  ;;  %v1238_v58 = vld [vmem:[#allocation5 + $0x24e0] sm:$0xff] }
 0x522   :  { %8782 = vmatmul.mubr.f32.vlgmr.msra.gmra.mrb[4].mxu0 %v17337_v1  ;;  %9350 = vmatmul.mubr.f32.vlgmr.msra.gmra.mrb[4].mxu1 %v17337_v1 }
 0x523   :  { %13249 = vmatpush1.bf16.msra.mxu0 %v16247_v15  ;;  %13749 = vmatpush1.bf16.msra.mxu1 %v16497_v16  ;;  %v1183_v15 = vld [vmem:[#allocation5 + $0x2328] sm:$0xff] }
 0x524   :  { %13251 = vmatprep.subr.bf16.mxu0 %v16248_v20  ;;  %13751 = vmatprep.subr.bf16.mxu1 %v16498_v21  ;;  %v1191_v16 = vld [vmem:[#allocation5 + $0x2368] sm:$0xff]  ;;  %v16257_v20 = vcombine.low %v1166_v5, %v1174_v55  ;;  %v16507_v21 = vcombine.low %v1167_v60, %v1175_v31  ;;  %v16264_v5 = vcombine.high %v1230_v54, %v1238_v58  ;;  %v1246_v60 = vld [vmem:[#allocation5 + $0x2520] sm:$0xff] }
 0x525   :  { %8852 = vmatprep.mubr.f32.mxu0 %v17358_v37  ;;  %9420 = vmatprep.mubr.f32.mxu1 %v17358_v37  ;;  %v16508_v28 = vcombine.high %v1183_v15, %v1191_v16  ;;  %v1254_v31 = vld [vmem:[#allocation5 + $0x2560] sm:$0xff] }
 0x527   :  { %13253 = vmatpush1.bf16.msra.mxu0 %v16249_v30  ;;  %13753 = vmatpush1.bf16.msra.mxu1 %v16499_v18  ;;  %v1199_v30 = vld [vmem:[#allocation5 + $0x23a8] sm:$0xff] }
 0x528   :  { %13255 = vmatprep.subr.bf16.mxu0 %v16250_v19  ;;  %13755 = vmatprep.subr.bf16.mxu1 %v16500_v22  ;;  %v1207_v18 = vld [vmem:[#allocation5 + $0x23e8] sm:$0xff]  ;;  %v16259_v19 = vcombine.low %v1182_v13, %v1190_v14  ;;  %v16509_v22 = vcombine.low %v1183_v15, %v1191_v16  ;;  %v16266_v13 = vcombine.high %v1246_v60, %v1254_v31  ;;  %v1262_v15 = vld [vmem:[#allocation5 + $0x25a0] sm:$0xff] }
 0x529   :  { %v16510_v35 = vcombine.high %v1199_v30, %v1207_v18  ;;  %v1270_v16 = vld [vmem:[#allocation5 + $0x25e0] sm:$0xff] }
 0x52b   :  { %13257 = vmatpush1.bf16.msra.mxu0 %v16251_v59  ;;  %13757 = vmatpush1.bf16.msra.mxu1 %v16501_v8  ;;  %v1215_v59 = vld [vmem:[#allocation5 + $0x2428] sm:$0xff] }
 0x52c   :  { %13259 = vmatprep.subr.bf16.mxu0 %v16252_v44  ;;  %13759 = vmatprep.subr.bf16.mxu1 %v16502_v47  ;;  %v1223_v8 = vld [vmem:[#allocation5 + $0x2468] sm:$0xff]  ;;  %v16261_v44 = vcombine.low %v1198_v63, %v1206_v34  ;;  %v16511_v47 = vcombine.low %v1199_v30, %v1207_v18  ;;  %v16268_v63 = vcombine.high %v1262_v15, %v1270_v16  ;;  %v1278_v30 = vld [vmem:[#allocation5 + $0x2620] sm:$0xff] }
 0x52d   :  { %v16512_v49 = vcombine.high %v1215_v59, %v1223_v8  ;;  %v1286_v18 = vld [vmem:[#allocation5 + $0x2660] sm:$0xff] }
 0x52f   :  { %13261 = vmatpush1.bf16.msra.mxu0 %v16253_v61  ;;  %13761 = vmatpush1.bf16.msra.mxu1 %v16503_v62  ;;  %v1231_v61 = vld [vmem:[#allocation5 + $0x24a8] sm:$0xff] }
 0x530   :  { %13263 = vmatprep.subr.bf16.mxu0 %v16254_v2  ;;  %13763 = vmatprep.subr.bf16.mxu1 %v16504_v4  ;;  %v1239_v62 = vld [vmem:[#allocation5 + $0x24e8] sm:$0xff]  ;;  %v16263_v2 = vcombine.low %v1214_v39, %v1222_v43  ;;  %v16513_v4 = vcombine.low %v1215_v59, %v1223_v8  ;;  %v16270_v39 = vcombine.high %v1278_v30, %v1286_v18  ;;  %v1294_v59 = vld [vmem:[#allocation5 + $0x26a0] sm:$0xff] }
 0x531   :  { %v16514_v55 = vcombine.high %v1231_v61, %v1239_v62  ;;  %v1302_v8 = vld [vmem:[#allocation5 + $0x26e0] sm:$0xff] }
 0x533   :  { %13265 = vmatpush1.bf16.msra.mxu0 %v16255_v17  ;;  %13765 = vmatpush1.bf16.msra.mxu1 %v16505_v6  ;;  %v1247_v17 = vld [vmem:[#allocation5 + $0x2528] sm:$0xff] }
 0x534   :  { %13267 = vmatprep.subr.bf16.mxu0 %v16256_v7  ;;  %13767 = vmatprep.subr.bf16.mxu1 %v16506_v10  ;;  %v1255_v6 = vld [vmem:[#allocation5 + $0x2568] sm:$0xff]  ;;  %v16265_v7 = vcombine.low %v1230_v54, %v1238_v58  ;;  %v16515_v10 = vcombine.low %v1231_v61, %v1239_v62  ;;  %v16272_v54 = vcombine.high %v1294_v59, %v1302_v8  ;;  %v1310_v61 = vld [vmem:[#allocation5 + $0x2720] sm:$0xff] }
 0x535   :  { %v16516_v14 = vcombine.high %v1247_v17, %v1255_v6  ;;  %v1318_v62 = vld [vmem:[#allocation5 + $0x2760] sm:$0xff] }
 0x537   :  { %13269 = vmatpush1.bf16.msra.mxu0 %v16257_v20  ;;  %13769 = vmatpush1.bf16.msra.mxu1 %v16507_v21  ;;  %v1263_v20 = vld [vmem:[#allocation5 + $0x25a8] sm:$0xff] }
 0x538   :  { %13271 = vmatprep.subr.bf16.mxu0 %v16258_v26  ;;  %13771 = vmatprep.subr.bf16.mxu1 %v16508_v28  ;;  %v1271_v21 = vld [vmem:[#allocation5 + $0x25e8] sm:$0xff]  ;;  %v16267_v26 = vcombine.low %v1246_v60, %v1254_v31  ;;  %v16517_v28 = vcombine.low %v1247_v17, %v1255_v6  ;;  %v16274_v60 = vcombine.high %v1310_v61, %v1318_v62  ;;  %v1326_v17 = vld [vmem:[#allocation5 + $0x27a0] sm:$0xff] }
 0x539   :  { %v16518_v34 = vcombine.high %v1263_v20, %v1271_v21  ;;  %v1334_v6 = vld [vmem:[#allocation5 + $0x27e0] sm:$0xff] }
 0x53b   :  { %13273 = vmatpush1.bf16.msra.mxu0 %v16259_v19  ;;  %13773 = vmatpush1.bf16.msra.mxu1 %v16509_v22  ;;  %v1279_v19 = vld [vmem:[#allocation5 + $0x2628] sm:$0xff] }
 0x53c   :  { %13275 = vmatprep.subr.bf16.mxu0 %v16260_v23  ;;  %13775 = vmatprep.subr.bf16.mxu1 %v16510_v35  ;;  %v1287_v22 = vld [vmem:[#allocation5 + $0x2668] sm:$0xff]  ;;  %v16269_v23 = vcombine.low %v1262_v15, %v1270_v16  ;;  %v16519_v35 = vcombine.low %v1263_v20, %v1271_v21  ;;  %v16276_v15 = vcombine.high %v1326_v17, %v1334_v6  ;;  %v1342_v20 = vld [vmem:[#allocation5 + $0x2820] sm:$0xff] }
 0x53d   :  { %v16520_v43 = vcombine.high %v1279_v19, %v1287_v22  ;;  %v1350_v21 = vld [vmem:[#allocation5 + $0x2860] sm:$0xff] }
 0x53f   :  { %13277 = vmatpush1.bf16.msra.mxu0 %v16261_v44  ;;  %13777 = vmatpush1.bf16.msra.mxu1 %v16511_v47  ;;  %v1295_v44 = vld [vmem:[#allocation5 + $0x26a8] sm:$0xff] }
 0x540   :  { %13279 = vmatprep.subr.bf16.mxu0 %v16262_v48  ;;  %13779 = vmatprep.subr.bf16.mxu1 %v16512_v49  ;;  %v1303_v47 = vld [vmem:[#allocation5 + $0x26e8] sm:$0xff]  ;;  %v16271_v48 = vcombine.low %v1278_v30, %v1286_v18  ;;  %v16521_v49 = vcombine.low %v1279_v19, %v1287_v22  ;;  %v16278_v30 = vcombine.high %v1342_v20, %v1350_v21  ;;  %v1358_v19 = vld [vmem:[#allocation5 + $0x28a0] sm:$0xff] }
 0x541   :  { %v16522_v58 = vcombine.high %v1295_v44, %v1303_v47  ;;  %v1366_v22 = vld [vmem:[#allocation5 + $0x28e0] sm:$0xff] }
 0x543   :  { %13281 = vmatpush1.bf16.msra.mxu0 %v16263_v2  ;;  %13781 = vmatpush1.bf16.msra.mxu1 %v16513_v4  ;;  %v1311_v2 = vld [vmem:[#allocation5 + $0x2728] sm:$0xff] }
 0x544   :  { %13283 = vmatprep.subr.bf16.mxu0 %v16264_v5  ;;  %13783 = vmatprep.subr.bf16.mxu1 %v16514_v55  ;;  %v1319_v4 = vld [vmem:[#allocation5 + $0x2768] sm:$0xff]  ;;  %v16273_v5 = vcombine.low %v1294_v59, %v1302_v8  ;;  %v16523_v55 = vcombine.low %v1295_v44, %v1303_v47  ;;  %v16280_v59 = vcombine.high %v1358_v19, %v1366_v22  ;;  %v1374_v44 = vld [vmem:[#allocation5 + $0x2920] sm:$0xff] }
 0x545   :  { %v16524_v31 = vcombine.high %v1311_v2, %v1319_v4  ;;  %v1382_v47 = vld [vmem:[#allocation5 + $0x2960] sm:$0xff] }
 0x547   :  { %13285 = vmatpush1.bf16.msra.mxu0 %v16265_v7  ;;  %13785 = vmatpush1.bf16.msra.mxu1 %v16515_v10  ;;  %v1327_v7 = vld [vmem:[#allocation5 + $0x27a8] sm:$0xff] }
 0x548   :  { %13287 = vmatprep.subr.bf16.mxu0 %v16266_v13  ;;  %13787 = vmatprep.subr.bf16.mxu1 %v16516_v14  ;;  %v1335_v10 = vld [vmem:[#allocation5 + $0x27e8] sm:$0xff]  ;;  %v16275_v13 = vcombine.low %v1310_v61, %v1318_v62  ;;  %v16525_v14 = vcombine.low %v1311_v2, %v1319_v4  ;;  %v16282_v61 = vcombine.high %v1374_v44, %v1382_v47  ;;  %v1390_v2 = vld [vmem:[#allocation5 + $0x29a0] sm:$0xff] }
 0x549   :  { %v16526_v16 = vcombine.high %v1327_v7, %v1335_v10  ;;  %v1398_v4 = vld [vmem:[#allocation5 + $0x29e0] sm:$0xff] }
 0x54b   :  { %13289 = vmatpush1.bf16.msra.mxu0 %v16267_v26  ;;  %13789 = vmatpush1.bf16.msra.mxu1 %v16517_v28  ;;  %v1343_v26 = vld [vmem:[#allocation5 + $0x2828] sm:$0xff] }
 0x54c   :  { %13291 = vmatprep.subr.bf16.mxu0 %v16268_v63  ;;  %13791 = vmatprep.subr.bf16.mxu1 %v16518_v34  ;;  %v1351_v28 = vld [vmem:[#allocation5 + $0x2868] sm:$0xff]  ;;  %v16277_v63 = vcombine.low %v1326_v17, %v1334_v6  ;;  %v16527_v34 = vcombine.low %v1327_v7, %v1335_v10  ;;  %v16284_v17 = vcombine.high %v1390_v2, %v1398_v4  ;;  %v1406_v7 = vld [vmem:[#allocation5 + $0x2a20] sm:$0xff] }
 0x54d   :  { %v16528_v18 = vcombine.high %v1343_v26, %v1351_v28  ;;  %v1414_v10 = vld [vmem:[#allocation5 + $0x2a60] sm:$0xff] }
 0x54f   :  { %13293 = vmatpush1.bf16.msra.mxu0 %v16269_v23  ;;  %13793 = vmatpush1.bf16.msra.mxu1 %v16519_v35  ;;  %v1359_v23 = vld [vmem:[#allocation5 + $0x28a8] sm:$0xff] }
 0x550   :  { %13295 = vmatprep.subr.bf16.mxu0 %v16270_v39  ;;  %13795 = vmatprep.subr.bf16.mxu1 %v16520_v43  ;;  %v1367_v35 = vld [vmem:[#allocation5 + $0x28e8] sm:$0xff]  ;;  %v16279_v39 = vcombine.low %v1342_v20, %v1350_v21  ;;  %v16529_v43 = vcombine.low %v1343_v26, %v1351_v28  ;;  %v16286_v20 = vcombine.high %v1406_v7, %v1414_v10  ;;  %v1422_v26 = vld [vmem:[#allocation5 + $0x2aa0] sm:$0xff] }
 0x551   :  { %v16530_v8 = vcombine.high %v1359_v23, %v1367_v35  ;;  %v1430_v28 = vld [vmem:[#allocation5 + $0x2ae0] sm:$0xff] }
 0x553   :  { %13297 = vmatpush1.bf16.msra.mxu0 %v16271_v48  ;;  %13797 = vmatpush1.bf16.msra.mxu1 %v16521_v49  ;;  %v1375_v48 = vld [vmem:[#allocation5 + $0x2928] sm:$0xff] }
 0x554   :  { %13299 = vmatprep.subr.bf16.mxu0 %v16272_v54  ;;  %13799 = vmatprep.subr.bf16.mxu1 %v16522_v58  ;;  %v1383_v49 = vld [vmem:[#allocation5 + $0x2968] sm:$0xff]  ;;  %v16281_v54 = vcombine.low %v1358_v19, %v1366_v22  ;;  %v16531_v58 = vcombine.low %v1359_v23, %v1367_v35  ;;  %v16288_v19 = vcombine.high %v1422_v26, %v1430_v28  ;;  %v1438_v23 = vld [vmem:[#allocation5 + $0x2b20] sm:$0xff] }
 0x555   :  { %v16532_v62 = vcombine.high %v1375_v48, %v1383_v49  ;;  %v1446_v35 = vld [vmem:[#allocation5 + $0x2b60] sm:$0xff] }
 0x557   :  { %13301 = vmatpush1.bf16.msra.mxu0 %v16273_v5  ;;  %13801 = vmatpush1.bf16.msra.mxu1 %v16523_v55  ;;  %v1391_v5 = vld [vmem:[#allocation5 + $0x29a8] sm:$0xff] }
 0x558   :  { %13303 = vmatprep.subr.bf16.mxu0 %v16274_v60  ;;  %13803 = vmatprep.subr.bf16.mxu1 %v16524_v31  ;;  %v1399_v55 = vld [vmem:[#allocation5 + $0x29e8] sm:$0xff]  ;;  %v16283_v60 = vcombine.low %v1374_v44, %v1382_v47  ;;  %v16533_v31 = vcombine.low %v1375_v48, %v1383_v49  ;;  %v16290_v44 = vcombine.high %v1438_v23, %v1446_v35  ;;  %v1454_v48 = vld [vmem:[#allocation5 + $0x2ba0] sm:$0xff] }
 0x559   :  { %v16534_v6 = vcombine.high %v1391_v5, %v1399_v55  ;;  %v1462_v49 = vld [vmem:[#allocation5 + $0x2be0] sm:$0xff] }
 0x55b   :  { %13305 = vmatpush1.bf16.msra.mxu0 %v16275_v13  ;;  %13805 = vmatpush1.bf16.msra.mxu1 %v16525_v14  ;;  %v1407_v13 = vld [vmem:[#allocation5 + $0x2a28] sm:$0xff] }
 0x55c   :  { %13307 = vmatprep.subr.bf16.mxu0 %v16276_v15  ;;  %13807 = vmatprep.subr.bf16.mxu1 %v16526_v16  ;;  %v1415_v14 = vld [vmem:[#allocation5 + $0x2a68] sm:$0xff]  ;;  %v16285_v15 = vcombine.low %v1390_v2, %v1398_v4  ;;  %v16535_v16 = vcombine.low %v1391_v5, %v1399_v55  ;;  %v16292_v2 = vcombine.high %v1454_v48, %v1462_v49  ;;  %v1470_v5 = vld [vmem:[#allocation5 + $0x2c20] sm:$0xff] }
 0x55d   :  { %v16536_v21 = vcombine.high %v1407_v13, %v1415_v14  ;;  %v1478_v55 = vld [vmem:[#allocation5 + $0x2c60] sm:$0xff] }
 0x55f   :  { %13309 = vmatpush1.bf16.msra.mxu0 %v16277_v63  ;;  %13809 = vmatpush1.bf16.msra.mxu1 %v16527_v34  ;;  %v1423_v63 = vld [vmem:[#allocation5 + $0x2aa8] sm:$0xff] }
 0x560   :  { %13311 = vmatprep.subr.bf16.mxu0 %v16278_v30  ;;  %13811 = vmatprep.subr.bf16.mxu1 %v16528_v18  ;;  %v1431_v34 = vld [vmem:[#allocation5 + $0x2ae8] sm:$0xff]  ;;  %v16287_v30 = vcombine.low %v1406_v7, %v1414_v10  ;;  %v16537_v18 = vcombine.low %v1407_v13, %v1415_v14  ;;  %v16294_v7 = vcombine.high %v1470_v5, %v1478_v55  ;;  %v1486_v13 = vld [vmem:[#allocation5 + $0x2ca0] sm:$0xff] }
 0x561   :  { %v16538_v22 = vcombine.high %v1423_v63, %v1431_v34  ;;  %v1494_v14 = vld [vmem:[#allocation5 + $0x2ce0] sm:$0xff] }
 0x562   :  { %8853 = vmatmul.mubr.f32.vlgmr.msra.gmra.mrb[4].mxu0 %v17354_v27  ;;  %9421 = vmatmul.mubr.f32.vlgmr.msra.gmra.mrb[4].mxu1 %v17354_v27 }
 0x563   :  { %13313 = vmatpush1.bf16.msra.mxu0 %v16279_v39  ;;  %13813 = vmatpush1.bf16.msra.mxu1 %v16529_v43  ;;  %v1439_v39 = vld [vmem:[#allocation5 + $0x2b28] sm:$0xff] }
 0x564   :  { %13315 = vmatprep.subr.bf16.mxu0 %v16280_v59  ;;  %13815 = vmatprep.subr.bf16.mxu1 %v16530_v8  ;;  %v1447_v43 = vld [vmem:[#allocation5 + $0x2b68] sm:$0xff]  ;;  %v16289_v59 = vcombine.low %v1422_v26, %v1430_v28  ;;  %v16539_v8 = vcombine.low %v1423_v63, %v1431_v34  ;;  %v16296_v26 = vcombine.high %v1486_v13, %v1494_v14  ;;  %v1502_v63 = vld [vmem:[#allocation5 + $0x2d20] sm:$0xff] }
 0x565   :  { %8923 = vmatprep.mubr.f32.mxu0 %v17371_v12  ;;  %9491 = vmatprep.mubr.f32.mxu1 %v17371_v12  ;;  %v16540_v47 = vcombine.high %v1439_v39, %v1447_v43  ;;  %v1510_v34 = vld [vmem:[#allocation5 + $0x2d60] sm:$0xff] }
 0x567   :  { %13317 = vmatpush1.bf16.msra.mxu0 %v16281_v54  ;;  %13817 = vmatpush1.bf16.msra.mxu1 %v16531_v58  ;;  %v1455_v54 = vld [vmem:[#allocation5 + $0x2ba8] sm:$0xff] }
 0x568   :  { %13319 = vmatprep.subr.bf16.mxu0 %v16282_v61  ;;  %13819 = vmatprep.subr.bf16.mxu1 %v16532_v62  ;;  %v1463_v58 = vld [vmem:[#allocation5 + $0x2be8] sm:$0xff]  ;;  %v16291_v61 = vcombine.low %v1438_v23, %v1446_v35  ;;  %v16541_v62 = vcombine.low %v1439_v39, %v1447_v43  ;;  %v16298_v23 = vcombine.high %v1502_v63, %v1510_v34  ;;  %v1518_v39 = vld [vmem:[#allocation5 + $0x2da0] sm:$0xff] }
 0x569   :  { %v16542_v4 = vcombine.high %v1455_v54, %v1463_v58  ;;  %v1526_v43 = vld [vmem:[#allocation5 + $0x2de0] sm:$0xff] }
 0x56b   :  { %13321 = vmatpush1.bf16.msra.mxu0 %v16283_v60  ;;  %13821 = vmatpush1.bf16.msra.mxu1 %v16533_v31  ;;  %v1471_v60 = vld [vmem:[#allocation5 + $0x2c28] sm:$0xff] }
 0x56c   :  { %13323 = vmatprep.subr.bf16.mxu0 %v16284_v17  ;;  %13823 = vmatprep.subr.bf16.mxu1 %v16534_v6  ;;  %v1479_v31 = vld [vmem:[#allocation5 + $0x2c68] sm:$0xff]  ;;  %v16293_v17 = vcombine.low %v1454_v48, %v1462_v49  ;;  %v16543_v6 = vcombine.low %v1455_v54, %v1463_v58  ;;  %v16300_v48 = vcombine.high %v1518_v39, %v1526_v43  ;;  %v1534_v54 = vld [vmem:[#allocation5 + $0x2e20] sm:$0xff] }
 0x56d   :  { %v16544_v10 = vcombine.high %v1471_v60, %v1479_v31  ;;  %v1542_v58 = vld [vmem:[#allocation5 + $0x2e60] sm:$0xff] }
 0x56f   :  { %13325 = vmatpush1.bf16.msra.mxu0 %v16285_v15  ;;  %13825 = vmatpush1.bf16.msra.mxu1 %v16535_v16  ;;  %v1487_v15 = vld [vmem:[#allocation5 + $0x2ca8] sm:$0xff] }
 0x570   :  { %13327 = vmatprep.subr.bf16.mxu0 %v16286_v20  ;;  %13827 = vmatprep.subr.bf16.mxu1 %v16536_v21  ;;  %v1495_v16 = vld [vmem:[#allocation5 + $0x2ce8] sm:$0xff]  ;;  %v16295_v20 = vcombine.low %v1470_v5, %v1478_v55  ;;  %v16545_v21 = vcombine.low %v1471_v60, %v1479_v31  ;;  %v16302_v5 = vcombine.high %v1534_v54, %v1542_v58  ;;  %v1550_v60 = vld [vmem:[#allocation5 + $0x2ea0] sm:$0xff] }
 0x571   :  { %v16546_v28 = vcombine.high %v1487_v15, %v1495_v16  ;;  %v1558_v31 = vld [vmem:[#allocation5 + $0x2ee0] sm:$0xff] }
 0x573   :  { %13329 = vmatpush1.bf16.msra.mxu0 %v16287_v30  ;;  %13829 = vmatpush1.bf16.msra.mxu1 %v16537_v18  ;;  %v1503_v30 = vld [vmem:[#allocation5 + $0x2d28] sm:$0xff] }
 0x574   :  { %13331 = vmatprep.subr.bf16.mxu0 %v16288_v19  ;;  %13831 = vmatprep.subr.bf16.mxu1 %v16538_v22  ;;  %v1511_v18 = vld [vmem:[#allocation5 + $0x2d68] sm:$0xff]  ;;  %v16297_v19 = vcombine.low %v1486_v13, %v1494_v14  ;;  %v16547_v22 = vcombine.low %v1487_v15, %v1495_v16  ;;  %v16304_v13 = vcombine.high %v1550_v60, %v1558_v31  ;;  %v1566_v15 = vld [vmem:[#allocation5 + $0x2f20] sm:$0xff] }
 0x575   :  { %v16548_v35 = vcombine.high %v1503_v30, %v1511_v18  ;;  %v1574_v16 = vld [vmem:[#allocation5 + $0x2f60] sm:$0xff] }
 0x577   :  { %13333 = vmatpush1.bf16.msra.mxu0 %v16289_v59  ;;  %13833 = vmatpush1.bf16.msra.mxu1 %v16539_v8  ;;  %v1519_v59 = vld [vmem:[#allocation5 + $0x2da8] sm:$0xff] }
 0x578   :  { %13335 = vmatprep.subr.bf16.mxu0 %v16290_v44  ;;  %13835 = vmatprep.subr.bf16.mxu1 %v16540_v47  ;;  %v1527_v8 = vld [vmem:[#allocation5 + $0x2de8] sm:$0xff]  ;;  %v16299_v44 = vcombine.low %v1502_v63, %v1510_v34  ;;  %v16549_v47 = vcombine.low %v1503_v30, %v1511_v18  ;;  %v16306_v63 = vcombine.high %v1566_v15, %v1574_v16  ;;  %v1582_v30 = vld [vmem:[#allocation5 + $0x2fa0] sm:$0xff] }
 0x579   :  { %v16550_v49 = vcombine.high %v1519_v59, %v1527_v8  ;;  %v1590_v18 = vld [vmem:[#allocation5 + $0x2fe0] sm:$0xff] }
 0x57b   :  { %13337 = vmatpush1.bf16.msra.mxu0 %v16291_v61  ;;  %13837 = vmatpush1.bf16.msra.mxu1 %v16541_v62  ;;  %v1535_v61 = vld [vmem:[#allocation5 + $0x2e28] sm:$0xff] }
 0x57c   :  { %13339 = vmatprep.subr.bf16.mxu0 %v16292_v2  ;;  %13839 = vmatprep.subr.bf16.mxu1 %v16542_v4  ;;  %v1543_v62 = vld [vmem:[#allocation5 + $0x2e68] sm:$0xff]  ;;  %v16301_v2 = vcombine.low %v1518_v39, %v1526_v43  ;;  %v16551_v4 = vcombine.low %v1519_v59, %v1527_v8  ;;  %v16308_v39 = vcombine.high %v1582_v30, %v1590_v18  ;;  %v1598_v59 = vld [vmem:[#allocation5 + $0x3020] sm:$0xff] }
 0x57d   :  { %v16552_v55 = vcombine.high %v1535_v61, %v1543_v62  ;;  %v1606_v8 = vld [vmem:[#allocation5 + $0x3060] sm:$0xff] }
 0x57f   :  { %13341 = vmatpush1.bf16.msra.mxu0 %v16293_v17  ;;  %13841 = vmatpush1.bf16.msra.mxu1 %v16543_v6  ;;  %v1551_v17 = vld [vmem:[#allocation5 + $0x2ea8] sm:$0xff] }
 0x580   :  { %13343 = vmatprep.subr.bf16.mxu0 %v16294_v7  ;;  %13843 = vmatprep.subr.bf16.mxu1 %v16544_v10  ;;  %v1559_v6 = vld [vmem:[#allocation5 + $0x2ee8] sm:$0xff]  ;;  %v16303_v7 = vcombine.low %v1534_v54, %v1542_v58  ;;  %v16553_v10 = vcombine.low %v1535_v61, %v1543_v62  ;;  %v16310_v54 = vcombine.high %v1598_v59, %v1606_v8  ;;  %v1614_v61 = vld [vmem:[#allocation5 + $0x30a0] sm:$0xff] }
 0x581   :  { %v16554_v14 = vcombine.high %v1551_v17, %v1559_v6  ;;  %v1622_v62 = vld [vmem:[#allocation5 + $0x30e0] sm:$0xff] }
 0x583   :  { %13345 = vmatpush1.bf16.msra.mxu0 %v16295_v20  ;;  %13845 = vmatpush1.bf16.msra.mxu1 %v16545_v21  ;;  %v1567_v20 = vld [vmem:[#allocation5 + $0x2f28] sm:$0xff] }
 0x584   :  { %13347 = vmatprep.subr.bf16.mxu0 %v16296_v26  ;;  %13847 = vmatprep.subr.bf16.mxu1 %v16546_v28  ;;  %v1575_v21 = vld [vmem:[#allocation5 + $0x2f68] sm:$0xff]  ;;  %v16305_v26 = vcombine.low %v1550_v60, %v1558_v31  ;;  %v16555_v28 = vcombine.low %v1551_v17, %v1559_v6  ;;  %v16312_v60 = vcombine.high %v1614_v61, %v1622_v62  ;;  %v1630_v17 = vld [vmem:[#allocation5 + $0x3120] sm:$0xff] }
 0x585   :  { %v16556_v34 = vcombine.high %v1567_v20, %v1575_v21  ;;  %v1638_v6 = vld [vmem:[#allocation5 + $0x3160] sm:$0xff] }
 0x587   :  { %13349 = vmatpush1.bf16.msra.mxu0 %v16297_v19  ;;  %13849 = vmatpush1.bf16.msra.mxu1 %v16547_v22  ;;  %v1583_v19 = vld [vmem:[#allocation5 + $0x2fa8] sm:$0xff] }
 0x588   :  { %13351 = vmatprep.subr.bf16.mxu0 %v16298_v23  ;;  %13851 = vmatprep.subr.bf16.mxu1 %v16548_v35  ;;  %v1591_v22 = vld [vmem:[#allocation5 + $0x2fe8] sm:$0xff]  ;;  %v16307_v23 = vcombine.low %v1566_v15, %v1574_v16  ;;  %v16557_v35 = vcombine.low %v1567_v20, %v1575_v21  ;;  %v16314_v15 = vcombine.high %v1630_v17, %v1638_v6  ;;  %v1646_v20 = vld [vmem:[#allocation5 + $0x31a0] sm:$0xff] }
 0x589   :  { %v16558_v43 = vcombine.high %v1583_v19, %v1591_v22  ;;  %v1654_v21 = vld [vmem:[#allocation5 + $0x31e0] sm:$0xff] }
 0x58b   :  { %13353 = vmatpush1.bf16.msra.mxu0 %v16299_v44  ;;  %13853 = vmatpush1.bf16.msra.mxu1 %v16549_v47  ;;  %v1599_v44 = vld [vmem:[#allocation5 + $0x3028] sm:$0xff] }
 0x58c   :  { %13355 = vmatprep.subr.bf16.mxu0 %v16300_v48  ;;  %13855 = vmatprep.subr.bf16.mxu1 %v16550_v49  ;;  %v1607_v47 = vld [vmem:[#allocation5 + $0x3068] sm:$0xff]  ;;  %v16309_v48 = vcombine.low %v1582_v30, %v1590_v18  ;;  %v16559_v49 = vcombine.low %v1583_v19, %v1591_v22  ;;  %v16316_v30 = vcombine.high %v1646_v20, %v1654_v21  ;;  %v1662_v19 = vld [vmem:[#allocation5 + $0x3220] sm:$0xff] }
 0x58d   :  { %v16560_v58 = vcombine.high %v1599_v44, %v1607_v47  ;;  %v1670_v22 = vld [vmem:[#allocation5 + $0x3260] sm:$0xff] }
 0x58f   :  { %13357 = vmatpush1.bf16.msra.mxu0 %v16301_v2  ;;  %13857 = vmatpush1.bf16.msra.mxu1 %v16551_v4  ;;  %v1615_v2 = vld [vmem:[#allocation5 + $0x30a8] sm:$0xff] }
 0x590   :  { %13359 = vmatprep.subr.bf16.mxu0 %v16302_v5  ;;  %13859 = vmatprep.subr.bf16.mxu1 %v16552_v55  ;;  %v1623_v4 = vld [vmem:[#allocation5 + $0x30e8] sm:$0xff]  ;;  %v16311_v5 = vcombine.low %v1598_v59, %v1606_v8  ;;  %v16561_v55 = vcombine.low %v1599_v44, %v1607_v47  ;;  %v16318_v59 = vcombine.high %v1662_v19, %v1670_v22  ;;  %v1678_v44 = vld [vmem:[#allocation5 + $0x32a0] sm:$0xff] }
 0x591   :  { %v16562_v31 = vcombine.high %v1615_v2, %v1623_v4  ;;  %v1686_v47 = vld [vmem:[#allocation5 + $0x32e0] sm:$0xff] }
 0x593   :  { %13361 = vmatpush1.bf16.msra.mxu0 %v16303_v7  ;;  %13861 = vmatpush1.bf16.msra.mxu1 %v16553_v10  ;;  %v1631_v7 = vld [vmem:[#allocation5 + $0x3128] sm:$0xff] }
 0x594   :  { %13363 = vmatprep.subr.bf16.mxu0 %v16304_v13  ;;  %13863 = vmatprep.subr.bf16.mxu1 %v16554_v14  ;;  %v1639_v10 = vld [vmem:[#allocation5 + $0x3168] sm:$0xff]  ;;  %v16313_v13 = vcombine.low %v1614_v61, %v1622_v62  ;;  %v16563_v14 = vcombine.low %v1615_v2, %v1623_v4  ;;  %v16320_v61 = vcombine.high %v1678_v44, %v1686_v47  ;;  %v1694_v2 = vld [vmem:[#allocation5 + $0x3320] sm:$0xff] }
 0x595   :  { %v16564_v16 = vcombine.high %v1631_v7, %v1639_v10  ;;  %v1702_v4 = vld [vmem:[#allocation5 + $0x3360] sm:$0xff] }
 0x597   :  { %13365 = vmatpush1.bf16.msra.mxu0 %v16305_v26  ;;  %13865 = vmatpush1.bf16.msra.mxu1 %v16555_v28  ;;  %v1647_v26 = vld [vmem:[#allocation5 + $0x31a8] sm:$0xff] }
 0x598   :  { %13367 = vmatprep.subr.bf16.mxu0 %v16306_v63  ;;  %13867 = vmatprep.subr.bf16.mxu1 %v16556_v34  ;;  %v1655_v28 = vld [vmem:[#allocation5 + $0x31e8] sm:$0xff]  ;;  %v16315_v63 = vcombine.low %v1630_v17, %v1638_v6  ;;  %v16565_v34 = vcombine.low %v1631_v7, %v1639_v10  ;;  %v16322_v17 = vcombine.high %v1694_v2, %v1702_v4  ;;  %v1710_v7 = vld [vmem:[#allocation5 + $0x33a0] sm:$0xff] }
 0x599   :  { %v16566_v18 = vcombine.high %v1647_v26, %v1655_v28  ;;  %v1718_v10 = vld [vmem:[#allocation5 + $0x33e0] sm:$0xff] }
 0x59b   :  { %13369 = vmatpush1.bf16.msra.mxu0 %v16307_v23  ;;  %13869 = vmatpush1.bf16.msra.mxu1 %v16557_v35  ;;  %v1663_v23 = vld [vmem:[#allocation5 + $0x3228] sm:$0xff] }
 0x59c   :  { %13371 = vmatprep.subr.bf16.mxu0 %v16308_v39  ;;  %13871 = vmatprep.subr.bf16.mxu1 %v16558_v43  ;;  %v1671_v35 = vld [vmem:[#allocation5 + $0x3268] sm:$0xff]  ;;  %v16317_v39 = vcombine.low %v1646_v20, %v1654_v21  ;;  %v16567_v43 = vcombine.low %v1647_v26, %v1655_v28  ;;  %v16324_v20 = vcombine.high %v1710_v7, %v1718_v10  ;;  %v1726_v26 = vld [vmem:[#allocation5 + $0x3420] sm:$0xff] }
 0x59d   :  { %v16568_v8 = vcombine.high %v1663_v23, %v1671_v35  ;;  %v1734_v28 = vld [vmem:[#allocation5 + $0x3460] sm:$0xff] }
 0x59f   :  { %13373 = vmatpush1.bf16.msra.mxu0 %v16309_v48  ;;  %13873 = vmatpush1.bf16.msra.mxu1 %v16559_v49  ;;  %v1679_v48 = vld [vmem:[#allocation5 + $0x32a8] sm:$0xff] }
 0x5a0   :  { %13375 = vmatprep.subr.bf16.mxu0 %v16310_v54  ;;  %13875 = vmatprep.subr.bf16.mxu1 %v16560_v58  ;;  %v1687_v49 = vld [vmem:[#allocation5 + $0x32e8] sm:$0xff]  ;;  %v16319_v54 = vcombine.low %v1662_v19, %v1670_v22  ;;  %v16569_v58 = vcombine.low %v1663_v23, %v1671_v35  ;;  %v16326_v19 = vcombine.high %v1726_v26, %v1734_v28  ;;  %v1742_v23 = vld [vmem:[#allocation5 + $0x34a0] sm:$0xff] }
 0x5a1   :  { %v16570_v62 = vcombine.high %v1679_v48, %v1687_v49  ;;  %v1750_v35 = vld [vmem:[#allocation5 + $0x34e0] sm:$0xff] }
 0x5a2   :  { %8924 = vmatmul.mubr.f32.vlgmr.msra.gmra.mrb[4].mxu0 %v17367_v0  ;;  %9492 = vmatmul.mubr.f32.vlgmr.msra.gmra.mrb[4].mxu1 %v17367_v0 }
 0x5a3   :  { %13377 = vmatpush1.bf16.msra.mxu0 %v16311_v5  ;;  %13877 = vmatpush1.bf16.msra.mxu1 %v16561_v55  ;;  %v1695_v5 = vld [vmem:[#allocation5 + $0x3328] sm:$0xff] }
 0x5a4   :  { %13379 = vmatprep.subr.bf16.mxu0 %v16312_v60  ;;  %13879 = vmatprep.subr.bf16.mxu1 %v16562_v31  ;;  %v1703_v55 = vld [vmem:[#allocation5 + $0x3368] sm:$0xff]  ;;  %v16321_v60 = vcombine.low %v1678_v44, %v1686_v47  ;;  %v16571_v31 = vcombine.low %v1679_v48, %v1687_v49  ;;  %v16328_v44 = vcombine.high %v1742_v23, %v1750_v35  ;;  %v1758_v48 = vld [vmem:[#allocation5 + $0x3520] sm:$0xff] }
 0x5a5   :  { %8994 = vmatprep.mubr.f32.mxu0 %v17386_v51  ;;  %9562 = vmatprep.mubr.f32.mxu1 %v17386_v51  ;;  %v16572_v6 = vcombine.high %v1695_v5, %v1703_v55  ;;  %v1766_v49 = vld [vmem:[#allocation5 + $0x3560] sm:$0xff] }
 0x5a7   :  { %13381 = vmatpush1.bf16.msra.mxu0 %v16313_v13  ;;  %13881 = vmatpush1.bf16.msra.mxu1 %v16563_v14  ;;  %v1711_v13 = vld [vmem:[#allocation5 + $0x33a8] sm:$0xff] }
 0x5a8   :  { %13383 = vmatprep.subr.bf16.mxu0 %v16314_v15  ;;  %13883 = vmatprep.subr.bf16.mxu1 %v16564_v16  ;;  %v1719_v14 = vld [vmem:[#allocation5 + $0x33e8] sm:$0xff]  ;;  %v16323_v15 = vcombine.low %v1694_v2, %v1702_v4  ;;  %v16573_v16 = vcombine.low %v1695_v5, %v1703_v55  ;;  %v16330_v2 = vcombine.high %v1758_v48, %v1766_v49  ;;  %v1774_v5 = vld [vmem:[#allocation5 + $0x35a0] sm:$0xff] }
 0x5a9   :  { %v16574_v21 = vcombine.high %v1711_v13, %v1719_v14  ;;  %v1782_v55 = vld [vmem:[#allocation5 + $0x35e0] sm:$0xff] }
 0x5ab   :  { %13385 = vmatpush1.bf16.msra.mxu0 %v16315_v63  ;;  %13885 = vmatpush1.bf16.msra.mxu1 %v16565_v34  ;;  %v1727_v63 = vld [vmem:[#allocation5 + $0x3428] sm:$0xff] }
 0x5ac   :  { %13387 = vmatprep.subr.bf16.mxu0 %v16316_v30  ;;  %13887 = vmatprep.subr.bf16.mxu1 %v16566_v18  ;;  %v1735_v34 = vld [vmem:[#allocation5 + $0x3468] sm:$0xff]  ;;  %v16325_v30 = vcombine.low %v1710_v7, %v1718_v10  ;;  %v16575_v18 = vcombine.low %v1711_v13, %v1719_v14  ;;  %v16332_v7 = vcombine.high %v1774_v5, %v1782_v55  ;;  %v1790_v13 = vld [vmem:[#allocation5 + $0x3620] sm:$0xff] }
 0x5ad   :  { %v16576_v22 = vcombine.high %v1727_v63, %v1735_v34  ;;  %v1798_v14 = vld [vmem:[#allocation5 + $0x3660] sm:$0xff] }
 0x5af   :  { %13389 = vmatpush1.bf16.msra.mxu0 %v16317_v39  ;;  %13889 = vmatpush1.bf16.msra.mxu1 %v16567_v43  ;;  %v1743_v39 = vld [vmem:[#allocation5 + $0x34a8] sm:$0xff] }
 0x5b0   :  { %13391 = vmatprep.subr.bf16.mxu0 %v16318_v59  ;;  %13891 = vmatprep.subr.bf16.mxu1 %v16568_v8  ;;  %v1751_v43 = vld [vmem:[#allocation5 + $0x34e8] sm:$0xff]  ;;  %v16327_v59 = vcombine.low %v1726_v26, %v1734_v28  ;;  %v16577_v8 = vcombine.low %v1727_v63, %v1735_v34  ;;  %v16334_v26 = vcombine.high %v1790_v13, %v1798_v14  ;;  %v1806_v63 = vld [vmem:[#allocation5 + $0x36a0] sm:$0xff] }
 0x5b1   :  { %v16578_v47 = vcombine.high %v1743_v39, %v1751_v43  ;;  %v1814_v34 = vld [vmem:[#allocation5 + $0x36e0] sm:$0xff] }
 0x5b3   :  { %13393 = vmatpush1.bf16.msra.mxu0 %v16319_v54  ;;  %13893 = vmatpush1.bf16.msra.mxu1 %v16569_v58  ;;  %v1759_v54 = vld [vmem:[#allocation5 + $0x3528] sm:$0xff] }
 0x5b4   :  { %13395 = vmatprep.subr.bf16.mxu0 %v16320_v61  ;;  %13895 = vmatprep.subr.bf16.mxu1 %v16570_v62  ;;  %v1767_v58 = vld [vmem:[#allocation5 + $0x3568] sm:$0xff]  ;;  %v16329_v61 = vcombine.low %v1742_v23, %v1750_v35  ;;  %v16579_v62 = vcombine.low %v1743_v39, %v1751_v43  ;;  %v16336_v23 = vcombine.high %v1806_v63, %v1814_v34  ;;  %v1822_v39 = vld [vmem:[#allocation5 + $0x3720] sm:$0xff] }
 0x5b5   :  { %v16580_v4 = vcombine.high %v1759_v54, %v1767_v58  ;;  %v1830_v43 = vld [vmem:[#allocation5 + $0x3760] sm:$0xff] }
 0x5b7   :  { %13397 = vmatpush1.bf16.msra.mxu0 %v16321_v60  ;;  %13897 = vmatpush1.bf16.msra.mxu1 %v16571_v31  ;;  %v1775_v60 = vld [vmem:[#allocation5 + $0x35a8] sm:$0xff] }
 0x5b8   :  { %13399 = vmatprep.subr.bf16.mxu0 %v16322_v17  ;;  %13899 = vmatprep.subr.bf16.mxu1 %v16572_v6  ;;  %v1783_v31 = vld [vmem:[#allocation5 + $0x35e8] sm:$0xff]  ;;  %v16331_v17 = vcombine.low %v1758_v48, %v1766_v49  ;;  %v16581_v6 = vcombine.low %v1759_v54, %v1767_v58  ;;  %v16338_v48 = vcombine.high %v1822_v39, %v1830_v43  ;;  %v1838_v54 = vld [vmem:[#allocation5 + $0x37a0] sm:$0xff] }
 0x5b9   :  { %v16582_v10 = vcombine.high %v1775_v60, %v1783_v31  ;;  %v1846_v58 = vld [vmem:[#allocation5 + $0x37e0] sm:$0xff] }
 0x5bb   :  { %13401 = vmatpush1.bf16.msra.mxu0 %v16323_v15  ;;  %13901 = vmatpush1.bf16.msra.mxu1 %v16573_v16  ;;  %v1791_v15 = vld [vmem:[#allocation5 + $0x3628] sm:$0xff] }
 0x5bc   :  { %13403 = vmatprep.subr.bf16.mxu0 %v16324_v20  ;;  %13903 = vmatprep.subr.bf16.mxu1 %v16574_v21  ;;  %v1799_v16 = vld [vmem:[#allocation5 + $0x3668] sm:$0xff]  ;;  %v16333_v20 = vcombine.low %v1774_v5, %v1782_v55  ;;  %v16583_v21 = vcombine.low %v1775_v60, %v1783_v31  ;;  %v16340_v5 = vcombine.high %v1838_v54, %v1846_v58  ;;  %v1854_v60 = vld [vmem:[#allocation5 + $0x3820] sm:$0xff] }
 0x5bd   :  { %v16584_v28 = vcombine.high %v1791_v15, %v1799_v16  ;;  %v1862_v31 = vld [vmem:[#allocation5 + $0x3860] sm:$0xff] }
 0x5bf   :  { %13405 = vmatpush1.bf16.msra.mxu0 %v16325_v30  ;;  %13905 = vmatpush1.bf16.msra.mxu1 %v16575_v18  ;;  %v1807_v30 = vld [vmem:[#allocation5 + $0x36a8] sm:$0xff] }
 0x5c0   :  { %13407 = vmatprep.subr.bf16.mxu0 %v16326_v19  ;;  %13907 = vmatprep.subr.bf16.mxu1 %v16576_v22  ;;  %v1815_v18 = vld [vmem:[#allocation5 + $0x36e8] sm:$0xff]  ;;  %v16335_v19 = vcombine.low %v1790_v13, %v1798_v14  ;;  %v16585_v22 = vcombine.low %v1791_v15, %v1799_v16  ;;  %v16342_v13 = vcombine.high %v1854_v60, %v1862_v31  ;;  %v1870_v15 = vld [vmem:[#allocation5 + $0x38a0] sm:$0xff] }
 0x5c1   :  { %v16586_v35 = vcombine.high %v1807_v30, %v1815_v18  ;;  %v1878_v16 = vld [vmem:[#allocation5 + $0x38e0] sm:$0xff] }
 0x5c3   :  { %13409 = vmatpush1.bf16.msra.mxu0 %v16327_v59  ;;  %13909 = vmatpush1.bf16.msra.mxu1 %v16577_v8  ;;  %v1823_v59 = vld [vmem:[#allocation5 + $0x3728] sm:$0xff] }
 0x5c4   :  { %13411 = vmatprep.subr.bf16.mxu0 %v16328_v44  ;;  %13911 = vmatprep.subr.bf16.mxu1 %v16578_v47  ;;  %v1831_v8 = vld [vmem:[#allocation5 + $0x3768] sm:$0xff]  ;;  %v16337_v44 = vcombine.low %v1806_v63, %v1814_v34  ;;  %v16587_v47 = vcombine.low %v1807_v30, %v1815_v18  ;;  %v16344_v63 = vcombine.high %v1870_v15, %v1878_v16  ;;  %v1886_v30 = vld [vmem:[#allocation5 + $0x3920] sm:$0xff] }
 0x5c5   :  { %v16588_v49 = vcombine.high %v1823_v59, %v1831_v8  ;;  %v1894_v18 = vld [vmem:[#allocation5 + $0x3960] sm:$0xff] }
 0x5c7   :  { %13413 = vmatpush1.bf16.msra.mxu0 %v16329_v61  ;;  %13913 = vmatpush1.bf16.msra.mxu1 %v16579_v62  ;;  %v1839_v61 = vld [vmem:[#allocation5 + $0x37a8] sm:$0xff] }
 0x5c8   :  { %13415 = vmatprep.subr.bf16.mxu0 %v16330_v2  ;;  %13915 = vmatprep.subr.bf16.mxu1 %v16580_v4  ;;  %v1847_v62 = vld [vmem:[#allocation5 + $0x37e8] sm:$0xff]  ;;  %v16339_v2 = vcombine.low %v1822_v39, %v1830_v43  ;;  %v16589_v4 = vcombine.low %v1823_v59, %v1831_v8  ;;  %v16346_v39 = vcombine.high %v1886_v30, %v1894_v18  ;;  %v1902_v59 = vld [vmem:[#allocation5 + $0x39a0] sm:$0xff] }
 0x5c9   :  { %v16590_v55 = vcombine.high %v1839_v61, %v1847_v62  ;;  %v1910_v8 = vld [vmem:[#allocation5 + $0x39e0] sm:$0xff] }
 0x5cb   :  { %13417 = vmatpush1.bf16.msra.mxu0 %v16331_v17  ;;  %13917 = vmatpush1.bf16.msra.mxu1 %v16581_v6  ;;  %v1855_v17 = vld [vmem:[#allocation5 + $0x3828] sm:$0xff] }
 0x5cc   :  { %13419 = vmatprep.subr.bf16.mxu0 %v16332_v7  ;;  %13919 = vmatprep.subr.bf16.mxu1 %v16582_v10  ;;  %v1863_v6 = vld [vmem:[#allocation5 + $0x3868] sm:$0xff]  ;;  %v16341_v7 = vcombine.low %v1838_v54, %v1846_v58  ;;  %v16591_v10 = vcombine.low %v1839_v61, %v1847_v62  ;;  %v16348_v54 = vcombine.high %v1902_v59, %v1910_v8  ;;  %v1918_v61 = vld [vmem:[#allocation5 + $0x3a20] sm:$0xff] }
 0x5cd   :  { %v16592_v14 = vcombine.high %v1855_v17, %v1863_v6  ;;  %v1926_v62 = vld [vmem:[#allocation5 + $0x3a60] sm:$0xff] }
 0x5cf   :  { %13421 = vmatpush1.bf16.msra.mxu0 %v16333_v20  ;;  %13921 = vmatpush1.bf16.msra.mxu1 %v16583_v21  ;;  %v1871_v20 = vld [vmem:[#allocation5 + $0x38a8] sm:$0xff] }
 0x5d0   :  { %13423 = vmatprep.subr.bf16.mxu0 %v16334_v26  ;;  %13923 = vmatprep.subr.bf16.mxu1 %v16584_v28  ;;  %v1879_v21 = vld [vmem:[#allocation5 + $0x38e8] sm:$0xff]  ;;  %v16343_v26 = vcombine.low %v1854_v60, %v1862_v31  ;;  %v16593_v28 = vcombine.low %v1855_v17, %v1863_v6  ;;  %v16350_v60 = vcombine.high %v1918_v61, %v1926_v62  ;;  %v1934_v17 = vld [vmem:[#allocation5 + $0x3aa0] sm:$0xff] }
 0x5d1   :  { %v16594_v34 = vcombine.high %v1871_v20, %v1879_v21  ;;  %v1942_v6 = vld [vmem:[#allocation5 + $0x3ae0] sm:$0xff] }
 0x5d3   :  { %13425 = vmatpush1.bf16.msra.mxu0 %v16335_v19  ;;  %13925 = vmatpush1.bf16.msra.mxu1 %v16585_v22  ;;  %v1887_v19 = vld [vmem:[#allocation5 + $0x3928] sm:$0xff] }
 0x5d4   :  { %13427 = vmatprep.subr.bf16.mxu0 %v16336_v23  ;;  %13927 = vmatprep.subr.bf16.mxu1 %v16586_v35  ;;  %v1895_v22 = vld [vmem:[#allocation5 + $0x3968] sm:$0xff]  ;;  %v16345_v23 = vcombine.low %v1870_v15, %v1878_v16  ;;  %v16595_v35 = vcombine.low %v1871_v20, %v1879_v21  ;;  %v16352_v15 = vcombine.high %v1934_v17, %v1942_v6  ;;  %v1950_v20 = vld [vmem:[#allocation5 + $0x3b20] sm:$0xff] }
 0x5d5   :  { %v16596_v43 = vcombine.high %v1887_v19, %v1895_v22  ;;  %v1958_v21 = vld [vmem:[#allocation5 + $0x3b60] sm:$0xff] }
 0x5d7   :  { %13429 = vmatpush1.bf16.msra.mxu0 %v16337_v44  ;;  %13929 = vmatpush1.bf16.msra.mxu1 %v16587_v47  ;;  %v1903_v44 = vld [vmem:[#allocation5 + $0x39a8] sm:$0xff] }
 0x5d8   :  { %13431 = vmatprep.subr.bf16.mxu0 %v16338_v48  ;;  %13931 = vmatprep.subr.bf16.mxu1 %v16588_v49  ;;  %v1911_v47 = vld [vmem:[#allocation5 + $0x39e8] sm:$0xff]  ;;  %v16347_v48 = vcombine.low %v1886_v30, %v1894_v18  ;;  %v16597_v49 = vcombine.low %v1887_v19, %v1895_v22  ;;  %v16354_v30 = vcombine.high %v1950_v20, %v1958_v21  ;;  %v1966_v19 = vld [vmem:[#allocation5 + $0x3ba0] sm:$0xff] }
 0x5d9   :  { %v16598_v58 = vcombine.high %v1903_v44, %v1911_v47  ;;  %v1974_v22 = vld [vmem:[#allocation5 + $0x3be0] sm:$0xff] }
 0x5db   :  { %13433 = vmatpush1.bf16.msra.mxu0 %v16339_v2  ;;  %13933 = vmatpush1.bf16.msra.mxu1 %v16589_v4  ;;  %v1919_v2 = vld [vmem:[#allocation5 + $0x3a28] sm:$0xff] }
 0x5dc   :  { %13435 = vmatprep.subr.bf16.mxu0 %v16340_v5  ;;  %13935 = vmatprep.subr.bf16.mxu1 %v16590_v55  ;;  %v1927_v4 = vld [vmem:[#allocation5 + $0x3a68] sm:$0xff]  ;;  %v16349_v5 = vcombine.low %v1902_v59, %v1910_v8  ;;  %v16599_v55 = vcombine.low %v1903_v44, %v1911_v47  ;;  %v16356_v59 = vcombine.high %v1966_v19, %v1974_v22  ;;  %v1982_v44 = vld [vmem:[#allocation5 + $0x3c20] sm:$0xff] }
 0x5dd   :  { %v16600_v31 = vcombine.high %v1919_v2, %v1927_v4  ;;  %v1990_v47 = vld [vmem:[#allocation5 + $0x3c60] sm:$0xff] }
 0x5df   :  { %13437 = vmatpush1.bf16.msra.mxu0 %v16341_v7  ;;  %13937 = vmatpush1.bf16.msra.mxu1 %v16591_v10  ;;  %v1935_v7 = vld [vmem:[#allocation5 + $0x3aa8] sm:$0xff] }
 0x5e0   :  { %13439 = vmatprep.subr.bf16.mxu0 %v16342_v13  ;;  %13939 = vmatprep.subr.bf16.mxu1 %v16592_v14  ;;  %v1943_v10 = vld [vmem:[#allocation5 + $0x3ae8] sm:$0xff]  ;;  %v16351_v13 = vcombine.low %v1918_v61, %v1926_v62  ;;  %v16601_v14 = vcombine.low %v1919_v2, %v1927_v4  ;;  %v16358_v61 = vcombine.high %v1982_v44, %v1990_v47  ;;  %v1998_v2 = vld [vmem:[#allocation5 + $0x3ca0] sm:$0xff] }
 0x5e1   :  { %v16602_v16 = vcombine.high %v1935_v7, %v1943_v10  ;;  %v2006_v4 = vld [vmem:[#allocation5 + $0x3ce0] sm:$0xff] }
 0x5e2   :  { %8995 = vmatmul.mubr.f32.vlgmr.msra.gmra.mrb[4].mxu0 %v17382_v42  ;;  %9563 = vmatmul.mubr.f32.vlgmr.msra.gmra.mrb[4].mxu1 %v17382_v42 }
 0x5e3   :  { %13441 = vmatpush1.bf16.msra.mxu0 %v16343_v26  ;;  %13941 = vmatpush1.bf16.msra.mxu1 %v16593_v28  ;;  %v1951_v26 = vld [vmem:[#allocation5 + $0x3b28] sm:$0xff] }
 0x5e4   :  { %13443 = vmatprep.subr.bf16.mxu0 %v16344_v63  ;;  %13943 = vmatprep.subr.bf16.mxu1 %v16594_v34  ;;  %v1959_v28 = vld [vmem:[#allocation5 + $0x3b68] sm:$0xff]  ;;  %v16353_v63 = vcombine.low %v1934_v17, %v1942_v6  ;;  %v16603_v34 = vcombine.low %v1935_v7, %v1943_v10  ;;  %v16360_v17 = vcombine.high %v1998_v2, %v2006_v4  ;;  %v2014_v7 = vld [vmem:[#allocation5 + $0x3d20] sm:$0xff] }
 0x5e5   :  { %10978 = vmatprep.mubr.msk.f32.mxu0 %vm6229_vm0, %v17399_v36  ;;  %10979 = vmatprep.mubr.msk.f32.mxu1 %vm6229_vm0, %v17399_v36  ;;  %v16604_v18 = vcombine.high %v1951_v26, %v1959_v28  ;;  %v2022_v10 = vld [vmem:[#allocation5 + $0x3d60] sm:$0xff] }
 0x5e7   :  { %13445 = vmatpush1.bf16.msra.mxu0 %v16345_v23  ;;  %13945 = vmatpush1.bf16.msra.mxu1 %v16595_v35  ;;  %v1967_v23 = vld [vmem:[#allocation5 + $0x3ba8] sm:$0xff] }
 0x5e8   :  { %13447 = vmatprep.subr.bf16.mxu0 %v16346_v39  ;;  %13947 = vmatprep.subr.bf16.mxu1 %v16596_v43  ;;  %v1975_v35 = vld [vmem:[#allocation5 + $0x3be8] sm:$0xff]  ;;  %v16355_v39 = vcombine.low %v1950_v20, %v1958_v21  ;;  %v16605_v43 = vcombine.low %v1951_v26, %v1959_v28  ;;  %v16362_v20 = vcombine.high %v2014_v7, %v2022_v10  ;;  %v2030_v26 = vld [vmem:[#allocation5 + $0x3da0] sm:$0xff] }
 0x5e9   :  { %v16606_v8 = vcombine.high %v1967_v23, %v1975_v35  ;;  %v2038_v28 = vld [vmem:[#allocation5 + $0x3de0] sm:$0xff] }
 0x5eb   :  { %13449 = vmatpush1.bf16.msra.mxu0 %v16347_v48  ;;  %13949 = vmatpush1.bf16.msra.mxu1 %v16597_v49  ;;  %v1983_v48 = vld [vmem:[#allocation5 + $0x3c28] sm:$0xff] }
 0x5ec   :  { %13451 = vmatprep.subr.bf16.mxu0 %v16348_v54  ;;  %13951 = vmatprep.subr.bf16.mxu1 %v16598_v58  ;;  %v1991_v49 = vld [vmem:[#allocation5 + $0x3c68] sm:$0xff]  ;;  %v16357_v54 = vcombine.low %v1966_v19, %v1974_v22  ;;  %v16607_v58 = vcombine.low %v1967_v23, %v1975_v35  ;;  %v16364_v19 = vcombine.high %v2030_v26, %v2038_v28  ;;  %v2046_v23 = vld [vmem:[#allocation5 + $0x3e20] sm:$0xff] }
 0x5ed   :  { %v16608_v62 = vcombine.high %v1983_v48, %v1991_v49  ;;  %v2054_v35 = vld [vmem:[#allocation5 + $0x3e60] sm:$0xff] }
 0x5ef   :  { %13453 = vmatpush1.bf16.msra.mxu0 %v16349_v5  ;;  %13953 = vmatpush1.bf16.msra.mxu1 %v16599_v55  ;;  %v1999_v5 = vld [vmem:[#allocation5 + $0x3ca8] sm:$0xff] }
 0x5f0   :  { %13455 = vmatprep.subr.bf16.mxu0 %v16350_v60  ;;  %13955 = vmatprep.subr.bf16.mxu1 %v16600_v31  ;;  %v2007_v55 = vld [vmem:[#allocation5 + $0x3ce8] sm:$0xff]  ;;  %v16359_v60 = vcombine.low %v1982_v44, %v1990_v47  ;;  %v16609_v31 = vcombine.low %v1983_v48, %v1991_v49  ;;  %v16366_v44 = vcombine.high %v2046_v23, %v2054_v35  ;;  %v64_v48 = vld [vmem:[#allocation5 + $0x30] sm:$0xff] }
 0x5f1   :  { %v16610_v6 = vcombine.high %v1999_v5, %v2007_v55  ;;  %v72_v49 = vld [vmem:[#allocation5 + $0x70] sm:$0xff] }
 0x5f3   :  { %13457 = vmatpush1.bf16.msra.mxu0 %v16351_v13  ;;  %13957 = vmatpush1.bf16.msra.mxu1 %v16601_v14  ;;  %v2015_v13 = vld [vmem:[#allocation5 + $0x3d28] sm:$0xff] }
 0x5f4   :  { %13459 = vmatprep.subr.bf16.mxu0 %v16352_v15  ;;  %13959 = vmatprep.subr.bf16.mxu1 %v16602_v16  ;;  %v2023_v14 = vld [vmem:[#allocation5 + $0x3d68] sm:$0xff]  ;;  %v16361_v15 = vcombine.low %v1998_v2, %v2006_v4  ;;  %v16611_v16 = vcombine.low %v1999_v5, %v2007_v55  ;;  %v16618_v2 = vcombine.high %v64_v48, %v72_v49  ;;  %v80_v5 = vld [vmem:[#allocation5 + $0xb0] sm:$0xff] }
 0x5f5   :  { %v16612_v21 = vcombine.high %v2015_v13, %v2023_v14  ;;  %v88_v55 = vld [vmem:[#allocation5 + $0xf0] sm:$0xff] }
 0x5f7   :  { %13461 = vmatpush1.bf16.msra.mxu0 %v16353_v63  ;;  %13961 = vmatpush1.bf16.msra.mxu1 %v16603_v34  ;;  %v2031_v63 = vld [vmem:[#allocation5 + $0x3da8] sm:$0xff] }
 0x5f8   :  { %13463 = vmatprep.subr.bf16.mxu0 %v16354_v30  ;;  %13963 = vmatprep.subr.bf16.mxu1 %v16604_v18  ;;  %v2039_v34 = vld [vmem:[#allocation5 + $0x3de8] sm:$0xff]  ;;  %v16363_v30 = vcombine.low %v2014_v7, %v2022_v10  ;;  %v16613_v18 = vcombine.low %v2015_v13, %v2023_v14  ;;  %v16620_v7 = vcombine.high %v80_v5, %v88_v55  ;;  %v96_v13 = vld [vmem:[#allocation5 + $0x130] sm:$0xff] }
 0x5f9   :  { %v16614_v22 = vcombine.high %v2031_v63, %v2039_v34  ;;  %v104_v14 = vld [vmem:[#allocation5 + $0x170] sm:$0xff] }
 0x5fb   :  { %13465 = vmatpush1.bf16.msra.mxu0 %v16355_v39  ;;  %13965 = vmatpush1.bf16.msra.mxu1 %v16605_v43  ;;  %v2047_v39 = vld [vmem:[#allocation5 + $0x3e28] sm:$0xff] }
 0x5fc   :  { %13467 = vmatprep.subr.bf16.mxu0 %v16356_v59  ;;  %13967 = vmatprep.subr.bf16.mxu1 %v16606_v8  ;;  %v2055_v43 = vld [vmem:[#allocation5 + $0x3e68] sm:$0xff]  ;;  %v16365_v59 = vcombine.low %v2030_v26, %v2038_v28  ;;  %v16615_v8 = vcombine.low %v2031_v63, %v2039_v34  ;;  %v16622_v26 = vcombine.high %v96_v13, %v104_v14  ;;  %v112_v63 = vld [vmem:[#allocation5 + $0x1b0] sm:$0xff] }
 0x5fd   :  { %v16616_v47 = vcombine.high %v2047_v39, %v2055_v43  ;;  %v120_v34 = vld [vmem:[#allocation5 + $0x1f0] sm:$0xff] }
 0x5ff   :  { %13469 = vmatpush1.bf16.msra.mxu0 %v16357_v54  ;;  %13969 = vmatpush1.bf16.msra.mxu1 %v16607_v58  ;;  %v65_v54 = vld [vmem:[#allocation5 + $0x38] sm:$0xff] }
 0x600   :  { %13471 = vmatprep.subr.bf16.mxu0 %v16358_v61  ;;  %13971 = vmatprep.subr.bf16.mxu1 %v16608_v62  ;;  %v73_v58 = vld [vmem:[#allocation5 + $0x78] sm:$0xff]  ;;  %v16367_v61 = vcombine.low %v2046_v23, %v2054_v35  ;;  %v16617_v62 = vcombine.low %v2047_v39, %v2055_v43  ;;  %v16624_v23 = vcombine.high %v112_v63, %v120_v34  ;;  %v128_v39 = vld [vmem:[#allocation5 + $0x230] sm:$0xff] }
 0x601   :  { %v16868_v4 = vcombine.high %v65_v54, %v73_v58  ;;  %v136_v43 = vld [vmem:[#allocation5 + $0x270] sm:$0xff] }
 0x603   :  { %13473 = vmatpush1.bf16.msra.mxu0 %v16359_v60  ;;  %13973 = vmatpush1.bf16.msra.mxu1 %v16609_v31  ;;  %v81_v60 = vld [vmem:[#allocation5 + $0xb8] sm:$0xff] }
 0x604   :  { %13475 = vmatprep.subr.bf16.mxu0 %v16360_v17  ;;  %13975 = vmatprep.subr.bf16.mxu1 %v16610_v6  ;;  %v89_v31 = vld [vmem:[#allocation5 + $0xf8] sm:$0xff]  ;;  %v16619_v17 = vcombine.low %v64_v48, %v72_v49  ;;  %v16869_v6 = vcombine.low %v65_v54, %v73_v58  ;;  %v16626_v48 = vcombine.high %v128_v39, %v136_v43  ;;  %v144_v49 = vld [vmem:[#allocation5 + $0x2b0] sm:$0xff] }
 0x605   :  { %v16870_v10 = vcombine.high %v81_v60, %v89_v31  ;;  %v152_v54 = vld [vmem:[#allocation5 + $0x2f0] sm:$0xff]  ;;  %v145_v58 = vld [vmem:[#allocation5 + $0x2b8] sm:$0xff] }
 0x607   :  { %13477 = vmatpush1.bf16.msra.mxu0 %v16361_v15  ;;  %13977 = vmatpush1.bf16.msra.mxu1 %v16611_v16  ;;  %v97_v15 = vld [vmem:[#allocation5 + $0x138] sm:$0xff] }
 0x608   :  { %13479 = vmatprep.subr.bf16.mxu0 %v16362_v20  ;;  %13979 = vmatprep.subr.bf16.mxu1 %v16612_v21  ;;  %v105_v16 = vld [vmem:[#allocation5 + $0x178] sm:$0xff]  ;;  %v16621_v20 = vcombine.low %v80_v5, %v88_v55  ;;  %v16871_v21 = vcombine.low %v81_v60, %v89_v31  ;;  %v160_v55 = vld [vmem:[#allocation5 + $0x330] sm:$0xff] }
 0x609   :  { %v16872_v28 = vcombine.high %v97_v15, %v105_v16  ;;  %v168_v60 = vld [vmem:[#allocation5 + $0x370] sm:$0xff]  ;;  %v161_v31 = vld [vmem:[#allocation5 + $0x338] sm:$0xff] }
 0x60b   :  { %13481 = vmatpush1.bf16.msra.mxu0 %v16363_v30  ;;  %13981 = vmatpush1.bf16.msra.mxu1 %v16613_v18  ;;  %v113_v30 = vld [vmem:[#allocation5 + $0x1b8] sm:$0xff] }
 0x60c   :  { %13483 = vmatprep.subr.bf16.mxu0 %v16364_v19  ;;  %13983 = vmatprep.subr.bf16.mxu1 %v16614_v22  ;;  %v121_v18 = vld [vmem:[#allocation5 + $0x1f8] sm:$0xff]  ;;  %v16623_v19 = vcombine.low %v96_v13, %v104_v14  ;;  %v16873_v22 = vcombine.low %v97_v15, %v105_v16  ;;  %v176_v14 = vld [vmem:[#allocation5 + $0x3b0] sm:$0xff] }
 0x60d   :  { %v16874_v35 = vcombine.high %v113_v30, %v121_v18  ;;  %v184_v15 = vld [vmem:[#allocation5 + $0x3f0] sm:$0xff]  ;;  %v177_v16 = vld [vmem:[#allocation5 + $0x3b8] sm:$0xff] }
 0x60f   :  { %13485 = vmatpush1.bf16.msra.mxu0 %v16365_v59  ;;  %13985 = vmatpush1.bf16.msra.mxu1 %v16615_v8  ;;  %v129_v59 = vld [vmem:[#allocation5 + $0x238] sm:$0xff] }
 0x610   :  { %13487 = vmatprep.subr.bf16.mxu0 %v16366_v44  ;;  %13987 = vmatprep.subr.bf16.mxu1 %v16616_v47  ;;  %v137_v8 = vld [vmem:[#allocation5 + $0x278] sm:$0xff]  ;;  %v16625_v44 = vcombine.low %v112_v63, %v120_v34  ;;  %v16875_v47 = vcombine.low %v113_v30, %v121_v18  ;;  %v192_v34 = vld [vmem:[#allocation5 + $0x430] sm:$0xff] }
 0x611   :  { %v200_v30 = vld [vmem:[#allocation5 + $0x470] sm:$0xff]  ;;  %v193_v18 = vld [vmem:[#allocation5 + $0x438] sm:$0xff] }
 0x613   :  { %13489 = vmatpush1.bf16.msra.mxu0 %v16367_v61  ;;  %13989 = vmatpush1.bf16.msra.mxu1 %v16617_v62  ;;  %v153_v61 = vld [vmem:[#allocation5 + $0x2f8] sm:$0xff]  ;;  %v16627_v62 = vcombine.low %v128_v39, %v136_v43  ;;  %v208_v43 = vld [vmem:[#allocation5 + $0x4b0] sm:$0xff] }
 0x614   :  { %13991 = vmatprep.subr.bf16.mxu0 %v16618_v2  ;;  %14491 = vmatprep.subr.bf16.mxu1 %v16868_v4  ;;  %v16877_v2 = vcombine.low %v129_v59, %v137_v8  ;;  %v16628_v4 = vcombine.high %v144_v49, %v152_v54  ;;  %v16878_v5 = vcombine.high %v145_v58, %v153_v61 }
 0x616   :  { %9066 = vmatmul.mubr.f32.vlgmr.msra.gmra.mrb[4].mxu0 %v17395_v24  ;;  %9634 = vmatmul.mubr.f32.vlgmr.msra.gmra.mrb[4].mxu1 %v17395_v24 }
 0x617   :  { %13993 = vmatpush1.bf16.msra.mxu0 %v16619_v17  ;;  %14493 = vmatpush1.bf16.msra.mxu1 %v16869_v6  ;;  %v169_v17 = vld [vmem:[#allocation5 + $0x378] sm:$0xff]  ;;  %v16629_v6 = vcombine.low %v144_v49, %v152_v54  ;;  %v224_v54 = vld [vmem:[#allocation5 + $0x530] sm:$0xff] }
 0x618   :  { %13995 = vmatprep.subr.bf16.mxu0 %v16620_v7  ;;  %14495 = vmatprep.subr.bf16.mxu1 %v16870_v10  ;;  %v16879_v7 = vcombine.low %v145_v58, %v153_v61  ;;  %v16630_v10 = vcombine.high %v160_v55, %v168_v60  ;;  %v16880_v13 = vcombine.high %v161_v31, %v169_v17  ;;  %v232_v58 = vld [vmem:[#allocation5 + $0x570] sm:$0xff]  ;;  %v225_v61 = vld [vmem:[#allocation5 + $0x538] sm:$0xff] }
 0x619   :  { %9704 = vmatprep.mubr.f32.mxu0 %v17302_v9  ;;  %10272 = vmatprep.mubr.f32.mxu1 %v17302_v9  ;;  %v16876_v9 = vcombine.high %v129_v59, %v137_v8  ;;  %v216_v59 = vld [vmem:[#allocation5 + $0x4f0] sm:$0xff]  ;;  %v209_v8 = vld [vmem:[#allocation5 + $0x4b8] sm:$0xff] }
 0x61b   :  { %13997 = vmatpush1.bf16.msra.mxu0 %v16621_v20  ;;  %14497 = vmatpush1.bf16.msra.mxu1 %v16871_v21  ;;  %v185_v20 = vld [vmem:[#allocation5 + $0x3f8] sm:$0xff]  ;;  %v16631_v21 = vcombine.low %v160_v55, %v168_v60  ;;  %v240_v60 = vld [vmem:[#allocation5 + $0x5b0] sm:$0xff] }
 0x61c   :  { %13999 = vmatprep.subr.bf16.mxu0 %v16622_v26  ;;  %14499 = vmatprep.subr.bf16.mxu1 %v16872_v28  ;;  %v16881_v26 = vcombine.low %v161_v31, %v169_v17  ;;  %v16632_v28 = vcombine.high %v176_v14, %v184_v15  ;;  %v16882_v63 = vcombine.high %v177_v16, %v185_v20  ;;  %v248_v31 = vld [vmem:[#allocation5 + $0x5f0] sm:$0xff]  ;;  %v241_v17 = vld [vmem:[#allocation5 + $0x5b8] sm:$0xff] }
 0x61f   :  { %14001 = vmatpush1.bf16.msra.mxu0 %v16623_v19  ;;  %14501 = vmatpush1.bf16.msra.mxu1 %v16873_v22  ;;  %v201_v19 = vld [vmem:[#allocation5 + $0x478] sm:$0xff]  ;;  %v16633_v22 = vcombine.low %v176_v14, %v184_v15  ;;  %v256_v15 = vld [vmem:[#allocation5 + $0x630] sm:$0xff] }
 0x620   :  { %14003 = vmatprep.subr.bf16.mxu0 %v16624_v23  ;;  %14503 = vmatprep.subr.bf16.mxu1 %v16874_v35  ;;  %v16883_v23 = vcombine.low %v177_v16, %v185_v20  ;;  %v16634_v35 = vcombine.high %v192_v34, %v200_v30  ;;  %v16884_v39 = vcombine.high %v193_v18, %v201_v19  ;;  %v264_v16 = vld [vmem:[#allocation5 + $0x670] sm:$0xff]  ;;  %v257_v20 = vld [vmem:[#allocation5 + $0x638] sm:$0xff] }
 0x623   :  { %14005 = vmatpush1.bf16.msra.mxu0 %v16625_v44  ;;  %14505 = vmatpush1.bf16.msra.mxu1 %v16875_v47  ;;  %v217_v44 = vld [vmem:[#allocation5 + $0x4f8] sm:$0xff]  ;;  %v16635_v47 = vcombine.low %v192_v34, %v200_v30  ;;  %v272_v30 = vld [vmem:[#allocation5 + $0x6b0] sm:$0xff] }
 0x624   :  { %14007 = vmatprep.subr.bf16.mxu0 %v16626_v48  ;;  %14507 = vmatprep.subr.bf16.mxu1 %v16876_v9  ;;  %v16885_v48 = vcombine.low %v193_v18, %v201_v19  ;;  %v16636_v9 = vcombine.high %v208_v43, %v216_v59  ;;  %v16886_v49 = vcombine.high %v209_v8, %v217_v44  ;;  %v280_v18 = vld [vmem:[#allocation5 + $0x6f0] sm:$0xff]  ;;  %v273_v19 = vld [vmem:[#allocation5 + $0x6b8] sm:$0xff] }
 0x627   :  { %14009 = vmatpush1.bf16.msra.mxu0 %v16627_v62  ;;  %14509 = vmatpush1.bf16.msra.mxu1 %v16877_v2  ;;  %v233_v62 = vld [vmem:[#allocation5 + $0x578] sm:$0xff]  ;;  %v16637_v2 = vcombine.low %v208_v43, %v216_v59  ;;  %v288_v59 = vld [vmem:[#allocation5 + $0x730] sm:$0xff] }
 0x628   :  { %14011 = vmatprep.subr.bf16.mxu0 %v16628_v4  ;;  %14511 = vmatprep.subr.bf16.mxu1 %v16878_v5  ;;  %v16887_v4 = vcombine.low %v209_v8, %v217_v44  ;;  %v16638_v5 = vcombine.high %v224_v54, %v232_v58  ;;  %v16888_v55 = vcombine.high %v225_v61, %v233_v62  ;;  %v296_v8 = vld [vmem:[#allocation5 + $0x770] sm:$0xff]  ;;  %v289_v44 = vld [vmem:[#allocation5 + $0x738] sm:$0xff] }
 0x62b   :  { %14013 = vmatpush1.bf16.msra.mxu0 %v16629_v6  ;;  %14513 = vmatpush1.bf16.msra.mxu1 %v16879_v7  ;;  %v249_v6 = vld [vmem:[#allocation5 + $0x5f8] sm:$0xff]  ;;  %v16639_v7 = vcombine.low %v224_v54, %v232_v58  ;;  %v304_v58 = vld [vmem:[#allocation5 + $0x7b0] sm:$0xff] }
 0x62c   :  { %14015 = vmatprep.subr.bf16.mxu0 %v16630_v10  ;;  %14515 = vmatprep.subr.bf16.mxu1 %v16880_v13  ;;  %v16889_v10 = vcombine.low %v225_v61, %v233_v62  ;;  %v16640_v13 = vcombine.high %v240_v60, %v248_v31  ;;  %v16890_v14 = vcombine.high %v241_v17, %v249_v6  ;;  %v312_v61 = vld [vmem:[#allocation5 + $0x7f0] sm:$0xff]  ;;  %v305_v62 = vld [vmem:[#allocation5 + $0x7b8] sm:$0xff] }
 0x62f   :  { %14017 = vmatpush1.bf16.msra.mxu0 %v16631_v21  ;;  %14517 = vmatpush1.bf16.msra.mxu1 %v16881_v26  ;;  %v265_v21 = vld [vmem:[#allocation5 + $0x678] sm:$0xff]  ;;  %v16641_v26 = vcombine.low %v240_v60, %v248_v31  ;;  %v320_v31 = vld [vmem:[#allocation5 + $0x830] sm:$0xff] }
 0x630   :  { %14019 = vmatprep.subr.bf16.mxu0 %v16632_v28  ;;  %14519 = vmatprep.subr.bf16.mxu1 %v16882_v63  ;;  %v16891_v28 = vcombine.low %v241_v17, %v249_v6  ;;  %v16642_v63 = vcombine.high %v256_v15, %v264_v16  ;;  %v16892_v34 = vcombine.high %v257_v20, %v265_v21  ;;  %v328_v17 = vld [vmem:[#allocation5 + $0x870] sm:$0xff]  ;;  %v321_v6 = vld [vmem:[#allocation5 + $0x838] sm:$0xff] }
 0x633   :  { %14021 = vmatpush1.bf16.msra.mxu0 %v16633_v22  ;;  %14521 = vmatpush1.bf16.msra.mxu1 %v16883_v23  ;;  %v281_v22 = vld [vmem:[#allocation5 + $0x6f8] sm:$0xff]  ;;  %v16643_v23 = vcombine.low %v256_v15, %v264_v16  ;;  %v336_v16 = vld [vmem:[#allocation5 + $0x8b0] sm:$0xff] }
 0x634   :  { %14023 = vmatprep.subr.bf16.mxu0 %v16634_v35  ;;  %14523 = vmatprep.subr.bf16.mxu1 %v16884_v39  ;;  %v16893_v35 = vcombine.low %v257_v20, %v265_v21  ;;  %v16644_v39 = vcombine.high %v272_v30, %v280_v18  ;;  %v16894_v43 = vcombine.high %v273_v19, %v281_v22  ;;  %v344_v20 = vld [vmem:[#allocation5 + $0x8f0] sm:$0xff]  ;;  %v337_v21 = vld [vmem:[#allocation5 + $0x8b8] sm:$0xff] }
 0x637   :  { %14025 = vmatpush1.bf16.msra.mxu0 %v16635_v47  ;;  %14525 = vmatpush1.bf16.msra.mxu1 %v16885_v48  ;;  %v297_v47 = vld [vmem:[#allocation5 + $0x778] sm:$0xff]  ;;  %v16645_v48 = vcombine.low %v272_v30, %v280_v18  ;;  %v352_v18 = vld [vmem:[#allocation5 + $0x930] sm:$0xff] }
 0x638   :  { %14027 = vmatprep.subr.bf16.mxu0 %v16636_v9  ;;  %14527 = vmatprep.subr.bf16.mxu1 %v16886_v49  ;;  %v16895_v9 = vcombine.low %v273_v19, %v281_v22  ;;  %v16646_v49 = vcombine.high %v288_v59, %v296_v8  ;;  %v16896_v54 = vcombine.high %v289_v44, %v297_v47  ;;  %v360_v19 = vld [vmem:[#allocation5 + $0x970] sm:$0xff]  ;;  %v353_v22 = vld [vmem:[#allocation5 + $0x938] sm:$0xff] }
 0x63b   :  { %14029 = vmatpush1.bf16.msra.mxu0 %v16637_v2  ;;  %14529 = vmatpush1.bf16.msra.mxu1 %v16887_v4  ;;  %v313_v2 = vld [vmem:[#allocation5 + $0x7f8] sm:$0xff]  ;;  %v16647_v4 = vcombine.low %v288_v59, %v296_v8  ;;  %v368_v8 = vld [vmem:[#allocation5 + $0x9b0] sm:$0xff] }
 0x63c   :  { %14031 = vmatprep.subr.bf16.mxu0 %v16638_v5  ;;  %14531 = vmatprep.subr.bf16.mxu1 %v16888_v55  ;;  %v16897_v5 = vcombine.low %v289_v44, %v297_v47  ;;  %v16648_v55 = vcombine.high %v304_v58, %v312_v61  ;;  %v16898_v60 = vcombine.high %v305_v62, %v313_v2  ;;  %v376_v44 = vld [vmem:[#allocation5 + $0x9f0] sm:$0xff]  ;;  %v369_v47 = vld [vmem:[#allocation5 + $0x9b8] sm:$0xff] }
 0x63f   :  { %14033 = vmatpush1.bf16.msra.mxu0 %v16639_v7  ;;  %14533 = vmatpush1.bf16.msra.mxu1 %v16889_v10  ;;  %v329_v7 = vld [vmem:[#allocation5 + $0x878] sm:$0xff]  ;;  %v16649_v10 = vcombine.low %v304_v58, %v312_v61  ;;  %v384_v58 = vld [vmem:[#allocation5 + $0xa30] sm:$0xff] }
 0x640   :  { %14035 = vmatprep.subr.bf16.mxu0 %v16640_v13  ;;  %14535 = vmatprep.subr.bf16.mxu1 %v16890_v14  ;;  %v16899_v13 = vcombine.low %v305_v62, %v313_v2  ;;  %v16650_v14 = vcombine.high %v320_v31, %v328_v17  ;;  %v16900_v15 = vcombine.high %v321_v6, %v329_v7  ;;  %v392_v61 = vld [vmem:[#allocation5 + $0xa70] sm:$0xff]  ;;  %v385_v62 = vld [vmem:[#allocation5 + $0xa38] sm:$0xff] }
 0x641   :  { %v393_v2 = vld [vmem:[#allocation5 + $0xa78] sm:$0xff] }
 0x643   :  { %14037 = vmatpush1.bf16.msra.mxu0 %v16641_v26  ;;  %14537 = vmatpush1.bf16.msra.mxu1 %v16891_v28  ;;  %v345_v26 = vld [vmem:[#allocation5 + $0x8f8] sm:$0xff]  ;;  %v16651_v28 = vcombine.low %v320_v31, %v328_v17  ;;  %v408_v31 = vld [vmem:[#allocation5 + $0xaf0] sm:$0xff] }
 0x644   :  { %14039 = vmatprep.subr.bf16.mxu0 %v16642_v63  ;;  %14539 = vmatprep.subr.bf16.mxu1 %v16892_v34  ;;  %v16901_v63 = vcombine.low %v321_v6, %v329_v7  ;;  %v16652_v34 = vcombine.high %v336_v16, %v344_v20  ;;  %v16902_v30 = vcombine.high %v337_v21, %v345_v26  ;;  %v401_v17 = vld [vmem:[#allocation5 + $0xab8] sm:$0xff] }
 0x645   :  { %v409_v6 = vld [vmem:[#allocation5 + $0xaf8] sm:$0xff]  ;;  %v16659_v7 = vcombine.low %v384_v58, %v392_v61 }
 0x647   :  { %14041 = vmatpush1.bf16.msra.mxu0 %v16643_v23  ;;  %14541 = vmatpush1.bf16.msra.mxu1 %v16893_v35  ;;  %v361_v23 = vld [vmem:[#allocation5 + $0x978] sm:$0xff]  ;;  %v16653_v35 = vcombine.low %v336_v16, %v344_v20  ;;  %v424_v16 = vld [vmem:[#allocation5 + $0xb70] sm:$0xff] }
 0x648   :  { %14043 = vmatprep.subr.bf16.mxu0 %v16644_v39  ;;  %14543 = vmatprep.subr.bf16.mxu1 %v16894_v43  ;;  %v16903_v39 = vcombine.low %v337_v21, %v345_v26  ;;  %v16654_v43 = vcombine.high %v352_v18, %v360_v19  ;;  %v16904_v59 = vcombine.high %v353_v22, %v361_v23  ;;  %v417_v20 = vld [vmem:[#allocation5 + $0xb38] sm:$0xff] }
 0x649   :  { %v425_v21 = vld [vmem:[#allocation5 + $0xb78] sm:$0xff] }
 0x64b   :  { %14045 = vmatpush1.bf16.msra.mxu0 %v16645_v48  ;;  %14545 = vmatpush1.bf16.msra.mxu1 %v16895_v9  ;;  %v377_v48 = vld [vmem:[#allocation5 + $0x9f8] sm:$0xff]  ;;  %v16655_v9 = vcombine.low %v352_v18, %v360_v19  ;;  %v440_v18 = vld [vmem:[#allocation5 + $0xbf0] sm:$0xff] }
 0x64c   :  { %14047 = vmatprep.subr.bf16.mxu0 %v16646_v49  ;;  %14547 = vmatprep.subr.bf16.mxu1 %v16896_v54  ;;  %v16656_v49 = vcombine.high %v368_v8, %v376_v44  ;;  %v16906_v54 = vcombine.high %v369_v47, %v377_v48  ;;  %v433_v19 = vld [vmem:[#allocation5 + $0xbb8] sm:$0xff] }
 0x64f   :  { %14049 = vmatpush1.bf16.msra.mxu0 %v16647_v4  ;;  %14549 = vmatpush1.bf16.msra.mxu1 %v16897_v5  ;;  %v16657_v4 = vcombine.low %v368_v8, %v376_v44  ;;  %v16907_v5 = vcombine.low %v369_v47, %v377_v48  ;;  %v456_v8 = vld [vmem:[#allocation5 + $0xc70] sm:$0xff]  ;;  %v449_v44 = vld [vmem:[#allocation5 + $0xc38] sm:$0xff] }
 0x650   :  { %14051 = vmatprep.subr.bf16.mxu0 %v16648_v55  ;;  %14551 = vmatprep.subr.bf16.mxu1 %v16898_v60  ;;  %v16658_v55 = vcombine.high %v384_v58, %v392_v61  ;;  %v400_v60 = vld [vmem:[#allocation5 + $0xab0] sm:$0xff]  ;;  %v457_v47 = vld [vmem:[#allocation5 + $0xc78] sm:$0xff] }
 0x651   :  { %v16661_v26 = vcombine.low %v400_v60, %v408_v31  ;;  %v472_v58 = vld [vmem:[#allocation5 + $0xcf0] sm:$0xff]  ;;  %v465_v61 = vld [vmem:[#allocation5 + $0xcb8] sm:$0xff] }
 0x653   :  { %14053 = vmatpush1.bf16.msra.mxu0 %v16649_v10  ;;  %14553 = vmatpush1.bf16.msra.mxu1 %v16899_v13  ;;  %v16909_v10 = vcombine.low %v385_v62, %v393_v2  ;;  %v16660_v13 = vcombine.high %v400_v60, %v408_v31  ;;  %v488_v60 = vld [vmem:[#allocation5 + $0xd70] sm:$0xff]  ;;  %v481_v31 = vld [vmem:[#allocation5 + $0xd38] sm:$0xff] }
 0x654   :  { %14055 = vmatprep.subr.bf16.mxu0 %v16650_v14  ;;  %14555 = vmatprep.subr.bf16.mxu1 %v16900_v15  ;;  %v16910_v14 = vcombine.high %v401_v17, %v409_v6  ;;  %v416_v15 = vld [vmem:[#allocation5 + $0xb30] sm:$0xff] }
 0x656   :  { %9705 = vmatmul.mubr.f32.vlgmr.msra.gmra.mrb[6].mxu0 %v17298_v3  ;;  %10273 = vmatmul.mubr.f32.vlgmr.msra.gmra.mrb[6].mxu1 %v17298_v3  ;;  %v16905_v3 = vcombine.low %v353_v22, %v361_v23  ;;  %v441_v22 = vld [vmem:[#allocation5 + $0xbf8] sm:$0xff]  ;;  %v16663_v23 = vcombine.low %v416_v15, %v424_v16 }
 0x657   :  { %14057 = vmatpush1.bf16.msra.mxu0 %v16651_v28  ;;  %14557 = vmatpush1.bf16.msra.mxu1 %v16901_v63  ;;  %v16911_v28 = vcombine.low %v401_v17, %v409_v6  ;;  %v16662_v63 = vcombine.high %v416_v15, %v424_v16  ;;  %v489_v17 = vld [vmem:[#allocation5 + $0xd78] sm:$0xff]  ;;  %v504_v15 = vld [vmem:[#allocation5 + $0xdf0] sm:$0xff] }
 0x658   :  { %14059 = vmatprep.subr.bf16.mxu0 %v16652_v34  ;;  %14559 = vmatprep.subr.bf16.mxu1 %v16902_v30  ;;  %v16912_v34 = vcombine.high %v417_v20, %v425_v21  ;;  %v432_v30 = vld [vmem:[#allocation5 + $0xbb0] sm:$0xff]  ;;  %v497_v16 = vld [vmem:[#allocation5 + $0xdb8] sm:$0xff] }
 0x659   :  { %9775 = vmatprep.mubr.f32.mxu0 %v17313_v33  ;;  %10343 = vmatprep.mubr.f32.mxu1 %v17313_v33  ;;  %v16908_v33 = vcombine.high %v385_v62, %v393_v2  ;;  %v16665_v48 = vcombine.low %v432_v30, %v440_v18  ;;  %v473_v62 = vld [vmem:[#allocation5 + $0xcf8] sm:$0xff] }
 0x65b   :  { %14061 = vmatpush1.bf16.msra.mxu0 %v16653_v35  ;;  %14561 = vmatpush1.bf16.msra.mxu1 %v16903_v39  ;;  %v16913_v35 = vcombine.low %v417_v20, %v425_v21  ;;  %v16664_v39 = vcombine.high %v432_v30, %v440_v18  ;;  %v505_v20 = vld [vmem:[#allocation5 + $0xdf8] sm:$0xff]  ;;  %v520_v30 = vld [vmem:[#allocation5 + $0xe70] sm:$0xff] }
 0x65c   :  { %14063 = vmatprep.subr.bf16.mxu0 %v16654_v43  ;;  %14563 = vmatprep.subr.bf16.mxu1 %v16904_v59  ;;  %v16914_v43 = vcombine.high %v433_v19, %v441_v22  ;;  %v448_v59 = vld [vmem:[#allocation5 + $0xc30] sm:$0xff]  ;;  %v513_v18 = vld [vmem:[#allocation5 + $0xe38] sm:$0xff] }
 0x65d   :  { %v16667_v2 = vcombine.low %v448_v59, %v456_v8 }
 0x65f   :  { %14065 = vmatpush1.bf16.msra.mxu0 %v16655_v9  ;;  %14565 = vmatpush1.bf16.msra.mxu1 %v16905_v3  ;;  %v16915_v9 = vcombine.low %v433_v19, %v441_v22  ;;  %v16666_v3 = vcombine.high %v448_v59, %v456_v8  ;;  %v521_v19 = vld [vmem:[#allocation5 + $0xe78] sm:$0xff]  ;;  %v536_v59 = vld [vmem:[#allocation5 + $0xef0] sm:$0xff] }
 0x660   :  { %14067 = vmatprep.subr.bf16.mxu0 %v16656_v49  ;;  %14567 = vmatprep.subr.bf16.mxu1 %v16906_v54  ;;  %v16916_v49 = vcombine.high %v449_v44, %v457_v47  ;;  %v464_v54 = vld [vmem:[#allocation5 + $0xcb0] sm:$0xff]  ;;  %v529_v8 = vld [vmem:[#allocation5 + $0xeb8] sm:$0xff] }
 0x661   :  { %v16669_v6 = vcombine.low %v464_v54, %v472_v58 }
 0x663   :  { %14069 = vmatpush1.bf16.msra.mxu0 %v16657_v4  ;;  %14569 = vmatpush1.bf16.msra.mxu1 %v16907_v5  ;;  %v16917_v4 = vcombine.low %v449_v44, %v457_v47  ;;  %v16668_v5 = vcombine.high %v464_v54, %v472_v58  ;;  %v537_v44 = vld [vmem:[#allocation5 + $0xef8] sm:$0xff]  ;;  %v552_v54 = vld [vmem:[#allocation5 + $0xf70] sm:$0xff] }
 0x664   :  { %14071 = vmatprep.subr.bf16.mxu0 %v16658_v55  ;;  %14571 = vmatprep.subr.bf16.mxu1 %v16908_v33  ;;  %v16918_v55 = vcombine.high %v465_v61, %v473_v62  ;;  %v480_v33 = vld [vmem:[#allocation5 + $0xd30] sm:$0xff]  ;;  %v545_v58 = vld [vmem:[#allocation5 + $0xf38] sm:$0xff] }
 0x665   :  { %v16671_v21 = vcombine.low %v480_v33, %v488_v60 }
 0x667   :  { %14073 = vmatpush1.bf16.msra.mxu0 %v16659_v7  ;;  %14573 = vmatpush1.bf16.msra.mxu1 %v16909_v10  ;;  %v16919_v7 = vcombine.low %v465_v61, %v473_v62  ;;  %v16670_v10 = vcombine.high %v480_v33, %v488_v60  ;;  %v553_v61 = vld [vmem:[#allocation5 + $0xf78] sm:$0xff]  ;;  %v568_v33 = vld [vmem:[#allocation5 + $0xff0] sm:$0xff] }
 0x668   :  { %14075 = vmatprep.subr.bf16.mxu0 %v16660_v13  ;;  %14575 = vmatprep.subr.bf16.mxu1 %v16910_v14  ;;  %v16920_v13 = vcombine.high %v481_v31, %v489_v17  ;;  %v496_v14 = vld [vmem:[#allocation5 + $0xdb0] sm:$0xff]  ;;  %v561_v60 = vld [vmem:[#allocation5 + $0xfb8] sm:$0xff] }
 0x669   :  { %v16673_v22 = vcombine.low %v496_v14, %v504_v15 }
 0x66b   :  { %14077 = vmatpush1.bf16.msra.mxu0 %v16661_v26  ;;  %14577 = vmatpush1.bf16.msra.mxu1 %v16911_v28  ;;  %v16921_v26 = vcombine.low %v481_v31, %v489_v17  ;;  %v16672_v28 = vcombine.high %v496_v14, %v504_v15  ;;  %v569_v31 = vld [vmem:[#allocation5 + $0xff8] sm:$0xff]  ;;  %v584_v14 = vld [vmem:[#allocation5 + $0x1070] sm:$0xff] }
 0x66c   :  { %14079 = vmatprep.subr.bf16.mxu0 %v16662_v63  ;;  %14579 = vmatprep.subr.bf16.mxu1 %v16912_v34  ;;  %v16922_v63 = vcombine.high %v497_v16, %v505_v20  ;;  %v512_v34 = vld [vmem:[#allocation5 + $0xe30] sm:$0xff]  ;;  %v577_v15 = vld [vmem:[#allocation5 + $0x1038] sm:$0xff] }
 0x66d   :  { %v16675_v47 = vcombine.low %v512_v34, %v520_v30 }
 0x66f   :  { %14081 = vmatpush1.bf16.msra.mxu0 %v16663_v23  ;;  %14581 = vmatpush1.bf16.msra.mxu1 %v16913_v35  ;;  %v16923_v23 = vcombine.low %v497_v16, %v505_v20  ;;  %v16674_v35 = vcombine.high %v512_v34, %v520_v30  ;;  %v585_v16 = vld [vmem:[#allocation5 + $0x1078] sm:$0xff]  ;;  %v600_v34 = vld [vmem:[#allocation5 + $0x10f0] sm:$0xff] }
 0x670   :  { %14083 = vmatprep.subr.bf16.mxu0 %v16664_v39  ;;  %14583 = vmatprep.subr.bf16.mxu1 %v16914_v43  ;;  %v16924_v39 = vcombine.high %v513_v18, %v521_v19  ;;  %v528_v43 = vld [vmem:[#allocation5 + $0xeb0] sm:$0xff]  ;;  %v593_v30 = vld [vmem:[#allocation5 + $0x10b8] sm:$0xff] }
 0x671   :  { %v16677_v62 = vcombine.low %v528_v43, %v536_v59 }
 0x673   :  { %14085 = vmatpush1.bf16.msra.mxu0 %v16665_v48  ;;  %14585 = vmatpush1.bf16.msra.mxu1 %v16915_v9  ;;  %v16925_v48 = vcombine.low %v513_v18, %v521_v19  ;;  %v16676_v9 = vcombine.high %v528_v43, %v536_v59  ;;  %v601_v18 = vld [vmem:[#allocation5 + $0x10f8] sm:$0xff]  ;;  %v616_v43 = vld [vmem:[#allocation5 + $0x1170] sm:$0xff] }
 0x674   :  { %14087 = vmatprep.subr.bf16.mxu0 %v16666_v3  ;;  %14587 = vmatprep.subr.bf16.mxu1 %v16916_v49  ;;  %v16926_v3 = vcombine.high %v529_v8, %v537_v44  ;;  %v544_v49 = vld [vmem:[#allocation5 + $0xf30] sm:$0xff]  ;;  %v609_v59 = vld [vmem:[#allocation5 + $0x1138] sm:$0xff] }
 0x675   :  { %v16679_v17 = vcombine.low %v544_v49, %v552_v54 }
 0x677   :  { %14089 = vmatpush1.bf16.msra.mxu0 %v16667_v2  ;;  %14589 = vmatpush1.bf16.msra.mxu1 %v16917_v4  ;;  %v16927_v2 = vcombine.low %v529_v8, %v537_v44  ;;  %v16678_v4 = vcombine.high %v544_v49, %v552_v54  ;;  %v617_v8 = vld [vmem:[#allocation5 + $0x1178] sm:$0xff]  ;;  %v632_v49 = vld [vmem:[#allocation5 + $0x11f0] sm:$0xff] }
 0x678   :  { %14091 = vmatprep.subr.bf16.mxu0 %v16668_v5  ;;  %14591 = vmatprep.subr.bf16.mxu1 %v16918_v55  ;;  %v16928_v5 = vcombine.high %v545_v58, %v553_v61  ;;  %v560_v55 = vld [vmem:[#allocation5 + $0xfb0] sm:$0xff]  ;;  %v625_v54 = vld [vmem:[#allocation5 + $0x11b8] sm:$0xff] }
 0x679   :  { %v16681_v20 = vcombine.low %v560_v55, %v568_v33 }
 0x67b   :  { %14093 = vmatpush1.bf16.msra.mxu0 %v16669_v6  ;;  %14593 = vmatpush1.bf16.msra.mxu1 %v16919_v7  ;;  %v16929_v6 = vcombine.low %v545_v58, %v553_v61  ;;  %v16680_v7 = vcombine.high %v560_v55, %v568_v33  ;;  %v633_v58 = vld [vmem:[#allocation5 + $0x11f8] sm:$0xff] }
 0x67c   :  { %14095 = vmatprep.subr.bf16.mxu0 %v16670_v10  ;;  %14595 = vmatprep.subr.bf16.mxu1 %v16920_v13  ;;  %v16930_v10 = vcombine.high %v561_v60, %v569_v31  ;;  %v576_v13 = vld [vmem:[#allocation5 + $0x1030] sm:$0xff]  ;;  %v641_v55 = vld [vmem:[#allocation5 + $0x1238] sm:$0xff] }
 0x67d   :  { %v16683_v19 = vcombine.low %v576_v13, %v584_v14  ;;  %v649_v33 = vld [vmem:[#allocation5 + $0x1278] sm:$0xff] }
 0x67f   :  { %14097 = vmatpush1.bf16.msra.mxu0 %v16671_v21  ;;  %14597 = vmatpush1.bf16.msra.mxu1 %v16921_v26  ;;  %v16931_v21 = vcombine.low %v561_v60, %v569_v31  ;;  %v16682_v26 = vcombine.high %v576_v13, %v584_v14  ;;  %v16939_v31 = vcombine.low %v625_v54, %v633_v58  ;;  %v665_v13 = vld [vmem:[#allocation5 + $0x12f8] sm:$0xff] }
 0x680   :  { %14099 = vmatprep.subr.bf16.mxu0 %v16672_v28  ;;  %14599 = vmatprep.subr.bf16.mxu1 %v16922_v63  ;;  %v16932_v28 = vcombine.high %v577_v15, %v585_v16  ;;  %v592_v63 = vld [vmem:[#allocation5 + $0x10b0] sm:$0xff] }
 0x681   :  { %v16685_v44 = vcombine.low %v592_v63, %v600_v34 }
 0x683   :  { %14101 = vmatpush1.bf16.msra.mxu0 %v16673_v22  ;;  %14601 = vmatpush1.bf16.msra.mxu1 %v16923_v23  ;;  %v16933_v22 = vcombine.low %v577_v15, %v585_v16  ;;  %v16684_v23 = vcombine.high %v592_v63, %v600_v34  ;;  %v16941_v15 = vcombine.low %v641_v55, %v649_v33  ;;  %v681_v63 = vld [vmem:[#allocation5 + $0x1378] sm:$0xff] }
 0x684   :  { %14103 = vmatprep.subr.bf16.mxu0 %v16674_v35  ;;  %14603 = vmatprep.subr.bf16.mxu1 %v16924_v39  ;;  %v16934_v35 = vcombine.high %v593_v30, %v601_v18  ;;  %v608_v39 = vld [vmem:[#allocation5 + $0x1130] sm:$0xff] }
 0x685   :  { %v16687_v61 = vcombine.low %v608_v39, %v616_v43 }
 0x687   :  { %14105 = vmatpush1.bf16.msra.mxu0 %v16675_v47  ;;  %14605 = vmatpush1.bf16.msra.mxu1 %v16925_v48  ;;  %v16935_v47 = vcombine.low %v593_v30, %v601_v18  ;;  %v16686_v48 = vcombine.high %v608_v39, %v616_v43  ;;  %v697_v39 = vld [vmem:[#allocation5 + $0x13f8] sm:$0xff] }
 0x688   :  { %14107 = vmatprep.subr.bf16.mxu0 %v16676_v9  ;;  %14607 = vmatprep.subr.bf16.mxu1 %v16926_v3  ;;  %v16936_v9 = vcombine.high %v609_v59, %v617_v8  ;;  %v624_v3 = vld [vmem:[#allocation5 + $0x11b0] sm:$0xff] }
 0x689   :  { %v16689_v60 = vcombine.low %v624_v3, %v632_v49 }
 0x68b   :  { %14109 = vmatpush1.bf16.msra.mxu0 %v16677_v62  ;;  %14609 = vmatpush1.bf16.msra.mxu1 %v16927_v2  ;;  %v16688_v62 = vcombine.high %v624_v3, %v632_v49  ;;  %v16938_v2 = vcombine.high %v625_v54, %v633_v58  ;;  %v713_v3 = vld [vmem:[#allocation5 + $0x1478] sm:$0xff] }
 0x68c   :  { %14111 = vmatprep.subr.bf16.mxu0 %v16678_v4  ;;  %14611 = vmatprep.subr.bf16.mxu1 %v16928_v5  ;;  %v640_v4 = vld [vmem:[#allocation5 + $0x1230] sm:$0xff] }
 0x68d   :  { %v648_v5 = vld [vmem:[#allocation5 + $0x1270] sm:$0xff] }
 0x68e   :  { %v16691_v14 = vcombine.low %v640_v4, %v648_v5 }
 0x68f   :  { %14113 = vmatpush1.bf16.msra.mxu0 %v16679_v17  ;;  %14613 = vmatpush1.bf16.msra.mxu1 %v16929_v6  ;;  %v16690_v17 = vcombine.high %v640_v4, %v648_v5  ;;  %v656_v6 = vld [vmem:[#allocation5 + $0x12b0] sm:$0xff]  ;;  %v729_v4 = vld [vmem:[#allocation5 + $0x14f8] sm:$0xff] }
 0x690   :  { %14115 = vmatprep.subr.bf16.mxu0 %v16680_v7  ;;  %14615 = vmatprep.subr.bf16.mxu1 %v16930_v10  ;;  %v664_v7 = vld [vmem:[#allocation5 + $0x12f0] sm:$0xff]  ;;  %v657_v10 = vld [vmem:[#allocation5 + $0x12b8] sm:$0xff] }
 0x691   :  { %v16692_v16 = vcombine.high %v656_v6, %v664_v7  ;;  %v16693_v34 = vcombine.low %v656_v6, %v664_v7  ;;  %v16943_v30 = vcombine.low %v657_v10, %v665_v13  ;;  %v745_v6 = vld [vmem:[#allocation5 + $0x1578] sm:$0xff] }
 0x693   :  { %14117 = vmatpush1.bf16.msra.mxu0 %v16681_v20  ;;  %14617 = vmatpush1.bf16.msra.mxu1 %v16931_v21  ;;  %v16942_v20 = vcombine.high %v657_v10, %v665_v13  ;;  %v672_v21 = vld [vmem:[#allocation5 + $0x1330] sm:$0xff] }
 0x694   :  { %14119 = vmatprep.subr.bf16.mxu0 %v16682_v26  ;;  %14619 = vmatprep.subr.bf16.mxu1 %v16932_v28  ;;  %v680_v26 = vld [vmem:[#allocation5 + $0x1370] sm:$0xff]  ;;  %v673_v28 = vld [vmem:[#allocation5 + $0x1338] sm:$0xff] }
 0x695   :  { %v16694_v18 = vcombine.high %v672_v21, %v680_v26  ;;  %v16695_v43 = vcombine.low %v672_v21, %v680_v26  ;;  %v761_v21 = vld [vmem:[#allocation5 + $0x15f8] sm:$0xff] }
 0x696   :  { %9776 = vmatmul.mubr.f32.vlgmr.msra.gmra.mrb[6].mxu0 %v17309_v25  ;;  %10344 = vmatmul.mubr.f32.vlgmr.msra.gmra.mrb[6].mxu1 %v17309_v25  ;;  %v16937_v25 = vcombine.low %v609_v59, %v617_v8  ;;  %v16945_v59 = vcombine.low %v673_v28, %v681_v63 }
 0x697   :  { %14121 = vmatpush1.bf16.msra.mxu0 %v16683_v19  ;;  %14621 = vmatpush1.bf16.msra.mxu1 %v16933_v22  ;;  %v16944_v19 = vcombine.high %v673_v28, %v681_v63  ;;  %v688_v22 = vld [vmem:[#allocation5 + $0x13b0] sm:$0xff] }
 0x698   :  { %14123 = vmatprep.subr.bf16.mxu0 %v16684_v23  ;;  %14623 = vmatprep.subr.bf16.mxu1 %v16934_v35  ;;  %v696_v23 = vld [vmem:[#allocation5 + $0x13f0] sm:$0xff]  ;;  %v689_v35 = vld [vmem:[#allocation5 + $0x13b8] sm:$0xff] }
 0x699   :  { %9846 = vmatprep.mubr.f32.mxu0 %v17328_v50  ;;  %10414 = vmatprep.mubr.f32.mxu1 %v17328_v50  ;;  %v16940_v50 = vcombine.high %v641_v55, %v649_v33  ;;  %v16696_v8 = vcombine.high %v688_v22, %v696_v23  ;;  %v16697_v49 = vcombine.low %v688_v22, %v696_v23  ;;  %v777_v22 = vld [vmem:[#allocation5 + $0x1678] sm:$0xff] }
 0x69a   :  { %v16947_v54 = vcombine.low %v689_v35, %v697_v39 }
 0x69b   :  { %14125 = vmatpush1.bf16.msra.mxu0 %v16685_v44  ;;  %14625 = vmatpush1.bf16.msra.mxu1 %v16935_v47  ;;  %v16946_v44 = vcombine.high %v689_v35, %v697_v39  ;;  %v704_v47 = vld [vmem:[#allocation5 + $0x1430] sm:$0xff] }
 0x69c   :  { %14127 = vmatprep.subr.bf16.mxu0 %v16686_v48  ;;  %14627 = vmatprep.subr.bf16.mxu1 %v16936_v9  ;;  %v712_v48 = vld [vmem:[#allocation5 + $0x1470] sm:$0xff]  ;;  %v705_v9 = vld [vmem:[#allocation5 + $0x1438] sm:$0xff] }
 0x69d   :  { %v16698_v58 = vcombine.high %v704_v47, %v712_v48  ;;  %v16699_v5 = vcombine.low %v704_v47, %v712_v48  ;;  %v16949_v55 = vcombine.low %v705_v9, %v713_v3  ;;  %v793_v47 = vld [vmem:[#allocation5 + $0x16f8] sm:$0xff] }
 0x69f   :  { %14129 = vmatpush1.bf16.msra.mxu0 %v16687_v61  ;;  %14629 = vmatpush1.bf16.msra.mxu1 %v16937_v25  ;;  %v16948_v61 = vcombine.high %v705_v9, %v713_v3  ;;  %v720_v25 = vld [vmem:[#allocation5 + $0x14b0] sm:$0xff] }
 0x6a0   :  { %14131 = vmatprep.subr.bf16.mxu0 %v16688_v62  ;;  %14631 = vmatprep.subr.bf16.mxu1 %v16938_v2  ;;  %v728_v62 = vld [vmem:[#allocation5 + $0x14f0] sm:$0xff]  ;;  %v721_v2 = vld [vmem:[#allocation5 + $0x14b8] sm:$0xff] }
 0x6a1   :  { %v16700_v33 = vcombine.high %v720_v25, %v728_v62  ;;  %v16701_v7 = vcombine.low %v720_v25, %v728_v62  ;;  %v16951_v10 = vcombine.low %v721_v2, %v729_v4  ;;  %v809_v25 = vld [vmem:[#allocation5 + $0x1778] sm:$0xff] }
 0x6a3   :  { %14133 = vmatpush1.bf16.msra.mxu0 %v16689_v60  ;;  %14633 = vmatpush1.bf16.msra.mxu1 %v16939_v31  ;;  %v16950_v60 = vcombine.high %v721_v2, %v729_v4  ;;  %v736_v31 = vld [vmem:[#allocation5 + $0x1530] sm:$0xff] }
 0x6a4   :  { %14135 = vmatprep.subr.bf16.mxu0 %v16690_v17  ;;  %14635 = vmatprep.subr.bf16.mxu1 %v16940_v50  ;;  %v744_v17 = vld [vmem:[#allocation5 + $0x1570] sm:$0xff]  ;;  %v737_v50 = vld [vmem:[#allocation5 + $0x1538] sm:$0xff] }
 0x6a5   :  { %v16702_v13 = vcombine.high %v736_v31, %v744_v17  ;;  %v16703_v26 = vcombine.low %v736_v31, %v744_v17  ;;  %v16953_v28 = vcombine.low %v737_v50, %v745_v6  ;;  %v825_v31 = vld [vmem:[#allocation5 + $0x17f8] sm:$0xff] }
 0x6a7   :  { %14137 = vmatpush1.bf16.msra.mxu0 %v16691_v14  ;;  %14637 = vmatpush1.bf16.msra.mxu1 %v16941_v15  ;;  %v16952_v14 = vcombine.high %v737_v50, %v745_v6  ;;  %v752_v15 = vld [vmem:[#allocation5 + $0x15b0] sm:$0xff] }
 0x6a8   :  { %14139 = vmatprep.subr.bf16.mxu0 %v16692_v16  ;;  %14639 = vmatprep.subr.bf16.mxu1 %v16942_v20  ;;  %v760_v16 = vld [vmem:[#allocation5 + $0x15f0] sm:$0xff]  ;;  %v753_v20 = vld [vmem:[#allocation5 + $0x15b8] sm:$0xff] }
 0x6a9   :  { %v16704_v63 = vcombine.high %v752_v15, %v760_v16  ;;  %v16705_v23 = vcombine.low %v752_v15, %v760_v16  ;;  %v16955_v35 = vcombine.low %v753_v20, %v761_v21  ;;  %v841_v15 = vld [vmem:[#allocation5 + $0x1878] sm:$0xff] }
 0x6ab   :  { %14141 = vmatpush1.bf16.msra.mxu0 %v16693_v34  ;;  %14641 = vmatpush1.bf16.msra.mxu1 %v16943_v30  ;;  %v16954_v34 = vcombine.high %v753_v20, %v761_v21  ;;  %v768_v30 = vld [vmem:[#allocation5 + $0x1630] sm:$0xff] }
 0x6ac   :  { %14143 = vmatprep.subr.bf16.mxu0 %v16694_v18  ;;  %14643 = vmatprep.subr.bf16.mxu1 %v16944_v19  ;;  %v776_v18 = vld [vmem:[#allocation5 + $0x1670] sm:$0xff]  ;;  %v769_v19 = vld [vmem:[#allocation5 + $0x1638] sm:$0xff] }
 0x6ad   :  { %v16706_v39 = vcombine.high %v768_v30, %v776_v18  ;;  %v16707_v48 = vcombine.low %v768_v30, %v776_v18  ;;  %v16957_v9 = vcombine.low %v769_v19, %v777_v22  ;;  %v857_v30 = vld [vmem:[#allocation5 + $0x18f8] sm:$0xff] }
 0x6af   :  { %14145 = vmatpush1.bf16.msra.mxu0 %v16695_v43  ;;  %14645 = vmatpush1.bf16.msra.mxu1 %v16945_v59  ;;  %v16956_v43 = vcombine.high %v769_v19, %v777_v22  ;;  %v784_v59 = vld [vmem:[#allocation5 + $0x16b0] sm:$0xff] }
 0x6b0   :  { %14147 = vmatprep.subr.bf16.mxu0 %v16696_v8  ;;  %14647 = vmatprep.subr.bf16.mxu1 %v16946_v44  ;;  %v792_v8 = vld [vmem:[#allocation5 + $0x16f0] sm:$0xff]  ;;  %v785_v44 = vld [vmem:[#allocation5 + $0x16b8] sm:$0xff] }
 0x6b1   :  { %v16708_v3 = vcombine.high %v784_v59, %v792_v8  ;;  %v16709_v62 = vcombine.low %v784_v59, %v792_v8  ;;  %v16959_v2 = vcombine.low %v785_v44, %v793_v47  ;;  %v873_v59 = vld [vmem:[#allocation5 + $0x1978] sm:$0xff] }
 0x6b3   :  { %14149 = vmatpush1.bf16.msra.mxu0 %v16697_v49  ;;  %14649 = vmatpush1.bf16.msra.mxu1 %v16947_v54  ;;  %v16958_v49 = vcombine.high %v785_v44, %v793_v47  ;;  %v800_v54 = vld [vmem:[#allocation5 + $0x1730] sm:$0xff] }
 0x6b4   :  { %14151 = vmatprep.subr.bf16.mxu0 %v16698_v58  ;;  %14651 = vmatprep.subr.bf16.mxu1 %v16948_v61  ;;  %v808_v58 = vld [vmem:[#allocation5 + $0x1770] sm:$0xff]  ;;  %v801_v61 = vld [vmem:[#allocation5 + $0x1738] sm:$0xff] }
 0x6b5   :  { %v16710_v4 = vcombine.high %v800_v54, %v808_v58  ;;  %v16711_v17 = vcombine.low %v800_v54, %v808_v58  ;;  %v16961_v50 = vcombine.low %v801_v61, %v809_v25  ;;  %v889_v54 = vld [vmem:[#allocation5 + $0x19f8] sm:$0xff] }
 0x6b7   :  { %14153 = vmatpush1.bf16.msra.mxu0 %v16699_v5  ;;  %14653 = vmatpush1.bf16.msra.mxu1 %v16949_v55  ;;  %v16960_v5 = vcombine.high %v801_v61, %v809_v25  ;;  %v816_v55 = vld [vmem:[#allocation5 + $0x17b0] sm:$0xff] }
 0x6b8   :  { %14155 = vmatprep.subr.bf16.mxu0 %v16700_v33  ;;  %14655 = vmatprep.subr.bf16.mxu1 %v16950_v60  ;;  %v824_v33 = vld [vmem:[#allocation5 + $0x17f0] sm:$0xff]  ;;  %v817_v60 = vld [vmem:[#allocation5 + $0x17b8] sm:$0xff] }
 0x6b9   :  { %v16712_v6 = vcombine.high %v816_v55, %v824_v33  ;;  %v16713_v16 = vcombine.low %v816_v55, %v824_v33  ;;  %v16963_v20 = vcombine.low %v817_v60, %v825_v31 }
 0x6bb   :  { %14157 = vmatpush1.bf16.msra.mxu0 %v16701_v7  ;;  %14657 = vmatpush1.bf16.msra.mxu1 %v16951_v10  ;;  %v16962_v7 = vcombine.high %v817_v60, %v825_v31  ;;  %v832_v10 = vld [vmem:[#allocation5 + $0x1830] sm:$0xff] }
 0x6bc   :  { %14159 = vmatprep.subr.bf16.mxu0 %v16702_v13  ;;  %14659 = vmatprep.subr.bf16.mxu1 %v16952_v14  ;;  %v840_v13 = vld [vmem:[#allocation5 + $0x1870] sm:$0xff]  ;;  %v833_v14 = vld [vmem:[#allocation5 + $0x1838] sm:$0xff] }
 0x6bd   :  { %v16714_v21 = vcombine.high %v832_v10, %v840_v13  ;;  %v16715_v18 = vcombine.low %v832_v10, %v840_v13  ;;  %v16965_v19 = vcombine.low %v833_v14, %v841_v15  ;;  %v912_v31 = vld [vmem:[#allocation5 + $0x1ab0] sm:$0xff]  ;;  %v6059_v10 = vld [vmem:[#allocation7 + $0x8] sm:$0xff] }
 0x6bf   :  { %14161 = vmatpush1.bf16.msra.mxu0 %v16703_v26  ;;  %14661 = vmatpush1.bf16.msra.mxu1 %v16953_v28  ;;  %v16964_v26 = vcombine.high %v833_v14, %v841_v15  ;;  %v848_v28 = vld [vmem:[#allocation5 + $0x18b0] sm:$0xff] }
 0x6c0   :  { %14163 = vmatprep.subr.bf16.mxu0 %v16704_v63  ;;  %14663 = vmatprep.subr.bf16.mxu1 %v16954_v34  ;;  %v856_v63 = vld [vmem:[#allocation5 + $0x18f0] sm:$0xff]  ;;  %v849_v34 = vld [vmem:[#allocation5 + $0x18b8] sm:$0xff] }
 0x6c1   :  { %v16716_v22 = vcombine.high %v848_v28, %v856_v63  ;;  %v16717_v8 = vcombine.low %v848_v28, %v856_v63  ;;  %v16967_v44 = vcombine.low %v849_v34, %v857_v30  ;;  %v937_v28 = vld [vmem:[#allocation5 + $0x1b78] sm:$0xff]  ;;  %v6105_v63 = vrot.slane %v6059_v10, %v6072_v56 }
 0x6c3   :  { %14165 = vmatpush1.bf16.msra.mxu0 %v16705_v23  ;;  %14665 = vmatpush1.bf16.msra.mxu1 %v16955_v35  ;;  %v16966_v23 = vcombine.high %v849_v34, %v857_v30  ;;  %v864_v35 = vld [vmem:[#allocation5 + $0x1930] sm:$0xff]  ;;  %v6101_v34 = vrot.slane %v6059_v10, %v6068_v38 }
 0x6c4   :  { %14167 = vmatprep.subr.bf16.mxu0 %v16706_v39  ;;  %14667 = vmatprep.subr.bf16.mxu1 %v16956_v43  ;;  %v872_v39 = vld [vmem:[#allocation5 + $0x1970] sm:$0xff]  ;;  %v865_v43 = vld [vmem:[#allocation5 + $0x1938] sm:$0xff] }
 0x6c5   :  { %v16718_v47 = vcombine.high %v864_v35, %v872_v39  ;;  %v16719_v58 = vcombine.low %v864_v35, %v872_v39  ;;  %v952_v35 = vld [vmem:[#allocation5 + $0x1bf0] sm:$0xff] }
 0x6c7   :  { %14169 = vmatpush1.bf16.msra.mxu0 %v16707_v48  ;;  %14669 = vmatpush1.bf16.msra.mxu1 %v16957_v9  ;;  %v16968_v48 = vcombine.high %v865_v43, %v873_v59  ;;  %v880_v9 = vld [vmem:[#allocation5 + $0x19b0] sm:$0xff] }
 0x6c8   :  { %14171 = vmatprep.subr.bf16.mxu0 %v16708_v3  ;;  %14671 = vmatprep.subr.bf16.mxu1 %v16958_v49  ;;  %v888_v3 = vld [vmem:[#allocation5 + $0x19f0] sm:$0xff]  ;;  %v881_v49 = vld [vmem:[#allocation5 + $0x19b8] sm:$0xff] }
 0x6c9   :  { %v16720_v61 = vcombine.high %v880_v9, %v888_v3  ;;  %v16970_v25 = vcombine.high %v881_v49, %v889_v54  ;;  %v16721_v55 = vcombine.low %v880_v9, %v888_v3  ;;  %v16971_v33 = vcombine.low %v881_v49, %v889_v54 }
 0x6cb   :  { %14173 = vmatpush1.bf16.msra.mxu0 %v16709_v62  ;;  %14673 = vmatpush1.bf16.msra.mxu1 %v16959_v2  ;;  %v896_v62 = vld [vmem:[#allocation5 + $0x1a30] sm:$0xff] }
 0x6cc   :  { %14175 = vmatprep.subr.bf16.mxu0 %v16710_v4  ;;  %14675 = vmatprep.subr.bf16.mxu1 %v16960_v5  ;;  %v904_v2 = vld [vmem:[#allocation5 + $0x1a70] sm:$0xff]  ;;  %v897_v4 = vld [vmem:[#allocation5 + $0x1a38] sm:$0xff] }
 0x6cd   :  { %v905_v5 = vld [vmem:[#allocation5 + $0x1a78] sm:$0xff]  ;;  %v16722_v60 = vcombine.high %v896_v62, %v904_v2 }
 0x6ce   :  { %v16973_v13 = vcombine.low %v897_v4, %v905_v5 }
 0x6cf   :  { %14177 = vmatpush1.bf16.msra.mxu0 %v16711_v17  ;;  %14677 = vmatpush1.bf16.msra.mxu1 %v16961_v50  ;;  %v920_v17 = vld [vmem:[#allocation5 + $0x1af0] sm:$0xff]  ;;  %v913_v50 = vld [vmem:[#allocation5 + $0x1ab8] sm:$0xff] }
 0x6d0   :  { %14179 = vmatprep.subr.bf16.mxu0 %v16712_v6  ;;  %14679 = vmatprep.subr.bf16.mxu1 %v16962_v7  ;;  %v921_v6 = vld [vmem:[#allocation5 + $0x1af8] sm:$0xff]  ;;  %v16723_v7 = vcombine.low %v896_v62, %v904_v2  ;;  %v16724_v14 = vcombine.high %v912_v31, %v920_v17  ;;  %v16725_v30 = vcombine.low %v912_v31, %v920_v17 }
 0x6d1   :  { %v16974_v15 = vcombine.high %v913_v50, %v921_v6 }
 0x6d3   :  { %14181 = vmatpush1.bf16.msra.mxu0 %v16713_v16  ;;  %14681 = vmatpush1.bf16.msra.mxu1 %v16963_v20  ;;  %v928_v16 = vld [vmem:[#allocation5 + $0x1b30] sm:$0xff] }
 0x6d4   :  { %14183 = vmatprep.subr.bf16.mxu0 %v16714_v21  ;;  %14683 = vmatprep.subr.bf16.mxu1 %v16964_v26  ;;  %v936_v20 = vld [vmem:[#allocation5 + $0x1b70] sm:$0xff]  ;;  %v6097_v21 = vrot.slane %v6059_v10, %v6064_v29  ;;  %v929_v26 = vld [vmem:[#allocation5 + $0x1b38] sm:$0xff] }
 0x6d5   :  { %v16976_v39 = vcombine.high %v929_v26, %v937_v28  ;;  %v16977_v3 = vcombine.low %v929_v26, %v937_v28 }
 0x6d6   :  { %9847 = vmatmul.mubr.f32.vlgmr.msra.gmra.mrb[6].mxu0 %v17324_v41  ;;  %10415 = vmatmul.mubr.f32.vlgmr.msra.gmra.mrb[6].mxu1 %v17324_v41  ;;  %v16969_v41 = vcombine.low %v865_v43, %v873_v59  ;;  %v945_v43 = vld [vmem:[#allocation5 + $0x1bb8] sm:$0xff] }
 0x6d7   :  { %14185 = vmatpush1.bf16.msra.mxu0 %v16715_v18  ;;  %14685 = vmatpush1.bf16.msra.mxu1 %v16965_v19  ;;  %v6109_v18 = vrot.slane %v6059_v10, %v6076_v40  ;;  %v16975_v19 = vcombine.low %v913_v50, %v921_v6  ;;  %v953_v59 = vld [vmem:[#allocation5 + $0x1bf8] sm:$0xff] }
 0x6d8   :  { %14187 = vmatprep.subr.bf16.mxu0 %v16716_v22  ;;  %14687 = vmatprep.subr.bf16.mxu1 %v16966_v23  ;;  %v16726_v22 = vcombine.high %v928_v16, %v936_v20  ;;  %v944_v23 = vld [vmem:[#allocation5 + $0x1bb0] sm:$0xff]  ;;  %v16979_v31 = vcombine.low %v945_v43, %v953_v59 }
 0x6d9   :  { %9917 = vmatprep.mubr.f32.mxu0 %v17341_v11  ;;  %10485 = vmatprep.mubr.f32.mxu1 %v17341_v11  ;;  %v16972_v11 = vcombine.high %v897_v4, %v905_v5  ;;  %v16728_v40 = vcombine.high %v944_v23, %v952_v35  ;;  %v961_v5 = vld [vmem:[#allocation5 + $0x1c38] sm:$0xff] }
 0x6db   :  { %14189 = vmatpush1.bf16.msra.mxu0 %v16717_v8  ;;  %14689 = vmatpush1.bf16.msra.mxu1 %v16967_v44 }
 0x6dc   :  { %14191 = vmatprep.subr.bf16.mxu0 %v16718_v47  ;;  %14691 = vmatprep.subr.bf16.mxu1 %v16968_v48  ;;  %v16727_v47 = vcombine.low %v928_v16, %v936_v20  ;;  %v977_v16 = vld [vmem:[#allocation5 + $0x1cb8] sm:$0xff] }
 0x6dd   :  { %v985_v20 = vld [vmem:[#allocation5 + $0x1cf8] sm:$0xff] }
 0x6df   :  { %14193 = vmatpush1.bf16.msra.mxu0 %v16719_v58  ;;  %14693 = vmatpush1.bf16.msra.mxu1 %v16969_v41  ;;  %v16978_v58 = vcombine.high %v945_v43, %v953_v59  ;;  %v960_v41 = vld [vmem:[#allocation5 + $0x1c30] sm:$0xff] }
 0x6e0   :  { %14195 = vmatprep.subr.bf16.mxu0 %v16720_v61  ;;  %14695 = vmatprep.subr.bf16.mxu1 %v16970_v25  ;;  %v968_v61 = vld [vmem:[#allocation5 + $0x1c70] sm:$0xff] }
 0x6e1   :  { %v16730_v6 = vcombine.high %v960_v41, %v968_v61  ;;  %v16731_v26 = vcombine.low %v960_v41, %v968_v61  ;;  %v1008_v59 = vld [vmem:[#allocation5 + $0x1db0] sm:$0xff] }
 0x6e3   :  { %14197 = vmatpush1.bf16.msra.mxu0 %v16721_v55  ;;  %14697 = vmatpush1.bf16.msra.mxu1 %v16971_v33  ;;  %v969_v55 = vld [vmem:[#allocation5 + $0x1c78] sm:$0xff] }
 0x6e4   :  { %14199 = vmatprep.subr.bf16.mxu0 %v16722_v60  ;;  %14699 = vmatprep.subr.bf16.mxu1 %v16972_v11  ;;  %v16729_v11 = vcombine.low %v944_v23, %v952_v35  ;;  %v16980_v10 = vcombine.high %v961_v5, %v969_v55  ;;  %v16981_v28 = vcombine.low %v961_v5, %v969_v55  ;;  %v1001_v23 = vld [vmem:[#allocation5 + $0x1d78] sm:$0xff] }
 0x6e5   :  { %v1049_v5 = vld [vmem:[#allocation5 + $0x1ef8] sm:$0xff] }
 0x6e7   :  { %14201 = vmatpush1.bf16.msra.mxu0 %v16723_v7  ;;  %14701 = vmatpush1.bf16.msra.mxu1 %v16973_v13  ;;  %v976_v13 = vld [vmem:[#allocation5 + $0x1cb0] sm:$0xff] }
 0x6e8   :  { %14203 = vmatprep.subr.bf16.mxu0 %v16724_v14  ;;  %14703 = vmatprep.subr.bf16.mxu1 %v16974_v15  ;;  %v984_v14 = vld [vmem:[#allocation5 + $0x1cf0] sm:$0xff] }
 0x6e9   :  { %v9067_v29 = vpop.f32.mrb[4].mxu0  ;;  %v9635_v56 = vpop.f32.mrb[4].mxu1  ;;  %v16733_v35 = vcombine.low %v976_v13, %v984_v14 }
 0x6ea   :  { %v14998_v8 = vadd.f32 %v9067_v29, %v6097_v21  ;;  %v9069_v44 = vpop.f32.mrb[5].mxu0  ;;  %v15000_v38 = vadd.f32 %v9635_v56, %v6105_v63  ;;  %v9637_v9 = vpop.f32.mrb[5].mxu1  ;;  %v16732_v63 = vcombine.high %v976_v13, %v984_v14  ;;  %v16983_v29 = vcombine.low %v977_v16, %v985_v20  ;;  %v1009_v56 = vld [vmem:[#allocation5 + $0x1db8] sm:$0xff] }
 0x6eb   :  { %v14999_v48 = vadd.f32 %v9069_v44, %v6101_v34  ;;  %14205 = vmatpush1.bf16.msra.mxu0 %v16725_v30  ;;  %v15001_v54 = vadd.f32 %v9637_v9, %v6109_v18  ;;  %14705 = vmatpush1.bf16.msra.mxu1 %v16975_v19  ;;  %v16982_v34 = vcombine.high %v977_v16, %v985_v20  ;;  %v992_v30 = vld [vmem:[#allocation5 + $0x1d30] sm:$0xff]  ;;  %v1017_v44 = vld [vmem:[#allocation5 + $0x1df8] sm:$0xff] }
 0x6ec   :  { %vm10784_vm9 = vcmp.ge.f32.partialorder %v14998_v8, 0.0  ;;  %v10800_v49 = vmul.f32 0.01, %v14998_v8  ;;  %14207 = vmatprep.subr.bf16.mxu0 %v16726_v22  ;;  %vm10786_vm10 = vcmp.ge.f32.partialorder %v15000_v38, 0.0  ;;  %v10802_v25 = vmul.f32 0.01, %v15000_v38  ;;  %14707 = vmatprep.subr.bf16.mxu1 %v16976_v39 }
 0x6ed   :  { %vm10785_vm11 = vcmp.ge.f32.partialorder %v14999_v48, 0.0  ;;  %v10801_v62 = vmul.f32 0.01, %v14999_v48  ;;  %vm10787_vm12 = vcmp.ge.f32.partialorder %v15001_v54, 0.0  ;;  %v10803_v4 = vmul.f32 0.01, %v15001_v54 }
 0x6ee   :  { %v10816_v2 = vsel %vm10784_vm9, %v14998_v8, %v10800_v49  ;;  %v10818_v33 = vsel %vm10786_vm10, %v15000_v38, %v10802_v25  ;;  %v1000_v18 = vld [vmem:[#allocation5 + $0x1d70] sm:$0xff]  ;;  %v993_v22 = vld [vmem:[#allocation5 + $0x1d38] sm:$0xff]  ;;  %v16986_v9 = vcombine.high %v1009_v56, %v1017_v44  ;;  %v16987_v41 = vcombine.low %v1009_v56, %v1017_v44 }
 0x6ef   :  { %v10817_v60 = vsel %vm10785_vm11, %v14999_v48, %v10801_v62  ;;  %14209 = vmatpush1.bf16.msra.mxu0 %v16727_v47  ;;  %v10819_v50 = vsel %vm10787_vm12, %v15001_v54, %v10803_v4  ;;  %14709 = vmatpush1.bf16.msra.mxu1 %v16977_v3  ;;  %v16734_v39 = vcombine.high %v992_v30, %v1000_v18  ;;  %v1016_v8 = vld [vmem:[#allocation5 + $0x1df0] sm:$0xff]  ;;  %v1025_v49 = vld [vmem:[#allocation5 + $0x1e38] sm:$0xff] }
 0x6f0   :  { %v10986_v17 = vpack.c.bf16 %v10817_v60, %v10816_v2  ;;  %14211 = vmatprep.subr.bf16.mxu0 %v16728_v40  ;;  %v10987_v7 = vpack.c.bf16 %v10819_v50, %v10818_v33  ;;  %14711 = vmatprep.subr.bf16.mxu1 %v16978_v58  ;;  %v16984_v43 = vcombine.high %v993_v22, %v1001_v23  ;;  %v1024_v3 = vld [vmem:[#allocation5 + $0x1e30] sm:$0xff]  ;;  %v1033_v54 = vld [vmem:[#allocation5 + $0x1e78] sm:$0xff] }
 0x6f1   :  { %v16735_v47 = vcombine.low %v992_v30, %v1000_v18  ;;  %v16985_v38 = vcombine.low %v993_v22, %v1001_v23  ;;  %v16736_v48 = vcombine.high %v1008_v59, %v1016_v8  ;;  %v1032_v40 = vld [vmem:[#allocation5 + $0x1e70] sm:$0xff]  ;;  %v16737_v58 = vcombine.low %v1008_v59, %v1016_v8  ;;  %v1041_v4 = vld [vmem:[#allocation5 + $0x1eb8] sm:$0xff] }
 0x6f2   :  { %v17542_v15 = vrot.slane %v10986_v17, %v17436_v32  ;;  %v17545_v21 = vrot.slane %v10987_v7, %v17436_v32  ;;  %v16738_v61 = vcombine.high %v1024_v3, %v1032_v40  ;;  %v16988_v25 = vcombine.high %v1025_v49, %v1033_v54  ;;  %v1040_v62 = vld [vmem:[#allocation5 + $0x1eb0] sm:$0xff]  ;;  %v1057_v50 = vld [vmem:[#allocation5 + $0x1f38] sm:$0xff] }
 0x6f3   :  { %14213 = vmatpush1.bf16.msra.mxu0 %v16729_v11  ;;  %14713 = vmatpush1.bf16.msra.mxu1 %v16979_v31  ;;  %v1048_v2 = vld [vmem:[#allocation5 + $0x1ef0] sm:$0xff]  ;;  %v16739_v55 = vcombine.low %v1024_v3, %v1032_v40  ;;  %v16989_v33 = vcombine.low %v1025_v49, %v1033_v54  ;;  %v16990_v11 = vcombine.high %v1041_v4, %v1049_v5 }
 0x6f4   :  { %14215 = vmatprep.subr.bf16.mxu0 %v16730_v6  ;;  %14715 = vmatprep.subr.bf16.mxu1 %v16980_v10  ;;  %v10937_v19 = vcombine.low %v17542_v15, %v17545_v21  ;;  %v16740_v60 = vcombine.high %v1040_v62, %v1048_v2  ;;  %v1056_v31 = vld [vmem:[#allocation5 + $0x1f30] sm:$0xff]  ;;  %v1065_v6 = vld [vmem:[#allocation5 + $0x1f78] sm:$0xff]  ;;  %v16741_v7 = vcombine.low %v1040_v62, %v1048_v2 }
 0x6f5   :  { %v1064_v17 = vld [vmem:[#allocation5 + $0x1f70] sm:$0xff]  ;;  %v16991_v10 = vcombine.low %v1041_v4, %v1049_v5  ;;  %v16992_v14 = vcombine.high %v1057_v50, %v1065_v6 }
 0x6f6   :  { %v16742_v13 = vcombine.high %v1056_v31, %v1064_v17  ;;  %v1072_v16 = vld [vmem:[#allocation5 + $0x1fb0] sm:$0xff] }
 0x6f7   :  { %14217 = vmatpush1.bf16.msra.mxu0 %v16731_v26  ;;  %14717 = vmatpush1.bf16.msra.mxu1 %v16981_v28  ;;  %v1080_v20 = vld [vmem:[#allocation5 + $0x1ff0] sm:$0xff]  ;;  %v1073_v26 = vld [vmem:[#allocation5 + $0x1fb8] sm:$0xff] }
 0x6f8   :  { %14219 = vmatprep.subr.bf16.mxu0 %v16732_v63  ;;  %14719 = vmatprep.subr.bf16.mxu1 %v16982_v34  ;;  %v1081_v28 = vld [vmem:[#allocation5 + $0x1ff8] sm:$0xff]  ;;  %v16743_v63 = vcombine.low %v1056_v31, %v1064_v17  ;;  %v16993_v34 = vcombine.low %v1057_v50, %v1065_v6  ;;  %v16744_v30 = vcombine.high %v1072_v16, %v1080_v20  ;;  %v1088_v22 = vld [vmem:[#allocation5 + $0x2030] sm:$0xff] }
 0x6f9   :  { %v16994_v18 = vcombine.high %v1073_v26, %v1081_v28  ;;  %v1096_v23 = vld [vmem:[#allocation5 + $0x2070] sm:$0xff]  ;;  %v1153_v6 = vld [vmem:[#allocation5 + $0x2238] sm:$0xff] }
 0x6fa   :  { %v16746_v59 = vcombine.high %v1088_v22, %v1096_v23  ;;  %v1104_v56 = vld [vmem:[#allocation5 + $0x20b0] sm:$0xff] }
 0x6fb   :  { %14221 = vmatpush1.bf16.msra.mxu0 %v16733_v35  ;;  %14721 = vmatpush1.bf16.msra.mxu1 %v16983_v29  ;;  %v1089_v35 = vld [vmem:[#allocation5 + $0x2038] sm:$0xff]  ;;  %v1112_v44 = vld [vmem:[#allocation5 + $0x20f0] sm:$0xff] }
 0x6fc   :  { %14223 = vmatprep.subr.bf16.mxu0 %v16734_v39  ;;  %14723 = vmatprep.subr.bf16.mxu1 %v16984_v43  ;;  %v1097_v29 = vld [vmem:[#allocation5 + $0x2078] sm:$0xff]  ;;  %v16745_v39 = vcombine.low %v1072_v16, %v1080_v20  ;;  %v16995_v43 = vcombine.low %v1073_v26, %v1081_v28  ;;  %v16748_v3 = vcombine.high %v1104_v56, %v1112_v44  ;;  %v1120_v49 = vld [vmem:[#allocation5 + $0x2130] sm:$0xff] }
 0x6fd   :  { %v16996_v8 = vcombine.high %v1089_v35, %v1097_v29  ;;  %v1128_v54 = vld [vmem:[#allocation5 + $0x2170] sm:$0xff]  ;;  %v1169_v26 = vld [vmem:[#allocation5 + $0x22b8] sm:$0xff] }
 0x6fe   :  { %v16750_v62 = vcombine.high %v1120_v49, %v1128_v54  ;;  %v1136_v4 = vld [vmem:[#allocation5 + $0x21b0] sm:$0xff]  ;;  %v1177_v28 = vld [vmem:[#allocation5 + $0x22f8] sm:$0xff] }
 0x6ff   :  { %14225 = vmatpush1.bf16.msra.mxu0 %v16735_v47  ;;  %14725 = vmatpush1.bf16.msra.mxu1 %v16985_v38  ;;  %v1105_v47 = vld [vmem:[#allocation5 + $0x20b8] sm:$0xff]  ;;  %v1144_v5 = vld [vmem:[#allocation5 + $0x21f0] sm:$0xff] }
 0x700   :  { %14227 = vmatprep.subr.bf16.mxu0 %v16736_v48  ;;  %14727 = vmatprep.subr.bf16.mxu1 %v16986_v9  ;;  %v1113_v38 = vld [vmem:[#allocation5 + $0x20f8] sm:$0xff]  ;;  %v16747_v48 = vcombine.low %v1088_v22, %v1096_v23  ;;  %v16997_v9 = vcombine.low %v1089_v35, %v1097_v29  ;;  %v1152_v17 = vld [vmem:[#allocation5 + $0x2230] sm:$0xff] }
 0x701   :  { %v16998_v40 = vcombine.high %v1105_v47, %v1113_v38  ;;  %v1160_v50 = vld [vmem:[#allocation5 + $0x2270] sm:$0xff]  ;;  %v1185_v35 = vld [vmem:[#allocation5 + $0x2338] sm:$0xff] }
 0x702   :  { %v1168_v16 = vld [vmem:[#allocation5 + $0x22b0] sm:$0xff]  ;;  %v1193_v29 = vld [vmem:[#allocation5 + $0x2378] sm:$0xff] }
 0x703   :  { %14229 = vmatpush1.bf16.msra.mxu0 %v16737_v58  ;;  %14729 = vmatpush1.bf16.msra.mxu1 %v16987_v41  ;;  %v1121_v58 = vld [vmem:[#allocation5 + $0x2138] sm:$0xff]  ;;  %v1176_v20 = vld [vmem:[#allocation5 + $0x22f0] sm:$0xff] }
 0x704   :  { %14231 = vmatprep.subr.bf16.mxu0 %v16738_v61  ;;  %14731 = vmatprep.subr.bf16.mxu1 %v16988_v25  ;;  %v1129_v41 = vld [vmem:[#allocation5 + $0x2178] sm:$0xff]  ;;  %v16749_v61 = vcombine.low %v1104_v56, %v1112_v44  ;;  %v16999_v25 = vcombine.low %v1105_v47, %v1113_v38  ;;  %v1184_v22 = vld [vmem:[#allocation5 + $0x2330] sm:$0xff] }
 0x705   :  { %v17000_v2 = vcombine.high %v1121_v58, %v1129_v41  ;;  %v1192_v23 = vld [vmem:[#allocation5 + $0x2370] sm:$0xff]  ;;  %v1201_v47 = vld [vmem:[#allocation5 + $0x23b8] sm:$0xff] }
 0x706   :  { %v1200_v56 = vld [vmem:[#allocation5 + $0x23b0] sm:$0xff]  ;;  %v1209_v38 = vld [vmem:[#allocation5 + $0x23f8] sm:$0xff] }
 0x707   :  { %14233 = vmatpush1.bf16.msra.mxu0 %v16739_v55  ;;  %14733 = vmatpush1.bf16.msra.mxu1 %v16989_v33  ;;  %v1137_v55 = vld [vmem:[#allocation5 + $0x21b8] sm:$0xff]  ;;  %v1208_v44 = vld [vmem:[#allocation5 + $0x23f0] sm:$0xff] }
 0x708   :  { %14235 = vmatprep.subr.bf16.mxu0 %v16740_v60  ;;  %14735 = vmatprep.subr.bf16.mxu1 %v16990_v11  ;;  %v1145_v33 = vld [vmem:[#allocation5 + $0x21f8] sm:$0xff]  ;;  %v16751_v60 = vcombine.low %v1120_v49, %v1128_v54  ;;  %v16752_v11 = vcombine.high %v1136_v4, %v1144_v5  ;;  %v1216_v49 = vld [vmem:[#allocation5 + $0x2430] sm:$0xff] }
 0x709   :  { %v17002_v31 = vcombine.high %v1137_v55, %v1145_v33  ;;  %v1224_v54 = vld [vmem:[#allocation5 + $0x2470] sm:$0xff] }
 0x70b   :  { %14237 = vmatpush1.bf16.msra.mxu0 %v16741_v7  ;;  %14737 = vmatpush1.bf16.msra.mxu1 %v16991_v10  ;;  %v1161_v7 = vld [vmem:[#allocation5 + $0x2278] sm:$0xff]  ;;  %v16753_v10 = vcombine.low %v1136_v4, %v1144_v5  ;;  %v1232_v4 = vld [vmem:[#allocation5 + $0x24b0] sm:$0xff] }
 0x70c   :  { %14239 = vmatprep.subr.bf16.mxu0 %v16742_v13  ;;  %14739 = vmatprep.subr.bf16.mxu1 %v16992_v14  ;;  %v17003_v13 = vcombine.low %v1137_v55, %v1145_v33  ;;  %v16754_v14 = vcombine.high %v1152_v17, %v1160_v50  ;;  %v1240_v5 = vld [vmem:[#allocation5 + $0x24f0] sm:$0xff]  ;;  %v1233_v55 = vld [vmem:[#allocation5 + $0x24b8] sm:$0xff] }
 0x70d   :  { %v1241_v33 = vld [vmem:[#allocation5 + $0x24f8] sm:$0xff] }
 0x70f   :  { %14241 = vmatpush1.bf16.msra.mxu0 %v16743_v63  ;;  %14741 = vmatpush1.bf16.msra.mxu1 %v16993_v34  ;;  %v16755_v63 = vcombine.low %v1152_v17, %v1160_v50  ;;  %v17005_v34 = vcombine.low %v1153_v6, %v1161_v7  ;;  %v1248_v17 = vld [vmem:[#allocation5 + $0x2530] sm:$0xff] }
 0x710   :  { %14243 = vmatprep.subr.bf16.mxu0 %v16744_v30  ;;  %14743 = vmatprep.subr.bf16.mxu1 %v16994_v18  ;;  %v16756_v30 = vcombine.high %v1168_v16, %v1176_v20  ;;  %v17006_v18 = vcombine.high %v1169_v26, %v1177_v28  ;;  %v1256_v50 = vld [vmem:[#allocation5 + $0x2570] sm:$0xff] }
 0x713   :  { %14245 = vmatpush1.bf16.msra.mxu0 %v16745_v39  ;;  %14745 = vmatpush1.bf16.msra.mxu1 %v16995_v43  ;;  %v16757_v39 = vcombine.low %v1168_v16, %v1176_v20  ;;  %v17007_v43 = vcombine.low %v1169_v26, %v1177_v28  ;;  %v1264_v16 = vld [vmem:[#allocation5 + $0x25b0] sm:$0xff]  ;;  %v1265_v26 = vld [vmem:[#allocation5 + $0x25b8] sm:$0xff] }
 0x714   :  { %14247 = vmatprep.subr.bf16.mxu0 %v16746_v59  ;;  %14747 = vmatprep.subr.bf16.mxu1 %v16996_v8  ;;  %v16758_v59 = vcombine.high %v1184_v22, %v1192_v23  ;;  %v17008_v8 = vcombine.high %v1185_v35, %v1193_v29  ;;  %v1272_v20 = vld [vmem:[#allocation5 + $0x25f0] sm:$0xff]  ;;  %v1273_v28 = vld [vmem:[#allocation5 + $0x25f8] sm:$0xff] }
 0x716   :  { %9918 = vmatmul.mubr.f32.vlgmr.msra.gmra.mrb[6].mxu0 %v17337_v1  ;;  %10486 = vmatmul.mubr.f32.vlgmr.msra.gmra.mrb[6].mxu1 %v17337_v1  ;;  %v17001_v1 = vcombine.low %v1121_v58, %v1129_v41  ;;  %v1217_v58 = vld [vmem:[#allocation5 + $0x2438] sm:$0xff] }
 0x717   :  { %14249 = vmatpush1.bf16.msra.mxu0 %v16747_v48  ;;  %14749 = vmatpush1.bf16.msra.mxu1 %v16997_v9  ;;  %v16759_v48 = vcombine.low %v1184_v22, %v1192_v23  ;;  %v17009_v9 = vcombine.low %v1185_v35, %v1193_v29  ;;  %v1225_v41 = vld [vmem:[#allocation5 + $0x2478] sm:$0xff]  ;;  %v1280_v22 = vld [vmem:[#allocation5 + $0x2630] sm:$0xff] }
 0x718   :  { %14251 = vmatprep.subr.bf16.mxu0 %v16748_v3  ;;  %14751 = vmatprep.subr.bf16.mxu1 %v16998_v40  ;;  %v16760_v3 = vcombine.high %v1200_v56, %v1208_v44  ;;  %v17010_v40 = vcombine.high %v1201_v47, %v1209_v38  ;;  %v1288_v23 = vld [vmem:[#allocation5 + $0x2670] sm:$0xff]  ;;  %v1281_v35 = vld [vmem:[#allocation5 + $0x2638] sm:$0xff] }
 0x719   :  { %9988 = vmatprep.mubr.f32.mxu0 %v17358_v37  ;;  %10556 = vmatprep.mubr.f32.mxu1 %v17358_v37  ;;  %v17004_v37 = vcombine.high %v1153_v6, %v1161_v7  ;;  %v1249_v6 = vld [vmem:[#allocation5 + $0x2538] sm:$0xff] }
 0x71a   :  { %v1257_v7 = vld [vmem:[#allocation5 + $0x2578] sm:$0xff] }
 0x71b   :  { %14253 = vmatpush1.bf16.msra.mxu0 %v16749_v61  ;;  %14753 = vmatpush1.bf16.msra.mxu1 %v16999_v25  ;;  %v16761_v61 = vcombine.low %v1200_v56, %v1208_v44  ;;  %v17011_v25 = vcombine.low %v1201_v47, %v1209_v38  ;;  %v1289_v29 = vld [vmem:[#allocation5 + $0x2678] sm:$0xff]  ;;  %v1296_v56 = vld [vmem:[#allocation5 + $0x26b0] sm:$0xff] }
 0x71c   :  { %14255 = vmatprep.subr.bf16.mxu0 %v16750_v62  ;;  %14755 = vmatprep.subr.bf16.mxu1 %v17000_v2  ;;  %v16762_v62 = vcombine.high %v1216_v49, %v1224_v54  ;;  %v17012_v2 = vcombine.high %v1217_v58, %v1225_v41  ;;  %v1304_v44 = vld [vmem:[#allocation5 + $0x26f0] sm:$0xff]  ;;  %v1297_v47 = vld [vmem:[#allocation5 + $0x26b8] sm:$0xff] }
 0x71d   :  { %v1305_v38 = vld [vmem:[#allocation5 + $0x26f8] sm:$0xff] }
 0x71f   :  { %14257 = vmatpush1.bf16.msra.mxu0 %v16751_v60  ;;  %14757 = vmatpush1.bf16.msra.mxu1 %v17001_v1  ;;  %v16763_v60 = vcombine.low %v1216_v49, %v1224_v54  ;;  %v17013_v1 = vcombine.low %v1217_v58, %v1225_v41  ;;  %v1312_v49 = vld [vmem:[#allocation5 + $0x2730] sm:$0xff]  ;;  %v1313_v58 = vld [vmem:[#allocation5 + $0x2738] sm:$0xff] }
 0x720   :  { %14259 = vmatprep.subr.bf16.mxu0 %v16752_v11  ;;  %14759 = vmatprep.subr.bf16.mxu1 %v17002_v31  ;;  %v16764_v11 = vcombine.high %v1232_v4, %v1240_v5  ;;  %v17014_v31 = vcombine.high %v1233_v55, %v1241_v33  ;;  %v1320_v54 = vld [vmem:[#allocation5 + $0x2770] sm:$0xff]  ;;  %v1321_v41 = vld [vmem:[#allocation5 + $0x2778] sm:$0xff] }
 0x723   :  { %14261 = vmatpush1.bf16.msra.mxu0 %v16753_v10  ;;  %14761 = vmatpush1.bf16.msra.mxu1 %v17003_v13  ;;  %v16765_v10 = vcombine.low %v1232_v4, %v1240_v5  ;;  %v17015_v13 = vcombine.low %v1233_v55, %v1241_v33  ;;  %v1328_v4 = vld [vmem:[#allocation5 + $0x27b0] sm:$0xff]  ;;  %v1329_v55 = vld [vmem:[#allocation5 + $0x27b8] sm:$0xff] }
 0x724   :  { %14263 = vmatprep.subr.bf16.mxu0 %v16754_v14  ;;  %14763 = vmatprep.subr.bf16.mxu1 %v17004_v37  ;;  %v16766_v14 = vcombine.high %v1248_v17, %v1256_v50  ;;  %v17016_v37 = vcombine.high %v1249_v6, %v1257_v7  ;;  %v1336_v5 = vld [vmem:[#allocation5 + $0x27f0] sm:$0xff]  ;;  %v1337_v33 = vld [vmem:[#allocation5 + $0x27f8] sm:$0xff] }
 0x727   :  { %14265 = vmatpush1.bf16.msra.mxu0 %v16755_v63  ;;  %14765 = vmatpush1.bf16.msra.mxu1 %v17005_v34  ;;  %v16767_v63 = vcombine.low %v1248_v17, %v1256_v50  ;;  %v17017_v34 = vcombine.low %v1249_v6, %v1257_v7  ;;  %v1344_v17 = vld [vmem:[#allocation5 + $0x2830] sm:$0xff]  ;;  %v1345_v6 = vld [vmem:[#allocation5 + $0x2838] sm:$0xff] }
 0x728   :  { %14267 = vmatprep.subr.bf16.mxu0 %v16756_v30  ;;  %14767 = vmatprep.subr.bf16.mxu1 %v17006_v18  ;;  %v16768_v30 = vcombine.high %v1264_v16, %v1272_v20  ;;  %v17018_v18 = vcombine.high %v1265_v26, %v1273_v28  ;;  %v1352_v50 = vld [vmem:[#allocation5 + $0x2870] sm:$0xff]  ;;  %v1353_v7 = vld [vmem:[#allocation5 + $0x2878] sm:$0xff] }
 0x72b   :  { %14269 = vmatpush1.bf16.msra.mxu0 %v16757_v39  ;;  %14769 = vmatpush1.bf16.msra.mxu1 %v17007_v43  ;;  %v16769_v39 = vcombine.low %v1264_v16, %v1272_v20  ;;  %v17019_v43 = vcombine.low %v1265_v26, %v1273_v28  ;;  %v1360_v16 = vld [vmem:[#allocation5 + $0x28b0] sm:$0xff]  ;;  %v1361_v26 = vld [vmem:[#allocation5 + $0x28b8] sm:$0xff] }
 0x72c   :  { %14271 = vmatprep.subr.bf16.mxu0 %v16758_v59  ;;  %14771 = vmatprep.subr.bf16.mxu1 %v17008_v8  ;;  %v16770_v59 = vcombine.high %v1280_v22, %v1288_v23  ;;  %v17020_v8 = vcombine.high %v1281_v35, %v1289_v29  ;;  %v1368_v20 = vld [vmem:[#allocation5 + $0x28f0] sm:$0xff]  ;;  %v1369_v28 = vld [vmem:[#allocation5 + $0x28f8] sm:$0xff] }
 0x72f   :  { %14273 = vmatpush1.bf16.msra.mxu0 %v16759_v48  ;;  %14773 = vmatpush1.bf16.msra.mxu1 %v17009_v9  ;;  %v16771_v48 = vcombine.low %v1280_v22, %v1288_v23  ;;  %v17021_v9 = vcombine.low %v1281_v35, %v1289_v29  ;;  %v1376_v22 = vld [vmem:[#allocation5 + $0x2930] sm:$0xff]  ;;  %v1377_v35 = vld [vmem:[#allocation5 + $0x2938] sm:$0xff] }
 0x730   :  { %14275 = vmatprep.subr.bf16.mxu0 %v16760_v3  ;;  %14775 = vmatprep.subr.bf16.mxu1 %v17010_v40  ;;  %v16772_v3 = vcombine.high %v1296_v56, %v1304_v44  ;;  %v17022_v40 = vcombine.high %v1297_v47, %v1305_v38  ;;  %v1384_v23 = vld [vmem:[#allocation5 + $0x2970] sm:$0xff]  ;;  %v1385_v29 = vld [vmem:[#allocation5 + $0x2978] sm:$0xff] }
 0x733   :  { %14277 = vmatpush1.bf16.msra.mxu0 %v16761_v61  ;;  %14777 = vmatpush1.bf16.msra.mxu1 %v17011_v25  ;;  %v16773_v61 = vcombine.low %v1296_v56, %v1304_v44  ;;  %v17023_v25 = vcombine.low %v1297_v47, %v1305_v38  ;;  %v1392_v56 = vld [vmem:[#allocation5 + $0x29b0] sm:$0xff]  ;;  %v1393_v47 = vld [vmem:[#allocation5 + $0x29b8] sm:$0xff] }
 0x734   :  { %14279 = vmatprep.subr.bf16.mxu0 %v16762_v62  ;;  %14779 = vmatprep.subr.bf16.mxu1 %v17012_v2  ;;  %v16774_v62 = vcombine.high %v1312_v49, %v1320_v54  ;;  %v17024_v2 = vcombine.high %v1313_v58, %v1321_v41  ;;  %v1400_v44 = vld [vmem:[#allocation5 + $0x29f0] sm:$0xff]  ;;  %v1401_v38 = vld [vmem:[#allocation5 + $0x29f8] sm:$0xff] }
 0x737   :  { %14281 = vmatpush1.bf16.msra.mxu0 %v16763_v60  ;;  %14781 = vmatpush1.bf16.msra.mxu1 %v17013_v1  ;;  %v16775_v60 = vcombine.low %v1312_v49, %v1320_v54  ;;  %v17025_v1 = vcombine.low %v1313_v58, %v1321_v41  ;;  %v1416_v49 = vld [vmem:[#allocation5 + $0x2a70] sm:$0xff]  ;;  %v1409_v54 = vld [vmem:[#allocation5 + $0x2a38] sm:$0xff]  ;;  %v16785_v41 = vcombine.low %v1392_v56, %v1400_v44 }
 0x738   :  { %14283 = vmatprep.subr.bf16.mxu0 %v16764_v11  ;;  %14783 = vmatprep.subr.bf16.mxu1 %v17014_v31  ;;  %v16776_v11 = vcombine.high %v1328_v4, %v1336_v5  ;;  %v17026_v31 = vcombine.high %v1329_v55, %v1337_v33  ;;  %v1417_v58 = vld [vmem:[#allocation5 + $0x2a78] sm:$0xff] }
 0x73b   :  { %14285 = vmatpush1.bf16.msra.mxu0 %v16765_v10  ;;  %14785 = vmatpush1.bf16.msra.mxu1 %v17015_v13  ;;  %v16777_v10 = vcombine.low %v1328_v4, %v1336_v5  ;;  %v17027_v13 = vcombine.low %v1329_v55, %v1337_v33  ;;  %v1425_v4 = vld [vmem:[#allocation5 + $0x2ab8] sm:$0xff]  ;;  %v17037_v33 = vcombine.low %v1409_v54, %v1417_v58 }
 0x73c   :  { %14287 = vmatprep.subr.bf16.mxu0 %v16766_v14  ;;  %14787 = vmatprep.subr.bf16.mxu1 %v17016_v37  ;;  %v16778_v14 = vcombine.high %v1344_v17, %v1352_v50  ;;  %v17028_v37 = vcombine.high %v1345_v6, %v1353_v7  ;;  %v1433_v5 = vld [vmem:[#allocation5 + $0x2af8] sm:$0xff] }
 0x73f   :  { %14289 = vmatpush1.bf16.msra.mxu0 %v16767_v63  ;;  %14789 = vmatpush1.bf16.msra.mxu1 %v17017_v34  ;;  %v16779_v63 = vcombine.low %v1344_v17, %v1352_v50  ;;  %v17029_v34 = vcombine.low %v1345_v6, %v1353_v7  ;;  %v1441_v17 = vld [vmem:[#allocation5 + $0x2b38] sm:$0xff]  ;;  %v17039_v7 = vcombine.low %v1425_v4, %v1433_v5 }
 0x740   :  { %14291 = vmatprep.subr.bf16.mxu0 %v16768_v30  ;;  %14791 = vmatprep.subr.bf16.mxu1 %v17018_v18  ;;  %v16780_v30 = vcombine.high %v1360_v16, %v1368_v20  ;;  %v17030_v18 = vcombine.high %v1361_v26, %v1369_v28  ;;  %v1449_v50 = vld [vmem:[#allocation5 + $0x2b78] sm:$0xff] }
 0x743   :  { %14293 = vmatpush1.bf16.msra.mxu0 %v16769_v39  ;;  %14793 = vmatpush1.bf16.msra.mxu1 %v17019_v43  ;;  %v16781_v39 = vcombine.low %v1360_v16, %v1368_v20  ;;  %v17031_v43 = vcombine.low %v1361_v26, %v1369_v28  ;;  %v1457_v16 = vld [vmem:[#allocation5 + $0x2bb8] sm:$0xff]  ;;  %v17041_v28 = vcombine.low %v1441_v17, %v1449_v50 }
 0x744   :  { %14295 = vmatprep.subr.bf16.mxu0 %v16770_v59  ;;  %14795 = vmatprep.subr.bf16.mxu1 %v17020_v8  ;;  %v16782_v59 = vcombine.high %v1376_v22, %v1384_v23  ;;  %v17032_v8 = vcombine.high %v1377_v35, %v1385_v29  ;;  %v1465_v20 = vld [vmem:[#allocation5 + $0x2bf8] sm:$0xff] }
 0x747   :  { %14297 = vmatpush1.bf16.msra.mxu0 %v16771_v48  ;;  %14797 = vmatpush1.bf16.msra.mxu1 %v17021_v9  ;;  %v16783_v48 = vcombine.low %v1376_v22, %v1384_v23  ;;  %v16784_v9 = vcombine.high %v1392_v56, %v1400_v44  ;;  %v1473_v22 = vld [vmem:[#allocation5 + $0x2c38] sm:$0xff] }
 0x748   :  { %14299 = vmatprep.subr.bf16.mxu0 %v16772_v3  ;;  %14799 = vmatprep.subr.bf16.mxu1 %v17022_v40  ;;  %v17034_v3 = vcombine.high %v1393_v47, %v1401_v38  ;;  %v1408_v40 = vld [vmem:[#allocation5 + $0x2a30] sm:$0xff]  ;;  %v1481_v23 = vld [vmem:[#allocation5 + $0x2c78] sm:$0xff] }
 0x749   :  { %v16787_v55 = vcombine.low %v1408_v40, %v1416_v49  ;;  %v1489_v56 = vld [vmem:[#allocation5 + $0x2cb8] sm:$0xff] }
 0x74a   :  { %v1497_v44 = vld [vmem:[#allocation5 + $0x2cf8] sm:$0xff] }
 0x74b   :  { %14301 = vmatpush1.bf16.msra.mxu0 %v16773_v61  ;;  %14801 = vmatpush1.bf16.msra.mxu1 %v17023_v25  ;;  %v17035_v61 = vcombine.low %v1393_v47, %v1401_v38  ;;  %v16786_v25 = vcombine.high %v1408_v40, %v1416_v49  ;;  %v17045_v38 = vcombine.low %v1473_v22, %v1481_v23  ;;  %v1505_v40 = vld [vmem:[#allocation5 + $0x2d38] sm:$0xff] }
 0x74c   :  { %14303 = vmatprep.subr.bf16.mxu0 %v16774_v62  ;;  %14803 = vmatprep.subr.bf16.mxu1 %v17024_v2  ;;  %v1424_v62 = vld [vmem:[#allocation5 + $0x2ab0] sm:$0xff]  ;;  %v1513_v49 = vld [vmem:[#allocation5 + $0x2d78] sm:$0xff] }
 0x74d   :  { %v1432_v2 = vld [vmem:[#allocation5 + $0x2af0] sm:$0xff] }
 0x74e   :  { %v16789_v6 = vcombine.low %v1424_v62, %v1432_v2 }
 0x74f   :  { %14305 = vmatpush1.bf16.msra.mxu0 %v16775_v60  ;;  %14805 = vmatpush1.bf16.msra.mxu1 %v17025_v1  ;;  %v16788_v60 = vcombine.high %v1424_v62, %v1432_v2  ;;  %v17038_v1 = vcombine.high %v1425_v4, %v1433_v5  ;;  %v1521_v62 = vld [vmem:[#allocation5 + $0x2db8] sm:$0xff]  ;;  %v17049_v5 = vcombine.low %v1505_v40, %v1513_v49 }
 0x750   :  { %14307 = vmatprep.subr.bf16.mxu0 %v16776_v11  ;;  %14807 = vmatprep.subr.bf16.mxu1 %v17026_v31  ;;  %v1440_v11 = vld [vmem:[#allocation5 + $0x2b30] sm:$0xff]  ;;  %v1529_v2 = vld [vmem:[#allocation5 + $0x2df8] sm:$0xff] }
 0x751   :  { %v1448_v31 = vld [vmem:[#allocation5 + $0x2b70] sm:$0xff] }
 0x752   :  { %v16791_v26 = vcombine.low %v1440_v11, %v1448_v31 }
 0x753   :  { %14309 = vmatpush1.bf16.msra.mxu0 %v16777_v10  ;;  %14809 = vmatpush1.bf16.msra.mxu1 %v17027_v13  ;;  %v16790_v10 = vcombine.high %v1440_v11, %v1448_v31  ;;  %v17040_v13 = vcombine.high %v1441_v17, %v1449_v50  ;;  %v1537_v11 = vld [vmem:[#allocation5 + $0x2e38] sm:$0xff]  ;;  %v17051_v50 = vcombine.low %v1521_v62, %v1529_v2 }
 0x754   :  { %14311 = vmatprep.subr.bf16.mxu0 %v16778_v14  ;;  %14811 = vmatprep.subr.bf16.mxu1 %v17028_v37  ;;  %v1456_v14 = vld [vmem:[#allocation5 + $0x2bb0] sm:$0xff]  ;;  %v1545_v31 = vld [vmem:[#allocation5 + $0x2e78] sm:$0xff] }
 0x755   :  { %v1464_v37 = vld [vmem:[#allocation5 + $0x2bf0] sm:$0xff] }
 0x756   :  { %9989 = vmatmul.mubr.f32.vlgmr.msra.gmra.mrb[6].mxu0 %v17354_v27  ;;  %10557 = vmatmul.mubr.f32.vlgmr.msra.gmra.mrb[6].mxu1 %v17354_v27  ;;  %v17033_v27 = vcombine.low %v1377_v35, %v1385_v29  ;;  %v16793_v35 = vcombine.low %v1456_v14, %v1464_v37  ;;  %v17043_v29 = vcombine.low %v1457_v16, %v1465_v20 }
 0x757   :  { %14313 = vmatpush1.bf16.msra.mxu0 %v16779_v63  ;;  %14813 = vmatpush1.bf16.msra.mxu1 %v17029_v34  ;;  %v16792_v63 = vcombine.high %v1456_v14, %v1464_v37  ;;  %v17042_v34 = vcombine.high %v1457_v16, %v1465_v20  ;;  %v1553_v14 = vld [vmem:[#allocation5 + $0x2eb8] sm:$0xff]  ;;  %v17053_v20 = vcombine.low %v1537_v11, %v1545_v31 }
 0x758   :  { %14315 = vmatprep.subr.bf16.mxu0 %v16780_v30  ;;  %14815 = vmatprep.subr.bf16.mxu1 %v17030_v18  ;;  %v1472_v30 = vld [vmem:[#allocation5 + $0x2c30] sm:$0xff]  ;;  %v1561_v37 = vld [vmem:[#allocation5 + $0x2ef8] sm:$0xff] }
 0x759   :  { %10059 = vmatprep.mubr.f32.mxu0 %v17371_v12  ;;  %10627 = vmatprep.mubr.f32.mxu1 %v17371_v12  ;;  %v17036_v12 = vcombine.high %v1409_v54, %v1417_v58  ;;  %v1480_v18 = vld [vmem:[#allocation5 + $0x2c70] sm:$0xff]  ;;  %v17047_v58 = vcombine.low %v1489_v56, %v1497_v44 }
 0x75a   :  { %v16795_v47 = vcombine.low %v1472_v30, %v1480_v18 }
 0x75b   :  { %14317 = vmatpush1.bf16.msra.mxu0 %v16781_v39  ;;  %14817 = vmatpush1.bf16.msra.mxu1 %v17031_v43  ;;  %v16794_v39 = vcombine.high %v1472_v30, %v1480_v18  ;;  %v17044_v43 = vcombine.high %v1473_v22, %v1481_v23  ;;  %v1569_v30 = vld [vmem:[#allocation5 + $0x2f38] sm:$0xff]  ;;  %v17055_v23 = vcombine.low %v1553_v14, %v1561_v37 }
 0x75c   :  { %14319 = vmatprep.subr.bf16.mxu0 %v16782_v59  ;;  %14819 = vmatprep.subr.bf16.mxu1 %v17032_v8  ;;  %v1488_v59 = vld [vmem:[#allocation5 + $0x2cb0] sm:$0xff]  ;;  %v1577_v18 = vld [vmem:[#allocation5 + $0x2f78] sm:$0xff] }
 0x75d   :  { %v1496_v8 = vld [vmem:[#allocation5 + $0x2cf0] sm:$0xff] }
 0x75e   :  { %v16797_v54 = vcombine.low %v1488_v59, %v1496_v8 }
 0x75f   :  { %14321 = vmatpush1.bf16.msra.mxu0 %v16783_v48  ;;  %14821 = vmatpush1.bf16.msra.mxu1 %v17033_v27  ;;  %v16796_v48 = vcombine.high %v1488_v59, %v1496_v8  ;;  %v17046_v27 = vcombine.high %v1489_v56, %v1497_v44  ;;  %v1585_v59 = vld [vmem:[#allocation5 + $0x2fb8] sm:$0xff]  ;;  %v17057_v44 = vcombine.low %v1569_v30, %v1577_v18 }
 0x760   :  { %14323 = vmatprep.subr.bf16.mxu0 %v16784_v9  ;;  %14823 = vmatprep.subr.bf16.mxu1 %v17034_v3  ;;  %v1504_v9 = vld [vmem:[#allocation5 + $0x2d30] sm:$0xff]  ;;  %v1593_v8 = vld [vmem:[#allocation5 + $0x2ff8] sm:$0xff] }
 0x761   :  { %v1512_v3 = vld [vmem:[#allocation5 + $0x2d70] sm:$0xff] }
 0x762   :  { %v16799_v4 = vcombine.low %v1504_v9, %v1512_v3 }
 0x763   :  { %14325 = vmatpush1.bf16.msra.mxu0 %v16785_v41  ;;  %14825 = vmatpush1.bf16.msra.mxu1 %v17035_v61  ;;  %v16798_v41 = vcombine.high %v1504_v9, %v1512_v3  ;;  %v17048_v61 = vcombine.high %v1505_v40, %v1513_v49  ;;  %v1601_v9 = vld [vmem:[#allocation5 + $0x3038] sm:$0xff]  ;;  %v17059_v49 = vcombine.low %v1585_v59, %v1593_v8 }
 0x764   :  { %14327 = vmatprep.subr.bf16.mxu0 %v16786_v25  ;;  %14827 = vmatprep.subr.bf16.mxu1 %v17036_v12  ;;  %v1520_v25 = vld [vmem:[#allocation5 + $0x2db0] sm:$0xff]  ;;  %v1609_v3 = vld [vmem:[#allocation5 + $0x3078] sm:$0xff] }
 0x765   :  { %v1528_v12 = vld [vmem:[#allocation5 + $0x2df0] sm:$0xff] }
 0x766   :  { %v16801_v17 = vcombine.low %v1520_v25, %v1528_v12 }
 0x767   :  { %14329 = vmatpush1.bf16.msra.mxu0 %v16787_v55  ;;  %14829 = vmatpush1.bf16.msra.mxu1 %v17037_v33  ;;  %v16800_v55 = vcombine.high %v1520_v25, %v1528_v12  ;;  %v17050_v33 = vcombine.high %v1521_v62, %v1529_v2  ;;  %v1617_v25 = vld [vmem:[#allocation5 + $0x30b8] sm:$0xff]  ;;  %v17061_v2 = vcombine.low %v1601_v9, %v1609_v3 }
 0x768   :  { %14331 = vmatprep.subr.bf16.mxu0 %v16788_v60  ;;  %14831 = vmatprep.subr.bf16.mxu1 %v17038_v1  ;;  %v1536_v60 = vld [vmem:[#allocation5 + $0x2e30] sm:$0xff]  ;;  %v1625_v12 = vld [vmem:[#allocation5 + $0x30f8] sm:$0xff] }
 0x769   :  { %v1544_v1 = vld [vmem:[#allocation5 + $0x2e70] sm:$0xff] }
 0x76a   :  { %v16803_v16 = vcombine.low %v1536_v60, %v1544_v1 }
 0x76b   :  { %14333 = vmatpush1.bf16.msra.mxu0 %v16789_v6  ;;  %14833 = vmatpush1.bf16.msra.mxu1 %v17039_v7  ;;  %v16802_v6 = vcombine.high %v1536_v60, %v1544_v1  ;;  %v17052_v7 = vcombine.high %v1537_v11, %v1545_v31  ;;  %v1633_v60 = vld [vmem:[#allocation5 + $0x3138] sm:$0xff]  ;;  %v17063_v31 = vcombine.low %v1617_v25, %v1625_v12 }
 0x76c   :  { %14335 = vmatprep.subr.bf16.mxu0 %v16790_v10  ;;  %14835 = vmatprep.subr.bf16.mxu1 %v17040_v13  ;;  %v1552_v10 = vld [vmem:[#allocation5 + $0x2eb0] sm:$0xff]  ;;  %v1641_v1 = vld [vmem:[#allocation5 + $0x3178] sm:$0xff] }
 0x76d   :  { %v1560_v13 = vld [vmem:[#allocation5 + $0x2ef0] sm:$0xff] }
 0x76e   :  { %v16805_v22 = vcombine.low %v1552_v10, %v1560_v13 }
 0x76f   :  { %14337 = vmatpush1.bf16.msra.mxu0 %v16791_v26  ;;  %14837 = vmatpush1.bf16.msra.mxu1 %v17041_v28  ;;  %v16804_v26 = vcombine.high %v1552_v10, %v1560_v13  ;;  %v17054_v28 = vcombine.high %v1553_v14, %v1561_v37  ;;  %v1649_v10 = vld [vmem:[#allocation5 + $0x31b8] sm:$0xff] }
 0x770   :  { %14339 = vmatprep.subr.bf16.mxu0 %v16792_v63  ;;  %14839 = vmatprep.subr.bf16.mxu1 %v17042_v34  ;;  %v1568_v63 = vld [vmem:[#allocation5 + $0x2f30] sm:$0xff]  ;;  %v1657_v13 = vld [vmem:[#allocation5 + $0x31f8] sm:$0xff] }
 0x771   :  { %v1576_v34 = vld [vmem:[#allocation5 + $0x2f70] sm:$0xff] }
 0x772   :  { %v16807_v56 = vcombine.low %v1568_v63, %v1576_v34 }
 0x773   :  { %14341 = vmatpush1.bf16.msra.mxu0 %v16793_v35  ;;  %14841 = vmatpush1.bf16.msra.mxu1 %v17043_v29  ;;  %v16806_v35 = vcombine.high %v1568_v63, %v1576_v34  ;;  %v17056_v29 = vcombine.high %v1569_v30, %v1577_v18  ;;  %v1673_v63 = vld [vmem:[#allocation5 + $0x3278] sm:$0xff]  ;;  %v17067_v30 = vcombine.low %v1649_v10, %v1657_v13 }
 0x774   :  { %14343 = vmatprep.subr.bf16.mxu0 %v16794_v39  ;;  %14843 = vmatprep.subr.bf16.mxu1 %v17044_v43  ;;  %v1584_v39 = vld [vmem:[#allocation5 + $0x2fb0] sm:$0xff] }
 0x775   :  { %v1592_v43 = vld [vmem:[#allocation5 + $0x2ff0] sm:$0xff] }
 0x776   :  { %v16809_v40 = vcombine.low %v1584_v39, %v1592_v43 }
 0x777   :  { %14345 = vmatpush1.bf16.msra.mxu0 %v16795_v47  ;;  %14845 = vmatpush1.bf16.msra.mxu1 %v17045_v38  ;;  %v16808_v47 = vcombine.high %v1584_v39, %v1592_v43  ;;  %v17058_v38 = vcombine.high %v1585_v59, %v1593_v8 }
 0x778   :  { %14347 = vmatprep.subr.bf16.mxu0 %v16796_v48  ;;  %14847 = vmatprep.subr.bf16.mxu1 %v17046_v27  ;;  %v1600_v48 = vld [vmem:[#allocation5 + $0x3030] sm:$0xff] }
 0x779   :  { %v1608_v27 = vld [vmem:[#allocation5 + $0x3070] sm:$0xff] }
 0x77a   :  { %v16811_v62 = vcombine.low %v1600_v48, %v1608_v27 }
 0x77b   :  { %14349 = vmatpush1.bf16.msra.mxu0 %v16797_v54  ;;  %14849 = vmatpush1.bf16.msra.mxu1 %v17047_v58  ;;  %v16810_v54 = vcombine.high %v1600_v48, %v1608_v27  ;;  %v17060_v58 = vcombine.high %v1601_v9, %v1609_v3 }
 0x77c   :  { %14351 = vmatprep.subr.bf16.mxu0 %v16798_v41  ;;  %14851 = vmatprep.subr.bf16.mxu1 %v17048_v61  ;;  %v1616_v41 = vld [vmem:[#allocation5 + $0x30b0] sm:$0xff] }
 0x77d   :  { %v1624_v61 = vld [vmem:[#allocation5 + $0x30f0] sm:$0xff] }
 0x77e   :  { %v16813_v11 = vcombine.low %v1616_v41, %v1624_v61 }
 0x77f   :  { %14353 = vmatpush1.bf16.msra.mxu0 %v16799_v4  ;;  %14853 = vmatpush1.bf16.msra.mxu1 %v17049_v5  ;;  %v16812_v4 = vcombine.high %v1616_v41, %v1624_v61  ;;  %v17062_v5 = vcombine.high %v1617_v25, %v1625_v12 }
 0x780   :  { %14355 = vmatprep.subr.bf16.mxu0 %v16800_v55  ;;  %14855 = vmatprep.subr.bf16.mxu1 %v17050_v33  ;;  %v1632_v55 = vld [vmem:[#allocation5 + $0x3130] sm:$0xff] }
 0x781   :  { %v1640_v33 = vld [vmem:[#allocation5 + $0x3170] sm:$0xff] }
 0x782   :  { %v16815_v14 = vcombine.low %v1632_v55, %v1640_v33 }
 0x783   :  { %14357 = vmatpush1.bf16.msra.mxu0 %v16801_v17  ;;  %14857 = vmatpush1.bf16.msra.mxu1 %v17051_v50  ;;  %v16814_v17 = vcombine.high %v1632_v55, %v1640_v33  ;;  %v17064_v50 = vcombine.high %v1633_v60, %v1641_v1 }
 0x784   :  { %14359 = vmatprep.subr.bf16.mxu0 %v16802_v6  ;;  %14859 = vmatprep.subr.bf16.mxu1 %v17052_v7  ;;  %v1648_v6 = vld [vmem:[#allocation5 + $0x31b0] sm:$0xff] }
 0x785   :  { %v1656_v7 = vld [vmem:[#allocation5 + $0x31f0] sm:$0xff] }
 0x786   :  { %v16816_v37 = vcombine.high %v1648_v6, %v1656_v7  ;;  %v16817_v34 = vcombine.low %v1648_v6, %v1656_v7 }
 0x787   :  { %14361 = vmatpush1.bf16.msra.mxu0 %v16803_v16  ;;  %14861 = vmatpush1.bf16.msra.mxu1 %v17053_v20  ;;  %v17066_v16 = vcombine.high %v1649_v10, %v1657_v13  ;;  %v1664_v20 = vld [vmem:[#allocation5 + $0x3230] sm:$0xff] }
 0x788   :  { %14363 = vmatprep.subr.bf16.mxu0 %v16804_v26  ;;  %14863 = vmatprep.subr.bf16.mxu1 %v17054_v28  ;;  %v1672_v26 = vld [vmem:[#allocation5 + $0x3270] sm:$0xff]  ;;  %v1665_v28 = vld [vmem:[#allocation5 + $0x3238] sm:$0xff] }
 0x789   :  { %v16818_v18 = vcombine.high %v1664_v20, %v1672_v26  ;;  %v16819_v39 = vcombine.low %v1664_v20, %v1672_v26  ;;  %v17069_v43 = vcombine.low %v1665_v28, %v1673_v63 }
 0x78b   :  { %14365 = vmatpush1.bf16.msra.mxu0 %v16805_v22  ;;  %14865 = vmatpush1.bf16.msra.mxu1 %v17055_v23  ;;  %v1680_v22 = vld [vmem:[#allocation5 + $0x32b0] sm:$0xff] }
 0x78c   :  { %14367 = vmatprep.subr.bf16.mxu0 %v16806_v35  ;;  %14867 = vmatprep.subr.bf16.mxu1 %v17056_v29  ;;  %v1688_v23 = vld [vmem:[#allocation5 + $0x32f0] sm:$0xff]  ;;  %v1681_v35 = vld [vmem:[#allocation5 + $0x32b8] sm:$0xff] }
 0x78d   :  { %v1689_v29 = vld [vmem:[#allocation5 + $0x32f8] sm:$0xff]  ;;  %v16820_v59 = vcombine.high %v1680_v22, %v1688_v23  ;;  %v16821_v48 = vcombine.low %v1680_v22, %v1688_v23 }
 0x78e   :  { %v17070_v8 = vcombine.high %v1681_v35, %v1689_v29  ;;  %v17071_v27 = vcombine.low %v1681_v35, %v1689_v29 }
 0x78f   :  { %14369 = vmatpush1.bf16.msra.mxu0 %v16807_v56  ;;  %14869 = vmatpush1.bf16.msra.mxu1 %v17057_v44  ;;  %v1696_v56 = vld [vmem:[#allocation5 + $0x3330] sm:$0xff] }
 0x790   :  { %14371 = vmatprep.subr.bf16.mxu0 %v16808_v47  ;;  %14871 = vmatprep.subr.bf16.mxu1 %v17058_v38  ;;  %v1704_v44 = vld [vmem:[#allocation5 + $0x3370] sm:$0xff]  ;;  %v1697_v47 = vld [vmem:[#allocation5 + $0x3338] sm:$0xff] }
 0x791   :  { %v1705_v38 = vld [vmem:[#allocation5 + $0x3378] sm:$0xff]  ;;  %v16822_v9 = vcombine.high %v1696_v56, %v1704_v44  ;;  %v16823_v41 = vcombine.low %v1696_v56, %v1704_v44 }
 0x792   :  { %v17072_v3 = vcombine.high %v1697_v47, %v1705_v38  ;;  %v17073_v61 = vcombine.low %v1697_v47, %v1705_v38 }
 0x793   :  { %14373 = vmatpush1.bf16.msra.mxu0 %v16809_v40  ;;  %14873 = vmatpush1.bf16.msra.mxu1 %v17059_v49  ;;  %v1712_v40 = vld [vmem:[#allocation5 + $0x33b0] sm:$0xff] }
 0x794   :  { %14375 = vmatprep.subr.bf16.mxu0 %v16810_v54  ;;  %14875 = vmatprep.subr.bf16.mxu1 %v17060_v58  ;;  %v1720_v49 = vld [vmem:[#allocation5 + $0x33f0] sm:$0xff]  ;;  %v1713_v54 = vld [vmem:[#allocation5 + $0x33b8] sm:$0xff] }
 0x795   :  { %v1721_v58 = vld [vmem:[#allocation5 + $0x33f8] sm:$0xff]  ;;  %v16824_v25 = vcombine.high %v1712_v40, %v1720_v49  ;;  %v16825_v55 = vcombine.low %v1712_v40, %v1720_v49 }
 0x796   :  { %10060 = vmatmul.mubr.f32.vlgmr.msra.gmra.mrb[6].mxu0 %v17367_v0  ;;  %10628 = vmatmul.mubr.f32.vlgmr.msra.gmra.mrb[6].mxu1 %v17367_v0  ;;  %v17065_v0 = vcombine.low %v1633_v60, %v1641_v1  ;;  %v17074_v12 = vcombine.high %v1713_v54, %v1721_v58  ;;  %v17075_v33 = vcombine.low %v1713_v54, %v1721_v58 }
 0x797   :  { %14377 = vmatpush1.bf16.msra.mxu0 %v16811_v62  ;;  %14877 = vmatpush1.bf16.msra.mxu1 %v17061_v2  ;;  %v1728_v62 = vld [vmem:[#allocation5 + $0x3430] sm:$0xff] }
 0x798   :  { %14379 = vmatprep.subr.bf16.mxu0 %v16812_v4  ;;  %14879 = vmatprep.subr.bf16.mxu1 %v17062_v5  ;;  %v1736_v2 = vld [vmem:[#allocation5 + $0x3470] sm:$0xff]  ;;  %v1729_v4 = vld [vmem:[#allocation5 + $0x3438] sm:$0xff] }
 0x799   :  { %10130 = vmatprep.mubr.f32.mxu0 %v17386_v51  ;;  %10698 = vmatprep.mubr.f32.mxu1 %v17386_v51  ;;  %v17068_v51 = vcombine.high %v1665_v28, %v1673_v63  ;;  %v1737_v5 = vld [vmem:[#allocation5 + $0x3478] sm:$0xff]  ;;  %v16826_v60 = vcombine.high %v1728_v62, %v1736_v2  ;;  %v16827_v6 = vcombine.low %v1728_v62, %v1736_v2 }
 0x79a   :  { %v17076_v1 = vcombine.high %v1729_v4, %v1737_v5  ;;  %v17077_v7 = vcombine.low %v1729_v4, %v1737_v5 }
 0x79b   :  { %14381 = vmatpush1.bf16.msra.mxu0 %v16813_v11  ;;  %14881 = vmatpush1.bf16.msra.mxu1 %v17063_v31  ;;  %v1744_v11 = vld [vmem:[#allocation5 + $0x34b0] sm:$0xff] }
 0x79c   :  { %14383 = vmatprep.subr.bf16.mxu0 %v16814_v17  ;;  %14883 = vmatprep.subr.bf16.mxu1 %v17064_v50  ;;  %v1752_v31 = vld [vmem:[#allocation5 + $0x34f0] sm:$0xff]  ;;  %v1745_v17 = vld [vmem:[#allocation5 + $0x34b8] sm:$0xff] }
 0x79d   :  { %v1753_v50 = vld [vmem:[#allocation5 + $0x34f8] sm:$0xff]  ;;  %v16828_v10 = vcombine.high %v1744_v11, %v1752_v31  ;;  %v16829_v20 = vcombine.low %v1744_v11, %v1752_v31 }
 0x79e   :  { %v17078_v13 = vcombine.high %v1745_v17, %v1753_v50  ;;  %v17079_v26 = vcombine.low %v1745_v17, %v1753_v50 }
 0x79f   :  { %14385 = vmatpush1.bf16.msra.mxu0 %v16815_v14  ;;  %14885 = vmatpush1.bf16.msra.mxu1 %v17065_v0  ;;  %v1760_v14 = vld [vmem:[#allocation5 + $0x3530] sm:$0xff] }
 0x7a0   :  { %14387 = vmatprep.subr.bf16.mxu0 %v16816_v37  ;;  %14887 = vmatprep.subr.bf16.mxu1 %v17066_v16  ;;  %v1768_v0 = vld [vmem:[#allocation5 + $0x3570] sm:$0xff]  ;;  %v1761_v37 = vld [vmem:[#allocation5 + $0x3538] sm:$0xff] }
 0x7a1   :  { %v1769_v16 = vld [vmem:[#allocation5 + $0x3578] sm:$0xff]  ;;  %v16830_v28 = vcombine.high %v1760_v14, %v1768_v0  ;;  %v16831_v22 = vcombine.low %v1760_v14, %v1768_v0 }
 0x7a2   :  { %v17080_v63 = vcombine.high %v1761_v37, %v1769_v16  ;;  %v17081_v23 = vcombine.low %v1761_v37, %v1769_v16 }
 0x7a3   :  { %14389 = vmatpush1.bf16.msra.mxu0 %v16817_v34  ;;  %14889 = vmatpush1.bf16.msra.mxu1 %v17067_v30  ;;  %v1776_v34 = vld [vmem:[#allocation5 + $0x35b0] sm:$0xff] }
 0x7a4   :  { %14391 = vmatprep.subr.bf16.mxu0 %v16818_v18  ;;  %14891 = vmatprep.subr.bf16.mxu1 %v17068_v51  ;;  %v1784_v30 = vld [vmem:[#allocation5 + $0x35f0] sm:$0xff]  ;;  %v1777_v18 = vld [vmem:[#allocation5 + $0x35b8] sm:$0xff] }
 0x7a5   :  { %v1785_v51 = vld [vmem:[#allocation5 + $0x35f8] sm:$0xff]  ;;  %v16832_v35 = vcombine.high %v1776_v34, %v1784_v30  ;;  %v16833_v56 = vcombine.low %v1776_v34, %v1784_v30 }
 0x7a6   :  { %v17082_v29 = vcombine.high %v1777_v18, %v1785_v51  ;;  %v17083_v44 = vcombine.low %v1777_v18, %v1785_v51 }
 0x7a7   :  { %14393 = vmatpush1.bf16.msra.mxu0 %v16819_v39  ;;  %14893 = vmatpush1.bf16.msra.mxu1 %v17069_v43  ;;  %v1792_v39 = vld [vmem:[#allocation5 + $0x3630] sm:$0xff] }
 0x7a8   :  { %14395 = vmatprep.subr.bf16.mxu0 %v16820_v59  ;;  %14895 = vmatprep.subr.bf16.mxu1 %v17070_v8  ;;  %v1800_v43 = vld [vmem:[#allocation5 + $0x3670] sm:$0xff]  ;;  %v1793_v59 = vld [vmem:[#allocation5 + $0x3638] sm:$0xff] }
 0x7a9   :  { %v1801_v8 = vld [vmem:[#allocation5 + $0x3678] sm:$0xff]  ;;  %v16834_v47 = vcombine.high %v1792_v39, %v1800_v43  ;;  %v16835_v40 = vcombine.low %v1792_v39, %v1800_v43 }
 0x7aa   :  { %v17084_v38 = vcombine.high %v1793_v59, %v1801_v8  ;;  %v17085_v49 = vcombine.low %v1793_v59, %v1801_v8 }
 0x7ab   :  { %14397 = vmatpush1.bf16.msra.mxu0 %v16821_v48  ;;  %14897 = vmatpush1.bf16.msra.mxu1 %v17071_v27  ;;  %v1808_v48 = vld [vmem:[#allocation5 + $0x36b0] sm:$0xff] }
 0x7ac   :  { %14399 = vmatprep.subr.bf16.mxu0 %v16822_v9  ;;  %14899 = vmatprep.subr.bf16.mxu1 %v17072_v3  ;;  %v1816_v27 = vld [vmem:[#allocation5 + $0x36f0] sm:$0xff]  ;;  %v1809_v9 = vld [vmem:[#allocation5 + $0x36b8] sm:$0xff] }
 0x7ad   :  { %v1817_v3 = vld [vmem:[#allocation5 + $0x36f8] sm:$0xff]  ;;  %v16836_v54 = vcombine.high %v1808_v48, %v1816_v27  ;;  %v16837_v62 = vcombine.low %v1808_v48, %v1816_v27 }
 0x7ae   :  { %v17086_v58 = vcombine.high %v1809_v9, %v1817_v3  ;;  %v17087_v2 = vcombine.low %v1809_v9, %v1817_v3  ;;  %v1920_v3 = vld [vmem:[#allocation5 + $0x3a30] sm:$0xff] }
 0x7af   :  { %14401 = vmatpush1.bf16.msra.mxu0 %v16823_v41  ;;  %14901 = vmatpush1.bf16.msra.mxu1 %v17073_v61  ;;  %v1824_v41 = vld [vmem:[#allocation5 + $0x3730] sm:$0xff] }
 0x7b0   :  { %14403 = vmatprep.subr.bf16.mxu0 %v16824_v25  ;;  %14903 = vmatprep.subr.bf16.mxu1 %v17074_v12  ;;  %v1832_v61 = vld [vmem:[#allocation5 + $0x3770] sm:$0xff]  ;;  %v1825_v25 = vld [vmem:[#allocation5 + $0x3738] sm:$0xff] }
 0x7b1   :  { %v1833_v12 = vld [vmem:[#allocation5 + $0x3778] sm:$0xff]  ;;  %v16838_v4 = vcombine.high %v1824_v41, %v1832_v61  ;;  %v16839_v11 = vcombine.low %v1824_v41, %v1832_v61 }
 0x7b2   :  { %v17088_v5 = vcombine.high %v1825_v25, %v1833_v12  ;;  %v17089_v31 = vcombine.low %v1825_v25, %v1833_v12  ;;  %v1936_v25 = vld [vmem:[#allocation5 + $0x3ab0] sm:$0xff] }
 0x7b3   :  { %14405 = vmatpush1.bf16.msra.mxu0 %v16825_v55  ;;  %14905 = vmatpush1.bf16.msra.mxu1 %v17075_v33  ;;  %v1840_v55 = vld [vmem:[#allocation5 + $0x37b0] sm:$0xff] }
 0x7b4   :  { %14407 = vmatprep.subr.bf16.mxu0 %v16826_v60  ;;  %14907 = vmatprep.subr.bf16.mxu1 %v17076_v1  ;;  %v1848_v33 = vld [vmem:[#allocation5 + $0x37f0] sm:$0xff]  ;;  %v1841_v60 = vld [vmem:[#allocation5 + $0x37b8] sm:$0xff] }
 0x7b5   :  { %v1849_v1 = vld [vmem:[#allocation5 + $0x37f8] sm:$0xff]  ;;  %v16840_v17 = vcombine.high %v1840_v55, %v1848_v33  ;;  %v16841_v14 = vcombine.low %v1840_v55, %v1848_v33  ;;  %v1944_v12 = vld [vmem:[#allocation5 + $0x3af0] sm:$0xff] }
 0x7b6   :  { %v17090_v50 = vcombine.high %v1841_v60, %v1849_v1  ;;  %v17091_v0 = vcombine.low %v1841_v60, %v1849_v1  ;;  %v16852_v55 = vcombine.high %v1936_v25, %v1944_v12  ;;  %v1952_v60 = vld [vmem:[#allocation5 + $0x3b30] sm:$0xff] }
 0x7b7   :  { %14409 = vmatpush1.bf16.msra.mxu0 %v16827_v6  ;;  %14909 = vmatpush1.bf16.msra.mxu1 %v17077_v7  ;;  %v1856_v6 = vld [vmem:[#allocation5 + $0x3830] sm:$0xff] }
 0x7b8   :  { %14411 = vmatprep.subr.bf16.mxu0 %v16828_v10  ;;  %14911 = vmatprep.subr.bf16.mxu1 %v17078_v13  ;;  %v1864_v7 = vld [vmem:[#allocation5 + $0x3870] sm:$0xff]  ;;  %v1857_v10 = vld [vmem:[#allocation5 + $0x3838] sm:$0xff] }
 0x7b9   :  { %v1865_v13 = vld [vmem:[#allocation5 + $0x3878] sm:$0xff]  ;;  %v16842_v37 = vcombine.high %v1856_v6, %v1864_v7  ;;  %v16843_v34 = vcombine.low %v1856_v6, %v1864_v7  ;;  %v1960_v1 = vld [vmem:[#allocation5 + $0x3b70] sm:$0xff] }
 0x7ba   :  { %v17092_v16 = vcombine.high %v1857_v10, %v1865_v13  ;;  %v17093_v30 = vcombine.low %v1857_v10, %v1865_v13  ;;  %v16854_v6 = vcombine.high %v1952_v60, %v1960_v1  ;;  %v1968_v10 = vld [vmem:[#allocation5 + $0x3bb0] sm:$0xff] }
 0x7bb   :  { %14413 = vmatpush1.bf16.msra.mxu0 %v16829_v20  ;;  %14913 = vmatpush1.bf16.msra.mxu1 %v17079_v26  ;;  %v1872_v20 = vld [vmem:[#allocation5 + $0x38b0] sm:$0xff] }
 0x7bc   :  { %14415 = vmatprep.subr.bf16.mxu0 %v16830_v28  ;;  %14915 = vmatprep.subr.bf16.mxu1 %v17080_v63  ;;  %v1880_v26 = vld [vmem:[#allocation5 + $0x38f0] sm:$0xff]  ;;  %v1873_v28 = vld [vmem:[#allocation5 + $0x38b8] sm:$0xff] }
 0x7bd   :  { %v1881_v63 = vld [vmem:[#allocation5 + $0x38f8] sm:$0xff]  ;;  %v16844_v18 = vcombine.high %v1872_v20, %v1880_v26  ;;  %v16845_v39 = vcombine.low %v1872_v20, %v1880_v26  ;;  %v1976_v13 = vld [vmem:[#allocation5 + $0x3bf0] sm:$0xff] }
 0x7be   :  { %v17094_v51 = vcombine.high %v1873_v28, %v1881_v63  ;;  %v17095_v43 = vcombine.low %v1873_v28, %v1881_v63  ;;  %v16856_v20 = vcombine.high %v1968_v10, %v1976_v13  ;;  %v1984_v28 = vld [vmem:[#allocation5 + $0x3c30] sm:$0xff] }
 0x7bf   :  { %14417 = vmatpush1.bf16.msra.mxu0 %v16831_v22  ;;  %14917 = vmatpush1.bf16.msra.mxu1 %v17081_v23  ;;  %v1888_v22 = vld [vmem:[#allocation5 + $0x3930] sm:$0xff] }
 0x7c0   :  { %14419 = vmatprep.subr.bf16.mxu0 %v16832_v35  ;;  %14919 = vmatprep.subr.bf16.mxu1 %v17082_v29  ;;  %v1896_v23 = vld [vmem:[#allocation5 + $0x3970] sm:$0xff]  ;;  %v1889_v35 = vld [vmem:[#allocation5 + $0x3938] sm:$0xff] }
 0x7c1   :  { %v1897_v29 = vld [vmem:[#allocation5 + $0x3978] sm:$0xff]  ;;  %v16846_v59 = vcombine.high %v1888_v22, %v1896_v23  ;;  %v16847_v48 = vcombine.low %v1888_v22, %v1896_v23  ;;  %v1992_v63 = vld [vmem:[#allocation5 + $0x3c70] sm:$0xff] }
 0x7c2   :  { %v17096_v8 = vcombine.high %v1889_v35, %v1897_v29  ;;  %v16858_v22 = vcombine.high %v1984_v28, %v1992_v63 }
 0x7c3   :  { %14421 = vmatpush1.bf16.msra.mxu0 %v16833_v56  ;;  %14921 = vmatpush1.bf16.msra.mxu1 %v17083_v44  ;;  %v1904_v56 = vld [vmem:[#allocation5 + $0x39b0] sm:$0xff] }
 0x7c4   :  { %14423 = vmatprep.subr.bf16.mxu0 %v16834_v47  ;;  %14923 = vmatprep.subr.bf16.mxu1 %v17084_v38  ;;  %v1912_v44 = vld [vmem:[#allocation5 + $0x39f0] sm:$0xff]  ;;  %v1905_v47 = vld [vmem:[#allocation5 + $0x39b8] sm:$0xff] }
 0x7c5   :  { %v1913_v38 = vld [vmem:[#allocation5 + $0x39f8] sm:$0xff]  ;;  %v16848_v27 = vcombine.high %v1904_v56, %v1912_v44 }
 0x7c6   :  { %v17098_v9 = vcombine.high %v1905_v47, %v1913_v38  ;;  %v17099_v41 = vcombine.low %v1905_v47, %v1913_v38  ;;  %v2016_v47 = vld [vmem:[#allocation5 + $0x3d30] sm:$0xff] }
 0x7c7   :  { %14425 = vmatpush1.bf16.msra.mxu0 %v16835_v40  ;;  %14925 = vmatpush1.bf16.msra.mxu1 %v17085_v49  ;;  %v1928_v40 = vld [vmem:[#allocation5 + $0x3a70] sm:$0xff]  ;;  %v1921_v49 = vld [vmem:[#allocation5 + $0x3a38] sm:$0xff] }
 0x7c8   :  { %14427 = vmatprep.subr.bf16.mxu0 %v16836_v54  ;;  %14927 = vmatprep.subr.bf16.mxu1 %v17086_v58  ;;  %v1929_v54 = vld [vmem:[#allocation5 + $0x3a78] sm:$0xff]  ;;  %v16849_v58 = vcombine.low %v1904_v56, %v1912_v44  ;;  %v16850_v61 = vcombine.high %v1920_v3, %v1928_v40  ;;  %v2024_v38 = vld [vmem:[#allocation5 + $0x3d70] sm:$0xff] }
 0x7cb   :  { %14429 = vmatpush1.bf16.msra.mxu0 %v16837_v62  ;;  %14929 = vmatpush1.bf16.msra.mxu1 %v17087_v2  ;;  %v1937_v62 = vld [vmem:[#allocation5 + $0x3ab8] sm:$0xff] }
 0x7cc   :  { %14431 = vmatprep.subr.bf16.mxu0 %v16838_v4  ;;  %14931 = vmatprep.subr.bf16.mxu1 %v17088_v5  ;;  %v1945_v2 = vld [vmem:[#allocation5 + $0x3af8] sm:$0xff]  ;;  %v16851_v4 = vcombine.low %v1920_v3, %v1928_v40  ;;  %v17101_v5 = vcombine.low %v1921_v49, %v1929_v54  ;;  %v16862_v3 = vcombine.high %v2016_v47, %v2024_v38 }
 0x7cd   :  { %v17102_v33 = vcombine.high %v1937_v62, %v1945_v2 }
 0x7cf   :  { %14433 = vmatpush1.bf16.msra.mxu0 %v16839_v11  ;;  %14933 = vmatpush1.bf16.msra.mxu1 %v17089_v31  ;;  %v1953_v11 = vld [vmem:[#allocation5 + $0x3b38] sm:$0xff] }
 0x7d0   :  { %14435 = vmatprep.subr.bf16.mxu0 %v16840_v17  ;;  %14935 = vmatprep.subr.bf16.mxu1 %v17090_v50  ;;  %v1961_v31 = vld [vmem:[#allocation5 + $0x3b78] sm:$0xff]  ;;  %v16853_v17 = vcombine.low %v1936_v25, %v1944_v12  ;;  %v17103_v50 = vcombine.low %v1937_v62, %v1945_v2  ;;  %v2048_v62 = vld [vmem:[#allocation5 + $0x3e30] sm:$0xff] }
 0x7d1   :  { %v17104_v7 = vcombine.high %v1953_v11, %v1961_v31  ;;  %v2056_v2 = vld [vmem:[#allocation5 + $0x3e70] sm:$0xff] }
 0x7d3   :  { %14437 = vmatpush1.bf16.msra.mxu0 %v16841_v14  ;;  %14937 = vmatpush1.bf16.msra.mxu1 %v17091_v0  ;;  %v1969_v14 = vld [vmem:[#allocation5 + $0x3bb8] sm:$0xff] }
 0x7d4   :  { %14439 = vmatprep.subr.bf16.mxu0 %v16842_v37  ;;  %14939 = vmatprep.subr.bf16.mxu1 %v17092_v16  ;;  %v1977_v0 = vld [vmem:[#allocation5 + $0x3bf8] sm:$0xff]  ;;  %v16855_v37 = vcombine.low %v1952_v60, %v1960_v1  ;;  %v17105_v16 = vcombine.low %v1953_v11, %v1961_v31  ;;  %v16866_v60 = vcombine.high %v2048_v62, %v2056_v2 }
 0x7d5   :  { %v17106_v26 = vcombine.high %v1969_v14, %v1977_v0  ;;  %v16867_v11 = vcombine.low %v2048_v62, %v2056_v2 }
 0x7d6   :  { %10131 = vmatmul.mubr.f32.vlgmr.msra.gmra.mrb[6].mxu0 %v17382_v42  ;;  %10699 = vmatmul.mubr.f32.vlgmr.msra.gmra.mrb[6].mxu1 %v17382_v42  ;;  %v17097_v42 = vcombine.low %v1889_v35, %v1897_v29  ;;  %v2000_v35 = vld [vmem:[#allocation5 + $0x3cb0] sm:$0xff] }
 0x7d7   :  { %14441 = vmatpush1.bf16.msra.mxu0 %v16843_v34  ;;  %14941 = vmatpush1.bf16.msra.mxu1 %v17093_v30  ;;  %v1985_v34 = vld [vmem:[#allocation5 + $0x3c38] sm:$0xff]  ;;  %v2008_v29 = vld [vmem:[#allocation5 + $0x3cf0] sm:$0xff] }
 0x7d8   :  { %14443 = vmatprep.subr.bf16.mxu0 %v16844_v18  ;;  %14943 = vmatprep.subr.bf16.mxu1 %v17094_v51  ;;  %v1993_v30 = vld [vmem:[#allocation5 + $0x3c78] sm:$0xff]  ;;  %v16857_v18 = vcombine.low %v1968_v10, %v1976_v13  ;;  %v17107_v51 = vcombine.low %v1969_v14, %v1977_v0  ;;  %v16860_v56 = vcombine.high %v2000_v35, %v2008_v29 }
 0x7d9   :  { %10980 = vmatprep.mubr.msk.f32.mxu0 %vm6229_vm0, %v17399_v36  ;;  %10981 = vmatprep.mubr.msk.f32.mxu1 %vm6229_vm0, %v17399_v36  ;;  %v17100_v36 = vcombine.high %v1921_v49, %v1929_v54  ;;  %v17108_v23 = vcombine.high %v1985_v34, %v1993_v30  ;;  %v2032_v49 = vld [vmem:[#allocation5 + $0x3db0] sm:$0xff] }
 0x7da   :  { %v2040_v54 = vld [vmem:[#allocation5 + $0x3df0] sm:$0xff] }
 0x7db   :  { %14445 = vmatpush1.bf16.msra.mxu0 %v16845_v39  ;;  %14945 = vmatpush1.bf16.msra.mxu1 %v17095_v43  ;;  %v2001_v39 = vld [vmem:[#allocation5 + $0x3cb8] sm:$0xff]  ;;  %v16864_v25 = vcombine.high %v2032_v49, %v2040_v54 }
 0x7dc   :  { %14447 = vmatprep.subr.bf16.mxu0 %v16846_v59  ;;  %14947 = vmatprep.subr.bf16.mxu1 %v17096_v8  ;;  %v2009_v43 = vld [vmem:[#allocation5 + $0x3cf8] sm:$0xff]  ;;  %v16859_v59 = vcombine.low %v1984_v28, %v1992_v63  ;;  %v17109_v8 = vcombine.low %v1985_v34, %v1993_v30 }
 0x7dd   :  { %v17110_v44 = vcombine.high %v2001_v39, %v2009_v43 }
 0x7df   :  { %14449 = vmatpush1.bf16.msra.mxu0 %v16847_v48  ;;  %14949 = vmatpush1.bf16.msra.mxu1 %v17097_v42  ;;  %v2017_v48 = vld [vmem:[#allocation5 + $0x3d38] sm:$0xff] }
 0x7e0   :  { %14451 = vmatprep.subr.bf16.mxu0 %v16848_v27  ;;  %14951 = vmatprep.subr.bf16.mxu1 %v17098_v9  ;;  %v2025_v42 = vld [vmem:[#allocation5 + $0x3d78] sm:$0xff]  ;;  %v16861_v27 = vcombine.low %v2000_v35, %v2008_v29  ;;  %v17111_v9 = vcombine.low %v2001_v39, %v2009_v43  ;;  %v10945_v35 = vrot.slane %v10937_v19, %v17436_v32 }
 0x7e1   :  { %v17112_v40 = vcombine.high %v2017_v48, %v2025_v42 }
 0x7e3   :  { %14453 = vmatpush1.bf16.msra.mxu0 %v16849_v58  ;;  %14953 = vmatpush1.bf16.msra.mxu1 %v17099_v41  ;;  %v2033_v58 = vld [vmem:[#allocation5 + $0x3db8] sm:$0xff] }
 0x7e4   :  { %14455 = vmatprep.subr.bf16.mxu0 %v16850_v61  ;;  %14955 = vmatprep.subr.bf16.mxu1 %v17100_v36  ;;  %v2041_v41 = vld [vmem:[#allocation5 + $0x3df8] sm:$0xff]  ;;  %v16863_v61 = vcombine.low %v2016_v47, %v2024_v38  ;;  %v17113_v36 = vcombine.low %v2017_v48, %v2025_v42 }
 0x7e5   :  { %v17114_v12 = vcombine.high %v2033_v58, %v2041_v41 }
 0x7e7   :  { %14457 = vmatpush1.bf16.msra.mxu0 %v16851_v4  ;;  %14957 = vmatpush1.bf16.msra.mxu1 %v17101_v5  ;;  %v2049_v4 = vld [vmem:[#allocation5 + $0x3e38] sm:$0xff] }
 0x7e8   :  { %14459 = vmatprep.subr.bf16.mxu0 %v16852_v55  ;;  %14959 = vmatprep.subr.bf16.mxu1 %v17102_v33  ;;  %v2057_v5 = vld [vmem:[#allocation5 + $0x3e78] sm:$0xff]  ;;  %v16865_v55 = vcombine.low %v2032_v49, %v2040_v54  ;;  %v17115_v33 = vcombine.low %v2033_v58, %v2041_v41 }
 0x7e9   :  { %v17116_v1 = vcombine.high %v2049_v4, %v2057_v5  ;;  %v17117_v31 = vcombine.low %v2049_v4, %v2057_v5 }
 0x7eb   :  { %14461 = vmatpush1.bf16.msra.mxu0 %v16853_v17  ;;  %14961 = vmatpush1.bf16.msra.mxu1 %v17103_v50  ;;  %v17127_v17 = vld [vmem:[#allocation7 + $0x8] sm:$0xff] }
 0x7ec   :  { %14463 = vmatprep.subr.bf16.mxu0 %v16854_v6  ;;  %14963 = vmatprep.subr.bf16.mxu1 %v17104_v7  ;;  %v6113_v50 = vrot.slane %v17127_v17, %v6080_v45  ;;  %v6121_v6 = vrot.slane %v17127_v17, %v6088_v52  ;;  %v6117_v7 = vrot.slane %v17127_v17, %v6084_v53 }
 0x7ed   :  { %v6125_v10 = vrot.slane %v17127_v17, %v6092_v57 }
 0x7ef   :  { %14465 = vmatpush1.bf16.msra.mxu0 %v16855_v37  ;;  %14965 = vmatpush1.bf16.msra.mxu1 %v17105_v16 }
 0x7f0   :  { %14467 = vmatprep.subr.bf16.mxu0 %v16856_v20  ;;  %14967 = vmatprep.subr.bf16.mxu1 %v17106_v26 }
 0x7f3   :  { %14469 = vmatpush1.bf16.msra.mxu0 %v16857_v18  ;;  %14969 = vmatpush1.bf16.msra.mxu1 %v17107_v51 }
 0x7f4   :  { %14471 = vmatprep.subr.bf16.mxu0 %v16858_v22  ;;  %14971 = vmatprep.subr.bf16.mxu1 %v17108_v23 }
 0x7f7   :  { %14473 = vmatpush1.bf16.msra.mxu0 %v16859_v59  ;;  %14973 = vmatpush1.bf16.msra.mxu1 %v17109_v8 }
 0x7f8   :  { %14475 = vmatprep.subr.bf16.mxu0 %v16860_v56  ;;  %14975 = vmatprep.subr.bf16.mxu1 %v17110_v44 }
 0x7fb   :  { %14477 = vmatpush1.bf16.msra.mxu0 %v16861_v27  ;;  %14977 = vmatpush1.bf16.msra.mxu1 %v17111_v9 }
 0x7fc   :  { %14479 = vmatprep.subr.bf16.mxu0 %v16862_v3  ;;  %14979 = vmatprep.subr.bf16.mxu1 %v17112_v40 }
 0x7ff   :  { %14481 = vmatpush1.bf16.msra.mxu0 %v16863_v61  ;;  %14981 = vmatpush1.bf16.msra.mxu1 %v17113_v36 }
 0x800   :  { %14483 = vmatprep.subr.bf16.mxu0 %v16864_v25  ;;  %14983 = vmatprep.subr.bf16.mxu1 %v17114_v12 }
 0x803   :  { %14485 = vmatpush1.bf16.msra.mxu0 %v16865_v55  ;;  %14985 = vmatpush1.bf16.msra.mxu1 %v17115_v33 }
 0x804   :  { %14487 = vmatprep.subr.bf16.mxu0 %v16866_v60  ;;  %14987 = vmatprep.subr.bf16.mxu1 %v17116_v1 }
 0x807   :  { %14489 = vmatpush1.bf16.msra.mxu0 %v16867_v11  ;;  %14989 = vmatpush1.bf16.msra.mxu1 %v17117_v31 }
 0x80a   :  { %10202 = vmatmul.mubr.f32.vlgmr.msra.gmra.mrb[6].mxu0 %v17395_v24  ;;  %10770 = vmatmul.mubr.f32.vlgmr.msra.gmra.mrb[6].mxu1 %v17395_v24 }
 0x8dd   :  { %v10203_v13 = vpop.f32.mrb[6].mxu0  ;;  %v10771_v0 = vpop.f32.mrb[6].mxu1 }
 0x8de   :  { %v15002_v14 = vadd.f32 %v10203_v13, %v6113_v50  ;;  %v10205_v37 = vpop.f32.mrb[7].mxu0  ;;  %v15004_v16 = vadd.f32 %v10771_v0, %v6121_v6  ;;  %v10773_v24 = vpop.f32.mrb[7].mxu1 }
 0x8df   :  { %v15003_v20 = vadd.f32 %v10205_v37, %v6117_v7  ;;  %v15005_v28 = vadd.f32 %v10773_v24, %v6125_v10 }
 0x8e0   :  { %vm10788_vm13 = vcmp.ge.f32.partialorder %v15002_v14, 0.0  ;;  %v10804_v26 = vmul.f32 0.01, %v15002_v14  ;;  %vm10790_vm14 = vcmp.ge.f32.partialorder %v15004_v16, 0.0  ;;  %v10806_v45 = vmul.f32 0.01, %v15004_v16 }
 0x8e1   :  { %vm10789_vm15 = vcmp.ge.f32.partialorder %v15003_v20, 0.0  ;;  %v10805_v52 = vmul.f32 0.01, %v15003_v20  ;;  %vm10791_vm0 = vcmp.ge.f32.partialorder %v15005_v28, 0.0  ;;  %v10807_v53 = vmul.f32 0.01, %v15005_v28 }
 0x8e2   :  { %v10820_v63 = vsel %vm10788_vm13, %v15002_v14, %v10804_v26  ;;  %v10822_v34 = vsel %vm10790_vm14, %v15004_v16, %v10806_v45 }
 0x8e3   :  { %v10821_v46 = vsel %vm10789_vm15, %v15003_v20, %v10805_v52  ;;  %v10823_v30 = vsel %vm10791_vm0, %v15005_v28, %v10807_v53 }
 0x8e4   :  { %v10988_v57 = vpack.c.bf16 %v10821_v46, %v10820_v63  ;;  %v10989_v18 = vpack.c.bf16 %v10823_v30, %v10822_v34 }
 0x8e6   :  { %v10929_v51 = vrot.slane %v10988_v57, %v17436_v32  ;;  %v10936_v22 = vrot.slane %v10989_v18, %v17436_v32 }
 0x8e8   :  { %v10938_v23 = vcombine.low %v10929_v51, %v10936_v22 }
 0x8ea   :  { %v10952_v29 = vrot.slane %v10938_v23, %v17436_v32 }
 0x8ec   :  { %v10953_v39 = vcombine.low %v10945_v35, %v10952_v29 }
 0x8ee   :  { %10957 = vst [vmem:[#allocation8 + $0x8] sm:$0xff] %v10953_v39 }
 0x8ef   :  { %17205 = shalt.err (!%p17202_p0)
}
 0x8f0   :  { %s17206_s25 = scalar_lea.hbm %s17599_s3, 256 }
 0x8f1   :  { %p17207_p1 = scmp.ne.s32.totalorder %s17599_s3, %s17206_s25  ;;  %p17210_p2 = scmp.lt.u32.totalorder %s17206_s25, %s17599_s3 }
 0x8f3   :  { %p17212_p3 = pnand %p17210_p2, %p17207_p1 }
 0x8f5   :  { %17215 = shalt.err (!%p17212_p3)
}
 0x8f6   :  { %10967 = dma.vmem_to_hbm [thread:$0]  %s10965_s21, 256, %s17599_s3, [#allocation4]  }
 0x8f7   :  { %17220 = dma.done.wait [#allocation4], 256  }
 0x8f8   :  { %17221 = vsyncadd [#allocation4], 4294967040 }
 0x8f9   :  { %10971 = vsyncpa [#allocation3], 1 }
 0x8fa   :  { %10972 = vsyncpa [#allocation6], 1 }
 0x8fb   :  { %10973 = vsyncpa [#allocation4], 1 }

// kernel: voxnet_forward.5
= control target key start
LH: loop header
LB: loop body
LE: loop exit
PB: predicated region body
PF: predicated region fallthrough
CT: control target
= control target key end

     0   :  { %12 = vsyncpa [#allocation3], 0  ;;  %s1925_s0 = inlined_call_operand.hbm [shape: bf16[16,864], index: 0, kind: input, shape index: {}]   ;;  %s1926_s1 = inlined_call_operand.hbm [shape: bf16[864,32], index: 1, kind: input, shape index: {}]   ;;  %s1927_s2 = inlined_call_operand.hbm [shape: f32[1,32], index: 2, kind: input, shape index: {}]   ;;  %s1928_s3 = inlined_call_operand.hbm [shape: f32[32,128], index: 3, kind: input, shape index: {}]   ;;  %s1929_s4 = inlined_call_operand.hbm [shape: f32[1,128], index: 4, kind: input, shape index: {}]   ;;  %s1930_s5 = inlined_call_operand.hbm [shape: f32[128,10], index: 5, kind: input, shape index: {}]   ;;  %s1931_s6 = inlined_call_operand.hbm [shape: f32[1,10], index: 6, kind: input, shape index: {}]   ;;  %s1932_s7 = inlined_call_operand.hbm [shape: f32[2,10], index: 7, kind: output, shape index: {}]  }
   0x1   :  { %13 = vsyncpa [#allocation6], 0 }
   0x2   :  { %14 = vsyncpa [#allocation9], 0 }
   0x3   :  { %15 = vsyncpa [#allocation12], 0 }
   0x4   :  { %16 = vsyncpa [#allocation4], 0  ;;  %s1757_s24 = smov [#allocation5]   ;;  %s1571_s28 = scalar_lea.hbm %s1926_s1, 6912 }
   0x5   :  { %s34_s25 = sshll.u32 %s1757_s24, 4  ;;  %p1572_p0 = scmp.ne.s32.totalorder %s1926_s1, %s1571_s28  ;;  %s35_s25 = int_to_ptr.vmem [resolvable:$true] %s34_s25 }
   0x6   :  { %p1575_p1 = scmp.lt.u32.totalorder %s1571_s28, %s1926_s1 }
   0x8   :  { %p1577_p2 = pnand %p1575_p1, %p1572_p0 }
   0xa   :  { %1580 = shalt.err (!%p1577_p2)
}
   0xb   :  { %s1581_s10 = scalar_lea.vmem %s35_s25, 6912  ;;  %p1586_p4 = scmp.lt.s32.totalorder %s35_s25, %s35_s25 }
   0xc   :  { %p1582_p3 = scmp.ne.s32.totalorder %s35_s25, %s1581_s10  ;;  %p1587_p5 = scmp.lt.s32.totalorder %s1581_s10, %s1581_s10 }
   0xe   :  { %p1588_p6 = por %p1587_p5, %p1586_p4 }
  0x10   :  { %p1589_p7 = pnand %p1588_p6, %p1582_p3 }
  0x12   :  { %1592 = shalt.err (!%p1589_p7)
}
  0x13   :  { %s1758_s11 = smov 64   ;;  %s1759_s12 = smov 4  }
  0x14   :  { %40 = dma.hbm_to_vmem [thread:$0]  %s1926_s1, 6912, %s35_s25, [#allocation6], %s1758_s11, %s1758_s11, %s1759_s12  }
  0x15   :  { %s1760_s15 = smov [#allocation8]   ;;  %s1593_s19 = scalar_lea.hbm %s1928_s3, 512 }
  0x16   :  { %s56_s16 = sshll.u32 %s1760_s15, 4  ;;  %p1594_p8 = scmp.ne.s32.totalorder %s1928_s3, %s1593_s19  ;;  %s57_s16 = int_to_ptr.vmem [resolvable:$true] %s56_s16 }
  0x17   :  { %p1597_p9 = scmp.lt.u32.totalorder %s1593_s19, %s1928_s3 }
  0x19   :  { %p1599_p10 = pnand %p1597_p9, %p1594_p8 }
  0x1b   :  { %1602 = shalt.err (!%p1599_p10)
}
  0x1c   :  { %s1603_s24 = scalar_lea.vmem %s57_s16, 512  ;;  %p1608_p12 = scmp.lt.s32.totalorder %s57_s16, %s57_s16 }
  0x1d   :  { %p1604_p11 = scmp.ne.s32.totalorder %s57_s16, %s1603_s24  ;;  %p1609_p13 = scmp.lt.s32.totalorder %s1603_s24, %s1603_s24 }
  0x1f   :  { %p1610_p0 = por %p1609_p13, %p1608_p12 }
  0x21   :  { %p1611_p1 = pnand %p1610_p0, %p1604_p11 }
  0x23   :  { %1614 = shalt.err (!%p1611_p1)
}
  0x24   :  { %s1761_s1 = smov 128   ;;  %s1762_s25 = smov 8  }
  0x25   :  { %62 = dma.hbm_to_vmem [thread:$0]  %s1928_s3, 512, %s57_s16, [#allocation9], %s1761_s1, %s1761_s1, %s1762_s25  }
  0x26   :  { %s1763_s28 = smov [#allocation11]   ;;  %s1764_s30 = smov [#allocation2]  }
  0x27   :  { %s78_s29 = sshll.u32 %s1763_s28, 4  ;;  %s22_s8 = sshll.u32 %s1764_s30, 4  ;;  %s79_s29 = int_to_ptr.vmem [resolvable:$true] %s78_s29  ;;  %s1838_s8 = int_to_ptr.vmem [resolvable:$true] %s22_s8 }
  0x28   :  { %s1615_s11 = scalar_lea.hbm %s1930_s5, 2048 }
  0x29   :  { %p1616_p2 = scmp.ne.s32.totalorder %s1930_s5, %s1615_s11  ;;  %p1619_p3 = scmp.lt.u32.totalorder %s1615_s11, %s1930_s5 }
  0x2b   :  { %p1621_p4 = pnand %p1619_p3, %p1616_p2 }
  0x2d   :  { %1624 = shalt.err (!%p1621_p4)
}
  0x2e   :  { %s1625_s3 = scalar_lea.vmem %s79_s29, 2048  ;;  %p1630_p6 = scmp.lt.s32.totalorder %s79_s29, %s79_s29 }
  0x2f   :  { %p1626_p5 = scmp.ne.s32.totalorder %s79_s29, %s1625_s3  ;;  %p1631_p7 = scmp.lt.s32.totalorder %s1625_s3, %s1625_s3 }
  0x31   :  { %p1632_p8 = por %p1631_p7, %p1630_p6 }
  0x33   :  { %p1633_p9 = pnand %p1632_p8, %p1626_p5 }
  0x35   :  { %1636 = shalt.err (!%p1633_p9)
}
  0x36   :  { %84 = dma.hbm_to_vmem [thread:$0]  %s1930_s5, 2048, %s79_s29, [#allocation12], %s1761_s1, %s1761_s1, %s1762_s25  }
  0x37   :  { %s1637_s20 = scalar_lea.hbm %s1925_s0, 896 }
  0x38   :  { %p1638_p10 = scmp.ne.s32.totalorder %s1925_s0, %s1637_s20  ;;  %p1641_p11 = scmp.lt.u32.totalorder %s1637_s20, %s1925_s0 }
  0x3a   :  { %p1643_p12 = pnand %p1641_p11, %p1638_p10 }
  0x3c   :  { %1646 = shalt.err (!%p1643_p12)
}
  0x3d   :  { %s1647_s26 = scalar_lea.vmem %s1838_s8, 896  ;;  %p1652_p0 = scmp.lt.s32.totalorder %s1838_s8, %s1838_s8 }
  0x3e   :  { %p1648_p13 = scmp.ne.s32.totalorder %s1838_s8, %s1647_s26  ;;  %p1653_p1 = scmp.lt.s32.totalorder %s1647_s26, %s1647_s26 }
  0x40   :  { %p1654_p2 = por %p1653_p1, %p1652_p0 }
  0x42   :  { %p1655_p3 = pnand %p1654_p2, %p1648_p13 }
  0x44   :  { %1658 = shalt.err (!%p1655_p3)
}
  0x45   :  { %s1765_s5 = smov 448   ;;  %s1766_s1 = smov 28  }
  0x46   :  { %28 = dma.hbm_to_vmem [thread:$0]  %s1925_s0, 896, %s1838_s8, [#allocation3], %s1765_s5, %s1765_s5, %s1766_s1  }
  0x47   :  { %s1767_s28 = smov [#allocation7]   ;;  %s1768_s30 = smov [#allocation10]  }
  0x48   :  { %s47_s29 = sshll.u32 %s1767_s28, 4  ;;  %s69_s9 = sshll.u32 %s1768_s30, 4  ;;  %s48_s29 = int_to_ptr.vmem [resolvable:$true] %s47_s29  ;;  %s70_s9 = int_to_ptr.vmem [resolvable:$true] %s69_s9 }
  0x49   :  { %s1659_s12 = scalar_lea.hbm %s1927_s2, 16 }
  0x4a   :  { %p1660_p4 = scmp.ne.s32.totalorder %s1927_s2, %s1659_s12  ;;  %p1663_p5 = scmp.lt.u32.totalorder %s1659_s12, %s1927_s2 }
  0x4c   :  { %p1665_p6 = pnand %p1663_p5, %p1660_p4 }
  0x4e   :  { %1668 = shalt.err (!%p1665_p6)
}
  0x4f   :  { %s1669_s0 = scalar_lea.vmem %s48_s29, 16  ;;  %s1673_s8 = scalar_lea.vmem %s48_s29, 32 }
  0x50   :  { %p1670_p7 = scmp.ne.s32.totalorder %s48_s29, %s1669_s0  ;;  %p1674_p8 = scmp.lt.s32.totalorder %s48_s29, %s48_s29 }
  0x51   :  { %p1675_p9 = scmp.lt.s32.totalorder %s1673_s8, %s1669_s0 }
  0x53   :  { %p1676_p10 = por %p1675_p9, %p1674_p8 }
  0x55   :  { %p1677_p11 = pnand %p1676_p10, %p1670_p7 }
  0x57   :  { %1680 = shalt.err (!%p1677_p11)
}
  0x58   :  { %50 = dma.hbm_to_vmem [thread:$0]  %s1927_s2, 16, %s48_s29, [#allocation6]  }
  0x59   :  { %s1681_s20 = scalar_lea.hbm %s1929_s4, 16 }
  0x5a   :  { %p1682_p12 = scmp.ne.s32.totalorder %s1929_s4, %s1681_s20  ;;  %p1685_p13 = scmp.lt.u32.totalorder %s1681_s20, %s1929_s4 }
  0x5c   :  { %p1687_p0 = pnand %p1685_p13, %p1682_p12 }
  0x5e   :  { %1690 = shalt.err (!%p1687_p0)
}
  0x5f   :  { %s1691_s26 = scalar_lea.vmem %s70_s9, 16  ;;  %s1695_s5 = scalar_lea.vmem %s70_s9, 32 }
  0x60   :  { %p1692_p1 = scmp.ne.s32.totalorder %s70_s9, %s1691_s26  ;;  %p1696_p2 = scmp.lt.s32.totalorder %s70_s9, %s70_s9 }
  0x61   :  { %p1697_p3 = scmp.lt.s32.totalorder %s1695_s5, %s1691_s26 }
  0x63   :  { %p1698_p4 = por %p1697_p3, %p1696_p2 }
  0x65   :  { %p1699_p5 = pnand %p1698_p4, %p1692_p1 }
  0x67   :  { %1702 = shalt.err (!%p1699_p5)
}
  0x68   :  { %72 = dma.hbm_to_vmem [thread:$0]  %s1929_s4, 16, %s70_s9, [#allocation9]  }
  0x69   :  { %s1769_s25 = smov [#allocation13]   ;;  %s1703_s30 = scalar_lea.hbm %s1931_s6, 16 }
  0x6a   :  { %s91_s27 = sshll.u32 %s1769_s25, 4  ;;  %p1704_p6 = scmp.ne.s32.totalorder %s1931_s6, %s1703_s30  ;;  %s92_s27 = int_to_ptr.vmem [resolvable:$true] %s91_s27 }
  0x6b   :  { %p1707_p7 = scmp.lt.u32.totalorder %s1703_s30, %s1931_s6 }
  0x6d   :  { %p1709_p8 = pnand %p1707_p7, %p1704_p6 }
  0x6f   :  { %1712 = shalt.err (!%p1709_p8)
}
  0x70   :  { %s1713_s14 = scalar_lea.vmem %s92_s27, 16  ;;  %s1717_s4 = scalar_lea.vmem %s92_s27, 32 }
  0x71   :  { %p1714_p9 = scmp.ne.s32.totalorder %s92_s27, %s1713_s14  ;;  %p1718_p10 = scmp.lt.s32.totalorder %s92_s27, %s92_s27 }
  0x72   :  { %p1719_p11 = scmp.lt.s32.totalorder %s1717_s4, %s1713_s14 }
  0x74   :  { %p1720_p12 = por %p1719_p11, %p1718_p10 }
  0x76   :  { %p1721_p13 = pnand %p1720_p12, %p1714_p9 }
  0x78   :  { %1724 = shalt.err (!%p1721_p13)
}
  0x79   :  { %94 = dma.hbm_to_vmem [thread:$0]  %s1931_s6, 16, %s92_s27, [#allocation12]  }
  0x7a   :  { %1747 = dma.done.wait [#allocation3], 896  }
  0x7b   :  { %1748 = vsyncadd [#allocation3], 4294966400 }
  0x7c   :  { %1749 = dma.done.wait [#allocation6], 6928  }
  0x7d   :  { %1750 = vsyncadd [#allocation6], 4294960368 }
  0x7e   :  { %1751 = dma.done.wait [#allocation9], 528  }
  0x7f   :  { %1752 = vsyncadd [#allocation9], 4294966768 }
  0x80   :  { %1753 = dma.done.wait [#allocation12], 2064  }
  0x81   :  { %1754 = vsyncadd [#allocation12], 4294965232  ;;  %v1131_v0 = vld [vmem:[#allocation5 + $0x40] sm:$0xff]   ;;  %v1132_v4 = vld [vmem:[#allocation5 + $0x48] sm:$0xff]   ;;  %vm361_vm0 = vcmask 785408   ;;  %vm1771_vm1 = vmmov 0  }
  0x82   :  { %v909_v1 = vld [vmem:[#allocation5] sm:$0xff]   ;;  %1401 = vmatprep.subr.bf16.mxu0 %v1131_v0  ;;  %v1148_v5 = vld [vmem:[#allocation5 + $0xc8] sm:$0xff]   ;;  %v1133_v8 = vld [vmem:[#allocation5 + $0x50] sm:$0xff]   ;;  %vm674_vm3 = vcmask 261120   ;;  %vm702_vm5 = vcmask 1041409   ;;  %vm870_vm6 = vcmask 74752  }
  0x83   :  { %v1147_v2 = vld [vmem:[#allocation5 + $0xc0] sm:$0xff]   ;;  %1403 = vmatpush3.bf16.msra.mxu0 %v909_v1  ;;  %v1124_v6 = vld [vmem:[#allocation5 + $0x8] sm:$0xff]   ;;  %v1149_v9 = vld [vmem:[#allocation5 + $0xd0] sm:$0xff]   ;;  %s1773_s6 = smov [#allocation14]  }
  0x84   :  { %1433 = vmatprep.subr.bf16.mxu1 %v1147_v2  ;;  %v1139_v3 = vld [vmem:[#allocation5 + $0x80] sm:$0xff]   ;;  %1405 = vmatprep.subr.bf16.mxu0 %v1132_v4  ;;  %v1140_v7 = vld [vmem:[#allocation5 + $0x88] sm:$0xff]   ;;  %v1125_v10 = vld [vmem:[#allocation5 + $0x10] sm:$0xff]   ;;  %s890_s3 = sshll.u32 %s1773_s6, 4  ;;  %s891_s3 = int_to_ptr.vmem [resolvable:$true] %s890_s3 }
  0x85   :  { %1435 = vmatpush3.bf16.msra.mxu1 %v1139_v3  ;;  %v1141_v11 = vld [vmem:[#allocation5 + $0x90] sm:$0xff]   ;;  %v1134_v12 = vld [vmem:[#allocation5 + $0x58] sm:$0xff]   ;;  %v116_v14 = vld [vmem:[#allocation2] sm:$0xff]  ;;  %s1725_s0 = scalar_lea.vmem %s891_s3, 32  ;;  %p1730_p1 = scmp.lt.s32.totalorder %s891_s3, %s891_s3 }
  0x86   :  { %1437 = vmatprep.subr.bf16.mxu1 %v1148_v5  ;;  %v1150_v13 = vld [vmem:[#allocation5 + $0xd8] sm:$0xff]   ;;  %v125_v17 = vunpack.c.h.bf16 %v116_v14  ;;  %v117_v18 = vld [vmem:[#allocation2 + $0x8] sm:$0xff]  ;;  %v1135_v19 = vld [vmem:[#allocation5 + $0x60] sm:$0xff]   ;;  %v124_v38 = vunpack.c.l.bf16 %v116_v14  ;;  %v1770_v14 = vmov 0.0|0.0   ;;  %p1726_p0 = scmp.ne.s32.totalorder %s891_s3, %s1725_s0  ;;  %p1731_p2 = scmp.lt.s32.totalorder %s1725_s0, %s1725_s0 }
  0x87   :  { %1407 = vmatpush3.bf16.msra.mxu0 %v1124_v6  ;;  %v1126_v15 = vld [vmem:[#allocation5 + $0x18] sm:$0xff]   ;;  %v1151_v20 = vld [vmem:[#allocation5 + $0xe0] sm:$0xff]   ;;  %v127_v21 = vunpack.c.h.bf16 %v117_v18  ;;  %v1136_v24 = vld [vmem:[#allocation5 + $0x68] sm:$0xff]   ;;  %v126_v39 = vunpack.c.l.bf16 %v117_v18 }
  0x88   :  { %1409 = vmatprep.subr.bf16.mxu0 %v1133_v8  ;;  %v1142_v16 = vld [vmem:[#allocation5 + $0x98] sm:$0xff]   ;;  %432 = vmatprep.mubr.f32.mxu0 %v125_v17  ;;  %v1127_v22 = vld [vmem:[#allocation5 + $0x20] sm:$0xff]   ;;  %v1152_v25 = vld [vmem:[#allocation5 + $0xe8] sm:$0xff]   ;;  %v1772_v17 = vmov 0.0   ;;  %p1732_p3 = por %p1731_p2, %p1730_p1 }
  0x89   :  { %1439 = vmatpush3.bf16.msra.mxu1 %v1140_v7  ;;  %v1143_v23 = vld [vmem:[#allocation5 + $0xa0] sm:$0xff]   ;;  %507 = vmatprep.mubr.f32.mxu1 %v127_v21  ;;  %v1128_v26 = vld [vmem:[#allocation5 + $0x28] sm:$0xff]   ;;  %v1137_v28 = vld [vmem:[#allocation5 + $0x70] sm:$0xff]  }
  0x8a   :  { %1441 = vmatprep.subr.bf16.mxu1 %v1149_v9  ;;  %v1144_v27 = vld [vmem:[#allocation5 + $0xa8] sm:$0xff]   ;;  %v1153_v29 = vld [vmem:[#allocation5 + $0xf0] sm:$0xff]   ;;  %v1138_v32 = vld [vmem:[#allocation5 + $0x78] sm:$0xff]   ;;  %p1733_p4 = pnand %p1732_p3, %p1726_p0 }
  0x8b   :  { %1411 = vmatpush3.bf16.msra.mxu0 %v1125_v10  ;;  %v1129_v30 = vld [vmem:[#allocation5 + $0x30] sm:$0xff]   ;;  %v1154_v33 = vld [vmem:[#allocation5 + $0xf8] sm:$0xff]   ;;  %v1163_v36 = vld [vmem:[#allocation5 + $0x140] sm:$0xff]  }
  0x8c   :  { %1413 = vmatprep.subr.bf16.mxu0 %v1134_v12  ;;  %v1145_v31 = vld [vmem:[#allocation5 + $0xb0] sm:$0xff]   ;;  %v1130_v34 = vld [vmem:[#allocation5 + $0x38] sm:$0xff]   ;;  %v1171_v37 = vld [vmem:[#allocation5 + $0x180] sm:$0xff]  }
  0x8d   :  { %1443 = vmatpush3.bf16.msra.mxu1 %v1141_v11  ;;  %v1146_v35 = vld [vmem:[#allocation5 + $0xb8] sm:$0xff]   ;;  %v120_v40 = vld [vmem:[#allocation2 + $0x1c] sm:$0xff]  ;;  %v121_v41 = vld [vmem:[#allocation2 + $0x24] sm:$0xff] }
  0x8e   :  { %1445 = vmatprep.subr.bf16.mxu1 %v1150_v13  ;;  %v1155_v42 = vld [vmem:[#allocation5 + $0x100] sm:$0xff]   ;;  %v1164_v43 = vld [vmem:[#allocation5 + $0x148] sm:$0xff]   ;;  %v132_v45 = vunpack.c.h.bf16 %v120_v40  ;;  %v134_v46 = vunpack.c.h.bf16 %v121_v41  ;;  %v131_v47 = vunpack.c.l.bf16 %v120_v40  ;;  %v133_v48 = vunpack.c.l.bf16 %v121_v41  ;;  %v118_v49 = vld [vmem:[#allocation2 + $0x10] sm:$0xff] }
  0x8f   :  { %1415 = vmatpush3.bf16.msra.mxu0 %v1126_v15  ;;  %v1172_v44 = vld [vmem:[#allocation5 + $0x188] sm:$0xff]   ;;  %v119_v50 = vld [vmem:[#allocation2 + $0x18] ss:$28 sps:$4 sm:$0xff]   ;;  %v1165_v52 = vld [vmem:[#allocation5 + $0x150] sm:$0xff]   ;;  %v129_v54 = vunpack.c.h.bf16 %v118_v49  ;;  %v128_v8 = vunpack.c.l.bf16 %v118_v49 }
  0x90   :  { %1417 = vmatprep.subr.bf16.mxu0 %v1135_v19  ;;  %v1156_v51 = vld [vmem:[#allocation5 + $0x108] sm:$0xff]   ;;  %v1173_v53 = vld [vmem:[#allocation5 + $0x190] sm:$0xff]   ;;  %v130_v55 = vunpack.c.l.bf16 %v119_v50  ;;  %v1166_v57 = vld [vmem:[#allocation5 + $0x158] sm:$0xff]   ;;  %v137_v3 = vunpack.c.h.bf16 %v119_v50 }
  0x91   :  { %1447 = vmatpush3.bf16.msra.mxu1 %v1142_v16  ;;  %v1157_v56 = vld [vmem:[#allocation5 + $0x110] sm:$0xff]   ;;  %v1174_v58 = vld [vmem:[#allocation5 + $0x198] sm:$0xff]   ;;  %v1167_v60 = vld [vmem:[#allocation5 + $0x160] sm:$0xff]  }
  0x92   :  { %1449 = vmatprep.subr.bf16.mxu1 %v1151_v20  ;;  %v1158_v59 = vld [vmem:[#allocation5 + $0x118] sm:$0xff]   ;;  %v1175_v61 = vld [vmem:[#allocation5 + $0x1a0] sm:$0xff]   ;;  %v1168_v63 = vld [vmem:[#allocation5 + $0x168] sm:$0xff]  }
  0x93   :  { %1419 = vmatpush3.bf16.msra.mxu0 %v1127_v22  ;;  %v1159_v62 = vld [vmem:[#allocation5 + $0x120] sm:$0xff]   ;;  %v1176_v0 = vld [vmem:[#allocation5 + $0x1a8] sm:$0xff]   ;;  %v1169_v2 = vld [vmem:[#allocation5 + $0x170] sm:$0xff]  }
  0x94   :  { %1421 = vmatprep.subr.bf16.mxu0 %v1136_v24  ;;  %v1160_v1 = vld [vmem:[#allocation5 + $0x128] sm:$0xff]   ;;  %v1161_v4 = vld [vmem:[#allocation5 + $0x130] sm:$0xff]   ;;  %v1170_v5 = vld [vmem:[#allocation5 + $0x178] sm:$0xff]  }
  0x95   :  { %1451 = vmatpush3.bf16.msra.mxu1 %v1143_v23  ;;  %v1162_v6 = vld [vmem:[#allocation5 + $0x138] sm:$0xff]   ;;  %v691_v13 = vld [vmem:[#allocation8 + $0x10] sm:$0xff]  ;;  %v692_v16 = vld [vmem:[#allocation8 + $0x18] sm:$0xff] }
  0x96   :  { %1453 = vmatprep.subr.bf16.mxu1 %v1152_v25  ;;  %v122_v7 = vld [vmem:[#allocation2 + $0x2c] sm:$0xff]  ;;  %v1524_v18 = vpack.c.bf16 %v692_v16, %v691_v13  ;;  %v778_v20 = vld [vmem:[#allocation11 + $0x8] sm:$0xff]  ;;  %v779_v21 = vld [vmem:[#allocation11 + $0x10] sm:$0xff] }
  0x97   :  { %1423 = vmatpush3.bf16.msra.mxu0 %v1128_v26  ;;  %v136_v9 = vunpack.c.h.bf16 %v122_v7  ;;  %v135_v10 = vunpack.c.l.bf16 %v122_v7  ;;  %v689_v11 = vld [vmem:[#allocation8] sm:$0xff]  ;;  %v690_v12 = vld [vmem:[#allocation8 + $0x8] sm:$0xff] }
  0x98   :  { %1425 = vmatprep.subr.bf16.mxu0 %v1137_v28  ;;  %v1521_v15 = vpack.c.bf16 %v690_v12, %v689_v11  ;;  %v777_v19 = vld [vmem:[#allocation11] sm:$0xff]  ;;  %v780_v23 = vld [vmem:[#allocation11 + $0x18] sm:$0xff]  ;;  %v782_v26 = vld [vmem:[#allocation11 + $0x28] sm:$0xff] }
  0x99   :  { %1455 = vmatpush3.bf16.msra.mxu1 %v1144_v27  ;;  %v1527_v22 = vpack.c.bf16 %v778_v20, %v777_v19  ;;  %v1530_v24 = vpack.c.bf16 %v780_v23, %v779_v21  ;;  %v781_v25 = vld [vmem:[#allocation11 + $0x20] sm:$0xff]  ;;  %v783_v28 = vld [vmem:[#allocation11 + $0x30] sm:$0xff] }
  0x9a   :  { %1457 = vmatprep.subr.bf16.mxu1 %v1153_v29  ;;  %v1533_v27 = vpack.c.bf16 %v782_v26, %v781_v25  ;;  %v784_v29 = vld [vmem:[#allocation11 + $0x38] sm:$0xff] }
  0x9b   :  { %1427 = vmatpush3.bf16.msra.mxu0 %v1129_v30  ;;  %v1536_v30 = vpack.c.bf16 %v784_v29, %v783_v28  ;;  %v792_v25 = vld [vmem:[#allocation11 + $0x78] sm:$0xff] }
  0x9c   :  { %1429 = vmatprep.subr.bf16.mxu0 %v1138_v32  ;;  %v786_v32 = vld [vmem:[#allocation11 + $0x48] sm:$0xff] }
  0x9d   :  { %1459 = vmatpush3.bf16.msra.mxu1 %v1145_v31  ;;  %v785_v31 = vld [vmem:[#allocation11 + $0x40] sm:$0xff] }
  0x9e   :  { %1461 = vmatprep.subr.bf16.mxu1 %v1154_v33  ;;  %v1539_v33 = vpack.c.bf16 %v786_v32, %v785_v31  ;;  %v907_v32 = vld [vmem:[#allocation13] ss:$0 sm:$0xff] }
  0x9f   :  { %1431 = vmatpush3.bf16.msra.mxu0 %v1130_v34  ;;  %v787_v34 = vld [vmem:[#allocation11 + $0x50] sm:$0xff] }
  0xa0   :  { %1465 = vmatprep.subr.bf16.mxu0 %v1163_v36 }
  0xa1   :  { %1463 = vmatpush3.bf16.msra.mxu1 %v1146_v35  ;;  %v788_v35 = vld [vmem:[#allocation11 + $0x58] sm:$0xff] }
  0xa2   :  { %1497 = vmatprep.subr.bf16.mxu1 %v1171_v37  ;;  %433 = vmatmul.mubr.f32.vlgmr.msra.gmra.mrb[0].mxu0 %v124_v38  ;;  %v1542_v36 = vpack.c.bf16 %v788_v35, %v787_v34  ;;  %v790_v38 = vld [vmem:[#allocation11 + $0x68] sm:$0xff] }
  0xa3   :  { %1467 = vmatpush3.bf16.msra.mxu0 %v1155_v42  ;;  %437 = vmatprep.mubr.f32.mxu0 %v132_v45  ;;  %v902_v42 = vld [vmem:[#allocation7] ss:$0 sm:$0xff] }
  0xa4   :  { %508 = vmatmul.mubr.f32.vlgmr.msra.gmra.mrb[0].mxu1 %v126_v39  ;;  %1469 = vmatprep.subr.bf16.mxu0 %v1164_v43 }
  0xa5   :  { %1499 = vmatpush3.bf16.msra.mxu1 %v1171_v37  ;;  %512 = vmatprep.mubr.f32.mxu1 %v134_v46  ;;  %v789_v37 = vld [vmem:[#allocation11 + $0x60] sm:$0xff] }
  0xa6   :  { %1501 = vmatprep.subr.bf16.mxu1 %v1172_v44  ;;  %438 = vmatmul.mubr.f32.gmra.mrb[2].mxu0 %v131_v47  ;;  %v1545_v39 = vpack.c.bf16 %v790_v38, %v789_v37 }
  0xa7   :  { %1471 = vmatpush3.bf16.msra.mxu0 %v1156_v51  ;;  %582 = vmatprep.mubr.f32.mxu0 %v129_v54 }
  0xa8   :  { %513 = vmatmul.mubr.f32.gmra.mrb[2].mxu1 %v133_v48  ;;  %1473 = vmatprep.subr.bf16.mxu0 %v1165_v52 }
  0xa9   :  { %1503 = vmatpush3.bf16.msra.mxu1 %v1172_v44  ;;  %1351 = vmatprep.mubr.msk.f32.mxu1 %vm361_vm0, %v130_v55 }
  0xaa   :  { %1505 = vmatprep.subr.bf16.mxu1 %v1173_v53 }
  0xab   :  { %1475 = vmatpush3.bf16.msra.mxu0 %v1157_v56 }
  0xac   :  { %1477 = vmatprep.subr.bf16.mxu0 %v1166_v57 }
  0xad   :  { %1507 = vmatpush3.bf16.msra.mxu1 %v1173_v53 }
  0xae   :  { %1509 = vmatprep.subr.bf16.mxu1 %v1174_v58 }
  0xaf   :  { %1479 = vmatpush3.bf16.msra.mxu0 %v1158_v59 }
  0xb0   :  { %1481 = vmatprep.subr.bf16.mxu0 %v1167_v60 }
  0xb1   :  { %1511 = vmatpush3.bf16.msra.mxu1 %v1174_v58 }
  0xb2   :  { %1513 = vmatprep.subr.bf16.mxu1 %v1175_v61 }
  0xb3   :  { %1483 = vmatpush3.bf16.msra.mxu0 %v1159_v62 }
  0xb4   :  { %1485 = vmatprep.subr.bf16.mxu0 %v1168_v63 }
  0xb5   :  { %1515 = vmatpush3.bf16.msra.mxu1 %v1175_v61 }
  0xb6   :  { %1517 = vmatprep.subr.bf16.mxu1 %v1176_v0 }
  0xb7   :  { %1487 = vmatpush3.bf16.msra.mxu0 %v1160_v1 }
  0xb8   :  { %1489 = vmatprep.subr.bf16.mxu0 %v1169_v2 }
  0xb9   :  { %1519 = vmatpush3.bf16.msra.mxu1 %v1176_v0 }
  0xba   :  { %1520 = vmatprep.subr.bf16.mxu1 %v1770_v14 }
  0xbb   :  { %1491 = vmatpush3.bf16.msra.mxu0 %v1161_v4 }
  0xbc   :  { %1352 = vmatmul.mubr.msk.f32.vlgmr.msra.gmra.mrb[4].mxu1 %vm361_vm0, %v137_v3  ;;  %1493 = vmatprep.subr.bf16.mxu0 %v1170_v5 }
  0xbd   :  { %1362 = vmatprep.mubr.msk.f32.mxu1 %vm1771_vm1, %v1772_v17  ;;  %1522 = vmatpush3.bf16.msra.mxu1 %v1521_v15 }
  0xbe   :  { %1523 = vmatprep.subr.bf16.mxu1 %v1770_v14 }
  0xbf   :  { %1495 = vmatpush3.bf16.msra.mxu0 %v1162_v6 }
  0xc0   :  { %1526 = vmatprep.subr.bf16.mxu0 %v1770_v14 }
  0xc1   :  { %1525 = vmatpush3.bf16.msra.mxu1 %v1524_v18 }
  0xc2   :  { %583 = vmatmul.mubr.f32.vlgmr.msra.gmra.mrb[4].mxu0 %v128_v8 }
  0xc3   :  { %587 = vmatprep.mubr.f32.mxu0 %v136_v9  ;;  %1528 = vmatpush3.bf16.msra.mxu0 %v1527_v22 }
  0xc4   :  { %1529 = vmatprep.subr.bf16.mxu0 %v1770_v14 }
  0xc6   :  { %588 = vmatmul.mubr.f32.gmra.mrb[6].mxu0 %v135_v10 }
  0xc7   :  { %1397 = vmatprep.mubr.msk.f32.mxu0 %vm1771_vm1, %v1772_v17  ;;  %1531 = vmatpush3.bf16.msra.mxu0 %v1530_v24  ;;  %v791_v24 = vld [vmem:[#allocation11 + $0x70] sm:$0xff] }
  0xc8   :  { %1532 = vmatprep.subr.bf16.mxu0 %v1770_v14  ;;  %v1548_v26 = vpack.c.bf16 %v792_v25, %v791_v24 }
  0xcb   :  { %1534 = vmatpush3.bf16.msra.mxu0 %v1533_v27  ;;  %v905_v27 = vld [vmem:[#allocation10] ss:$0 sm:$0xff] }
  0xcc   :  { %1535 = vmatprep.subr.bf16.mxu0 %v1770_v14 }
  0xcf   :  { %1537 = vmatpush3.bf16.msra.mxu0 %v1536_v30 }
  0xd0   :  { %1538 = vmatprep.subr.bf16.mxu0 %v1770_v14 }
  0xd3   :  { %1540 = vmatpush3.bf16.msra.mxu0 %v1539_v33 }
  0xd4   :  { %1541 = vmatprep.subr.bf16.mxu0 %v1770_v14 }
  0xd7   :  { %1543 = vmatpush3.bf16.msra.mxu0 %v1542_v36 }
  0xd8   :  { %1544 = vmatprep.subr.bf16.mxu0 %v1770_v14 }
  0xdb   :  { %1546 = vmatpush3.bf16.msra.mxu0 %v1545_v39 }
  0xdc   :  { %1547 = vmatprep.subr.bf16.mxu0 %v1770_v14 }
  0xdf   :  { %1549 = vmatpush3.bf16.msra.mxu0 %v1548_v26 }
 0x175   :  { %v1209_v40 = vpop.f32.mrb[0].mxu0 }
 0x176   :  { %v1210_v43 = vpop.f32.mrb[1].mxu0 }
 0x177   :  { %v1247_v41 = vpop.f32.mrb[0].mxu1  ;;  %v1211_v45 = vadd.f32 %v1210_v43, %v1209_v40 }
 0x178   :  { %v1248_v44 = vpop.f32.mrb[1].mxu1 }
 0x179   :  { %v1249_v46 = vadd.f32 %v1248_v44, %v1247_v41  ;;  %v435_v47 = vadd.f32 %v1211_v45, %v902_v42  ;;  %v1212_v48 = vpop.f32.mrb[2].mxu0 }
 0x17a   :  { %v1213_v50 = vpop.f32.mrb[3].mxu0 }
 0x17b   :  { %v1250_v49 = vpop.f32.mrb[2].mxu1  ;;  %v510_v52 = vadd.f32 %v1249_v46, %v435_v47  ;;  %v1214_v53 = vadd.f32 %v1213_v50, %v1212_v48 }
 0x17c   :  { %v1251_v51 = vpop.f32.mrb[3].mxu1 }
 0x17d   :  { %v1252_v54 = vadd.f32 %v1251_v51, %v1250_v49  ;;  %v440_v55 = vadd.f32 %v1214_v53, %v902_v42 }
 0x17f   :  { %v515_v56 = vadd.f32 %v1252_v54, %v440_v55 }
 0x18f   :  { %v1353_v57 = vpop.f32.mrb[4].mxu1 }
 0x190   :  { %v659_v58 = vpop.f32.mrb[5].mxu1 }
 0x195   :  { %v1285_v59 = vpop.f32.mrb[4].mxu0 }
 0x196   :  { %v1286_v60 = vpop.f32.mrb[5].mxu0 }
 0x197   :  { %v1287_v61 = vadd.f32 %v1286_v60, %v1285_v59 }
 0x199   :  { %v1288_v62 = vpop.f32.mrb[6].mxu0  ;;  %v585_v63 = vadd.f32 %v1287_v61, %v510_v52 }
 0x19a   :  { %v1289_v0 = vpop.f32.mrb[7].mxu0 }
 0x19b   :  { %v1290_v1 = vadd.f32 %v1289_v0, %v1288_v62  ;;  %v660_v2 = vadd.f32 %v659_v58, %v585_v63 }
 0x19d   :  { %v590_v3 = vadd.f32 %v1290_v1, %v515_v56  ;;  %vm668_vm2 = vcmp.ge.f32.partialorder %v660_v2, 0.0  ;;  %v670_v4 = vmul.f32 0.01, %v660_v2 }
 0x19f   :  { %v665_v5 = vadd.f32 %v1353_v57, %v590_v3  ;;  %v672_v6 = vsel %vm668_vm2, %v660_v2, %v670_v4 }
 0x1a0   :  { %v675_v7 = vsel %vm674_vm3, %v672_v6, -inf }
 0x1a1   :  { %vm669_vm4 = vcmp.ge.f32.partialorder %v665_v5, 0.0  ;;  %v671_v8 = vmul.f32 0.01, %v665_v5  ;;  %v676_v9 = vrot.slane %v675_v7, 4 }
 0x1a3   :  { %v673_v10 = vsel %vm669_vm4, %v665_v5, %v671_v8  ;;  %v677_v11 = vmax.f32 %v675_v7, %v676_v9 }
 0x1a4   :  { %v682_v12 = vsel %vm674_vm3, %v673_v10, -inf }
 0x1a5   :  { %v678_v13 = vrot.slane %v677_v11, 2  ;;  %v683_v14 = vrot.slane %v682_v12, 4 }
 0x1a7   :  { %v679_v15 = vmax.f32 %v677_v11, %v678_v13  ;;  %v684_v16 = vmax.f32 %v682_v12, %v683_v14 }
 0x1a9   :  { %v685_v17 = vrot.slane %v684_v16, 2  ;;  %v680_v18 = vrot.slane %v679_v15, 1 }
 0x1ab   :  { %v686_v19 = vmax.f32 %v684_v16, %v685_v17  ;;  %v681_v21 = vmax.f32 %v679_v15, %v680_v18 }
 0x1ad   :  { %v687_v20 = vrot.slane %v686_v19, 1 }
 0x1af   :  { %v688_v22 = vmax.f32 %v686_v19, %v687_v20 }
 0x1b1   :  { %v703_v23 = vsel %vm702_vm5, %v688_v22, %v681_v21 }
 0x1b2   :  { %1363 = vmatmul.mubr.msk.f32.vlgmr.msra.gmra.mrb[6].mxu1 %vm674_vm3, %v703_v23 }
 0x285   :  { %v772_v28 = vpop.f32.mrb[6].mxu1 }
 0x286   :  { %v773_v29 = vadd.f32 %v905_v27, %v772_v28  ;;  %v1364_v30 = vpop.f32.mrb[7].mxu1 }
 0x288   :  { %v776_v31 = vmax.f32 %v773_v29, 0.0 }
 0x28a   :  { %1398 = vmatmul.mubr.f32.vlgmr.msra.gmra.mrb[8].mxu0 %v776_v31 }
 0x35d   :  { %v866_v33 = vpop.f32.mrb[8].mxu0 }
 0x35e   :  { %v867_v34 = vadd.f32 %v907_v32, %v866_v33  ;;  %v1399_v35 = vpop.f32.mrb[9].mxu0 }
 0x360   :  { %v871_v36 = vsel %vm870_vm6, %v867_v34, -inf }
 0x361   :  { %872 = vmax.xlane.f32.xlu0 %v871_v36 }
 0x3ee   :  { %v873_v37 = vpop.xlane.xlu0 %872 }
 0x3ef   :  { %v874_v38 = vsub.f32 %v867_v34, %v873_v37 }
 0x3f1   :  { %v875_v39 = vmul.f32 1.442695, %v874_v38 }
 0x3f3   :  { %1567 = vpow2.f32 %v875_v39 }
 0x3fd   :  { %v1568_v40 = vpop.eup %1567 }
 0x3fe   :  { %v877_v41 = vsel %vm870_vm6, %v1568_v40, 0.0 }
 0x3ff   :  { %878 = vadd.xlane.f32.xlu0 %v877_v41 }
 0x48c   :  { %v879_v42 = vpop.xlane.xlu0 %878 }
 0x48d   :  { %1569 = vlog2.f32 %v879_v42 }
 0x497   :  { %v1570_v43 = vpop.eup %1569 }
 0x498   :  { %v881_v44 = vmul.f32 0.6931472, %v1570_v43 }
 0x49a   :  { %v882_v45 = vsub.f32 %v874_v38, %v881_v44 }
 0x49c   :  { %883 = vst.msk [vmem:[#allocation14] sm:$0x3] %vm870_vm6, %v882_v45 }
 0x49d   :  { %1736 = shalt.err (!%p1733_p4)
}
 0x49e   :  { %s1737_s17 = scalar_lea.hbm %s1932_s7, 32 }
 0x49f   :  { %p1738_p5 = scmp.ne.s32.totalorder %s1932_s7, %s1737_s17  ;;  %p1741_p6 = scmp.lt.u32.totalorder %s1737_s17, %s1932_s7 }
 0x4a1   :  { %p1743_p7 = pnand %p1741_p6, %p1738_p5 }
 0x4a3   :  { %1746 = shalt.err (!%p1743_p7)
}
 0x4a4   :  { %893 = dma.vmem_to_hbm [thread:$0]  %s891_s3, 32, %s1932_s7, [#allocation4]  }
 0x4a5   :  { %1755 = dma.done.wait [#allocation4], 32  }
 0x4a6   :  { %1756 = vsyncadd [#allocation4], 4294967264 }
 0x4a7   :  { %897 = vsyncpa [#allocation3], 1 }
 0x4a8   :  { %898 = vsyncpa [#allocation6], 1 }
 0x4a9   :  { %899 = vsyncpa [#allocation9], 1 }
 0x4aa   :  { %900 = vsyncpa [#allocation12], 1 }
 0x4ab   :  { %901 = vsyncpa [#allocation4], 1 }

</bundles_post_ra>
